<compile_context>
chip_gen: v7x
topology: tpu7x:2x2x1
jax: 0.10.0
libtpu: 0.0.40
codegen_flags: <defaults>
</compile_context>

<pallas_src>
import functools
import math

import jax
import jax.numpy as jnp
from jax.experimental import pallas as pl
from jax.experimental.pallas import tpu as pltpu


def _round_up(x, m):
    return (x + m - 1) // m * m


def _conv3x3_relu_kernel(x_ref, w_ref, b_ref, o_ref, patch_ref, *, bt, h, w, cin):
    """One batch tile, one Cout tile.

    x_ref:     (bt, h+2, w+2, cin)  bf16 zero-padded NHWC input (halo of 1)
    w_ref:     (9*cin, tco)         bf16 weights, rows ordered (dy, dx, cin)
    b_ref:     (1, tco)             f32 bias
    o_ref:     (bt, tco, h*w)       output, channel-major (lane-dense h*w)
    patch_ref: (bt*h*w, 9*cin)      bf16 im2col scratch in VMEM
    """
    hw = h * w
    # Build the im2col patch once in VMEM: 9 shifted-window slice-stores per image.
    # Every column block is written, so no scratch init is needed.
    for b in range(bt):
        for dy in range(3):
            for dx in range(3):
                tap = dy * 3 + dx
                patch_ref[b * hw:(b + 1) * hw, tap * cin:(tap + 1) * cin] = (
                    x_ref[b, dy:dy + h, dx:dx + w, :].reshape(hw, cin))

    # Single deep-K MXU dot, f32 accumulation, fused bias + ReLU epilogue.
    acc = jnp.dot(patch_ref[...], w_ref[...], preferred_element_type=jnp.float32)
    acc = jnp.maximum(acc + b_ref[...], 0.0)

    # Channel-major store: one XLU transpose per image (XLU slot is otherwise idle),
    # so the wrapper never round-trips the output through HBM to reach NCHW.
    for b in range(bt):
        o_ref[b] = jnp.transpose(
            acc[b * hw:(b + 1) * hw, :], (1, 0)).astype(o_ref.dtype)


def _pick_batch_tile(n, h, w, cin_p, tco, budget_bytes):
    """Largest divisor of n whose per-grid-step VMEM footprint fits the budget."""
    def estimate(bt):
        x_blk = bt * (h + 2) * (w + 2) * cin_p * 2        # bf16 input block
        out_blk = bt * tco * h * w * 4                     # f32 output block
        patch = bt * h * w * 9 * cin_p * 2                 # bf16 im2col scratch
        acc = bt * h * w * tco * 4                         # f32 dot result
        wgt = 9 * cin_p * tco * 2 + tco * 4                # weights + bias
        return 2 * (x_blk + out_blk) + patch + acc + 2 * wgt   # double-buffered I/O

    bt = 1
    for cand in range(1, n + 1):
        if n % cand == 0 and estimate(cand) <= budget_bytes:
            bt = cand
    return bt


def _vmem_limit_bytes():
    # Per-generation-safe scoped VMEM limit (v5e/v6e: 128 MiB physical, v7x: 64 MiB).
    try:
        cap = pltpu.get_tpu_info().vmem_capacity_bytes
    except Exception:
        cap = 64 * 1024 * 1024
    return int(min(cap // 2, 64 * 1024 * 1024))


def single_conv(x_nchw, w_oihw, bias, *, out_dtype=jnp.float32):
    """Conv2d(in_ch, out_ch, 3, padding=1) + ReLU.  NCHW f32 in, NCHW out."""
    n, cin, h, w = x_nchw.shape
    cout = w_oihw.shape[0]

    cin_p = _round_up(cin, 16)        # bf16 sublane-pair aligned tap slices
    cout_p = _round_up(cout, 128)     # lane-dense weight/bias columns
    # 256-wide Cout tiles fill the 2x256 MXU on v6e/v7x; 128 keeps v5e optimal and
    # avoids padded compute when cout is not a multiple of 256.
    tco = 256 if cout_p % 256 == 0 else 128

    vmem_limit = _vmem_limit_bytes()
    bt = _pick_batch_tile(n, h, w, cin_p, tco, budget_bytes=vmem_limit // 4)
    hw = h * w

    # NCHW -> NHWC, zero-pad spatial halo + channel tail, cast to bf16.
    x = jnp.transpose(x_nchw, (0, 2, 3, 1))
    x = jnp.pad(x, ((0, 0), (1, 1), (1, 1), (0, cin_p - cin))).astype(jnp.bfloat16)

    # (Cout, Cin, 3, 3) -> (3, 3, Cin_p, Cout_p) -> (9*Cin_p, Cout_p), bf16.
    wk = jnp.transpose(w_oihw, (2, 3, 1, 0))
    wk = jnp.pad(wk, ((0, 0), (0, 0), (0, cin_p - cin), (0, cout_p - cout)))
    wk = wk.reshape(9 * cin_p, cout_p).astype(jnp.bfloat16)
    b2 = jnp.pad(bias, (0, cout_p - cout)).reshape(1, cout_p).astype(jnp.float32)

    grid = (n // bt, cout_p // tco)
    out = pl.pallas_call(
        functools.partial(_conv3x3_relu_kernel, bt=bt, h=h, w=w, cin=cin_p),
        out_shape=jax.ShapeDtypeStruct((n, cout_p, hw), out_dtype),
        grid=grid,
        in_specs=[
            pl.BlockSpec((bt, h + 2, w + 2, cin_p), lambda i, j: (i, 0, 0, 0)),
            pl.BlockSpec((9 * cin_p, tco), lambda i, j: (0, j)),
            pl.BlockSpec((1, tco), lambda i, j: (0, j)),
        ],
        out_specs=pl.BlockSpec((bt, tco, hw), lambda i, j: (i, j, 0)),
        scratch_shapes=[pltpu.VMEM((bt * hw, 9 * cin_p), jnp.bfloat16)],
        compiler_params=pltpu.CompilerParams(
            dimension_semantics=("parallel", "parallel"),
            vmem_limit_bytes=vmem_limit,
        ),
    )(x, wk, b2)

    # Output is already channel-major: NCHW falls out of a free (contiguous) reshape.
    out = out.reshape(n, cout_p, h, w)
    if cout_p != cout:
        out = out[:, :cout]
    return out


if __name__ == "__main__":
    key = jax.random.PRNGKey(0)
    kx, kw, kb = jax.random.split(key, 3)

    n, in_ch, out_ch, hh, ww = 2, 4, 128, 16, 16
    x = jax.random.normal(kx, (n, in_ch, hh, ww), jnp.float32)
    bound = 1.0 / math.sqrt(in_ch * 9)
    wgt = jax.random.uniform(kw, (out_ch, in_ch, 3, 3), jnp.float32, -bound, bound)
    bias = jax.random.uniform(kb, (out_ch,), jnp.float32, -bound, bound)

    out = jax.jit(single_conv)(x, wgt, bias)
    out = jax.block_until_ready(out)
    assert out.shape == (n, out_ch, hh, ww), out.shape
    assert bool(jnp.all(jnp.isfinite(out)))

    # Reference: XLA conv + bias + relu in f32 (tolerance covers bf16 cast in kernel).
    ref = jax.lax.conv_general_dilated(
        x, wgt, window_strides=(1, 1), padding=((1, 1), (1, 1)),
        dimension_numbers=("NCHW", "OIHW", "NCHW"))
    ref = jnp.maximum(ref + bias.reshape(1, -1, 1, 1), 0.0)
    err = float(jnp.max(jnp.abs(out - ref)))
    assert err < 3e-2, err

    print("KERNEL_OK")
</pallas_src>

<mosaic_0001>
module attributes {stable_mosaic.version = 11 : i64} {
  func.func @_conv3x3_relu_kernel(%arg0: i32, %arg1: i32, %arg2: memref<2x18x18x16xbf16, #tpu.memory_space<vmem>>, %arg3: memref<144x128xbf16, #tpu.memory_space<vmem>>, %arg4: memref<1x128xf32, #tpu.memory_space<vmem>>, %arg5: memref<2x128x256xf32, #tpu.memory_space<vmem>>, %arg6: memref<512x144xbf16, #tpu.memory_space<vmem>>) attributes {dimension_semantics = [#tpu.dimension_semantics<parallel>, #tpu.dimension_semantics<parallel>], iteration_bounds = array<i64: 1, 1>, scalar_prefetch = 0 : i64, scratch_operands = 1 : i64, tpu.core_type = #tpu.core_type<tc>, window_params = [{transform_indices = @transform_0, window_bounds = array<i64: 2, 18, 18, 16>}, {transform_indices = @transform_1, window_bounds = array<i64: 144, 128>}, {transform_indices = @transform_2, window_bounds = array<i64: 1, 128>}, {transform_indices = @transform_3, window_bounds = array<i64: 2, 128, 256>}]} {
    %c0 = arith.constant 0 : index
    %c0_0 = arith.constant 0 : index
    %c0_1 = arith.constant 0 : index
    %c0_2 = arith.constant 0 : index
    %0 = vector.load %arg2[%c0, %c0_0, %c0_1, %c0_2] : memref<2x18x18x16xbf16, #tpu.memory_space<vmem>>, vector<1x16x16x16xbf16>
    %1 = vector.shape_cast %0 : vector<1x16x16x16xbf16> to vector<16x16x16xbf16>
    %2 = vector.shape_cast %1 : vector<16x16x16xbf16> to vector<256x16xbf16>
    %c0_3 = arith.constant 0 : index
    %c0_4 = arith.constant 0 : index
    %3 = vector.load %arg6[%c0_3, %c0_4] : memref<512x144xbf16, #tpu.memory_space<vmem>>, vector<256x16xbf16>
    tpu.vector_store %arg6[%c0_3, %c0_4], %2 {strides = array<i32>} : memref<512x144xbf16, #tpu.memory_space<vmem>>, vector<256x16xbf16>,
    %c0_5 = arith.constant 0 : index
    %c0_6 = arith.constant 0 : index
    %c1 = arith.constant 1 : index
    %c0_7 = arith.constant 0 : index
    %4 = vector.load %arg2[%c0_5, %c0_6, %c1, %c0_7] : memref<2x18x18x16xbf16, #tpu.memory_space<vmem>>, vector<1x16x16x16xbf16>
    %5 = vector.shape_cast %4 : vector<1x16x16x16xbf16> to vector<16x16x16xbf16>
    %6 = vector.shape_cast %5 : vector<16x16x16xbf16> to vector<256x16xbf16>
    %c0_8 = arith.constant 0 : index
    %c16 = arith.constant 16 : index
    %7 = vector.load %arg6[%c0_8, %c16] : memref<512x144xbf16, #tpu.memory_space<vmem>>, vector<256x16xbf16>
    tpu.vector_store %arg6[%c0_8, %c16], %6 {strides = array<i32>} : memref<512x144xbf16, #tpu.memory_space<vmem>>, vector<256x16xbf16>,
    %c0_9 = arith.constant 0 : index
    %c0_10 = arith.constant 0 : index
    %c2 = arith.constant 2 : index
    %c0_11 = arith.constant 0 : index
    %8 = vector.load %arg2[%c0_9, %c0_10, %c2, %c0_11] : memref<2x18x18x16xbf16, #tpu.memory_space<vmem>>, vector<1x16x16x16xbf16>
    %9 = vector.shape_cast %8 : vector<1x16x16x16xbf16> to vector<16x16x16xbf16>
    %10 = vector.shape_cast %9 : vector<16x16x16xbf16> to vector<256x16xbf16>
    %c0_12 = arith.constant 0 : index
    %c32 = arith.constant 32 : index
    %11 = vector.load %arg6[%c0_12, %c32] : memref<512x144xbf16, #tpu.memory_space<vmem>>, vector<256x16xbf16>
    tpu.vector_store %arg6[%c0_12, %c32], %10 {strides = array<i32>} : memref<512x144xbf16, #tpu.memory_space<vmem>>, vector<256x16xbf16>,
    %c0_13 = arith.constant 0 : index
    %c1_14 = arith.constant 1 : index
    %c0_15 = arith.constant 0 : index
    %c0_16 = arith.constant 0 : index
    %12 = vector.load %arg2[%c0_13, %c1_14, %c0_15, %c0_16] : memref<2x18x18x16xbf16, #tpu.memory_space<vmem>>, vector<1x16x16x16xbf16>
    %13 = vector.shape_cast %12 : vector<1x16x16x16xbf16> to vector<16x16x16xbf16>
    %14 = vector.shape_cast %13 : vector<16x16x16xbf16> to vector<256x16xbf16>
    %c0_17 = arith.constant 0 : index
    %c48 = arith.constant 48 : index
    %15 = vector.load %arg6[%c0_17, %c48] : memref<512x144xbf16, #tpu.memory_space<vmem>>, vector<256x16xbf16>
    tpu.vector_store %arg6[%c0_17, %c48], %14 {strides = array<i32>} : memref<512x144xbf16, #tpu.memory_space<vmem>>, vector<256x16xbf16>,
    %c0_18 = arith.constant 0 : index
    %c1_19 = arith.constant 1 : index
    %c1_20 = arith.constant 1 : index
    %c0_21 = arith.constant 0 : index
    %16 = vector.load %arg2[%c0_18, %c1_19, %c1_20, %c0_21] : memref<2x18x18x16xbf16, #tpu.memory_space<vmem>>, vector<1x16x16x16xbf16>
    %17 = vector.shape_cast %16 : vector<1x16x16x16xbf16> to vector<16x16x16xbf16>
    %18 = vector.shape_cast %17 : vector<16x16x16xbf16> to vector<256x16xbf16>
    %c0_22 = arith.constant 0 : index
    %c64 = arith.constant 64 : index
    %19 = vector.load %arg6[%c0_22, %c64] : memref<512x144xbf16, #tpu.memory_space<vmem>>, vector<256x16xbf16>
    tpu.vector_store %arg6[%c0_22, %c64], %18 {strides = array<i32>} : memref<512x144xbf16, #tpu.memory_space<vmem>>, vector<256x16xbf16>,
    %c0_23 = arith.constant 0 : index
    %c1_24 = arith.constant 1 : index
    %c2_25 = arith.constant 2 : index
    %c0_26 = arith.constant 0 : index
    %20 = vector.load %arg2[%c0_23, %c1_24, %c2_25, %c0_26] : memref<2x18x18x16xbf16, #tpu.memory_space<vmem>>, vector<1x16x16x16xbf16>
    %21 = vector.shape_cast %20 : vector<1x16x16x16xbf16> to vector<16x16x16xbf16>
    %22 = vector.shape_cast %21 : vector<16x16x16xbf16> to vector<256x16xbf16>
    %c0_27 = arith.constant 0 : index
    %c80 = arith.constant 80 : index
    %23 = vector.load %arg6[%c0_27, %c80] : memref<512x144xbf16, #tpu.memory_space<vmem>>, vector<256x16xbf16>
    tpu.vector_store %arg6[%c0_27, %c80], %22 {strides = array<i32>} : memref<512x144xbf16, #tpu.memory_space<vmem>>, vector<256x16xbf16>,
    %c0_28 = arith.constant 0 : index
    %c2_29 = arith.constant 2 : index
    %c0_30 = arith.constant 0 : index
    %c0_31 = arith.constant 0 : index
    %24 = vector.load %arg2[%c0_28, %c2_29, %c0_30, %c0_31] : memref<2x18x18x16xbf16, #tpu.memory_space<vmem>>, vector<1x16x16x16xbf16>
    %25 = vector.shape_cast %24 : vector<1x16x16x16xbf16> to vector<16x16x16xbf16>
    %26 = vector.shape_cast %25 : vector<16x16x16xbf16> to vector<256x16xbf16>
    %c0_32 = arith.constant 0 : index
    %c96 = arith.constant 96 : index
    %27 = vector.load %arg6[%c0_32, %c96] : memref<512x144xbf16, #tpu.memory_space<vmem>>, vector<256x16xbf16>
    tpu.vector_store %arg6[%c0_32, %c96], %26 {strides = array<i32>} : memref<512x144xbf16, #tpu.memory_space<vmem>>, vector<256x16xbf16>,
    %c0_33 = arith.constant 0 : index
    %c2_34 = arith.constant 2 : index
    %c1_35 = arith.constant 1 : index
    %c0_36 = arith.constant 0 : index
    %28 = vector.load %arg2[%c0_33, %c2_34, %c1_35, %c0_36] : memref<2x18x18x16xbf16, #tpu.memory_space<vmem>>, vector<1x16x16x16xbf16>
    %29 = vector.shape_cast %28 : vector<1x16x16x16xbf16> to vector<16x16x16xbf16>
    %30 = vector.shape_cast %29 : vector<16x16x16xbf16> to vector<256x16xbf16>
    %c0_37 = arith.constant 0 : index
    %c112 = arith.constant 112 : index
    %31 = vector.load %arg6[%c0_37, %c112] : memref<512x144xbf16, #tpu.memory_space<vmem>>, vector<256x16xbf16>
    tpu.vector_store %arg6[%c0_37, %c112], %30 {strides = array<i32>} : memref<512x144xbf16, #tpu.memory_space<vmem>>, vector<256x16xbf16>,
    %c0_38 = arith.constant 0 : index
    %c2_39 = arith.constant 2 : index
    %c2_40 = arith.constant 2 : index
    %c0_41 = arith.constant 0 : index
    %32 = vector.load %arg2[%c0_38, %c2_39, %c2_40, %c0_41] : memref<2x18x18x16xbf16, #tpu.memory_space<vmem>>, vector<1x16x16x16xbf16>
    %33 = vector.shape_cast %32 : vector<1x16x16x16xbf16> to vector<16x16x16xbf16>
    %34 = vector.shape_cast %33 : vector<16x16x16xbf16> to vector<256x16xbf16>
    %c0_42 = arith.constant 0 : index
    %c128 = arith.constant 128 : index
    %35 = vector.load %arg6[%c0_42, %c128] : memref<512x144xbf16, #tpu.memory_space<vmem>>, vector<256x16xbf16>
    tpu.vector_store %arg6[%c0_42, %c128], %34 {strides = array<i32>} : memref<512x144xbf16, #tpu.memory_space<vmem>>, vector<256x16xbf16>,
    %c1_43 = arith.constant 1 : index
    %c0_44 = arith.constant 0 : index
    %c0_45 = arith.constant 0 : index
    %c0_46 = arith.constant 0 : index
    %36 = vector.load %arg2[%c1_43, %c0_44, %c0_45, %c0_46] : memref<2x18x18x16xbf16, #tpu.memory_space<vmem>>, vector<1x16x16x16xbf16>
    %37 = vector.shape_cast %36 : vector<1x16x16x16xbf16> to vector<16x16x16xbf16>
    %38 = vector.shape_cast %37 : vector<16x16x16xbf16> to vector<256x16xbf16>
    %c256 = arith.constant 256 : index
    %c0_47 = arith.constant 0 : index
    %39 = vector.load %arg6[%c256, %c0_47] : memref<512x144xbf16, #tpu.memory_space<vmem>>, vector<256x16xbf16>
    tpu.vector_store %arg6[%c256, %c0_47], %38 {strides = array<i32>} : memref<512x144xbf16, #tpu.memory_space<vmem>>, vector<256x16xbf16>,
    %c1_48 = arith.constant 1 : index
    %c0_49 = arith.constant 0 : index
    %c1_50 = arith.constant 1 : index
    %c0_51 = arith.constant 0 : index
    %40 = vector.load %arg2[%c1_48, %c0_49, %c1_50, %c0_51] : memref<2x18x18x16xbf16, #tpu.memory_space<vmem>>, vector<1x16x16x16xbf16>
    %41 = vector.shape_cast %40 : vector<1x16x16x16xbf16> to vector<16x16x16xbf16>
    %42 = vector.shape_cast %41 : vector<16x16x16xbf16> to vector<256x16xbf16>
    %c256_52 = arith.constant 256 : index
    %c16_53 = arith.constant 16 : index
    %43 = vector.load %arg6[%c256_52, %c16_53] : memref<512x144xbf16, #tpu.memory_space<vmem>>, vector<256x16xbf16>
    tpu.vector_store %arg6[%c256_52, %c16_53], %42 {strides = array<i32>} : memref<512x144xbf16, #tpu.memory_space<vmem>>, vector<256x16xbf16>,
    %c1_54 = arith.constant 1 : index
    %c0_55 = arith.constant 0 : index
    %c2_56 = arith.constant 2 : index
    %c0_57 = arith.constant 0 : index
    %44 = vector.load %arg2[%c1_54, %c0_55, %c2_56, %c0_57] : memref<2x18x18x16xbf16, #tpu.memory_space<vmem>>, vector<1x16x16x16xbf16>
    %45 = vector.shape_cast %44 : vector<1x16x16x16xbf16> to vector<16x16x16xbf16>
    %46 = vector.shape_cast %45 : vector<16x16x16xbf16> to vector<256x16xbf16>
    %c256_58 = arith.constant 256 : index
    %c32_59 = arith.constant 32 : index
    %47 = vector.load %arg6[%c256_58, %c32_59] : memref<512x144xbf16, #tpu.memory_space<vmem>>, vector<256x16xbf16>
    tpu.vector_store %arg6[%c256_58, %c32_59], %46 {strides = array<i32>} : memref<512x144xbf16, #tpu.memory_space<vmem>>, vector<256x16xbf16>,
    %c1_60 = arith.constant 1 : index
    %c1_61 = arith.constant 1 : index
    %c0_62 = arith.constant 0 : index
    %c0_63 = arith.constant 0 : index
    %48 = vector.load %arg2[%c1_60, %c1_61, %c0_62, %c0_63] : memref<2x18x18x16xbf16, #tpu.memory_space<vmem>>, vector<1x16x16x16xbf16>
    %49 = vector.shape_cast %48 : vector<1x16x16x16xbf16> to vector<16x16x16xbf16>
    %50 = vector.shape_cast %49 : vector<16x16x16xbf16> to vector<256x16xbf16>
    %c256_64 = arith.constant 256 : index
    %c48_65 = arith.constant 48 : index
    %51 = vector.load %arg6[%c256_64, %c48_65] : memref<512x144xbf16, #tpu.memory_space<vmem>>, vector<256x16xbf16>
    tpu.vector_store %arg6[%c256_64, %c48_65], %50 {strides = array<i32>} : memref<512x144xbf16, #tpu.memory_space<vmem>>, vector<256x16xbf16>,
    %c1_66 = arith.constant 1 : index
    %c1_67 = arith.constant 1 : index
    %c1_68 = arith.constant 1 : index
    %c0_69 = arith.constant 0 : index
    %52 = vector.load %arg2[%c1_66, %c1_67, %c1_68, %c0_69] : memref<2x18x18x16xbf16, #tpu.memory_space<vmem>>, vector<1x16x16x16xbf16>
    %53 = vector.shape_cast %52 : vector<1x16x16x16xbf16> to vector<16x16x16xbf16>
    %54 = vector.shape_cast %53 : vector<16x16x16xbf16> to vector<256x16xbf16>
    %c256_70 = arith.constant 256 : index
    %c64_71 = arith.constant 64 : index
    %55 = vector.load %arg6[%c256_70, %c64_71] : memref<512x144xbf16, #tpu.memory_space<vmem>>, vector<256x16xbf16>
    tpu.vector_store %arg6[%c256_70, %c64_71], %54 {strides = array<i32>} : memref<512x144xbf16, #tpu.memory_space<vmem>>, vector<256x16xbf16>,
    %c1_72 = arith.constant 1 : index
    %c1_73 = arith.constant 1 : index
    %c2_74 = arith.constant 2 : index
    %c0_75 = arith.constant 0 : index
    %56 = vector.load %arg2[%c1_72, %c1_73, %c2_74, %c0_75] : memref<2x18x18x16xbf16, #tpu.memory_space<vmem>>, vector<1x16x16x16xbf16>
    %57 = vector.shape_cast %56 : vector<1x16x16x16xbf16> to vector<16x16x16xbf16>
    %58 = vector.shape_cast %57 : vector<16x16x16xbf16> to vector<256x16xbf16>
    %c256_76 = arith.constant 256 : index
    %c80_77 = arith.constant 80 : index
    %59 = vector.load %arg6[%c256_76, %c80_77] : memref<512x144xbf16, #tpu.memory_space<vmem>>, vector<256x16xbf16>
    tpu.vector_store %arg6[%c256_76, %c80_77], %58 {strides = array<i32>} : memref<512x144xbf16, #tpu.memory_space<vmem>>, vector<256x16xbf16>,
    %c1_78 = arith.constant 1 : index
    %c2_79 = arith.constant 2 : index
    %c0_80 = arith.constant 0 : index
    %c0_81 = arith.constant 0 : index
    %60 = vector.load %arg2[%c1_78, %c2_79, %c0_80, %c0_81] : memref<2x18x18x16xbf16, #tpu.memory_space<vmem>>, vector<1x16x16x16xbf16>
    %61 = vector.shape_cast %60 : vector<1x16x16x16xbf16> to vector<16x16x16xbf16>
    %62 = vector.shape_cast %61 : vector<16x16x16xbf16> to vector<256x16xbf16>
    %c256_82 = arith.constant 256 : index
    %c96_83 = arith.constant 96 : index
    %63 = vector.load %arg6[%c256_82, %c96_83] : memref<512x144xbf16, #tpu.memory_space<vmem>>, vector<256x16xbf16>
    tpu.vector_store %arg6[%c256_82, %c96_83], %62 {strides = array<i32>} : memref<512x144xbf16, #tpu.memory_space<vmem>>, vector<256x16xbf16>,
    %c1_84 = arith.constant 1 : index
    %c2_85 = arith.constant 2 : index
    %c1_86 = arith.constant 1 : index
    %c0_87 = arith.constant 0 : index
    %64 = vector.load %arg2[%c1_84, %c2_85, %c1_86, %c0_87] : memref<2x18x18x16xbf16, #tpu.memory_space<vmem>>, vector<1x16x16x16xbf16>
    %65 = vector.shape_cast %64 : vector<1x16x16x16xbf16> to vector<16x16x16xbf16>
    %66 = vector.shape_cast %65 : vector<16x16x16xbf16> to vector<256x16xbf16>
    %c256_88 = arith.constant 256 : index
    %c112_89 = arith.constant 112 : index
    %67 = vector.load %arg6[%c256_88, %c112_89] : memref<512x144xbf16, #tpu.memory_space<vmem>>, vector<256x16xbf16>
    tpu.vector_store %arg6[%c256_88, %c112_89], %66 {strides = array<i32>} : memref<512x144xbf16, #tpu.memory_space<vmem>>, vector<256x16xbf16>,
    %c1_90 = arith.constant 1 : index
    %c2_91 = arith.constant 2 : index
    %c2_92 = arith.constant 2 : index
    %c0_93 = arith.constant 0 : index
    %68 = vector.load %arg2[%c1_90, %c2_91, %c2_92, %c0_93] : memref<2x18x18x16xbf16, #tpu.memory_space<vmem>>, vector<1x16x16x16xbf16>
    %69 = vector.shape_cast %68 : vector<1x16x16x16xbf16> to vector<16x16x16xbf16>
    %70 = vector.shape_cast %69 : vector<16x16x16xbf16> to vector<256x16xbf16>
    %c256_94 = arith.constant 256 : index
    %c128_95 = arith.constant 128 : index
    %71 = vector.load %arg6[%c256_94, %c128_95] : memref<512x144xbf16, #tpu.memory_space<vmem>>, vector<256x16xbf16>
    tpu.vector_store %arg6[%c256_94, %c128_95], %70 {strides = array<i32>} : memref<512x144xbf16, #tpu.memory_space<vmem>>, vector<256x16xbf16>,
    %c0_96 = arith.constant 0 : index
    %c0_97 = arith.constant 0 : index
    %72 = vector.load %arg6[%c0_96, %c0_97] : memref<512x144xbf16, #tpu.memory_space<vmem>>, vector<512x144xbf16>
    %c0_98 = arith.constant 0 : index
    %c0_99 = arith.constant 0 : index
    %73 = vector.load %arg3[%c0_98, %c0_99] : memref<144x128xbf16, #tpu.memory_space<vmem>>, vector<144x128xbf16>
    %cst = arith.constant dense<0.000000e+00> : vector<512x128xf32>
    %74 = tpu.matmul %72, %73, %cst {dimension_numbers = #tpu.dot_dimension_numbers<[1], [0], [0], [1], [0, 0, 1, 1], [], []>} : vector<512x144xbf16>, vector<144x128xbf16>, vector<512x128xf32> -> vector<512x128xf32>
    %c0_100 = arith.constant 0 : index
    %c0_101 = arith.constant 0 : index
    %75 = vector.load %arg4[%c0_100, %c0_101] : memref<1x128xf32, #tpu.memory_space<vmem>>, vector<1x128xf32>
    %76 = vector.broadcast %75 : vector<1x128xf32> to vector<512x128xf32>
    %77 = arith.addf %74, %76 : vector<512x128xf32>
    %cst_102 = arith.constant 0.000000e+00 : f32
    %78 = vector.broadcast %cst_102 : f32 to vector<512x128xf32>
    %79 = arith.maximumf %77, %78 : vector<512x128xf32>
    %80 = vector.extract_strided_slice %79 {offsets = [0, 0], sizes = [256, 128], strides = [1, 1]} : vector<512x128xf32> to vector<256x128xf32>
    %81 = tpu.transpose %80, [1, 0] : vector<256x128xf32> -> vector<128x256xf32>
    %c0_103 = arith.constant 0 : index
    %c0_104 = arith.constant 0 : index
    %c0_105 = arith.constant 0 : index
    %82 = vector.load %arg5[%c0_103, %c0_104, %c0_105] : memref<2x128x256xf32, #tpu.memory_space<vmem>>, vector<1x128x256xf32>
    %83 = vector.shape_cast %82 : vector<1x128x256xf32> to vector<128x256xf32>
    %84 = vector.shape_cast %81 : vector<128x256xf32> to vector<1x128x256xf32>
    tpu.vector_store %arg5[%c0_103, %c0_104, %c0_105], %84 {strides = array<i32>} : memref<2x128x256xf32, #tpu.memory_space<vmem>>, vector<1x128x256xf32>,
    %85 = vector.extract_strided_slice %79 {offsets = [256, 0], sizes = [256, 128], strides = [1, 1]} : vector<512x128xf32> to vector<256x128xf32>
    %86 = tpu.transpose %85, [1, 0] : vector<256x128xf32> -> vector<128x256xf32>
    %c1_106 = arith.constant 1 : index
    %c0_107 = arith.constant 0 : index
    %c0_108 = arith.constant 0 : index
    %87 = vector.load %arg5[%c1_106, %c0_107, %c0_108] : memref<2x128x256xf32, #tpu.memory_space<vmem>>, vector<1x128x256xf32>
    %88 = vector.shape_cast %87 : vector<1x128x256xf32> to vector<128x256xf32>
    %89 = vector.shape_cast %86 : vector<128x256xf32> to vector<1x128x256xf32>
    tpu.vector_store %arg5[%c1_106, %c0_107, %c0_108], %89 {strides = array<i32>} : memref<2x128x256xf32, #tpu.memory_space<vmem>>, vector<1x128x256xf32>,
    return
  }
  func.func @transform_0(%arg0: i32, %arg1: i32) -> (i32, i32, i32, i32) {
    %c0_i32 = arith.constant 0 : i32
    %c0_i32_0 = arith.constant 0 : i32
    %c0_i32_1 = arith.constant 0 : i32
    %c0_i32_2 = arith.constant 0 : i32
    return %arg0, %c0_i32, %c0_i32_0, %c0_i32_1 : i32, i32, i32, i32
  }
  func.func @transform_1(%arg0: i32, %arg1: i32) -> (i32, i32) {
    %c0_i32 = arith.constant 0 : i32
    %c0_i32_0 = arith.constant 0 : i32
    return %c0_i32, %arg1 : i32, i32
  }
  func.func @transform_2(%arg0: i32, %arg1: i32) -> (i32, i32) {
    %c0_i32 = arith.constant 0 : i32
    %c0_i32_0 = arith.constant 0 : i32
    return %c0_i32, %arg1 : i32, i32
  }
  func.func @transform_3(%arg0: i32, %arg1: i32) -> (i32, i32, i32) {
    %c0_i32 = arith.constant 0 : i32
    %c0_i32_0 = arith.constant 0 : i32
    return %arg0, %arg1, %c0_i32 : i32, i32, i32
  }
}

</mosaic_0001>

<bundles_post_ra>
// kernel: single_conv.1
= control target key start
LH: loop header
LB: loop body
LE: loop exit
PB: predicated region body
PF: predicated region fallthrough
CT: control target
= control target key end

     0   :  { %vm208_vm0 = vsmask.f32 3328  ;;  %vm209_vm1 = vsmask.f32 7440  ;;  %s8165_s9 = smov 16   ;;  %vm804_vm3 = vcmask 1042432   ;;  %s12307_s0 = inlined_call_operand.vmem [shape: bf16[2,18,18,16], index: 0, kind: input, shape index: {}]   ;;  %s12308_s1 = inlined_call_operand.vmem [shape: bf16[144,128], index: 1, kind: input, shape index: {}]   ;;  %s12309_s2 = inlined_call_operand.vmem [shape: f32[1,128], index: 2, kind: input, shape index: {}]   ;;  %s12310_s3 = inlined_call_operand.vmem [shape: f32[2,128,256], index: 3, kind: output, shape index: {}]  }
   0x1   :  { %v166_v0 = vld [vmem:[%s12307_s0 + $0x18] sm:$0xf]  ;;  %v167_v1 = vld [vmem:[%s12307_s0 + $0x1c] sm:$0xf]  ;;  %v168_v2 = vld [vmem:[%s12307_s0 + $0x20] sm:$0x1] }
   0x2   :  { %v260_v3 = vshrl.u32 %v166_v0, 16  ;;  %v263_v4 = vshll.u32 %v166_v0, 16  ;;  %v269_v5 = vshll.u32 %v167_v1, 16  ;;  %v273_v6 = vshrl.u32 %v167_v1, 16  ;;  %v160_v7 = vld [vmem:[%s12307_s0] sm:$0xf]  ;;  %vm8219_vm2 = vmor %vm208_vm0, %vm209_vm1 }
   0x3   :  { %v279_v8 = vshll.u32 %v168_v2, 16  ;;  %v161_v9 = vld [vmem:[%s12307_s0 + $0x4] sm:$0xf]  ;;  %v162_v10 = vld [vmem:[%s12307_s0 + $0x8] sm:$0x1]  ;;  %v212_v11 = vshrl.u32 %v160_v7, 16 }
   0x4   :  { %v262_v12 = vrot.slane %v260_v3, 4  ;;  %v265_v13 = vrot.slane %v263_v4, 5  ;;  %v271_v14 = vrot.slane %v269_v5, 5  ;;  %v275_v15 = vrot.slane %v273_v6, 4  ;;  %v169_v16 = vld [vmem:[%s12307_s0 + $0x24] sm:$0xf] }
   0x5   :  { %v281_v17 = vrot.slane %v279_v8, 5  ;;  %v214_v18 = vrot.slane %v212_v11, 4  ;;  %v215_v19 = vshll.u32 %v160_v7, 16  ;;  %v221_v20 = vshll.u32 %v161_v9, 16  ;;  %v170_v25 = vld [vmem:[%s12307_s0 + $0x28] sm:$0xf] }
   0x6   :  { %v266_v21 = vor.u32 %v265_v13, %v262_v12  ;;  %v276_v22 = vor.u32 %v275_v15, %v271_v14  ;;  %v225_v23 = vshrl.u32 %v161_v9, 16  ;;  %v231_v24 = vshll.u32 %v162_v10, 16  ;;  %v171_v35 = vld [vmem:[%s12307_s0 + $0x2c] sm:$0x1]  ;;  %v164_v45 = vld [vmem:[%s12307_s0 + $0x10] sm:$0xf] }
   0x7   :  { %v217_v27 = vrot.slane %v215_v19, 5  ;;  %v223_v28 = vrot.slane %v221_v20, 5  ;;  %v284_v29 = vshrl.u32 %v169_v16, 16  ;;  %v287_v30 = vshll.u32 %v169_v16, 16  ;;  %v163_v40 = vld [vmem:[%s12307_s0 + $0xc] sm:$0xf] }
   0x8   :  { %v267_v31 = vrot.slane %v266_v21, 4  ;;  %v277_v32 = vrot.slane %v276_v22, 4  ;;  %v227_v33 = vrot.slane %v225_v23, 4  ;;  %v233_v34 = vrot.slane %v231_v24, 5  ;;  %v165_v53 = vld [vmem:[%s12307_s0 + $0x14] sm:$0x1] }
   0x9   :  { %v218_v36 = vor.u32 %v217_v27, %v214_v18  ;;  %v286_v37 = vrot.slane %v284_v29, 4  ;;  %v289_v38 = vrot.slane %v287_v30, 5  ;;  %v293_v39 = vshll.u32 %v170_v25, 16  ;;  %v175_v59 = vld [vmem:[%s12307_s0 + $0x3c] sm:$0xf]  ;;  %s8166_s20 = smov 32  }
   0xa   :  { %v272_v41 = vsel %vm8219_vm2, %v267_v31, %v271_v14  ;;  %v282_v42 = vsel %vm8219_vm2, %v277_v32, %v281_v17  ;;  %v228_v43 = vor.u32 %v227_v33, %v223_v28  ;;  %v297_v44 = vshrl.u32 %v170_v25, 16  ;;  %v176_v0 = vld [vmem:[%s12307_s0 + $0x40] sm:$0xf]  ;;  %v177_v8 = vld [vmem:[%s12307_s0 + $0x44] sm:$0x1]  ;;  %s8167_s28 = smov 48  }
   0xb   :  { %v6953_v46 = vcombine.low %v272_v41, %v282_v42  ;;  %v219_v47 = vrot.slane %v218_v36, 4  ;;  %v290_v48 = vor.u32 %v289_v38, %v286_v37  ;;  %v295_v49 = vrot.slane %v293_v39, 5  ;;  %v172_v14 = vld [vmem:[%s12307_s0 + $0x30] sm:$0xf]  ;;  %v173_v19 = vld [vmem:[%s12307_s0 + $0x34] sm:$0xf] }
   0xc   :  { %v229_v50 = vrot.slane %v228_v43, 4  ;;  %v299_v51 = vrot.slane %v297_v44, 4  ;;  %v303_v52 = vshll.u32 %v171_v35, 16  ;;  %v236_v54 = vshrl.u32 %v163_v40, 16  ;;  %v174_v31 = vld [vmem:[%s12307_s0 + $0x38] sm:$0x1] }
   0xd   :  { %647 = vrot.lane.b32.xlu1 %v6953_v46, %s8165_s9  ;;  %v224_v55 = vsel %vm8219_vm2, %v219_v47, %v223_v28  ;;  %v291_v56 = vrot.slane %v290_v48, 4  ;;  %v239_v57 = vshll.u32 %v163_v40, 16  ;;  %v245_v58 = vshll.u32 %v164_v45, 16  ;;  %v182_v46 = vld [vmem:[%s12307_s0 + $0x58] sm:$0xf]  ;;  %s8168_s19 = smov 64  }
   0xe   :  { %v234_v60 = vsel %vm8219_vm2, %v229_v50, %v233_v34  ;;  %v300_v61 = vor.u32 %v299_v51, %v295_v49  ;;  %v305_v62 = vrot.slane %v303_v52, 5  ;;  %v238_v63 = vrot.slane %v236_v54, 4  ;;  %v181_v34 = vld [vmem:[%s12307_s0 + $0x54] sm:$0xf]  ;;  %v183_v52 = vld [vmem:[%s12307_s0 + $0x5c] sm:$0x1] }
   0xf   :  { %v6951_v1 = vcombine.low %v224_v55, %v234_v60  ;;  %v296_v2 = vsel %vm8219_vm2, %v291_v56, %v295_v49  ;;  %v241_v3 = vrot.slane %v239_v57, 5  ;;  %v247_v4 = vrot.slane %v245_v58, 5  ;;  %s8169_s25 = smov 80   ;;  %s8170_s29 = smov 96  }
  0x10   :  { %v301_v5 = vrot.slane %v300_v61, 4  ;;  %v249_v6 = vshrl.u32 %v164_v45, 16  ;;  %v255_v7 = vshll.u32 %v165_v53, 16  ;;  %v332_v9 = vshrl.u32 %v175_v59, 16  ;;  %v178_v53 = vld [vmem:[%s12307_s0 + $0x48] sm:$0xf] }
  0x11   :  { %643 = vrot.lane.b32.xlu0 %v6951_v1, %s8165_s9  ;;  %v242_v10 = vor.u32 %v241_v3, %v238_v63  ;;  %v335_v11 = vshll.u32 %v175_v59, 16  ;;  %v341_v12 = vshll.u32 %v176_v0, 16  ;;  %v345_v13 = vshrl.u32 %v176_v0, 16  ;;  %v179_v1 = vld [vmem:[%s12307_s0 + $0x4c] sm:$0xf]  ;;  %s8171_s16 = smov 112  }
  0x12   :  { %v306_v15 = vsel %vm8219_vm2, %v301_v5, %v305_v62  ;;  %v251_v16 = vrot.slane %v249_v6, 4  ;;  %v257_v17 = vrot.slane %v255_v7, 5  ;;  %v334_v18 = vrot.slane %v332_v9, 4  ;;  %v180_v6 = vld [vmem:[%s12307_s0 + $0x50] sm:$0x1] }
  0x13   :  { %v6954_v20 = vcombine.low %v296_v2, %v306_v15  ;;  %v243_v21 = vrot.slane %v242_v10, 4  ;;  %v337_v22 = vrot.slane %v335_v11, 5  ;;  %v343_v23 = vrot.slane %v341_v12, 5  ;;  %v187_v12 = vld [vmem:[%s12307_s0 + $0x6c] sm:$0xf] }
  0x14   :  { %v252_v24 = vor.u32 %v251_v16, %v247_v4  ;;  %v347_v25 = vrot.slane %v345_v13, 4  ;;  %v351_v27 = vshll.u32 %v177_v8, 16  ;;  %v308_v28 = vshrl.u32 %v172_v14, 16 }
  0x15   :  { %649 = vrot.lane.b32.xlu1 %v6954_v20, %s8165_s9  ;;  %v248_v29 = vsel %vm8219_vm2, %v243_v21, %v247_v4  ;;  %v338_v30 = vor.u32 %v337_v22, %v334_v18  ;;  %v311_v32 = vshll.u32 %v172_v14, 16  ;;  %v317_v33 = vshll.u32 %v173_v19, 16  ;;  %v188_v21 = vld [vmem:[%s12307_s0 + $0x70] sm:$0xf] }
  0x16   :  { %v253_v35 = vrot.slane %v252_v24, 4  ;;  %v348_v36 = vor.u32 %v347_v25, %v343_v23  ;;  %v353_v37 = vrot.slane %v351_v27, 5  ;;  %v310_v38 = vrot.slane %v308_v28, 4  ;;  %v189_v25 = vld [vmem:[%s12307_s0 + $0x74] sm:$0x1] }
  0x17   :  { %v339_v39 = vrot.slane %v338_v30, 4  ;;  %v313_v40 = vrot.slane %v311_v32, 5  ;;  %v319_v41 = vrot.slane %v317_v33, 5  ;;  %v321_v42 = vshrl.u32 %v173_v19, 16 }
  0x18   :  { %v258_v43 = vsel %vm8219_vm2, %v253_v35, %v257_v17  ;;  %v349_v44 = vrot.slane %v348_v36, 4  ;;  %v327_v45 = vshll.u32 %v174_v31, 16  ;;  %v380_v47 = vshrl.u32 %v181_v34, 16  ;;  %v184_v36 = vld [vmem:[%s12307_s0 + $0x60] sm:$0xf] }
  0x19   :  { %v6952_v48 = vcombine.low %v248_v29, %v258_v43  ;;  %v344_v49 = vsel %vm8219_vm2, %v339_v39, %v343_v23  ;;  %v314_v50 = vor.u32 %v313_v40, %v310_v38  ;;  %v323_v51 = vrot.slane %v321_v42, 4 }
  0x1a   :  { %v354_v54 = vsel %vm8219_vm2, %v349_v44, %v353_v37  ;;  %v329_v55 = vrot.slane %v327_v45, 5  ;;  %v382_v56 = vrot.slane %v380_v47, 4  ;;  %v383_v57 = vshll.u32 %v181_v34, 16 }
  0x1b   :  { %645 = vrot.lane.b32.xlu0 %v6952_v48, %s8165_s9  ;;  %v6956_v58 = vcombine.low %v344_v49, %v354_v54  ;;  %v315_v59 = vrot.slane %v314_v50, 4  ;;  %v324_v60 = vor.u32 %v323_v51, %v319_v41  ;;  %v389_v61 = vshll.u32 %v182_v46, 16  ;;  %v186_v49 = vld [vmem:[%s12307_s0 + $0x68] sm:$0x1] }
  0x1c   :  { %v385_v62 = vrot.slane %v383_v57, 5  ;;  %v393_v63 = vshrl.u32 %v182_v46, 16  ;;  %v399_v0 = vshll.u32 %v183_v52, 16  ;;  %v356_v2 = vshrl.u32 %v178_v53, 16 }
  0x1d   :  { %653 = vrot.lane.b32.xlu1 %v6956_v58, %s8165_s9  ;;  %v320_v3 = vsel %vm8219_vm2, %v315_v59, %v319_v41  ;;  %v325_v4 = vrot.slane %v324_v60, 4  ;;  %v391_v5 = vrot.slane %v389_v61, 5  ;;  %v359_v7 = vshll.u32 %v178_v53, 16  ;;  %v185_v41 = vld [vmem:[%s12307_s0 + $0x64] sm:$0xf] }
  0x1e   :  { %v386_v8 = vor.u32 %v385_v62, %v382_v56  ;;  %v395_v9 = vrot.slane %v393_v63, 4  ;;  %v401_v10 = vrot.slane %v399_v0, 5  ;;  %v358_v11 = vrot.slane %v356_v2, 4  ;;  %v194_v60 = vld [vmem:[%s12307_s0 + $0x88] sm:$0xf] }
  0x1f   :  { %v330_v13 = vsel %vm8219_vm2, %v325_v4, %v329_v55  ;;  %v361_v14 = vrot.slane %v359_v7, 5  ;;  %v365_v15 = vshll.u32 %v179_v1, 16  ;;  %v369_v16 = vshrl.u32 %v179_v1, 16  ;;  %v193_v55 = vld [vmem:[%s12307_s0 + $0x84] sm:$0xf] }
  0x20   :  { %v6955_v17 = vcombine.low %v320_v3, %v330_v13  ;;  %v387_v18 = vrot.slane %v386_v8, 4  ;;  %v396_v19 = vor.u32 %v395_v9, %v391_v5  ;;  %v375_v20 = vshll.u32 %v180_v6, 16  ;;  %v195_v8 = vld [vmem:[%s12307_s0 + $0x8c] sm:$0x1] }
  0x21   :  { %v362_v22 = vor.u32 %v361_v14, %v358_v11  ;;  %v367_v23 = vrot.slane %v365_v15, 5  ;;  %v371_v24 = vrot.slane %v369_v16, 4  ;;  %v428_v27 = vshrl.u32 %v187_v12, 16  ;;  %v191_v15 = vld [vmem:[%s12307_s0 + $0x7c] sm:$0xf] }
  0x22   :  { %651 = vrot.lane.b32.xlu0 %v6955_v17, %s8165_s9  ;;  %v392_v28 = vsel %vm8219_vm2, %v387_v18, %v391_v5  ;;  %v397_v29 = vrot.slane %v396_v19, 4  ;;  %v377_v30 = vrot.slane %v375_v20, 5  ;;  %v431_v31 = vshll.u32 %v187_v12, 16 }
  0x23   :  { %v363_v32 = vrot.slane %v362_v22, 4  ;;  %v372_v33 = vor.u32 %v371_v24, %v367_v23  ;;  %v430_v34 = vrot.slane %v428_v27, 4  ;;  %v437_v35 = vshll.u32 %v188_v21, 16  ;;  %v192_v27 = vld [vmem:[%s12307_s0 + $0x80] sm:$0x1] }
  0x24   :  { %v402_v37 = vsel %vm8219_vm2, %v397_v29, %v401_v10  ;;  %v433_v38 = vrot.slane %v431_v31, 5  ;;  %v441_v39 = vshrl.u32 %v188_v21, 16  ;;  %v447_v40 = vshll.u32 %v189_v25, 16  ;;  %v190_v10 = vld [vmem:[%s12307_s0 + $0x78] sm:$0xf] }
  0x25   :  { %v6958_v42 = vcombine.low %v392_v28, %v402_v37  ;;  %v368_v43 = vsel %vm8219_vm2, %v363_v32, %v367_v23  ;;  %v373_v44 = vrot.slane %v372_v33, 4  ;;  %v439_v45 = vrot.slane %v437_v35, 5  ;;  %v200_v35 = vld [vmem:[%s12307_s0 + $0xa0] sm:$0xf] }
  0x26   :  { %v434_v46 = vor.u32 %v433_v38, %v430_v34  ;;  %v443_v47 = vrot.slane %v441_v39, 4  ;;  %v449_v48 = vrot.slane %v447_v40, 5  ;;  %v404_v50 = vshrl.u32 %v184_v36, 16 }
  0x27   :  { %657 = vrot.lane.b32.xlu1 %v6958_v42, %s8165_s9  ;;  %v378_v51 = vsel %vm8219_vm2, %v373_v44, %v377_v30  ;;  %v407_v52 = vshll.u32 %v184_v36, 16  ;;  %v413_v53 = vshll.u32 %v185_v41, 16  ;;  %v417_v54 = vshrl.u32 %v185_v41, 16  ;;  %v199_v30 = vld [vmem:[%s12307_s0 + $0x9c] sm:$0xf] }
  0x28   :  { %v6957_v56 = vcombine.low %v368_v43, %v378_v51  ;;  %v435_v57 = vrot.slane %v434_v46, 4  ;;  %v444_v58 = vor.u32 %v443_v47, %v439_v45  ;;  %v406_v59 = vrot.slane %v404_v50, 4  ;;  %v201_v43 = vld [vmem:[%s12307_s0 + $0xa4] sm:$0x1] }
  0x29   :  { %v409_v61 = vrot.slane %v407_v52, 5  ;;  %v415_v62 = vrot.slane %v413_v53, 5  ;;  %v419_v63 = vrot.slane %v417_v54, 4  ;;  %v423_v0 = vshll.u32 %v186_v49, 16  ;;  %v196_v49 = vld [vmem:[%s12307_s0 + $0x90] sm:$0xf] }
  0x2a   :  { %655 = vrot.lane.b32.xlu0 %v6957_v56, %s8165_s9  ;;  %v440_v1 = vsel %vm8219_vm2, %v435_v57, %v439_v45  ;;  %v445_v2 = vrot.slane %v444_v58, 4  ;;  %v476_v3 = vshrl.u32 %v193_v55, 16  ;;  %v479_v4 = vshll.u32 %v193_v55, 16  ;;  %v197_v58 = vld [vmem:[%s12307_s0 + $0x94] sm:$0xf] }
  0x2b   :  { %v410_v5 = vor.u32 %v409_v61, %v406_v59  ;;  %v420_v6 = vor.u32 %v419_v63, %v415_v62  ;;  %v425_v7 = vrot.slane %v423_v0, 5  ;;  %v485_v9 = vshll.u32 %v194_v60, 16 }
  0x2c   :  { %v450_v11 = vsel %vm8219_vm2, %v445_v2, %v449_v48  ;;  %v478_v12 = vrot.slane %v476_v3, 4  ;;  %v481_v13 = vrot.slane %v479_v4, 5  ;;  %v489_v14 = vshrl.u32 %v194_v60, 16  ;;  %v198_v2 = vld [vmem:[%s12307_s0 + $0x98] sm:$0x1] }
  0x2d   :  { %v6960_v16 = vcombine.low %v440_v1, %v450_v11  ;;  %v411_v17 = vrot.slane %v410_v5, 4  ;;  %v421_v18 = vrot.slane %v420_v6, 4  ;;  %v487_v19 = vrot.slane %v485_v9, 5 }
  0x2e   :  { %v482_v20 = vor.u32 %v481_v13, %v478_v12  ;;  %v491_v21 = vrot.slane %v489_v14, 4  ;;  %v495_v22 = vshll.u32 %v195_v8, 16  ;;  %v452_v23 = vshrl.u32 %v190_v10, 16  ;;  %v205_v8 = vld [vmem:[%s12307_s0 + $0xb4] sm:$0xf] }
  0x2f   :  { %661 = vrot.lane.b32.xlu1 %v6960_v16, %s8165_s9  ;;  %v416_v24 = vsel %vm8219_vm2, %v411_v17, %v415_v62  ;;  %v426_v25 = vsel %vm8219_vm2, %v421_v18, %v425_v7  ;;  %v455_v28 = vshll.u32 %v190_v10, 16  ;;  %v461_v29 = vshll.u32 %v191_v15, 16  ;;  %v206_v13 = vld [vmem:[%s12307_s0 + $0xb8] sm:$0xf] }
  0x30   :  { %v6959_v31 = vcombine.low %v416_v24, %v426_v25  ;;  %v483_v32 = vrot.slane %v482_v20, 4  ;;  %v492_v33 = vor.u32 %v491_v21, %v487_v19  ;;  %v497_v34 = vrot.slane %v495_v22, 5  ;;  %v207_v21 = vld [vmem:[%s12307_s0 + $0xbc] sm:$0x1] }
  0x31   :  { %v454_v36 = vrot.slane %v452_v23, 4  ;;  %v457_v37 = vrot.slane %v455_v28, 5  ;;  %v463_v38 = vrot.slane %v461_v29, 5  ;;  %v465_v39 = vshrl.u32 %v191_v15, 16  ;;  %v202_v28 = vld [vmem:[%s12307_s0 + $0xa8] sm:$0xf] }
  0x32   :  { %659 = vrot.lane.b32.xlu0 %v6959_v31, %s8165_s9  ;;  %v488_v40 = vsel %vm8219_vm2, %v483_v32, %v487_v19  ;;  %v493_v41 = vrot.slane %v492_v33, 4  ;;  %v471_v42 = vshll.u32 %v192_v27, 16  ;;  %v524_v44 = vshrl.u32 %v199_v30, 16  ;;  %v203_v33 = vld [vmem:[%s12307_s0 + $0xac] sm:$0xf] }
  0x33   :  { %v458_v45 = vor.u32 %v457_v37, %v454_v36  ;;  %v467_v46 = vrot.slane %v465_v39, 4  ;;  %v527_v47 = vshll.u32 %v199_v30, 16  ;;  %v533_v48 = vshll.u32 %v200_v35, 16 }
  0x34   :  { %v498_v50 = vsel %vm8219_vm2, %v493_v41, %v497_v34  ;;  %v473_v51 = vrot.slane %v471_v42, 5  ;;  %v526_v52 = vrot.slane %v524_v44, 4  ;;  %v537_v53 = vshrl.u32 %v200_v35, 16 }
  0x35   :  { %v6962_v54 = vcombine.low %v488_v40, %v498_v50  ;;  %v459_v55 = vrot.slane %v458_v45, 4  ;;  %v468_v56 = vor.u32 %v467_v46, %v463_v38  ;;  %v529_v57 = vrot.slane %v527_v47, 5 }
  0x36   :  { %v535_v59 = vrot.slane %v533_v48, 5  ;;  %v539_v60 = vrot.slane %v537_v53, 4  ;;  %v543_v61 = vshll.u32 %v201_v43, 16  ;;  %v500_v62 = vshrl.u32 %v196_v49, 16  ;;  %v711_v43 = vld [vmem:[%s12307_s0 + $0xc] sm:$0xe] }
  0x37   :  { %665 = vrot.lane.b32.xlu1 %v6962_v54, %s8165_s9  ;;  %v464_v63 = vsel %vm8219_vm2, %v459_v55, %v463_v38  ;;  %v469_v0 = vrot.slane %v468_v56, 4  ;;  %v530_v1 = vor.u32 %v529_v57, %v526_v52  ;;  %v503_v3 = vshll.u32 %v196_v49, 16  ;;  %v204_v38 = vld [vmem:[%s12307_s0 + $0xb0] sm:$0x1]  ;;  %v713_v53 = vld [vmem:[%s12307_s0 + $0x14] sm:$0x1] }
  0x38   :  { %v540_v4 = vor.u32 %v539_v60, %v535_v59  ;;  %v545_v5 = vrot.slane %v543_v61, 5  ;;  %v502_v6 = vrot.slane %v500_v62, 4  ;;  %v509_v7 = vshll.u32 %v197_v58, 16  ;;  %v712_v48 = vld [vmem:[%s12307_s0 + $0x10] sm:$0xf] }
  0x39   :  { %v474_v9 = vsel %vm8219_vm2, %v469_v0, %v473_v51  ;;  %v531_v10 = vrot.slane %v530_v1, 4  ;;  %v505_v11 = vrot.slane %v503_v3, 5  ;;  %v513_v12 = vshrl.u32 %v197_v58, 16  ;;  %v708_v58 = vld [vmem:[%s12307_s0] sm:$0xe] }
  0x3a   :  { %v6961_v14 = vcombine.low %v464_v63, %v474_v9  ;;  %v541_v15 = vrot.slane %v540_v4, 4  ;;  %v511_v16 = vrot.slane %v509_v7, 5  ;;  %v519_v17 = vshll.u32 %v198_v2, 16  ;;  %v710_v63 = vld [vmem:[%s12307_s0 + $0x8] sm:$0x1] }
  0x3b   :  { %v536_v18 = vsel %vm8219_vm2, %v531_v10, %v535_v59  ;;  %v506_v19 = vor.u32 %v505_v11, %v502_v6  ;;  %v515_v20 = vrot.slane %v513_v12, 4  ;;  %v572_v22 = vshrl.u32 %v205_v8, 16  ;;  %v709_v59 = vld [vmem:[%s12307_s0 + $0x4] sm:$0xf]  ;;  %v718_v6 = vld [vmem:[%s12307_s0 + $0x28] sm:$0xf] }
  0x3c   :  { %663 = vrot.lane.b32.xlu0 %v6961_v14, %s8165_s9  ;;  %v546_v23 = vsel %vm8219_vm2, %v541_v15, %v545_v5  ;;  %v521_v24 = vrot.slane %v519_v17, 5  ;;  %v575_v25 = vshll.u32 %v205_v8, 16  ;;  %v581_v27 = vshll.u32 %v206_v13, 16  ;;  %v717_v0 = vld [vmem:[%s12307_s0 + $0x24] sm:$0xe] }
  0x3d   :  { %v6964_v29 = vcombine.low %v536_v18, %v546_v23  ;;  %v507_v30 = vrot.slane %v506_v19, 4  ;;  %v516_v31 = vor.u32 %v515_v20, %v511_v16  ;;  %v574_v32 = vrot.slane %v572_v22, 4  ;;  %v719_v11 = vld [vmem:[%s12307_s0 + $0x2c] sm:$0x1]  ;;  %v715_v17 = vld [vmem:[%s12307_s0 + $0x1c] sm:$0xf] }
  0x3e   :  { %v577_v34 = vrot.slane %v575_v25, 5  ;;  %v583_v35 = vrot.slane %v581_v27, 5  ;;  %v585_v36 = vshrl.u32 %v206_v13, 16  ;;  %v591_v37 = vshll.u32 %v207_v21, 16  ;;  %v716_v18 = vld [vmem:[%s12307_s0 + $0x20] sm:$0x1] }
  0x3f   :  { %669 = vrot.lane.b32.xlu1 %v6964_v29, %s8165_s9  ;;  %v512_v39 = vsel %vm8219_vm2, %v507_v30, %v511_v16  ;;  %v517_v40 = vrot.slane %v516_v31, 4  ;;  %v548_v41 = vshrl.u32 %v202_v28, 16  ;;  %v551_v42 = vshll.u32 %v202_v28, 16  ;;  %v714_v16 = vld [vmem:[%s12307_s0 + $0x18] sm:$0xe] }
  0x40   :  { %v578_v44 = vor.u32 %v577_v34, %v574_v32  ;;  %v587_v45 = vrot.slane %v585_v36, 4  ;;  %v593_v46 = vrot.slane %v591_v37, 5  ;;  %v557_v47 = vshll.u32 %v203_v33, 16  ;;  %v723_v23 = vld [vmem:[%s12307_s0 + $0x3c] sm:$0xe] }
  0x41   :  { %v522_v49 = vsel %vm8219_vm2, %v517_v40, %v521_v24  ;;  %v550_v50 = vrot.slane %v548_v41, 4  ;;  %v553_v51 = vrot.slane %v551_v42, 5  ;;  %v561_v52 = vshrl.u32 %v203_v33, 16  ;;  %v724_v24 = vld [vmem:[%s12307_s0 + $0x40] sm:$0xf] }
  0x42   :  { %v6963_v54 = vcombine.low %v512_v39, %v522_v49  ;;  %v579_v55 = vrot.slane %v578_v44, 4  ;;  %v588_v56 = vor.u32 %v587_v45, %v583_v35  ;;  %v559_v57 = vrot.slane %v557_v47, 5  ;;  %v725_v30 = vld [vmem:[%s12307_s0 + $0x44] sm:$0x1]  ;;  %v721_v36 = vld [vmem:[%s12307_s0 + $0x34] sm:$0xf] }
  0x43   :  { %v554_v60 = vor.u32 %v553_v51, %v550_v50  ;;  %v563_v61 = vrot.slane %v561_v52, 4  ;;  %v567_v62 = vshll.u32 %v204_v38, 16  ;;  %vm805_vm4 = vcmask 1046532   ;;  %v722_v41 = vld [vmem:[%s12307_s0 + $0x38] sm:$0x1] }
  0x44   :  { %667 = vrot.lane.b32.xlu0 %v6963_v54, %s8165_s9  ;;  %v584_v1 = vsel %vm8219_vm2, %v579_v55, %v583_v35  ;;  %v589_v2 = vrot.slane %v588_v56, 4  ;;  %vm8437_vm5 = vmor %vm804_vm3, %vm805_vm4  ;;  %v6968_v4 = vrot.slane %v711_v43, 9  ;;  %v816_v5 = vrot.slane %v712_v48, 5  ;;  %v720_v35 = vld [vmem:[%s12307_s0 + $0x30] sm:$0xe] }
  0x45   :  { %v555_v7 = vrot.slane %v554_v60, 4  ;;  %v564_v8 = vor.u32 %v563_v61, %v559_v57  ;;  %v569_v9 = vrot.slane %v567_v62, 5  ;;  %v819_v10 = vrot.slane %v713_v53, 5  ;;  %v729_v42 = vld [vmem:[%s12307_s0 + $0x54] sm:$0xe] }
  0x46   :  { %v594_v12 = vsel %vm8219_vm2, %v589_v2, %v593_v46  ;;  %v817_v13 = vsel %vm8437_vm5, %v6968_v4, %v816_v5  ;;  %v818_v14 = vrot.slane %v816_v5, 4  ;;  %v6967_v15 = vrot.slane %v708_v58, 9  ;;  %v730_v43 = vld [vmem:[%s12307_s0 + $0x58] sm:$0xf]  ;;  %v731_v52 = vld [vmem:[%s12307_s0 + $0x5c] sm:$0x1] }
  0x47   :  { %v6966_v19 = vcombine.low %v584_v1, %v594_v12  ;;  %v560_v20 = vsel %vm8219_vm2, %v555_v7, %v559_v57  ;;  %v565_v21 = vrot.slane %v564_v8, 4  ;;  %v809_v22 = vrot.slane %v709_v59, 5  ;;  %v726_v57 = vld [vmem:[%s12307_s0 + $0x48] sm:$0xe]  ;;  %v727_v58 = vld [vmem:[%s12307_s0 + $0x4c] sm:$0xf] }
  0x48   :  { %v820_v25 = vsel %vm8437_vm5, %v818_v14, %v819_v10  ;;  %v812_v27 = vrot.slane %v710_v63, 5  ;;  %v6970_v28 = vrot.slane %v717_v0, 9  ;;  %v830_v29 = vrot.slane %v718_v6, 5  ;;  %v728_v59 = vld [vmem:[%s12307_s0 + $0x50] sm:$0x1] }
  0x49   :  { %673 = vrot.lane.b32.xlu1 %v6966_v19, %s8165_s9  ;;  %v570_v31 = vsel %vm8219_vm2, %v565_v21, %v569_v9  ;;  %v6984_v32 = vcombine.low %v817_v13, %v820_v25  ;;  %v810_v33 = vsel %vm8437_vm5, %v6967_v15, %v809_v22  ;;  %v811_v34 = vrot.slane %v809_v22, 4  ;;  %v735_v0 = vld [vmem:[%s12307_s0 + $0x6c] sm:$0xe]  ;;  %v736_v1 = vld [vmem:[%s12307_s0 + $0x70] sm:$0xf] }
  0x4a   :  { %v6965_v37 = vcombine.low %v560_v20, %v570_v31  ;;  %v831_v38 = vsel %vm8437_vm5, %v6970_v28, %v830_v29  ;;  %v832_v39 = vrot.slane %v830_v29, 4  ;;  %v833_v40 = vrot.slane %v719_v11, 5  ;;  %v737_v7 = vld [vmem:[%s12307_s0 + $0x74] sm:$0x1]  ;;  %v732_v12 = vld [vmem:[%s12307_s0 + $0x60] sm:$0xe] }
  0x4b   :  { %v813_v44 = vsel %vm8437_vm5, %v811_v34, %v812_v27  ;;  %v6969_v45 = vrot.slane %v714_v16, 9  ;;  %v823_v46 = vrot.slane %v715_v17, 5  ;;  %v826_v47 = vrot.slane %v716_v18, 5  ;;  %v733_v13 = vld [vmem:[%s12307_s0 + $0x64] sm:$0xf] }
  0x4c   :  { %671 = vrot.lane.b32.xlu0 %v6965_v37, %s8165_s9  ;;  %v6983_v48 = vcombine.low %v810_v33, %v813_v44  ;;  %v834_v49 = vsel %vm8437_vm5, %v832_v39, %v833_v40  ;;  %v6972_v50 = vrot.slane %v723_v23, 9  ;;  %v844_v51 = vrot.slane %v724_v24, 5  ;;  %v734_v18 = vld [vmem:[%s12307_s0 + $0x68] sm:$0x1]  ;;  %v741_v19 = vld [vmem:[%s12307_s0 + $0x84] sm:$0xe] }
  0x4d   :  { %969 = vrot.lane.b32.xlu1 %v6984_v32, %s8166_s20  ;;  %v6986_v53 = vcombine.low %v831_v38, %v834_v49  ;;  %v824_v54 = vsel %vm8437_vm5, %v6969_v45, %v823_v46  ;;  %v825_v55 = vrot.slane %v823_v46, 4  ;;  %v847_v56 = vrot.slane %v725_v30, 5  ;;  %v742_v20 = vld [vmem:[%s12307_s0 + $0x88] sm:$0xf]  ;;  %v743_v30 = vld [vmem:[%s12307_s0 + $0x8c] sm:$0x1] }
  0x4e   :  { %v845_v60 = vsel %vm8437_vm5, %v6972_v50, %v844_v51  ;;  %v846_v61 = vrot.slane %v844_v51, 4  ;;  %v6971_v62 = vrot.slane %v720_v35, 9  ;;  %v837_v63 = vrot.slane %v721_v36, 5  ;;  %v738_v35 = vld [vmem:[%s12307_s0 + $0x78] sm:$0xe] }
  0x4f   :  { %v827_v2 = vsel %vm8437_vm5, %v825_v55, %v826_v47  ;;  %v840_v4 = vrot.slane %v722_v41, 5  ;;  %v6974_v5 = vrot.slane %v729_v42, 9  ;;  %v858_v6 = vrot.slane %v730_v43, 5  ;;  %v739_v36 = vld [vmem:[%s12307_s0 + $0x7c] sm:$0xf] }
  0x50   :  { %967 = vrot.lane.b32.xlu0 %v6983_v48, %s8166_s20  ;;  %v6985_v8 = vcombine.low %v824_v54, %v827_v2  ;;  %v848_v9 = vsel %vm8437_vm5, %v846_v61, %v847_v56  ;;  %v838_v10 = vsel %vm8437_vm5, %v6971_v62, %v837_v63  ;;  %v839_v11 = vrot.slane %v837_v63, 4  ;;  %v740_v37 = vld [vmem:[%s12307_s0 + $0x80] sm:$0x1]  ;;  %v747_v42 = vld [vmem:[%s12307_s0 + $0x9c] sm:$0xe] }
  0x51   :  { %973 = vrot.lane.b32.xlu1 %v6986_v53, %s8166_s20  ;;  %v6988_v14 = vcombine.low %v845_v60, %v848_v9  ;;  %v859_v15 = vsel %vm8437_vm5, %v6974_v5, %v858_v6  ;;  %v860_v16 = vrot.slane %v858_v6, 4  ;;  %v861_v17 = vrot.slane %v731_v52, 5  ;;  %v748_v43 = vld [vmem:[%s12307_s0 + $0xa0] sm:$0xf]  ;;  %v749_v48 = vld [vmem:[%s12307_s0 + $0xa4] sm:$0x1] }
  0x52   :  { %v841_v21 = vsel %vm8437_vm5, %v839_v11, %v840_v4  ;;  %v6973_v22 = vrot.slane %v726_v57, 9  ;;  %v851_v23 = vrot.slane %v727_v58, 5  ;;  %v854_v24 = vrot.slane %v728_v59, 5  ;;  %v744_v53 = vld [vmem:[%s12307_s0 + $0x90] sm:$0xe] }
  0x53   :  { %v6987_v25 = vcombine.low %v838_v10, %v841_v21  ;;  %v862_v27 = vsel %vm8437_vm5, %v860_v16, %v861_v17  ;;  %v6976_v28 = vrot.slane %v735_v0, 9  ;;  %v872_v29 = vrot.slane %v736_v1, 5  ;;  %v745_v54 = vld [vmem:[%s12307_s0 + $0x94] sm:$0xf]  ;;  %v746_v59 = vld [vmem:[%s12307_s0 + $0x98] sm:$0x1] }
  0x54   :  { %971 = vrot.lane.b32.xlu0 %v6985_v8, %s8166_s20  ;;  %v6990_v31 = vcombine.low %v859_v15, %v862_v27  ;;  %v852_v32 = vsel %vm8437_vm5, %v6973_v22, %v851_v23  ;;  %v853_v33 = vrot.slane %v851_v23, 4  ;;  %v875_v34 = vrot.slane %v737_v7, 5  ;;  %v753_v60 = vld [vmem:[%s12307_s0 + $0xb4] sm:$0xe]  ;;  %v754_v61 = vld [vmem:[%s12307_s0 + $0xb8] sm:$0xf] }
  0x55   :  { %977 = vrot.lane.b32.xlu1 %v6988_v14, %s8166_s20  ;;  %v873_v38 = vsel %vm8437_vm5, %v6976_v28, %v872_v29  ;;  %v874_v39 = vrot.slane %v872_v29, 4  ;;  %v6975_v40 = vrot.slane %v732_v12, 9  ;;  %v865_v41 = vrot.slane %v733_v13, 5  ;;  %v755_v7 = vld [vmem:[%s12307_s0 + $0xbc] sm:$0x1] }
  0x56   :  { %v855_v44 = vsel %vm8437_vm5, %v853_v33, %v854_v24  ;;  %v868_v45 = vrot.slane %v734_v18, 5  ;;  %v6978_v46 = vrot.slane %v741_v19, 9  ;;  %v886_v47 = vrot.slane %v742_v20, 5  ;;  %v750_v12 = vld [vmem:[%s12307_s0 + $0xa8] sm:$0xe] }
  0x57   :  { %v6989_v49 = vcombine.low %v852_v32, %v855_v44  ;;  %v876_v50 = vsel %vm8437_vm5, %v874_v39, %v875_v34  ;;  %v866_v51 = vsel %vm8437_vm5, %v6975_v40, %v865_v41  ;;  %v867_v52 = vrot.slane %v865_v41, 4  ;;  %v751_v13 = vld [vmem:[%s12307_s0 + $0xac] sm:$0xf]  ;;  %v752_v22 = vld [vmem:[%s12307_s0 + $0xb0] sm:$0x1] }
  0x58   :  { %975 = vrot.lane.b32.xlu0 %v6987_v25, %s8166_s20  ;;  %v6992_v55 = vcombine.low %v873_v38, %v876_v50  ;;  %v887_v56 = vsel %vm8437_vm5, %v6978_v46, %v886_v47  ;;  %v888_v57 = vrot.slane %v886_v47, 4  ;;  %v889_v58 = vrot.slane %v743_v30, 5  ;;  %v7050_v28 = vld [vmem:[%s12307_s0 + $0x18] sm:$0xf]  ;;  %v7051_v33 = vld [vmem:[%s12307_s0 + $0x1c] sm:$0xf] }
  0x59   :  { %981 = vrot.lane.b32.xlu1 %v6990_v31, %s8166_s20  ;;  %v869_v62 = vsel %vm8437_vm5, %v867_v52, %v868_v45  ;;  %v6977_v63 = vrot.slane %v738_v35, 9  ;;  %v879_v0 = vrot.slane %v739_v36, 5  ;;  %v882_v1 = vrot.slane %v740_v37, 5  ;;  %v7052_v38 = vld [vmem:[%s12307_s0 + $0x20] sm:$0x1] }
  0x5a   :  { %v6991_v2 = vcombine.low %v866_v51, %v869_v62  ;;  %v890_v4 = vsel %vm8437_vm5, %v888_v57, %v889_v58  ;;  %v6980_v5 = vrot.slane %v747_v42, 9  ;;  %v900_v6 = vrot.slane %v748_v43, 5  ;;  %v7047_v43 = vld [vmem:[%s12307_s0 + $0xc] sm:$0xf]  ;;  %v7056_v58 = vld [vmem:[%s12307_s0 + $0x30] sm:$0xf] }
  0x5b   :  { %v6994_v8 = vcombine.low %v887_v56, %v890_v4  ;;  %v880_v9 = vsel %vm8437_vm5, %v6977_v63, %v879_v0  ;;  %v881_v10 = vrot.slane %v879_v0, 4  ;;  %v903_v11 = vrot.slane %v749_v48, 5  ;;  %v7048_v48 = vld [vmem:[%s12307_s0 + $0x10] sm:$0xf]  ;;  %v7057_v4 = vld [vmem:[%s12307_s0 + $0x34] sm:$0xf] }
  0x5c   :  { %979 = vrot.lane.b32.xlu0 %v6989_v49, %s8166_s20  ;;  %v901_v14 = vsel %vm8437_vm5, %v6980_v5, %v900_v6  ;;  %v902_v15 = vrot.slane %v900_v6, 4  ;;  %v6979_v16 = vrot.slane %v744_v53, 9  ;;  %v893_v17 = vrot.slane %v745_v54, 5  ;;  %v7049_v53 = vld [vmem:[%s12307_s0 + $0x14] sm:$0x1] }
  0x5d   :  { %985 = vrot.lane.b32.xlu1 %v6992_v55, %s8166_s20  ;;  %v883_v18 = vsel %vm8437_vm5, %v881_v10, %v882_v1  ;;  %v896_v19 = vrot.slane %v746_v59, 5  ;;  %v6982_v20 = vrot.slane %v753_v60, 9  ;;  %v914_v21 = vrot.slane %v754_v61, 5 }
  0x5e   :  { %v6993_v23 = vcombine.low %v880_v9, %v883_v18  ;;  %v904_v24 = vsel %vm8437_vm5, %v902_v15, %v903_v11  ;;  %v894_v25 = vsel %vm8437_vm5, %v6979_v16, %v893_v17  ;;  %v895_v27 = vrot.slane %v893_v17, 4  ;;  %v8059_v15 = vld [vmem:[%s12307_s0 + $0x18] sm:$0xff]  }
  0x5f   :  { %v6996_v29 = vcombine.low %v901_v14, %v904_v24  ;;  %v915_v30 = vsel %vm8437_vm5, %v6982_v20, %v914_v21  ;;  %v916_v31 = vrot.slane %v914_v21, 4  ;;  %v917_v32 = vrot.slane %v755_v7, 5  ;;  %v7053_v14 = vld [vmem:[%s12307_s0 + $0x24] sm:$0xf] }
  0x60   :  { %983 = vrot.lane.b32.xlu0 %v6991_v2, %s8166_s20  ;;  %v897_v34 = vsel %vm8437_vm5, %v895_v27, %v896_v19  ;;  %v6981_v35 = vrot.slane %v750_v12, 9  ;;  %v907_v36 = vrot.slane %v751_v13, 5  ;;  %v910_v37 = vrot.slane %v752_v22, 5  ;;  %v7054_v27 = vld [vmem:[%s12307_s0 + $0x28] sm:$0xf] }
  0x61   :  { %989 = vrot.lane.b32.xlu1 %v6994_v8, %s8166_s20  ;;  %v6995_v39 = vcombine.low %v894_v25, %v897_v34  ;;  %v918_v40 = vsel %vm8437_vm5, %v916_v31, %v917_v32  ;;  %v1283_v41 = vshrl.u32 %v7050_v28, 16  ;;  %v1286_v42 = vshll.u32 %v7050_v28, 16  ;;  %v7058_v8 = vld [vmem:[%s12307_s0 + $0x38] sm:$0x1]  ;;  %v7055_v31 = vld [vmem:[%s12307_s0 + $0x2c] sm:$0x1] }
  0x62   :  { %v6998_v44 = vcombine.low %v915_v30, %v918_v40  ;;  %v908_v45 = vsel %vm8437_vm5, %v6981_v35, %v907_v36  ;;  %v909_v46 = vrot.slane %v907_v36, 4  ;;  %v1292_v47 = vshll.u32 %v7051_v33, 16  ;;  %v8061_v32 = vld [vmem:[%s12307_s0 + $0x30] sm:$0xff]  }
  0x63   :  { %v1285_v49 = vrot.slane %v1283_v41, 4  ;;  %v1288_v50 = vrot.slane %v1286_v42, 5  ;;  %v1296_v51 = vshrl.u32 %v7051_v33, 16  ;;  %v1302_v52 = vshll.u32 %v7052_v38, 16  ;;  %v8062_v42 = vld [vmem:[%s12307_s0 + $0x24] sm:$0xff]  }
  0x64   :  { %987 = vrot.lane.b32.xlu0 %v6993_v23, %s8166_s20  ;;  %v911_v54 = vsel %vm8437_vm5, %v909_v46, %v910_v37  ;;  %v1294_v55 = vrot.slane %v1292_v47, 5  ;;  %v1259_v56 = vshrl.u32 %v7047_v43, 16  ;;  %v1262_v57 = vshll.u32 %v7047_v43, 16  ;;  %v7062_v37 = vld [vmem:[%s12307_s0 + $0x48] sm:$0xf] }
  0x65   :  { %993 = vrot.lane.b32.xlu1 %v6996_v29, %s8166_s20  ;;  %v6997_v59 = vcombine.low %v908_v45, %v911_v54  ;;  %v1289_v60 = vor.u32 %v1288_v50, %v1285_v49  ;;  %v1298_v61 = vrot.slane %v1296_v51, 4  ;;  %v1304_v62 = vrot.slane %v1302_v52, 5  ;;  %v8060_v29 = vld [vmem:[%s12307_s0 + $0xc] sm:$0xff]  }
  0x66   :  { %v1261_v63 = vrot.slane %v1259_v56, 4  ;;  %v1264_v0 = vrot.slane %v1262_v57, 5  ;;  %v1268_v1 = vshll.u32 %v7048_v48, 16  ;;  %v1272_v2 = vshrl.u32 %v7048_v48, 16  ;;  %v7063_v47 = vld [vmem:[%s12307_s0 + $0x4c] sm:$0xf] }
  0x67   :  { %v1290_v5 = vrot.slane %v1289_v60, 4  ;;  %v1299_v6 = vor.u32 %v1298_v61, %v1294_v55  ;;  %v1278_v7 = vshll.u32 %v7049_v53, 16  ;;  %v1331_v9 = vshrl.u32 %v7056_v58, 16  ;;  %v7064_v51 = vld [vmem:[%s12307_s0 + $0x50] sm:$0x1]  ;;  %v8063_v53 = vld [vmem:[%s12307_s0 + $0x48] sm:$0xff]  }
  0x68   :  { %991 = vrot.lane.b32.xlu0 %v6995_v39, %s8166_s20  ;;  %v1265_v10 = vor.u32 %v1264_v0, %v1261_v63  ;;  %v8677_v11 = vrot.slane %v1268_v1, 5  ;;  %v1274_v12 = vrot.slane %v1272_v2, 4  ;;  %v1334_v13 = vshll.u32 %v7056_v58, 16  ;;  %v7059_v58 = vld [vmem:[%s12307_s0 + $0x3c] sm:$0xf]  ;;  %v8065_v1 = vld [vmem:[%s12307_s0 + $0x60] sm:$0xff]  }
  0x69   :  { %997 = vrot.lane.b32.xlu1 %v6998_v44, %s8166_s20  ;;  %v1295_v16 = vsel %vm8219_vm2, %v1290_v5, %v1294_v55  ;;  %v1300_v17 = vrot.slane %v1299_v6, 4  ;;  %v1333_v18 = vrot.slane %v1331_v9, 4  ;;  %v1340_v22 = vshll.u32 %v7057_v4, 16  ;;  %v7060_v0 = vld [vmem:[%s12307_s0 + $0x40] sm:$0xf] }
  0x6a   :  { %v8688_v19 = vrot.slane %v1265_v10, 4  ;;  %v1275_v20 = vor.u32 %v1274_v12, %v8677_v11  ;;  %v1336_v21 = vrot.slane %v1334_v13, 5  ;;  %v1344_v24 = vshrl.u32 %v7057_v4, 16  ;;  %v7068_v12 = vld [vmem:[%s12307_s0 + $0x60] sm:$0xf] }
  0x6b   :  { %v1305_v23 = vsel %vm8219_vm2, %v1300_v17, %v1304_v62  ;;  %v1350_v25 = vshll.u32 %v7058_v8, 16  ;;  %v1307_v28 = vshrl.u32 %v7053_v14, 16  ;;  %v1280_v30 = vrot.slane %v1278_v7, 5  ;;  %v7069_v17 = vld [vmem:[%s12307_s0 + $0x64] sm:$0xf] }
  0x6c   :  { %995 = vrot.lane.b32.xlu0 %v6997_v59, %s8166_s20  ;;  %v1276_v33 = vrot.slane %v1275_v20, 4  ;;  %v1337_v34 = vor.u32 %v1336_v21, %v1333_v18  ;;  %v8707_v35 = vrot.slane %v1340_v22, 5  ;;  %v1346_v36 = vrot.slane %v1344_v24, 4  ;;  %v8064_v59 = vld [vmem:[%s12307_s0 + $0x3c] sm:$0xff]  }
  0x6d   :  { %1147 = vrot.lane.b32.xlu1 %v8059_v15, %s8167_s28  ;;  %v8712_v38 = vcombine.low %v1295_v16, %v1305_v23  ;;  %v1309_v39 = vrot.slane %v1307_v28, 4  ;;  %v1310_v40 = vshll.u32 %v7053_v14, 16  ;;  %v1316_v41 = vshll.u32 %v7054_v27, 16  ;;  %v8067_v28 = vld [vmem:[%s12307_s0 + $0x78] sm:$0xff]  }
  0x6e   :  { %v1271_v43 = vsel %vm8219_vm2, %v8688_v19, %v8677_v11  ;;  %v1347_v44 = vor.u32 %v1346_v36, %v8707_v35  ;;  %v8722_v45 = vrot.slane %v1350_v25, 5  ;;  %v1320_v46 = vshrl.u32 %v7054_v27, 16  ;;  %v7061_v11 = vld [vmem:[%s12307_s0 + $0x44] sm:$0x1]  ;;  %v8066_v27 = vld [vmem:[%s12307_s0 + $0x54] sm:$0xff]  }
  0x6f   :  { %v1312_v48 = vrot.slane %v1310_v40, 5  ;;  %v8728_v49 = vrot.slane %v1316_v41, 5  ;;  %v1326_v50 = vshll.u32 %v7055_v31, 16  ;;  %v1379_v52 = vshrl.u32 %v7062_v37, 16  ;;  %v7066_v40 = vld [vmem:[%s12307_s0 + $0x58] sm:$0xf] }
  0x70   :  { %1145 = vrot.lane.b32.xlu0 %v8060_v29, %s8167_s28  ;;  %v1281_v54 = vsel %vm8219_vm2, %v1276_v33, %v1280_v30  ;;  %v1338_v55 = vrot.slane %v1337_v34, 4  ;;  %v1322_v56 = vrot.slane %v1320_v46, 4  ;;  %v1382_v57 = vshll.u32 %v7062_v37, 16  ;;  %v7065_v33 = vld [vmem:[%s12307_s0 + $0x54] sm:$0xf]  ;;  %v8068_v41 = vld [vmem:[%s12307_s0 + $0x6c] sm:$0xff]  }
  0x71   :  { %1151 = vrot.lane.b32.xlu1 %v8061_v32, %s8167_s28  ;;  %v1313_v60 = vor.u32 %v1312_v48, %v1309_v39  ;;  %v1381_v61 = vrot.slane %v1379_v52, 4  ;;  %v1388_v62 = vshll.u32 %v7063_v47, 16  ;;  %v1392_v63 = vshrl.u32 %v7063_v47, 16  ;;  %v7070_v37 = vld [vmem:[%s12307_s0 + $0x68] sm:$0x1] }
  0x72   :  { %v1348_v2 = vrot.slane %v1347_v44, 4  ;;  %v1323_v4 = vor.u32 %v1322_v56, %v8728_v49  ;;  %v1384_v5 = vrot.slane %v1382_v57, 5  ;;  %v1398_v6 = vshll.u32 %v7064_v51, 16 }
  0x73   :  { %v1314_v7 = vrot.slane %v1313_v60, 4  ;;  %v1328_v8 = vrot.slane %v1326_v50, 5  ;;  %v8753_v9 = vrot.slane %v1388_v62, 5  ;;  %v1394_v10 = vrot.slane %v1392_v63, 4  ;;  %v7431_v63 = vld [vmem:[%s12307_s0 + $0xd8] sm:$0xf] }
  0x74   :  { %1149 = vrot.lane.b32.xlu0 %v8062_v42, %s8167_s28  ;;  %v8762_v13 = vcombine.low %v1271_v43, %v1281_v54  ;;  %v1324_v14 = vrot.slane %v1323_v4, 4  ;;  %v1385_v15 = vor.u32 %v1384_v5, %v1381_v61  ;;  %v1355_v16 = vshrl.u32 %v7059_v58, 16  ;;  %v8069_v54 = vld [vmem:[%s12307_s0 + $0x90] sm:$0xff]   ;;  %v7432_v5 = vld [vmem:[%s12307_s0 + $0xdc] sm:$0xf] }
  0x75   :  { %1155 = vrot.lane.b32.xlu1 %v8063_v53, %s8167_s28  ;;  %v1343_v18 = vsel %vm8219_vm2, %v1338_v55, %v8707_v35  ;;  %v1395_v19 = vor.u32 %v1394_v10, %v8753_v9  ;;  %v1358_v20 = vshll.u32 %v7059_v58, 16  ;;  %v1364_v21 = vshll.u32 %v7060_v0, 16 }
  0x76   :  { %v1353_v22 = vsel %vm8219_vm2, %v1348_v2, %v8722_v45  ;;  %v8774_v23 = vrot.slane %v1398_v6, 5  ;;  %v1357_v24 = vrot.slane %v1355_v16, 4  ;;  %v1368_v25 = vshrl.u32 %v7060_v0, 16  ;;  %v8070_v6 = vld [vmem:[%s12307_s0 + $0x84] sm:$0xff]  }
  0x77   :  { %v1319_v29 = vsel %vm8219_vm2, %v1314_v7, %v8728_v49  ;;  %v1329_v30 = vsel %vm8219_vm2, %v1324_v14, %v1328_v8  ;;  %v1360_v31 = vrot.slane %v1358_v20, 5  ;;  %v1366_v32 = vrot.slane %v1364_v21, 5  ;;  %v8071_v14 = vld [vmem:[%s12307_s0 + $0xa8] sm:$0xff]   ;;  %v8072_v20 = vld [vmem:[%s12307_s0 + $0x9c] sm:$0xff]  }
  0x78   :  { %1153 = vrot.lane.b32.xlu0 %v8064_v59, %s8167_s28  ;;  %v1386_v34 = vrot.slane %v1385_v15, 4  ;;  %v1370_v35 = vrot.slane %v1368_v25, 4  ;;  %v1374_v36 = vshll.u32 %v7061_v11, 16  ;;  %v1427_v39 = vshrl.u32 %v7068_v12, 16  ;;  %v7067_v11 = vld [vmem:[%s12307_s0 + $0x5c] sm:$0x1] }
  0x79   :  { %1159 = vrot.lane.b32.xlu1 %v8065_v1, %s8167_s28  ;;  %v1396_v42 = vrot.slane %v1395_v19, 4  ;;  %v1361_v43 = vor.u32 %v1360_v31, %v1357_v24  ;;  %v1430_v44 = vshll.u32 %v7068_v12, 16  ;;  %v1436_v45 = vshll.u32 %v7069_v17, 16  ;;  %v8841_v12 = vld [vmem:[%s12307_s0 + $0xe0] sm:$0x1] }
  0x7a   :  { %v8801_v46 = vcombine.low %v1343_v18, %v1353_v22  ;;  %v1371_v47 = vor.u32 %v1370_v35, %v1366_v32  ;;  %v1376_v48 = vrot.slane %v1374_v36, 5  ;;  %v1429_v49 = vrot.slane %v1427_v39, 4  ;;  %v7071_v19 = vld [vmem:[%s12307_s0 + $0x6c] sm:$0xf]  ;;  %v7072_v25 = vld [vmem:[%s12307_s0 + $0x70] sm:$0xf] }
  0x7b   :  { %v1362_v50 = vrot.slane %v1361_v43, 4  ;;  %v1432_v51 = vrot.slane %v1430_v44, 5  ;;  %v8804_v52 = vrot.slane %v1436_v45, 5  ;;  %v1440_v53 = vshrl.u32 %v7069_v17, 16  ;;  %v7073_v45 = vld [vmem:[%s12307_s0 + $0x74] sm:$0x1] }
  0x7c   :  { %1157 = vrot.lane.b32.xlu0 %v8066_v27, %s8167_s28  ;;  %v8810_v55 = vcombine.low %v1319_v29, %v1329_v30  ;;  %v1372_v56 = vrot.slane %v1371_v47, 4  ;;  %v1403_v57 = vshrl.u32 %v7065_v33, 16  ;;  %v1406_v58 = vshll.u32 %v7065_v33, 16  ;;  %v8073_v27 = vld [vmem:[%s12307_s0 + $0xc0] sm:$0xff]  }
  0x7d   :  { %1163 = vrot.lane.b32.xlu1 %v8067_v28, %s8167_s28  ;;  %v1433_v59 = vor.u32 %v1432_v51, %v1429_v49  ;;  %v1442_v60 = vrot.slane %v1440_v53, 4  ;;  %v1446_v61 = vshll.u32 %v7070_v37, 16  ;;  %v1412_v62 = vshll.u32 %v7066_v40, 16  ;;  %v8075_v49 = vld [vmem:[%s12307_s0 + $0x18] sm:$0xff]   ;;  %v8078_v51 = vld [vmem:[%s12307_s0 + $0x24] sm:$0xff]   ;;  %v8079_v53 = vld [vmem:[%s12307_s0 + $0xc] sm:$0xff]  }
  0x7e   :  { %v1391_v0 = vsel %vm8219_vm2, %v1386_v34, %v8753_v9  ;;  %v1401_v1 = vsel %vm8219_vm2, %v1396_v42, %v8774_v23  ;;  %v1405_v2 = vrot.slane %v1403_v57, 4  ;;  %v1408_v4 = vrot.slane %v1406_v58, 5  ;;  %v8074_v42 = vld [vmem:[%s12307_s0 + $0xb4] sm:$0xff]   ;;  %v8084_v58 = vld [vmem:[%s12307_s0 + $0x48] sm:$0xff]  }
  0x7f   :  { %v1367_v7 = vsel %vm8219_vm2, %v1362_v50, %v1366_v32  ;;  %v1377_v8 = vsel %vm8219_vm2, %v1372_v56, %v1376_v48  ;;  %v8832_v9 = vrot.slane %v1433_v59, 4  ;;  %v1443_v10 = vor.u32 %v1442_v60, %v8804_v52  ;;  %v8867_v32 = vpop.permute.xlu1 %647  ;;  %v8076_v50 = vld [vmem:[%s12307_s0] sm:$0xff]   ;;  %v8081_v56 = vld [vmem:[%s12307_s0 + $0x30] sm:$0xff]  }
  0x80   :  { %1161 = vrot.lane.b32.xlu0 %v8068_v41, %s8167_s28  ;;  %v1409_v15 = vor.u32 %v1408_v4, %v1405_v2  ;;  %v8847_v16 = vrot.slane %v1412_v62, 5  ;;  %v1416_v17 = vshrl.u32 %v7066_v40, 16  ;;  %v3281_v18 = vshrl.u32 %v7431_v63, 16  ;;  %v8083_v57 = vld [vmem:[%s12307_s0 + $0x54] sm:$0xff]   ;;  %v8086_v59 = vld [vmem:[%s12307_s0 + $0x6c] sm:$0xff]   ;;  %v8087_v60 = vld [vmem:[%s12307_s0 + $0x60] sm:$0xff]  }
  0x81   :  { %1167 = vrot.lane.b32.xlu1 %v8069_v54, %s8167_s28  ;;  %v8855_v21 = vcombine.low %v1391_v0, %v1401_v1  ;;  %v8857_v22 = vrot.slane %v1446_v61, 5  ;;  %v3284_v23 = vshll.u32 %v7431_v63, 16  ;;  %v3290_v24 = vshll.u32 %v7432_v5, 16  ;;  %v8080_v54 = vld [vmem:[%s12307_s0 + $0x3c] sm:$0xff]   ;;  %v8088_v61 = vld [vmem:[%s12307_s0 + $0x84] sm:$0xff]   ;;  %v8092_v0 = vld [vmem:[%s12307_s0 + $0x90] sm:$0xff]  }
  0x82   :  { %v8865_v28 = vcombine.low %v1367_v7, %v1377_v8  ;;  %v1418_v29 = vrot.slane %v1416_v17, 4  ;;  %v1422_v30 = vshll.u32 %v7067_v11, 16  ;;  %v3283_v31 = vrot.slane %v3281_v18, 4  ;;  %v8089_v62 = vld [vmem:[%s12307_s0 + $0x78] sm:$0xff]   ;;  %v8955_v17 = vld [vmem:[%s12307_s0 + $0xe0] sm:$0x1] }
  0x83   :  { %v8870_v33 = vrot.slane %v1443_v10, 4  ;;  %v3286_v34 = vrot.slane %v3284_v23, 5  ;;  %v8872_v35 = vrot.slane %v3290_v24, 5  ;;  %v3294_v36 = vshrl.u32 %v7432_v5, 16  ;;  %v8091_v63 = vld [vmem:[%s12307_s0 + $0x9c] sm:$0xff]   ;;  %v8093_v1 = vld [vmem:[%s12307_s0 + $0xb4] sm:$0xff]   ;;  %v644_v7 = vpop.permute.xlu0 %643 }
  0x84   :  { %1165 = vrot.lane.b32.xlu0 %v8070_v6, %s8167_s28  ;;  %v1439_v37 = vsel %vm8219_vm2, %v8832_v9, %v8804_v52  ;;  %v8879_v39 = vrot.slane %v1409_v15, 4  ;;  %v1419_v40 = vor.u32 %v1418_v29, %v8847_v16  ;;  %v3300_v41 = vshll.u32 %v8841_v12, 16  ;;  %v8941_v8 = vld [vmem:[%s12307_s0 + $0xdc] sm:$0xf]  ;;  %v8950_v15 = vld [vmem:[%s12307_s0 + $0xd8] sm:$0xe] }
  0x85   :  { %1171 = vrot.lane.b32.xlu1 %v8071_v14, %s8167_s28  ;;  %v3287_v43 = vor.u32 %v3286_v34, %v3283_v31  ;;  %v3296_v44 = vrot.slane %v3294_v36, 4  ;;  %v1451_v47 = vshrl.u32 %v7071_v19, 16  ;;  %v1454_v48 = vshll.u32 %v7071_v19, 16  ;;  %v8094_v18 = vld [vmem:[%s12307_s0 + $0xa8] sm:$0xff]   ;;  %v8110_v52 = vld [vmem:[%s12307_s0 + $0xd8] sm:$0xff]  }
  0x86   :  { %v8934_v2 = vrot.slane %v1419_v40, 4  ;;  %v8936_v4 = vrot.slane %v1422_v30, 5  ;;  %v1460_v5 = vshll.u32 %v7072_v25, 16  ;;  %v1464_v6 = vshrl.u32 %v7072_v25, 16  ;;  %v8968_v29 = vld [vmem:[%s12307_s0 + $0xc] sm:$0xe] }
  0x87   :  { %v8944_v10 = vrot.slane %v3287_v43, 4  ;;  %v3297_v11 = vor.u32 %v3296_v44, %v8872_v35  ;;  %v1453_v12 = vrot.slane %v1451_v47, 4  ;;  %v1456_v14 = vrot.slane %v1454_v48, 5  ;;  %v650_v25 = vpop.permute.xlu1 %649  ;;  %v8973_v30 = vld [vmem:[%s12307_s0 + $0x10] sm:$0xf] }
  0x88   :  { %1169 = vrot.lane.b32.xlu0 %v8072_v20, %s8167_s28  ;;  %v8961_v19 = vrot.slane %v3300_v41, 5  ;;  %v8963_v20 = vrot.slane %v1460_v5, 5  ;;  %v1466_v23 = vrot.slane %v1464_v6, 4  ;;  %v1470_v24 = vshll.u32 %v7073_v45, 16  ;;  %v8986_v40 = vld [vmem:[%s12307_s0 + $0x14] sm:$0x1] }
  0x89   :  { %1175 = vrot.lane.b32.xlu1 %v8073_v27, %s8167_s28  ;;  %v1449_v27 = vsel %vm8219_vm2, %v8870_v33, %v8857_v22  ;;  %v1415_v31 = vsel %vm8219_vm2, %v8879_v39, %v8847_v16  ;;  %v3298_v34 = vrot.slane %v3297_v11, 4  ;;  %v1457_v36 = vor.u32 %v1456_v14, %v1453_v12  ;;  %v7624_v44 = vld [vmem:[%s12307_s0 + $0xe8] sm:$0xf] }
  0x8a   :  { %v1467_v41 = vor.u32 %v1466_v23, %v8963_v20  ;;  %v8989_v43 = vrot.slane %v1470_v24, 5  ;;  %vm143_vm6 = vcmask 130048   ;;  %vm691_vm7 = vcmask 261248   ;;  %v7241_v23 = vld [vmem:[%s12307_s0 + $0x20] sm:$0x1] }
  0x8b   :  { %v1425_v16 = vsel %vm8219_vm2, %v8934_v2, %v8936_v4  ;;  %v3293_v22 = vsel %vm8219_vm2, %v8944_v10, %v8872_v35  ;;  %v1458_v33 = vrot.slane %v1457_v36, 4  ;;  %146 = vst.msk [vmem:[#allocation2 + $0x20] sm:$0xff] %vm143_vm6, %v8075_v49  ;;  %144 = vst.msk [vmem:[#allocation2] sm:$0xff] %vm143_vm6, %v8076_v50  ;;  %v3874_v39 = vrot.slane %v8941_v8, 5 }
  0x8c   :  { %1173 = vrot.lane.b32.xlu0 %v8074_v42, %s8167_s28  ;;  %147 = vst.msk [vmem:[#allocation2 + $0x30] sm:$0xff] %vm143_vm6, %v8078_v51  ;;  %145 = vst.msk [vmem:[#allocation2 + $0x10] sm:$0xff] %vm143_vm6, %v8079_v53  ;;  %v7623_v42 = vld [vmem:[%s12307_s0 + $0xe4] sm:$0xf]  ;;  %v3303_v35 = vsel %vm8219_vm2, %v3298_v34, %v8961_v19  ;;  %v1468_v45 = vrot.slane %v1467_v41, 4  ;;  %v7543_v47 = vrot.slane %v8950_v15, 9 }
  0x8d   :  { %149 = vst.msk [vmem:[#allocation2 + $0x50] sm:$0xff] %vm143_vm6, %v8080_v54  ;;  %148 = vst.msk [vmem:[#allocation2 + $0x40] sm:$0xff] %vm143_vm6, %v8081_v56  ;;  %1692 = vrot.lane.b32.xlu1 %v8712_v38, %s8168_s19  ;;  %v3877_v48 = vrot.slane %v8955_v17, 5  ;;  %v646_v49 = vpop.permute.xlu0 %645  ;;  %v7625_v38 = vld [vmem:[%s12307_s0 + $0xec] sm:$0x1]  ;;  %v1463_v50 = vsel %vm8219_vm2, %v1458_v33, %v8963_v20  ;;  %v3876_v51 = vrot.slane %v3874_v39, 4 }
  0x8e   :  { %151 = vst.msk [vmem:[#allocation2 + $0x70] sm:$0xff] %vm143_vm6, %v8083_v57  ;;  %150 = vst.msk [vmem:[#allocation2 + $0x60] sm:$0xff] %vm143_vm6, %v8084_v58  ;;  %v1853_v53 = vrot.slane %v8973_v30, 5  ;;  %v1473_v54 = vsel %vm8219_vm2, %v1468_v45, %v8989_v43  ;;  %v1856_v56 = vrot.slane %v8986_v40, 5  ;;  %v4322_v57 = vshrl.u32 %v7623_v42, 16 }
  0x8f   :  { %153 = vst.msk [vmem:[#allocation2 + $0x90] sm:$0xff] %vm143_vm6, %v8086_v59  ;;  %152 = vst.msk [vmem:[#allocation2 + $0x80] sm:$0xff] %vm143_vm6, %v8087_v60  ;;  %v4325_v58 = vshll.u32 %v7623_v42, 16  ;;  %v654_v59 = vpop.permute.xlu1 %653  ;;  %v9050_v60 = vld [vmem:[%s12307_s0 + $0xe4] sm:$0xe]  ;;  %v9076_v4 = vsel %vm8437_vm5, %v7543_v47, %v3874_v39  ;;  %v4331_v6 = vshll.u32 %v7624_v44, 16  ;;  %v9081_v9 = vcombine.low %v1463_v50, %v1473_v54 }
  0x90   :  { %155 = vst.msk [vmem:[#allocation2 + $0xb0] sm:$0xff] %vm143_vm6, %v8088_v61  ;;  %154 = vst.msk [vmem:[#allocation2 + $0xa0] sm:$0xff] %vm143_vm6, %v8089_v62  ;;  %v9055_v61 = vld [vmem:[%s12307_s0 + $0xe8] sm:$0xf]  ;;  %v7239_v62 = vld [vmem:[%s12307_s0 + $0x18] sm:$0xf]  ;;  %1690 = vrot.lane.b32.xlu0 %v8762_v13, %s8168_s19 }
  0x91   :  { %157 = vst.msk [vmem:[#allocation2 + $0xd0] sm:$0xff] %vm143_vm6, %v8091_v63  ;;  %156 = vst.msk [vmem:[#allocation2 + $0xc0] sm:$0xff] %vm143_vm6, %v8092_v0  ;;  %v7102_v63 = vcombine.low %v1439_v37, %v1449_v27  ;;  %v9067_v0 = vcombine.low %v1415_v31, %v1425_v16  ;;  %v1855_v2 = vrot.slane %v1853_v53, 4  ;;  %1696 = vrot.lane.b32.xlu1 %v8801_v46, %s8168_s19  ;;  %v4324_v13 = vrot.slane %v4322_v57, 4  ;;  %v9090_v46 = vld [vmem:[%s12307_s0 + $0xec] sm:$0x1] }
  0x92   :  { %159 = vst.msk [vmem:[#allocation2 + $0xf0] sm:$0xff] %vm143_vm6, %v8093_v1  ;;  %158 = vst.msk [vmem:[#allocation2 + $0xe0] sm:$0xff] %vm143_vm6, %v8094_v18  ;;  %v9069_v1 = vcombine.low %v3293_v22, %v3303_v35  ;;  %v4327_v5 = vrot.slane %v4325_v58, 5  ;;  %v9085_v37 = vsel %vm8437_vm5, %v3876_v51, %v3877_v48  ;;  %v4341_v8 = vshll.u32 %v7625_v38, 16  ;;  %v7240_v15 = vld [vmem:[%s12307_s0 + $0x1c] sm:$0xf] }
  0x93   :  { %694 = vst.msk [vmem:[#allocation2 + $0x20] sm:$0xff] %vm691_vm7, %v8867_v32  ;;  %692 = vst.msk [vmem:[#allocation2] sm:$0xff] %vm691_vm7, %v644_v7  ;;  %v7159_v32 = vrot.slane %v8968_v29, 9  ;;  %v4335_v7 = vshrl.u32 %v7624_v44, 16  ;;  %v9098_v11 = vsel %vm8437_vm5, %v1855_v2, %v1856_v56  ;;  %v9100_v14 = vrot.slane %v4331_v6, 5  ;;  %v8077_v56 = vld [vmem:[%s12307_s0 + $0xe4] sm:$0xff]  }
  0x94   :  { %695 = vst.msk [vmem:[#allocation2 + $0x30] sm:$0xff] %vm691_vm7, %v650_v25  ;;  %693 = vst.msk [vmem:[#allocation2 + $0x10] sm:$0xff] %vm691_vm7, %v646_v49  ;;  %v4328_v12 = vor.u32 %v4327_v5, %v4324_v13  ;;  %1694 = vrot.lane.b32.xlu0 %v8810_v55, %s8168_s19  ;;  %v652_v18 = vpop.permute.xlu0 %651  ;;  %v7735_v19 = vrot.slane %v9050_v60, 9  ;;  %v4915_v20 = vrot.slane %v9055_v61, 5  ;;  %v2303_v24 = vshrl.u32 %v7239_v62, 16 }
  0x95   :  { %697 = vst.msk [vmem:[#allocation2 + $0x50] sm:$0xff] %vm691_vm7, %v654_v59  ;;  %v9094_v10 = vsel %vm8437_vm5, %v7159_v32, %v1853_v53  ;;  %v4337_v17 = vrot.slane %v4335_v7, 4  ;;  %1700 = vrot.lane.b32.xlu1 %v8855_v21, %s8168_s19  ;;  %v4343_v29 = vrot.slane %v4341_v8, 5  ;;  %696 = vst.msk [vmem:[#allocation2 + $0x40] sm:$0xff] %vm691_vm7, %v652_v18  ;;  %v4918_v55 = vrot.slane %v9090_v46, 5 }
  0x96   :  { %3216 = vst.msk [vmem:[#allocation2 + $0x100] sm:$0xff] %vm143_vm6, %v8110_v52  ;;  %v4329_v25 = vrot.slane %v4328_v12, 4  ;;  %v2306_v30 = vshll.u32 %v7239_v62, 16  ;;  %v7434_v27 = vld [vmem:[%s12307_s0 + $0xe4] sm:$0xf]  ;;  %v2305_v34 = vrot.slane %v2303_v24, 4  ;;  %v7559_v41 = vcombine.low %v9076_v4, %v9085_v37 }
  0x97   :  { %v4338_v31 = vor.u32 %v4337_v17, %v9100_v14  ;;  %v2312_v36 = vshll.u32 %v7240_v15, 16  ;;  %v2316_v40 = vshrl.u32 %v7240_v15, 16  ;;  %v7435_v21 = vld [vmem:[%s12307_s0 + $0xe8] sm:$0xf]  ;;  %v7175_v43 = vcombine.low %v9094_v10, %v9098_v11  ;;  %v7436_v33 = vld [vmem:[%s12307_s0 + $0xec] sm:$0x1] }
  0x98   :  { %v2308_v16 = vrot.slane %v2306_v30, 5  ;;  %v2322_v22 = vshll.u32 %v7241_v23, 16  ;;  %1698 = vrot.lane.b32.xlu0 %v8865_v28, %s8168_s19  ;;  %v4917_v42 = vrot.slane %v4915_v20, 4  ;;  %v7815_v45 = vld [vmem:[%s12307_s0 + $0xf0] sm:$0xf]  ;;  %v3305_v38 = vshrl.u32 %v7434_v27, 16 }
  0x99   :  { %v4339_v39 = vrot.slane %v4338_v31, 4  ;;  %v9133_v44 = vrot.slane %v2312_v36, 5  ;;  %v2318_v35 = vrot.slane %v2316_v40, 4  ;;  %1704 = vrot.lane.b32.xlu1 %v7102_v63, %s8168_s19  ;;  %v658_v47 = vpop.permute.xlu1 %657  ;;  %v3308_v50 = vshll.u32 %v7434_v27, 16  ;;  %v7816_v28 = vld [vmem:[%s12307_s0 + $0xf4] sm:$0xf] }
  0x9a   :  { %v2309_v48 = vor.u32 %v2308_v16, %v2305_v34  ;;  %v9139_v49 = vrot.slane %v2322_v22, 5  ;;  %v4334_v51 = vsel %vm8219_vm2, %v4329_v25, %v9100_v14  ;;  %699 = vst.msk [vmem:[#allocation2 + $0x70] sm:$0xff] %vm691_vm7, %v658_v47  ;;  %v3314_v53 = vshll.u32 %v7435_v21, 16  ;;  %v7817_v5 = vld [vmem:[%s12307_s0 + $0xf8] sm:$0x1] }
  0x9b   :  { %v2319_v32 = vor.u32 %v2318_v35, %v9133_v44  ;;  %v3318_v54 = vshrl.u32 %v7435_v21, 16  ;;  %v4344_v57 = vsel %vm8219_vm2, %v4339_v39, %v4343_v29  ;;  %v3307_v59 = vrot.slane %v3305_v38, 4  ;;  %v7498_v8 = vld [vmem:[%s12307_s0 + $0xe4] sm:$0xe]  ;;  %v7499_v46 = vld [vmem:[%s12307_s0 + $0xe8] sm:$0xf] }
  0x9c   :  { %v9154_v58 = vrot.slane %v2309_v48, 4  ;;  %v3310_v60 = vrot.slane %v3308_v50, 5  ;;  %1702 = vrot.lane.b32.xlu0 %v9067_v0, %s8168_s19  ;;  %v656_v61 = vpop.permute.xlu0 %655  ;;  %v3316_v63 = vrot.slane %v3314_v53, 5  ;;  %v3324_v13 = vshll.u32 %v7436_v33, 16  ;;  %v7115_v40 = vld [vmem:[%s12307_s0 + $0x1c] sm:$0xf] }
  0x9d   :  { %v2320_v62 = vrot.slane %v2319_v32, 4  ;;  %v3320_v2 = vrot.slane %v3318_v54, 4  ;;  %3712 = vrot.lane.b32.xlu1 %v9069_v1, %s8165_s9  ;;  %v9165_v6 = vsel %vm8437_vm5, %v7735_v19, %v4915_v20  ;;  %698 = vst.msk [vmem:[#allocation2 + $0x60] sm:$0xff] %vm691_vm7, %v656_v61  ;;  %v5363_v0 = vshrl.u32 %v7815_v45, 16  ;;  %v7500_v1 = vld [vmem:[%s12307_s0 + $0xec] sm:$0x1] }
  0x9e   :  { %v3311_v52 = vor.u32 %v3310_v60, %v3307_v59  ;;  %v5366_v7 = vshll.u32 %v7815_v45, 16  ;;  %v7671_v12 = vcombine.low %v4334_v51, %v4344_v57  ;;  %v9179_v14 = vsel %vm8437_vm5, %v4917_v42, %v4918_v55  ;;  %v7116_v39 = vld [vmem:[%s12307_s0 + $0x20] sm:$0x1]  ;;  %v8082_v42 = vld [vmem:[%s12307_s0 + $0x18] sm:$0xff]   ;;  %v7626_v48 = vld [vmem:[%s12307_s0 + $0xf0] sm:$0xf] }
  0x9f   :  { %v3321_v15 = vor.u32 %v3320_v2, %v3316_v63  ;;  %v5372_v17 = vshll.u32 %v7816_v28, 16  ;;  %v3326_v19 = vrot.slane %v3324_v13, 5  ;;  %v5365_v20 = vrot.slane %v5363_v0, 4  ;;  %v7628_v53 = vld [vmem:[%s12307_s0 + $0xf8] sm:$0x1] }
  0xa0   :  { %v3312_v18 = vrot.slane %v3311_v52, 4  ;;  %v5368_v23 = vrot.slane %v5366_v7, 5  ;;  %1706 = vrot.lane.b32.xlu0 %v9081_v9, %s8168_s19  ;;  %v5376_v29 = vshrl.u32 %v7816_v28, 16  ;;  %v5382_v30 = vshll.u32 %v7817_v5, 16  ;;  %v7114_v9 = vld [vmem:[%s12307_s0 + $0x18] sm:$0xe] }
  0xa1   :  { %v3322_v24 = vrot.slane %v3321_v15, 4  ;;  %v9183_v25 = vrot.slane %v5372_v17, 5  ;;  %4209 = vrot.lane.b32.xlu1 %v8077_v56, %s8167_s28  ;;  %v2315_v55 = vsel %vm8219_vm2, %v9154_v58, %v9133_v44  ;;  %v2325_v27 = vsel %vm8219_vm2, %v2320_v62, %v9139_v49  ;;  %v662_v31 = vpop.permute.xlu1 %661  ;;  %v7627_v49 = vld [vmem:[%s12307_s0 + $0xf4] sm:$0xf]  ;;  %v7690_v13 = vld [vmem:[%s12307_s0 + $0xf0] sm:$0xe] }
  0xa2   :  { %v5369_v34 = vor.u32 %v5368_v23, %v5365_v20  ;;  %v3881_v36 = vrot.slane %v7499_v46, 5  ;;  %701 = vst.msk [vmem:[#allocation2 + $0x90] sm:$0xff] %vm691_vm7, %v662_v31  ;;  %v5378_v21 = vrot.slane %v5376_v29, 4  ;;  %v5384_v16 = vrot.slane %v5382_v30, 5  ;;  %v7692_v46 = vld [vmem:[%s12307_s0 + $0xf8] sm:$0x1] }
  0xa3   :  { %v7544_v22 = vrot.slane %v7498_v8, 9  ;;  %v3884_v33 = vrot.slane %v7500_v1, 5  ;;  %v3317_v44 = vsel %vm8219_vm2, %v3312_v18, %v3316_v63  ;;  %v3327_v35 = vsel %vm8219_vm2, %v3322_v24, %v3326_v19  ;;  %v7691_v8 = vld [vmem:[%s12307_s0 + $0xf4] sm:$0xf]  ;;  %v7242_v18 = vld [vmem:[%s12307_s0 + $0x24] sm:$0xf] }
  0xa4   :  { %v5370_v45 = vrot.slane %v5369_v34, 4  ;;  %v3883_v47 = vrot.slane %v3881_v36, 4  ;;  %4032 = vrot.lane.b32.xlu0 %v7559_v41, %s8166_s20  ;;  %v660_v38 = vpop.permute.xlu0 %659  ;;  %v5379_v50 = vor.u32 %v5378_v21, %v9183_v25  ;;  %v7160_v28 = vrot.slane %v7114_v9, 9  ;;  %v8085_v1 = vld [vmem:[%s12307_s0 + $0xf0] sm:$0xff]   ;;  %v7244_v29 = vld [vmem:[%s12307_s0 + $0x2c] sm:$0x1] }
  0xa5   :  { %v1860_v51 = vrot.slane %v7115_v40, 5  ;;  %v1863_v32 = vrot.slane %v7116_v39, 5  ;;  %2011 = vrot.lane.b32.xlu1 %v7175_v43, %s8169_s25  ;;  %v7751_v4 = vcombine.low %v9165_v6, %v9179_v14  ;;  %v7287_v37 = vcombine.low %v2315_v55, %v2325_v27  ;;  %700 = vst.msk [vmem:[#allocation2 + $0x80] sm:$0xff] %vm691_vm7, %v660_v38  ;;  %v7437_v21 = vld [vmem:[%s12307_s0 + $0xf0] sm:$0xf] }
  0xa6   :  { %v4346_v41 = vshrl.u32 %v7626_v48, 16  ;;  %v4349_v54 = vshll.u32 %v7626_v48, 16  ;;  %v9231_v56 = vcombine.low %v3317_v44, %v3327_v35  ;;  %v5380_v57 = vrot.slane %v5379_v50, 4  ;;  %v7438_v35 = vld [vmem:[%s12307_s0 + $0xf4] sm:$0xf] }
  0xa7   :  { %v9235_v58 = vsel %vm8437_vm5, %v7544_v22, %v3881_v36  ;;  %v1862_v59 = vrot.slane %v1860_v51, 4  ;;  %v4355_v10 = vshll.u32 %v7627_v49, 16  ;;  %v4359_v11 = vshrl.u32 %v7627_v49, 16  ;;  %v7439_v38 = vld [vmem:[%s12307_s0 + $0xf8] sm:$0x1] }
  0xa8   :  { %v4348_v60 = vrot.slane %v4346_v41, 4  ;;  %v4351_v61 = vrot.slane %v4349_v54, 5  ;;  %4753 = vrot.lane.b32.xlu0 %v7671_v12, %s8168_s19  ;;  %v5375_v43 = vsel %vm8219_vm2, %v5370_v45, %v9183_v25  ;;  %v5385_v62 = vsel %vm8219_vm2, %v5380_v57, %v5384_v16  ;;  %v7243_v25 = vld [vmem:[%s12307_s0 + $0x28] sm:$0xf] }
  0xa9   :  { %v9245_v63 = vsel %vm8437_vm5, %v3883_v47, %v3884_v33  ;;  %v4365_v2 = vshll.u32 %v7628_v53, 16  ;;  %2189 = vrot.lane.b32.xlu1 %v8082_v42, %s8170_s29  ;;  %v666_v5 = vpop.permute.xlu1 %665  ;;  %v9253_v6 = vsel %vm8437_vm5, %v7160_v28, %v1860_v51  ;;  %v9257_v52 = vsel %vm8437_vm5, %v1862_v59, %v1863_v32  ;;  %v8119_v16 = vld [vmem:[%s12307_s0 + $0xe4] sm:$0xff]   ;;  %v7818_v53 = vld [vmem:[%s12307_s0 + $0xfc] sm:$0xf] }
  0xaa   :  { %v4352_v0 = vor.u32 %v4351_v61, %v4348_v60  ;;  %v9259_v7 = vrot.slane %v4355_v10, 5  ;;  %703 = vst.msk [vmem:[#allocation2 + $0xb0] sm:$0xff] %vm691_vm7, %v666_v5  ;;  %v4361_v12 = vrot.slane %v4359_v11, 4  ;;  %v7736_v15 = vrot.slane %v7690_v13, 9  ;;  %v7819_v60 = vld [vmem:[%s12307_s0 + $0x100] sm:$0xf] }
  0xab   :  { %v4367_v14 = vrot.slane %v4365_v2, 5  ;;  %v4922_v17 = vrot.slane %v7691_v8, 5  ;;  %v7863_v19 = vcombine.low %v5375_v43, %v5385_v62  ;;  %v7560_v20 = vcombine.low %v9235_v58, %v9245_v63  ;;  %3217 = vst.msk [vmem:[#allocation2 + $0x110] sm:$0xff] %vm143_vm6, %v8119_v16  ;;  %v7820_v8 = vld [vmem:[%s12307_s0 + $0x104] sm:$0x1] }
  0xac   :  { %v4353_v23 = vrot.slane %v4352_v0, 4  ;;  %v4925_v24 = vrot.slane %v7692_v46, 5  ;;  %5073 = vrot.lane.b32.xlu0 %v7751_v4, %s8169_s25  ;;  %v7176_v30 = vcombine.low %v9253_v6, %v9257_v52  ;;  %v4362_v55 = vor.u32 %v4361_v12, %v9259_v7  ;;  %v8090_v4 = vld [vmem:[%s12307_s0 + $0xf0] sm:$0xff]  }
  0xad   :  { %v4924_v27 = vrot.slane %v4922_v17, 4  ;;  %v2327_v31 = vshrl.u32 %v7242_v18, 16  ;;  %2734 = vrot.lane.b32.xlu1 %v7287_v37, %s8171_s16  ;;  %v9289_v34 = vsel %vm8437_vm5, %v7736_v15, %v4922_v17  ;;  %v2330_v36 = vshll.u32 %v7242_v18, 16  ;;  %v7502_v18 = vld [vmem:[%s12307_s0 + $0xf4] sm:$0xf] }
  0xae   :  { %v2336_v9 = vshll.u32 %v7243_v25, 16  ;;  %v2340_v40 = vshrl.u32 %v7243_v25, 16  ;;  %v664_v22 = vpop.permute.xlu0 %663  ;;  %v4363_v33 = vrot.slane %v4362_v55, 4  ;;  %v2346_v44 = vshll.u32 %v7244_v29, 16  ;;  %v7503_v55 = vld [vmem:[%s12307_s0 + $0xf8] sm:$0x1] }
  0xaf   :  { %v9299_v39 = vsel %vm8437_vm5, %v4924_v27, %v4925_v24  ;;  %v2329_v42 = vrot.slane %v2327_v31, 4  ;;  %702 = vst.msk [vmem:[#allocation2 + $0xa0] sm:$0xff] %vm691_vm7, %v664_v22  ;;  %v4358_v45 = vsel %vm8219_vm2, %v4353_v23, %v9259_v7  ;;  %v2332_v47 = vrot.slane %v2330_v36, 5  ;;  %v7117_v27 = vld [vmem:[%s12307_s0 + $0x24] sm:$0xe] }
  0xb0   :  { %v9308_v48 = vrot.slane %v2336_v9, 5  ;;  %v2342_v49 = vrot.slane %v2340_v40, 4  ;;  %5250 = vrot.lane.b32.xlu0 %v8085_v1, %s8170_s29  ;;  %v4368_v50 = vsel %vm8219_vm2, %v4363_v33, %v4367_v14  ;;  %v7752_v28 = vcombine.low %v9289_v34, %v9299_v39  ;;  %v7501_v1 = vld [vmem:[%s12307_s0 + $0xf0] sm:$0xe]  ;;  %v8095_v31 = vld [vmem:[%s12307_s0 + $0x24] sm:$0xff]  }
  0xb1   :  { %v3329_v51 = vshrl.u32 %v7437_v21, 16  ;;  %v3332_v32 = vshll.u32 %v7437_v21, 16  ;;  %3714 = vrot.lane.b32.xlu1 %v9231_v56, %s8165_s9  ;;  %v670_v37 = vpop.permute.xlu1 %669  ;;  %v2333_v41 = vor.u32 %v2332_v47, %v2329_v42  ;;  %v2348_v57 = vrot.slane %v2346_v44, 5  ;;  %v7118_v44 = vld [vmem:[%s12307_s0 + $0x28] sm:$0xf] }
  0xb2   :  { %v2343_v54 = vor.u32 %v2342_v49, %v9308_v48  ;;  %v3338_v59 = vshll.u32 %v7438_v35, 16  ;;  %705 = vst.msk [vmem:[#allocation2 + $0xd0] sm:$0xff] %vm691_vm7, %v670_v37  ;;  %v3342_v11 = vshrl.u32 %v7438_v35, 16  ;;  %v3348_v56 = vshll.u32 %v7439_v38, 16  ;;  %v7119_v35 = vld [vmem:[%s12307_s0 + $0x2c] sm:$0x1] }
  0xb3   :  { %v3331_v61 = vrot.slane %v3329_v51, 4  ;;  %v3334_v10 = vrot.slane %v3332_v32, 5  ;;  %v2334_v43 = vrot.slane %v2333_v41, 4  ;;  %v5387_v13 = vshrl.u32 %v7818_v53, 16  ;;  %v7629_v47 = vld [vmem:[%s12307_s0 + $0xfc] sm:$0xf] }
  0xb4   :  { %v2344_v62 = vrot.slane %v2343_v54, 4  ;;  %v3340_v2 = vrot.slane %v3338_v59, 5  ;;  %5794 = vrot.lane.b32.xlu0 %v7863_v19, %s8171_s16  ;;  %v7672_v5 = vcombine.low %v4358_v45, %v4368_v50  ;;  %v3344_v7 = vrot.slane %v3342_v11, 4  ;;  %v7693_v59 = vld [vmem:[%s12307_s0 + $0xfc] sm:$0xe] }
  0xb5   :  { %v3335_v0 = vor.u32 %v3334_v10, %v3331_v61  ;;  %v5390_v46 = vshll.u32 %v7818_v53, 16  ;;  %4211 = vrot.lane.b32.xlu1 %v8090_v4, %s8167_s28  ;;  %v2339_v12 = vsel %vm8219_vm2, %v2334_v43, %v9308_v48  ;;  %v3350_v14 = vrot.slane %v3348_v56, 5  ;;  %v7630_v53 = vld [vmem:[%s12307_s0 + $0x100] sm:$0xf]  ;;  %v7631_v4 = vld [vmem:[%s12307_s0 + $0x104] sm:$0x1] }
  0xb6   :  { %v5389_v15 = vrot.slane %v5387_v13, 4  ;;  %v5396_v17 = vshll.u32 %v7819_v60, 16  ;;  %v668_v19 = vpop.permute.xlu0 %667  ;;  %v2349_v23 = vsel %vm8219_vm2, %v2344_v62, %v2348_v57  ;;  %v3345_v25 = vor.u32 %v3344_v7, %v3340_v2  ;;  %v7695_v43 = vld [vmem:[%s12307_s0 + $0x104] sm:$0x1]  ;;  %v7245_v62 = vld [vmem:[%s12307_s0 + $0x30] sm:$0xf] }
  0xb7   :  { %v3336_v24 = vrot.slane %v3335_v0, 4  ;;  %v5392_v29 = vrot.slane %v5390_v46, 5  ;;  %704 = vst.msk [vmem:[#allocation2 + $0xc0] sm:$0xff] %vm691_vm7, %v668_v19  ;;  %vm1015_vm8 = vcmask 392448   ;;  %v5400_v9 = vshrl.u32 %v7819_v60, 16 }
  0xb8   :  { %v5398_v36 = vrot.slane %v5396_v17, 5  ;;  %v5406_v40 = vshll.u32 %v7820_v8, 16  ;;  %v7545_v21 = vrot.slane %v7501_v1, 9  ;;  %4034 = vrot.lane.b32.xlu0 %v7560_v20, %s8166_s20  ;;  %v3346_v22 = vrot.slane %v3345_v25, 4  ;;  %v7694_v60 = vld [vmem:[%s12307_s0 + $0x100] sm:$0xf] }
  0xb9   :  { %v3341_v16 = vsel %vm8219_vm2, %v3336_v24, %v3340_v2  ;;  %v5393_v33 = vor.u32 %v5392_v29, %v5389_v15  ;;  %v3888_v42 = vrot.slane %v7502_v18, 5  ;;  %2013 = vrot.lane.b32.xlu1 %v7176_v30, %s8169_s25  ;;  %v5402_v58 = vrot.slane %v5400_v9, 4  ;;  %v7246_v15 = vld [vmem:[%s12307_s0 + $0x34] sm:$0xf]  ;;  %v8096_v17 = vld [vmem:[%s12307_s0 + $0xfc] sm:$0xff]  }
  0xba   :  { %v5408_v63 = vrot.slane %v5406_v40, 5  ;;  %v3891_v20 = vrot.slane %v7503_v55, 5  ;;  %v7161_v45 = vrot.slane %v7117_v27, 9  ;;  %v7288_v48 = vcombine.low %v2339_v12, %v2349_v23  ;;  %v7247_v25 = vld [vmem:[%s12307_s0 + $0x38] sm:$0x1] }
  0xbb   :  { %v3351_v49 = vsel %vm8219_vm2, %v3346_v22, %v3350_v14  ;;  %v5394_v38 = vrot.slane %v5393_v33, 4  ;;  %v3890_v50 = vrot.slane %v3888_v42, 4  ;;  %v674_v51 = vpop.permute.xlu1 %673  ;;  %v5403_v32 = vor.u32 %v5402_v58, %v5398_v36  ;;  %v7440_v55 = vld [vmem:[%s12307_s0 + $0xfc] sm:$0xf] }
  0xbc   :  { %v9381_v6 = vsel %vm8437_vm5, %v7545_v21, %v3888_v42  ;;  %v1867_v52 = vrot.slane %v7118_v44, 5  ;;  %v1870_v30 = vrot.slane %v7119_v35, 5  ;;  %4755 = vrot.lane.b32.xlu0 %v7672_v5, %s8168_s19  ;;  %707 = vst.msk [vmem:[#allocation2 + $0xf0] sm:$0xff] %vm691_vm7, %v674_v51  ;;  %v7481_v37 = vcombine.low %v3341_v16, %v3351_v49  ;;  %v7441_v21 = vld [vmem:[%s12307_s0 + $0x100] sm:$0xf] }
  0xbd   :  { %v9393_v41 = vsel %vm8437_vm5, %v3890_v50, %v3891_v20  ;;  %v4370_v54 = vshrl.u32 %v7629_v47, 16  ;;  %v4373_v57 = vshll.u32 %v7629_v47, 16  ;;  %2191 = vrot.lane.b32.xlu1 %v8095_v31, %s8170_s29  ;;  %v5399_v61 = vsel %vm8219_vm2, %v5394_v38, %v5398_v36  ;;  %v8125_v50 = vld [vmem:[%s12307_s0 + $0xf0] sm:$0xff]  }
  0xbe   :  { %v5404_v10 = vrot.slane %v5403_v32, 4  ;;  %v9406_v11 = vsel %vm8437_vm5, %v7161_v45, %v1867_v52  ;;  %v1869_v56 = vrot.slane %v1867_v52, 4  ;;  %v672_v2 = vpop.permute.xlu0 %671  ;;  %v4379_v0 = vshll.u32 %v7630_v53, 16  ;;  %v8097_v45 = vld [vmem:[%s12307_s0 + $0xfc] sm:$0xff]   ;;  %3218 = vst.msk [vmem:[#allocation2 + $0x120] sm:$0xff] %vm143_vm6, %v8125_v50 }
  0xbf   :  { %v4372_v13 = vrot.slane %v4370_v54, 4  ;;  %v4375_v5 = vrot.slane %v4373_v57, 5  ;;  %v4383_v7 = vshrl.u32 %v7630_v53, 16  ;;  %706 = vst.msk [vmem:[#allocation2 + $0xe0] sm:$0xff] %vm691_vm7, %v672_v2  ;;  %v970_v8 = vpop.permute.xlu1 %969  ;;  %v7561_v1 = vcombine.low %v9381_v6, %v9393_v41  ;;  %v7822_v2 = vld [vmem:[%s12307_s0 + $0x10c] sm:$0xf] }
  0xc0   :  { %v5409_v46 = vsel %vm8219_vm2, %v5404_v10, %v5408_v63  ;;  %v9421_v12 = vsel %vm8437_vm5, %v1869_v56, %v1870_v30  ;;  %v4389_v14 = vshll.u32 %v7631_v4, 16  ;;  %5075 = vrot.lane.b32.xlu0 %v7752_v28, %s8169_s25  ;;  %1017 = vst.msk [vmem:[#allocation2 + $0x10] sm:$0xff] %vm1015_vm8, %v970_v8  ;;  %v9434_v23 = vrot.slane %v4379_v0, 5  ;;  %v7442_v30 = vld [vmem:[%s12307_s0 + $0x104] sm:$0x1] }
  0xc1   :  { %v7864_v18 = vcombine.low %v5399_v61, %v5409_v46  ;;  %v4376_v19 = vor.u32 %v4375_v5, %v4372_v13  ;;  %v7737_v24 = vrot.slane %v7693_v59, 9  ;;  %2736 = vrot.lane.b32.xlu1 %v7288_v48, %s8171_s16  ;;  %v7177_v34 = vcombine.low %v9406_v11, %v9421_v12  ;;  %v7821_v61 = vld [vmem:[%s12307_s0 + $0x108] sm:$0xf]  ;;  %v7823_v8 = vld [vmem:[%s12307_s0 + $0x110] sm:$0x1] }
  0xc2   :  { %v4385_v39 = vrot.slane %v4383_v7, 4  ;;  %v4929_v28 = vrot.slane %v7694_v60, 5  ;;  %v4932_v29 = vrot.slane %v7695_v43, 5  ;;  %v968_v27 = vpop.permute.xlu0 %967  ;;  %v2351_v36 = vshrl.u32 %v7245_v62, 16  ;;  %v7120_v41 = vld [vmem:[%s12307_s0 + $0x30] sm:$0xe] }
  0xc3   :  { %v4377_v31 = vrot.slane %v4376_v19, 4  ;;  %v2354_v9 = vshll.u32 %v7245_v62, 16  ;;  %v2360_v40 = vshll.u32 %v7246_v15, 16  ;;  %1016 = vst.msk [vmem:[#allocation2] sm:$0xff] %vm1015_vm8, %v968_v27  ;;  %v974_v16 = vpop.permute.xlu1 %973  ;;  %v4391_v33 = vrot.slane %v4389_v14, 5 }
  0xc4   :  { %v4386_v22 = vor.u32 %v4385_v39, %v9434_v23  ;;  %v4931_v42 = vrot.slane %v4929_v28, 4  ;;  %v2364_v44 = vshrl.u32 %v7246_v15, 16  ;;  %5252 = vrot.lane.b32.xlu0 %v8096_v17, %s8170_s29  ;;  %1019 = vst.msk [vmem:[#allocation2 + $0x30] sm:$0xff] %vm1015_vm8, %v974_v16  ;;  %v9454_v35 = vsel %vm8437_vm5, %v7737_v24, %v4929_v28  ;;  %v7504_v19 = vld [vmem:[%s12307_s0 + $0xfc] sm:$0xe] }
  0xc5   :  { %v2353_v58 = vrot.slane %v2351_v36, 4  ;;  %v2356_v63 = vrot.slane %v2354_v9, 5  ;;  %v9456_v20 = vrot.slane %v2360_v40, 5  ;;  %3716 = vrot.lane.b32.xlu1 %v7481_v37, %s8165_s9  ;;  %v2370_v38 = vshll.u32 %v7247_v25, 16  ;;  %v8098_v40 = vld [vmem:[%s12307_s0 + $0x30] sm:$0xff]  }
  0xc6   :  { %v4387_v47 = vrot.slane %v4386_v22, 4  ;;  %v9464_v48 = vsel %vm8437_vm5, %v4931_v42, %v4932_v29  ;;  %v2366_v49 = vrot.slane %v2364_v44, 4  ;;  %v972_v51 = vpop.permute.xlu0 %971  ;;  %v4382_v32 = vsel %vm8219_vm2, %v4377_v31, %v9434_v23  ;;  %v7505_v23 = vld [vmem:[%s12307_s0 + $0x100] sm:$0xf]  ;;  %v7121_v11 = vld [vmem:[%s12307_s0 + $0x34] sm:$0xf] }
  0xc7   :  { %v2357_v52 = vor.u32 %v2356_v63, %v2353_v58  ;;  %v3353_v53 = vshrl.u32 %v7440_v55, 16  ;;  %v3356_v4 = vshll.u32 %v7440_v55, 16  ;;  %1018 = vst.msk [vmem:[#allocation2 + $0x20] sm:$0xff] %vm1015_vm8, %v972_v51  ;;  %v978_v37 = vpop.permute.xlu1 %977  ;;  %v2372_v59 = vrot.slane %v2370_v38, 5  ;;  %v7506_v55 = vld [vmem:[%s12307_s0 + $0x104] sm:$0x1] }
  0xc8   :  { %v4392_v54 = vsel %vm8219_vm2, %v4387_v47, %v4391_v33  ;;  %v2367_v57 = vor.u32 %v2366_v49, %v9456_v20  ;;  %v3362_v60 = vshll.u32 %v7441_v21, 16  ;;  %5796 = vrot.lane.b32.xlu0 %v7864_v18, %s8171_s16  ;;  %1021 = vst.msk [vmem:[#allocation2 + $0x50] sm:$0xff] %vm1015_vm8, %v978_v37  ;;  %v7753_v10 = vcombine.low %v9454_v35, %v9464_v48  ;;  %v7122_v12 = vld [vmem:[%s12307_s0 + $0x38] sm:$0x1]  ;;  %v7632_v49 = vld [vmem:[%s12307_s0 + $0x108] sm:$0xf] }
  0xc9   :  { %v2358_v56 = vrot.slane %v2357_v52, 4  ;;  %v3355_v43 = vrot.slane %v3353_v53, 4  ;;  %v3358_v62 = vrot.slane %v3356_v4, 5  ;;  %4213 = vrot.lane.b32.xlu1 %v8097_v45, %s8167_s28  ;;  %v3366_v0 = vshrl.u32 %v7441_v21, 16  ;;  %v7633_v52 = vld [vmem:[%s12307_s0 + $0x10c] sm:$0xf] }
  0xca   :  { %v2368_v13 = vrot.slane %v2367_v57, 4  ;;  %v3364_v5 = vrot.slane %v3362_v60, 5  ;;  %v3372_v7 = vshll.u32 %v7442_v30, 16  ;;  %v976_v46 = vpop.permute.xlu0 %975  ;;  %v7673_v14 = vcombine.low %v4382_v32, %v4392_v54  ;;  %v7634_v54 = vld [vmem:[%s12307_s0 + $0x110] sm:$0x1] }
  0xcb   :  { %v3359_v15 = vor.u32 %v3358_v62, %v3355_v43  ;;  %v5411_v17 = vshrl.u32 %v7821_v61, 16  ;;  %v5414_v18 = vshll.u32 %v7821_v61, 16  ;;  %1020 = vst.msk [vmem:[#allocation2 + $0x40] sm:$0xff] %vm1015_vm8, %v976_v46  ;;  %v982_v24 = vpop.permute.xlu1 %981  ;;  %v2363_v25 = vsel %vm8219_vm2, %v2358_v56, %v9456_v20  ;;  %v7696_v43 = vld [vmem:[%s12307_s0 + $0x108] sm:$0xe] }
  0xcc   :  { %v2373_v39 = vsel %vm8219_vm2, %v2368_v13, %v2372_v59  ;;  %v3368_v28 = vrot.slane %v3366_v0, 4  ;;  %v5420_v29 = vshll.u32 %v7822_v2, 16  ;;  %4036 = vrot.lane.b32.xlu0 %v7561_v1, %s8166_s20  ;;  %1023 = vst.msk [vmem:[#allocation2 + $0x70] sm:$0xff] %vm1015_vm8, %v982_v24  ;;  %v3374_v31 = vrot.slane %v3372_v7, 5  ;;  %v7249_v24 = vld [vmem:[%s12307_s0 + $0x40] sm:$0xf] }
  0xcd   :  { %v3360_v27 = vrot.slane %v3359_v15, 4  ;;  %v5413_v36 = vrot.slane %v5411_v17, 4  ;;  %v5416_v9 = vrot.slane %v5414_v18, 5  ;;  %2015 = vrot.lane.b32.xlu1 %v7177_v34, %s8169_s25  ;;  %v5424_v22 = vshrl.u32 %v7822_v2, 16  ;;  %v8099_v2 = vld [vmem:[%s12307_s0 + $0x108] sm:$0xff]  }
  0xce   :  { %v3369_v21 = vor.u32 %v3368_v28, %v3364_v5  ;;  %v5422_v16 = vrot.slane %v5420_v29, 5  ;;  %v5430_v6 = vshll.u32 %v7823_v8, 16  ;;  %v980_v1 = vpop.permute.xlu0 %979  ;;  %v7289_v33 = vcombine.low %v2363_v25, %v2373_v39  ;;  %v7697_v8 = vld [vmem:[%s12307_s0 + $0x10c] sm:$0xf]  ;;  %v7698_v18 = vld [vmem:[%s12307_s0 + $0x110] sm:$0x1] }
  0xcf   :  { %v5417_v42 = vor.u32 %v5416_v9, %v5413_v36  ;;  %v7546_v44 = vrot.slane %v7504_v19, 9  ;;  %v3895_v58 = vrot.slane %v7505_v23, 5  ;;  %1022 = vst.msk [vmem:[#allocation2 + $0x60] sm:$0xff] %vm1015_vm8, %v980_v1  ;;  %v986_v34 = vpop.permute.xlu1 %985  ;;  %v3365_v63 = vsel %vm8219_vm2, %v3360_v27, %v3364_v5  ;;  %v8100_v1 = vld [vmem:[%s12307_s0 + $0x108] sm:$0xff]  }
  0xd0   :  { %v3370_v20 = vrot.slane %v3369_v21, 4  ;;  %v5426_v45 = vrot.slane %v5424_v22, 4  ;;  %v3898_v47 = vrot.slane %v7506_v55, 5  ;;  %4757 = vrot.lane.b32.xlu0 %v7673_v14, %s8168_s19  ;;  %1025 = vst.msk [vmem:[#allocation2 + $0x90] sm:$0xff] %vm1015_vm8, %v986_v34  ;;  %v5432_v50 = vrot.slane %v5430_v6, 5 }
  0xd1   :  { %v5418_v38 = vrot.slane %v5417_v42, 4  ;;  %v9540_v51 = vsel %vm8437_vm5, %v7546_v44, %v3895_v58  ;;  %v3897_v32 = vrot.slane %v3895_v58, 4  ;;  %2193 = vrot.lane.b32.xlu1 %v8098_v40, %s8170_s29  ;;  %v7162_v4 = vrot.slane %v7120_v41, 9  ;;  %v7250_v22 = vld [vmem:[%s12307_s0 + $0x44] sm:$0x1] }
  0xd2   :  { %v3375_v30 = vsel %vm8219_vm2, %v3370_v20, %v3374_v31  ;;  %v5427_v53 = vor.u32 %v5426_v45, %v5422_v16  ;;  %v1874_v37 = vrot.slane %v7121_v11, 5  ;;  %v984_v57 = vpop.permute.xlu0 %983  ;;  %v1877_v56 = vrot.slane %v7122_v12, 5  ;;  %v7443_v45 = vld [vmem:[%s12307_s0 + $0x108] sm:$0xf] }
  0xd3   :  { %v7482_v59 = vcombine.low %v3365_v63, %v3375_v30  ;;  %v5423_v60 = vsel %vm8219_vm2, %v5418_v38, %v5422_v16  ;;  %v9555_v61 = vsel %vm8437_vm5, %v3897_v32, %v3898_v47  ;;  %1024 = vst.msk [vmem:[#allocation2 + $0x80] sm:$0xff] %vm1015_vm8, %v984_v57  ;;  %v990_v62 = vpop.permute.xlu1 %989  ;;  %v4394_v46 = vshrl.u32 %v7632_v49, 16  ;;  %v7824_v57 = vld [vmem:[%s12307_s0 + $0x114] sm:$0xf] }
  0xd4   :  { %v5428_v13 = vrot.slane %v5427_v53, 4  ;;  %v7562_v5 = vcombine.low %v9540_v51, %v9555_v61  ;;  %v9568_v0 = vsel %vm8437_vm5, %v7162_v4, %v1874_v37  ;;  %v1876_v7 = vrot.slane %v1874_v37, 4  ;;  %5077 = vrot.lane.b32.xlu0 %v7753_v10, %s8169_s25  ;;  %1027 = vst.msk [vmem:[#allocation2 + $0xb0] sm:$0xff] %vm1015_vm8, %v990_v62  ;;  %v7248_v10 = vld [vmem:[%s12307_s0 + $0x3c] sm:$0xf] }
  0xd5   :  { %v4397_v14 = vshll.u32 %v7632_v49, 16  ;;  %v4403_v15 = vshll.u32 %v7633_v52, 16  ;;  %v4407_v17 = vshrl.u32 %v7633_v52, 16  ;;  %2738 = vrot.lane.b32.xlu1 %v7289_v33, %s8171_s16  ;;  %v4413_v35 = vshll.u32 %v7634_v54, 16  ;;  %v7444_v52 = vld [vmem:[%s12307_s0 + $0x10c] sm:$0xf] }
  0xd6   :  { %v5433_v19 = vsel %vm8219_vm2, %v5428_v13, %v5432_v50  ;;  %v9586_v23 = vsel %vm8437_vm5, %v1876_v7, %v1877_v56  ;;  %v7738_v48 = vrot.slane %v7696_v43, 9  ;;  %v988_v25 = vpop.permute.xlu0 %987  ;;  %v4396_v29 = vrot.slane %v4394_v46, 4  ;;  %v7445_v54 = vld [vmem:[%s12307_s0 + $0x110] sm:$0x1]  ;;  %v8101_v51 = vld [vmem:[%s12307_s0 + $0x3c] sm:$0xff]  }
  0xd7   :  { %v7865_v39 = vcombine.low %v5423_v60, %v5433_v19  ;;  %v7178_v28 = vcombine.low %v9568_v0, %v9586_v23  ;;  %v4399_v55 = vrot.slane %v4397_v14, 5  ;;  %1026 = vst.msk [vmem:[#allocation2 + $0xa0] sm:$0xff] %vm1015_vm8, %v988_v25  ;;  %v994_v27 = vpop.permute.xlu1 %993  ;;  %vm1193_vm9 = vcmask 523648   ;;  %v7509_v23 = vld [vmem:[%s12307_s0 + $0x110] sm:$0x1] }
  0xd8   :  { %v4405_v31 = vrot.slane %v4403_v15, 5  ;;  %v4409_v36 = vrot.slane %v4407_v17, 4  ;;  %v4415_v9 = vrot.slane %v4413_v35, 5  ;;  %v4936_v40 = vrot.slane %v7697_v8, 5  ;;  %5254 = vrot.lane.b32.xlu0 %v8099_v2, %s8170_s29  ;;  %1029 = vst.msk [vmem:[#allocation2 + $0xd0] sm:$0xff] %vm1015_vm8, %v994_v27 }
  0xd9   :  { %v4400_v21 = vor.u32 %v4399_v55, %v4396_v29  ;;  %v4939_v16 = vrot.slane %v7698_v18, 5  ;;  %v2375_v6 = vshrl.u32 %v7248_v10, 16  ;;  %v2378_v41 = vshll.u32 %v7248_v10, 16  ;;  %3718 = vrot.lane.b32.xlu1 %v7482_v59, %s8165_s9  ;;  %v8128_v59 = vld [vmem:[%s12307_s0 + $0xfc] sm:$0xff]   ;;  %v7825_v2 = vld [vmem:[%s12307_s0 + $0x118] sm:$0xf] }
  0xda   :  { %v4410_v33 = vor.u32 %v4409_v36, %v4405_v31  ;;  %v9608_v42 = vsel %vm8437_vm5, %v7738_v48, %v4936_v40  ;;  %v4938_v44 = vrot.slane %v4936_v40, 4  ;;  %v2384_v58 = vshll.u32 %v7249_v24, 16  ;;  %v992_v11 = vpop.permute.xlu0 %991  ;;  %3219 = vst.msk [vmem:[#allocation2 + $0x130] sm:$0xff] %vm143_vm6, %v8128_v59  ;;  %v7826_v48 = vld [vmem:[%s12307_s0 + $0x11c] sm:$0x1] }
  0xdb   :  { %v4401_v12 = vrot.slane %v4400_v21, 4  ;;  %v2377_v34 = vrot.slane %v2375_v6, 4  ;;  %v2380_v63 = vrot.slane %v2378_v41, 5  ;;  %v2388_v20 = vshrl.u32 %v7249_v24, 16  ;;  %1028 = vst.msk [vmem:[#allocation2 + $0xc0] sm:$0xff] %vm1015_vm8, %v992_v11  ;;  %v998_v47 = vpop.permute.xlu1 %997 }
  0xdc   :  { %v4411_v49 = vrot.slane %v4410_v33, 4  ;;  %v9616_v38 = vsel %vm8437_vm5, %v4938_v44, %v4939_v16  ;;  %v2386_v50 = vrot.slane %v2384_v58, 5  ;;  %v2394_v32 = vshll.u32 %v7250_v22, 16  ;;  %5798 = vrot.lane.b32.xlu0 %v7865_v39, %s8171_s16  ;;  %1031 = vst.msk [vmem:[#allocation2 + $0xf0] sm:$0xff] %vm1015_vm8, %v998_v47  ;;  %v7507_v29 = vld [vmem:[%s12307_s0 + $0x108] sm:$0xe] }
  0xdd   :  { %v4406_v30 = vsel %vm8219_vm2, %v4401_v12, %v4405_v31  ;;  %v7754_v53 = vcombine.low %v9608_v42, %v9616_v38  ;;  %v2381_v4 = vor.u32 %v2380_v63, %v2377_v34  ;;  %v2390_v37 = vrot.slane %v2388_v20, 4  ;;  %4215 = vrot.lane.b32.xlu1 %v8100_v1, %s8167_s28  ;;  %v7508_v31 = vld [vmem:[%s12307_s0 + $0x10c] sm:$0xf]  ;;  %v7123_v1 = vld [vmem:[%s12307_s0 + $0x3c] sm:$0xe] }
  0xde   :  { %v4416_v60 = vsel %vm8219_vm2, %v4411_v49, %v4415_v9  ;;  %v2396_v56 = vrot.slane %v2394_v32, 5  ;;  %v3377_v43 = vshrl.u32 %v7443_v45, 16  ;;  %v3380_v62 = vshll.u32 %v7443_v45, 16  ;;  %v996_v13 = vpop.permute.xlu0 %995  ;;  %v7124_v33 = vld [vmem:[%s12307_s0 + $0x40] sm:$0xf] }
  0xdf   :  { %v7674_v7 = vcombine.low %v4406_v30, %v4416_v60  ;;  %v2382_v8 = vrot.slane %v2381_v4, 4  ;;  %v2391_v46 = vor.u32 %v2390_v37, %v2386_v50  ;;  %v3386_v14 = vshll.u32 %v7444_v52, 16  ;;  %1030 = vst.msk [vmem:[#allocation2 + $0xe0] sm:$0xff] %vm1015_vm8, %v996_v13  ;;  %v1148_v15 = vpop.permute.xlu1 %1147  ;;  %v7125_v47 = vld [vmem:[%s12307_s0 + $0x44] sm:$0x1] }
  0xe0   :  { %v3379_v17 = vrot.slane %v3377_v43, 4  ;;  %v3382_v18 = vrot.slane %v3380_v62, 5  ;;  %v3390_v19 = vshrl.u32 %v7444_v52, 16  ;;  %v3396_v35 = vshll.u32 %v7445_v54, 16  ;;  %4038 = vrot.lane.b32.xlu0 %v7562_v5, %s8166_s20  ;;  %1195 = vst.msk [vmem:[#allocation2 + $0x10] sm:$0xff] %vm1193_vm9, %v1148_v15  ;;  %v8102_v62 = vld [vmem:[%s12307_s0 + $0x114] sm:$0xff]  }
  0xe1   :  { %v2387_v10 = vsel %vm8219_vm2, %v2382_v8, %v2386_v50  ;;  %v2392_v24 = vrot.slane %v2391_v46, 4  ;;  %v3388_v25 = vrot.slane %v3386_v14, 5  ;;  %v5435_v39 = vshrl.u32 %v7824_v57, 16  ;;  %2017 = vrot.lane.b32.xlu1 %v7178_v28, %s8169_s25  ;;  %v7635_v4 = vld [vmem:[%s12307_s0 + $0x114] sm:$0xf] }
  0xe2   :  { %v3383_v61 = vor.u32 %v3382_v18, %v3379_v17  ;;  %v3392_v5 = vrot.slane %v3390_v19, 4  ;;  %v3398_v55 = vrot.slane %v3396_v35, 5  ;;  %v5438_v27 = vshll.u32 %v7824_v57, 16  ;;  %v1146_v36 = vpop.permute.xlu0 %1145  ;;  %v7637_v43 = vld [vmem:[%s12307_s0 + $0x11c] sm:$0x1] }
  0xe3   :  { %v2397_v9 = vsel %vm8219_vm2, %v2392_v24, %v2396_v56  ;;  %v5437_v40 = vrot.slane %v5435_v39, 4  ;;  %v5444_v21 = vshll.u32 %v7825_v2, 16  ;;  %v5448_v0 = vshrl.u32 %v7825_v2, 16  ;;  %1194 = vst.msk [vmem:[#allocation2] sm:$0xff] %vm1193_vm9, %v1146_v36  ;;  %v1152_v28 = vpop.permute.xlu1 %1151  ;;  %v7636_v56 = vld [vmem:[%s12307_s0 + $0x118] sm:$0xf] }
  0xe4   :  { %v7290_v16 = vcombine.low %v2387_v10, %v2397_v9  ;;  %v3384_v22 = vrot.slane %v3383_v61, 4  ;;  %v3393_v6 = vor.u32 %v3392_v5, %v3388_v25  ;;  %v5440_v41 = vrot.slane %v5438_v27, 5  ;;  %4759 = vrot.lane.b32.xlu0 %v7674_v7, %s8168_s19  ;;  %1197 = vst.msk [vmem:[#allocation2 + $0x30] sm:$0xff] %vm1193_vm9, %v1152_v28  ;;  %v7699_v46 = vld [vmem:[%s12307_s0 + $0x114] sm:$0xe] }
  0xe5   :  { %v5446_v44 = vrot.slane %v5444_v21, 5  ;;  %v5450_v58 = vrot.slane %v5448_v0, 4  ;;  %v5454_v11 = vshll.u32 %v7826_v48, 16  ;;  %v7547_v12 = vrot.slane %v7507_v29, 9  ;;  %2195 = vrot.lane.b32.xlu1 %v8101_v51, %s8170_s29  ;;  %v7700_v15 = vld [vmem:[%s12307_s0 + $0x118] sm:$0xf] }
  0xe6   :  { %v3389_v34 = vsel %vm8219_vm2, %v3384_v22, %v3388_v25  ;;  %v3394_v63 = vrot.slane %v3393_v6, 4  ;;  %v5441_v20 = vor.u32 %v5440_v41, %v5437_v40  ;;  %v3902_v45 = vrot.slane %v7508_v31, 5  ;;  %v1150_v49 = vpop.permute.xlu0 %1149  ;;  %v7701_v48 = vld [vmem:[%s12307_s0 + $0x11c] sm:$0x1]  ;;  %v7251_v51 = vld [vmem:[%s12307_s0 + $0x48] sm:$0xf] }
  0xe7   :  { %v5451_v50 = vor.u32 %v5450_v58, %v5446_v44  ;;  %v5456_v32 = vrot.slane %v5454_v11, 5  ;;  %v3905_v52 = vrot.slane %v7509_v23, 5  ;;  %v7163_v30 = vrot.slane %v7123_v1, 9  ;;  %1196 = vst.msk [vmem:[#allocation2 + $0x20] sm:$0xff] %vm1193_vm9, %v1150_v49  ;;  %v1156_v37 = vpop.permute.xlu1 %1155  ;;  %v8103_v5 = vld [vmem:[%s12307_s0 + $0x114] sm:$0xff]  }
  0xe8   :  { %v3399_v54 = vsel %vm8219_vm2, %v3394_v63, %v3398_v55  ;;  %v5442_v57 = vrot.slane %v5441_v20, 4  ;;  %v9695_v59 = vsel %vm8437_vm5, %v7547_v12, %v3902_v45  ;;  %v3904_v60 = vrot.slane %v3902_v45, 4  ;;  %5079 = vrot.lane.b32.xlu0 %v7754_v53, %s8169_s25  ;;  %1199 = vst.msk [vmem:[#allocation2 + $0x50] sm:$0xff] %vm1193_vm9, %v1156_v37  ;;  %v7252_v36 = vld [vmem:[%s12307_s0 + $0x4c] sm:$0xf] }
  0xe9   :  { %v7483_v2 = vcombine.low %v3389_v34, %v3399_v54  ;;  %v5452_v13 = vrot.slane %v5451_v50, 4  ;;  %v1881_v7 = vrot.slane %v7124_v33, 5  ;;  %v1884_v8 = vrot.slane %v7125_v47, 5  ;;  %2740 = vrot.lane.b32.xlu1 %v7290_v16, %s8171_s16  ;;  %v7253_v6 = vld [vmem:[%s12307_s0 + $0x50] sm:$0x1] }
  0xea   :  { %v5447_v42 = vsel %vm8219_vm2, %v5442_v57, %v5446_v44  ;;  %v9719_v38 = vsel %vm8437_vm5, %v3904_v60, %v3905_v52  ;;  %v4418_v53 = vshrl.u32 %v7635_v4, 16  ;;  %v4421_v14 = vshll.u32 %v7635_v4, 16  ;;  %v1154_v17 = vpop.permute.xlu0 %1153  ;;  %v7446_v45 = vld [vmem:[%s12307_s0 + $0x114] sm:$0xf]  ;;  %v7447_v52 = vld [vmem:[%s12307_s0 + $0x118] sm:$0xf] }
  0xeb   :  { %v5457_v18 = vsel %vm8219_vm2, %v5452_v13, %v5456_v32  ;;  %v7563_v19 = vcombine.low %v9695_v59, %v9719_v38  ;;  %v1883_v35 = vrot.slane %v1881_v7, 4  ;;  %1198 = vst.msk [vmem:[#allocation2 + $0x40] sm:$0xff] %vm1193_vm9, %v1154_v17  ;;  %v1160_v10 = vpop.permute.xlu1 %1159  ;;  %v9734_v24 = vsel %vm8437_vm5, %v7163_v30, %v1881_v7  ;;  %v7448_v30 = vld [vmem:[%s12307_s0 + $0x11c] sm:$0x1]  ;;  %v8132_v59 = vld [vmem:[%s12307_s0 + $0x108] sm:$0xff]  }
  0xec   :  { %v4420_v25 = vrot.slane %v4418_v53, 4  ;;  %v4423_v39 = vrot.slane %v4421_v14, 5  ;;  %v4427_v29 = vshll.u32 %v7636_v56, 16  ;;  %5256 = vrot.lane.b32.xlu0 %v8102_v62, %s8170_s29  ;;  %1201 = vst.msk [vmem:[#allocation2 + $0x70] sm:$0xff] %vm1193_vm9, %v1160_v10  ;;  %v7866_v61 = vcombine.low %v5447_v42, %v5457_v18  ;;  %v8104_v62 = vld [vmem:[%s12307_s0 + $0x48] sm:$0xff]  }
  0xed   :  { %v4431_v55 = vshrl.u32 %v7636_v56, 16  ;;  %v4437_v27 = vshll.u32 %v7637_v43, 16  ;;  %v7739_v31 = vrot.slane %v7699_v46, 9  ;;  %3720 = vrot.lane.b32.xlu1 %v7483_v2, %s8165_s9  ;;  %v1885_v9 = vsel %vm8437_vm5, %v1883_v35, %v1884_v8  ;;  %v7827_v56 = vld [vmem:[%s12307_s0 + $0x120] sm:$0xf]  ;;  %3220 = vst.msk [vmem:[#allocation2 + $0x140] sm:$0xff] %vm143_vm6, %v8132_v59 }
  0xee   :  { %v4424_v40 = vor.u32 %v4423_v39, %v4420_v25  ;;  %v4429_v21 = vrot.slane %v4427_v29, 5  ;;  %v4943_v0 = vrot.slane %v7700_v15, 5  ;;  %v1158_v23 = vpop.permute.xlu0 %1157  ;;  %v4946_v22 = vrot.slane %v7701_v48, 5  ;;  %v7828_v46 = vld [vmem:[%s12307_s0 + $0x124] sm:$0xf] }
  0xef   :  { %v4433_v28 = vrot.slane %v4431_v55, 4  ;;  %v4439_v16 = vrot.slane %v4437_v27, 5  ;;  %v2399_v41 = vshrl.u32 %v7251_v51, 16  ;;  %1200 = vst.msk [vmem:[#allocation2 + $0x60] sm:$0xff] %vm1193_vm9, %v1158_v23  ;;  %v1164_v1 = vpop.permute.xlu1 %1163  ;;  %v2402_v11 = vshll.u32 %v7251_v51, 16 }
  0xf0   :  { %v4425_v33 = vrot.slane %v4424_v40, 4  ;;  %v9756_v44 = vsel %vm8437_vm5, %v7739_v31, %v4943_v0  ;;  %v4945_v58 = vrot.slane %v4943_v0, 4  ;;  %5800 = vrot.lane.b32.xlu0 %v7866_v61, %s8171_s16  ;;  %1203 = vst.msk [vmem:[#allocation2 + $0x90] sm:$0xff] %vm1193_vm9, %v1164_v1  ;;  %v2408_v63 = vshll.u32 %v7252_v36, 16  ;;  %v7829_v10 = vld [vmem:[%s12307_s0 + $0x128] sm:$0x1] }
  0xf1   :  { %v4434_v12 = vor.u32 %v4433_v28, %v4429_v21  ;;  %v2401_v34 = vrot.slane %v2399_v41, 4  ;;  %v2412_v20 = vshrl.u32 %v7252_v36, 16  ;;  %4217 = vrot.lane.b32.xlu1 %v8103_v5, %s8167_s28  ;;  %v7179_v47 = vcombine.low %v9734_v24, %v1885_v9  ;;  %v7510_v29 = vld [vmem:[%s12307_s0 + $0x114] sm:$0xe]  ;;  %v7511_v31 = vld [vmem:[%s12307_s0 + $0x118] sm:$0xf] }
  0xf2   :  { %v9767_v49 = vsel %vm8437_vm5, %v4945_v58, %v4946_v22  ;;  %v2404_v50 = vrot.slane %v2402_v11, 5  ;;  %v2418_v32 = vshll.u32 %v7253_v6, 16  ;;  %v1162_v4 = vpop.permute.xlu0 %1161  ;;  %v4430_v37 = vsel %vm8219_vm2, %v4425_v33, %v4429_v21  ;;  %v7512_v0 = vld [vmem:[%s12307_s0 + $0x11c] sm:$0x1]  ;;  %v7126_v6 = vld [vmem:[%s12307_s0 + $0x48] sm:$0xe] }
  0xf3   :  { %v4435_v54 = vrot.slane %v4434_v12, 4  ;;  %v2410_v57 = vrot.slane %v2408_v63, 5  ;;  %v2414_v60 = vrot.slane %v2412_v20, 4  ;;  %1202 = vst.msk [vmem:[#allocation2 + $0x80] sm:$0xff] %vm1193_vm9, %v1162_v4  ;;  %v1168_v43 = vpop.permute.xlu1 %1167  ;;  %v7755_v2 = vcombine.low %v9756_v44, %v9767_v49  ;;  %v7127_v11 = vld [vmem:[%s12307_s0 + $0x4c] sm:$0xf] }
  0xf4   :  { %v2405_v13 = vor.u32 %v2404_v50, %v2401_v34  ;;  %v2420_v7 = vrot.slane %v2418_v32, 5  ;;  %v3401_v8 = vshrl.u32 %v7446_v45, 16  ;;  %4040 = vrot.lane.b32.xlu0 %v7563_v19, %s8166_s20  ;;  %1205 = vst.msk [vmem:[#allocation2 + $0xb0] sm:$0xff] %vm1193_vm9, %v1168_v43  ;;  %v3404_v14 = vshll.u32 %v7446_v45, 16  ;;  %v9832_v12 = vld [vmem:[%s12307_s0 + $0x50] sm:$0x1] }
  0xf5   :  { %v4440_v42 = vsel %vm8219_vm2, %v4435_v54, %v4439_v16  ;;  %v2415_v53 = vor.u32 %v2414_v60, %v2410_v57  ;;  %v3410_v15 = vshll.u32 %v7447_v52, 16  ;;  %2019 = vrot.lane.b32.xlu1 %v7179_v47, %s8169_s25  ;;  %v3414_v48 = vshrl.u32 %v7447_v52, 16  ;;  %v8105_v63 = vld [vmem:[%s12307_s0 + $0x120] sm:$0xff]  }
  0xf6   :  { %v7675_v17 = vcombine.low %v4430_v37, %v4440_v42  ;;  %v2406_v18 = vrot.slane %v2405_v13, 4  ;;  %v3403_v35 = vrot.slane %v3401_v8, 4  ;;  %v1166_v38 = vpop.permute.xlu0 %1165  ;;  %v3406_v24 = vrot.slane %v3404_v14, 5  ;;  %v7638_v50 = vld [vmem:[%s12307_s0 + $0x120] sm:$0xf] }
  0xf7   :  { %v2416_v19 = vrot.slane %v2415_v53, 4  ;;  %v3412_v25 = vrot.slane %v3410_v15, 5  ;;  %v3420_v39 = vshll.u32 %v7448_v30, 16  ;;  %1204 = vst.msk [vmem:[#allocation2 + $0xa0] sm:$0xff] %vm1193_vm9, %v1166_v38  ;;  %v1172_v51 = vpop.permute.xlu1 %1171  ;;  %vm1738_vm10 = vcmask 654848   ;;  %v8107_v37 = vld [vmem:[%s12308_s1] sm:$0xff]  }
  0xf8   :  { %v2411_v61 = vsel %vm8219_vm2, %v2406_v18, %v2410_v57  ;;  %v3416_v5 = vrot.slane %v3414_v48, 4  ;;  %v5459_v55 = vshrl.u32 %v7827_v56, 16  ;;  %v5462_v27 = vshll.u32 %v7827_v56, 16  ;;  %4761 = vrot.lane.b32.xlu0 %v7675_v17, %s8168_s19  ;;  %1207 = vst.msk [vmem:[#allocation2 + $0xd0] sm:$0xff] %vm1193_vm9, %v1172_v51  ;;  %v7639_v54 = vld [vmem:[%s12307_s0 + $0x124] sm:$0xf] }
  0xf9   :  { %v2421_v36 = vsel %vm8219_vm2, %v2416_v19, %v2420_v7  ;;  %v3407_v9 = vor.u32 %v3406_v24, %v3403_v35  ;;  %v3422_v40 = vrot.slane %v3420_v39, 5  ;;  %v5468_v21 = vshll.u32 %v7828_v46, 16  ;;  %2197 = vrot.lane.b32.xlu1 %v8104_v62, %s8170_s29  ;;  %v7640_v62 = vld [vmem:[%s12307_s0 + $0x128] sm:$0x1]  ;;  %v7702_v18 = vld [vmem:[%s12307_s0 + $0x120] sm:$0xe] }
  0xfa   :  { %v7291_v23 = vcombine.low %v2411_v61, %v2421_v36  ;;  %v3417_v28 = vor.u32 %v3416_v5, %v3412_v25  ;;  %v5461_v16 = vrot.slane %v5459_v55, 4  ;;  %v5464_v22 = vrot.slane %v5462_v27, 5  ;;  %v1170_v41 = vpop.permute.xlu0 %1169  ;;  %v8108_v38 = vld [vmem:[%s12308_s1 + $0x8] sm:$0xff]   ;;  %v7703_v19 = vld [vmem:[%s12307_s0 + $0x124] sm:$0xf] }
  0xfb   :  { %v3408_v1 = vrot.slane %v3407_v9, 4  ;;  %v9824_v33 = vrot.slane %v5468_v21, 5  ;;  %v5472_v44 = vshrl.u32 %v7828_v46, 16  ;;  %v5478_v58 = vshll.u32 %v7829_v10, 16  ;;  %1206 = vst.msk [vmem:[#allocation2 + $0xc0] sm:$0xff] %vm1193_vm9, %v1170_v41  ;;  %v1176_v34 = vpop.permute.xlu1 %1175  ;;  %v8106_v24 = vld [vmem:[%s12307_s0 + $0x120] sm:$0xff]  }
  0xfc   :  { %v3418_v20 = vrot.slane %v3417_v28, 4  ;;  %v5465_v45 = vor.u32 %v5464_v22, %v5461_v16  ;;  %v7548_v47 = vrot.slane %v7510_v29, 9  ;;  %v3909_v49 = vrot.slane %v7511_v31, 5  ;;  %5081 = vrot.lane.b32.xlu0 %v7755_v2, %s8169_s25  ;;  %1209 = vst.msk [vmem:[#allocation2 + $0xf0] sm:$0xff] %vm1193_vm9, %v1176_v34  ;;  %v7704_v61 = vld [vmem:[%s12307_s0 + $0x128] sm:$0x1] }
  0xfd   :  { %v3413_v32 = vsel %vm8219_vm2, %v3408_v1, %v3412_v25  ;;  %v5474_v52 = vrot.slane %v5472_v44, 4  ;;  %v5480_v30 = vrot.slane %v5478_v58, 5  ;;  %v3912_v4 = vrot.slane %v7512_v0, 5  ;;  %2742 = vrot.lane.b32.xlu1 %v7291_v23, %s8171_s16  ;;  %v7254_v9 = vld [vmem:[%s12307_s0 + $0x54] sm:$0xf] }
  0xfe   :  { %v3423_v57 = vsel %vm8219_vm2, %v3418_v20, %v3422_v40  ;;  %v5466_v60 = vrot.slane %v5465_v45, 4  ;;  %v9856_v56 = vsel %vm8437_vm5, %v7548_v47, %v3909_v49  ;;  %v3911_v43 = vrot.slane %v3909_v49, 4  ;;  %v1174_v2 = vpop.permute.xlu0 %1173  ;;  %v8111_v16 = vld [vmem:[%s12308_s1 + $0x10] sm:$0xff]   ;;  %v7255_v22 = vld [vmem:[%s12307_s0 + $0x58] sm:$0xf] }
  0xff   :  { %v7484_v13 = vcombine.low %v3413_v32, %v3423_v57  ;;  %v5475_v7 = vor.u32 %v5474_v52, %v9824_v33  ;;  %v7164_v8 = vrot.slane %v7126_v6, 9  ;;  %1208 = vst.msk [vmem:[#allocation2 + $0xe0] sm:$0xff] %vm1193_vm9, %v1174_v2  ;;  %v1693_v46 = vpop.permute.xlu1 %1692  ;;  %v8172_v14 = vmov 0   ;;  %v7256_v44 = vld [vmem:[%s12307_s0 + $0x5c] sm:$0x1] }
 0x100   :  { %v5471_v42 = vsel %vm8219_vm2, %v5466_v60, %v9824_v33  ;;  %v9868_v53 = vsel %vm8437_vm5, %v3911_v43, %v3912_v4  ;;  %8033 = vmatprep.subr.bf16.mxu1 %v8172_v14  ;;  %v1888_v15 = vrot.slane %v7127_v11, 5  ;;  %v1891_v17 = vrot.slane %v9832_v12, 5  ;;  %6385 = vmatprep.subr.bf16.mxu0 %v8172_v14  ;;  %1740 = vst.msk [vmem:[#allocation2 + $0x10] sm:$0xff] %vm1738_vm10, %v1693_v46  ;;  %v9918_v58 = vld [vmem:[%s12307_s0 + $0x120] sm:$0xf]  ;;  %v8113_v2 = vld [vmem:[%s12308_s1 + $0x18] sm:$0xff]  }
 0x101   :  { %5258 = vrot.lane.b32.xlu0 %v8105_v63, %s8170_s29  ;;  %v5476_v35 = vrot.slane %v5475_v7, 4  ;;  %v7564_v48 = vcombine.low %v9856_v56, %v9868_v53  ;;  %8042 = vmatpush1.bf16.msra.mxu1 %v8107_v37  ;;  %v4442_v10 = vshrl.u32 %v7638_v50, 16  ;;  %v4445_v59 = vshll.u32 %v7638_v50, 16 }
 0x102   :  { %3722 = vrot.lane.b32.xlu1 %v7484_v13, %s8165_s9  ;;  %v1889_v25 = vsel %vm8437_vm5, %v7164_v8, %v1888_v15  ;;  %v1890_v39 = vrot.slane %v1888_v15, 4  ;;  %v4451_v29 = vshll.u32 %v7639_v54, 16  ;;  %v4455_v51 = vshrl.u32 %v7639_v54, 16  ;;  %8034 = vmatprep.subr.bf16.mxu1 %v8172_v14  ;;  %v1691_v5 = vpop.permute.xlu0 %1690  ;;  %v7450_v13 = vld [vmem:[%s12307_s0 + $0x124] sm:$0xf] }
 0x103   :  { %v5481_v55 = vsel %vm8219_vm2, %v5476_v35, %v5480_v30  ;;  %v4444_v27 = vrot.slane %v4442_v10, 4  ;;  %v4447_v31 = vrot.slane %v4445_v59, 5  ;;  %v4461_v36 = vshll.u32 %v7640_v62, 16  ;;  %6386 = vmatpush1.bf16.msra.mxu0 %v8107_v37  ;;  %1739 = vst.msk [vmem:[#allocation2] sm:$0xff] %vm1738_vm10, %v1691_v5  ;;  %v1697_v21 = vpop.permute.xlu1 %1696  ;;  %v8109_v30 = vld [vmem:[%s12307_s0 + $0x54] sm:$0xff]   ;;  %v9962_v10 = vld [vmem:[%s12308_s1 + $0x20] sm:$0xff]  }
 0x104   :  { %v7867_v40 = vcombine.low %v5471_v42, %v5481_v55  ;;  %v1892_v0 = vsel %vm8437_vm5, %v1890_v39, %v1891_v17  ;;  %v4453_v23 = vrot.slane %v4451_v29, 5  ;;  %v4457_v28 = vrot.slane %v4455_v51, 4  ;;  %6387 = vmatprep.subr.bf16.mxu0 %v8172_v14  ;;  %1742 = vst.msk [vmem:[#allocation2 + $0x30] sm:$0xff] %vm1738_vm10, %v1697_v21  ;;  %v7451_v42 = vld [vmem:[%s12307_s0 + $0x128] sm:$0x1] }
 0x105   :  { %v7180_v6 = vcombine.low %v1889_v25, %v1892_v0  ;;  %v4448_v41 = vor.u32 %v4447_v31, %v4444_v27  ;;  %v4463_v1 = vrot.slane %v4461_v36, 5  ;;  %8043 = vmatpush1.bf16.msra.mxu1 %v8108_v38  ;;  %v7740_v33 = vrot.slane %v7702_v18, 9  ;;  %v7831_v39 = vld [vmem:[%s12307_s0 + $0x130] sm:$0xf]  ;;  %v7832_v55 = vld [vmem:[%s12307_s0 + $0x134] sm:$0x1] }
 0x106   :  { %5802 = vrot.lane.b32.xlu0 %v7867_v40, %s8171_s16  ;;  %4219 = vrot.lane.b32.xlu1 %v8106_v24, %s8167_s28  ;;  %v4458_v11 = vor.u32 %v4457_v28, %v4453_v23  ;;  %v4950_v12 = vrot.slane %v7703_v19, 5  ;;  %v4953_v34 = vrot.slane %v7704_v61, 5  ;;  %v2423_v63 = vshrl.u32 %v7254_v9, 16  ;;  %v1695_v20 = vpop.permute.xlu0 %1694  ;;  %v9981_v40 = vld [vmem:[%s12307_s0 + $0x120] sm:$0xe] }
 0x107   :  { %v4449_v45 = vrot.slane %v4448_v41, 4  ;;  %8035 = vmatprep.subr.bf16.mxu1 %v8172_v14  ;;  %v2426_v47 = vshll.u32 %v7254_v9, 16  ;;  %v2432_v49 = vshll.u32 %v7255_v22, 16  ;;  %v2436_v50 = vshrl.u32 %v7255_v22, 16  ;;  %6388 = vmatpush1.bf16.msra.mxu0 %v8108_v38  ;;  %1741 = vst.msk [vmem:[#allocation2 + $0x20] sm:$0xff] %vm1738_vm10, %v1695_v20  ;;  %v1701_v32 = vpop.permute.xlu1 %1700 }
 0x108   :  { %v4459_v52 = vrot.slane %v4458_v11, 4  ;;  %v9929_v4 = vsel %vm8437_vm5, %v7740_v33, %v4950_v12  ;;  %v4952_v37 = vrot.slane %v4950_v12, 4  ;;  %v2425_v54 = vrot.slane %v2423_v63, 4  ;;  %6389 = vmatprep.subr.bf16.mxu0 %v8172_v14  ;;  %1744 = vst.msk [vmem:[#allocation2 + $0x50] sm:$0xff] %vm1738_vm10, %v1701_v32  ;;  %v7514_v22 = vld [vmem:[%s12307_s0 + $0x124] sm:$0xf] }
 0x109   :  { %v4454_v57 = vsel %vm8219_vm2, %v4449_v45, %v4453_v23  ;;  %8044 = vmatpush1.bf16.msra.mxu1 %v8111_v16  ;;  %v2428_v60 = vrot.slane %v2426_v47, 5  ;;  %v2434_v43 = vrot.slane %v2432_v49, 5  ;;  %v2438_v62 = vrot.slane %v2436_v50, 4  ;;  %v8112_v33 = vld [vmem:[%s12307_s0 + $0x12c] sm:$0xff]   ;;  %v10003_v12 = vld [vmem:[%s12307_s0 + $0x54] sm:$0xe] }
 0x10a   :  { %4042 = vrot.lane.b32.xlu0 %v7564_v48, %s8166_s20  ;;  %2021 = vrot.lane.b32.xlu1 %v7180_v6, %s8169_s25  ;;  %v4464_v7 = vsel %vm8219_vm2, %v4459_v52, %v4463_v1  ;;  %v4954_v8 = vsel %vm8437_vm5, %v4952_v37, %v4953_v34  ;;  %v2442_v46 = vshll.u32 %v7256_v44, 16  ;;  %v3425_v15 = vshrl.u32 %v9918_v58, 16  ;;  %v1699_v17 = vpop.permute.xlu0 %1698  ;;  %v7830_v48 = vld [vmem:[%s12307_s0 + $0x12c] sm:$0xf]  ;;  %v9994_v6 = vld [vmem:[%s12307_s0 + $0x128] sm:$0x1] }
 0x10b   :  { %v7676_v18 = vcombine.low %v4454_v57, %v4464_v7  ;;  %v7756_v56 = vcombine.low %v9929_v4, %v4954_v8  ;;  %v2429_v53 = vor.u32 %v2428_v60, %v2425_v54  ;;  %v2439_v35 = vor.u32 %v2438_v62, %v2434_v43  ;;  %8036 = vmatprep.subr.bf16.mxu1 %v8172_v14  ;;  %v1705_v59 = vpop.permute.xlu1 %1704  ;;  %v8116_v47 = vld [vmem:[%s12308_s1 + $0x28] sm:$0xff]   ;;  %v7130_v52 = vld [vmem:[%s12307_s0 + $0x58] sm:$0xf] }
 0x10c   :  { %1743 = vst.msk [vmem:[#allocation2 + $0x40] sm:$0xff] %vm1738_vm10, %v1699_v17  ;;  %v2444_v38 = vrot.slane %v2442_v46, 5  ;;  %v3427_v19 = vrot.slane %v3425_v15, 4  ;;  %v3428_v24 = vshll.u32 %v9918_v58, 16  ;;  %v3434_v25 = vshll.u32 %v7450_v13, 16  ;;  %6390 = vmatpush1.bf16.msra.mxu0 %v8111_v16  ;;  %1746 = vst.msk [vmem:[#allocation2 + $0x70] sm:$0xff] %vm1738_vm10, %v1705_v59 }
 0x10d   :  { %v2430_v29 = vrot.slane %v2429_v53, 4  ;;  %v2440_v51 = vrot.slane %v2439_v35, 4  ;;  %8045 = vmatpush1.bf16.msra.mxu1 %v8113_v2  ;;  %v3438_v61 = vshrl.u32 %v7450_v13, 16  ;;  %v3444_v5 = vshll.u32 %v7451_v42, 16  ;;  %6391 = vmatprep.subr.bf16.mxu0 %v8172_v14  ;;  %v8136_v4 = vld [vmem:[%s12307_s0 + $0x114] sm:$0xff]  }
 0x10e   :  { %4763 = vrot.lane.b32.xlu0 %v7676_v18, %s8168_s19  ;;  %2199 = vrot.lane.b32.xlu1 %v8109_v30, %s8170_s29  ;;  %v3430_v27 = vrot.slane %v3428_v24, 5  ;;  %v9976_v31 = vrot.slane %v3434_v25, 5  ;;  %v5483_v36 = vshrl.u32 %v7830_v48, 16  ;;  %v5486_v9 = vshll.u32 %v7830_v48, 16  ;;  %v1703_v21 = vpop.permute.xlu0 %1702  ;;  %v10021_v30 = vld [vmem:[%s12307_s0 + $0x5c] sm:$0x1] }
 0x10f   :  { %v2435_v0 = vsel %vm8219_vm2, %v2430_v29, %v2434_v43  ;;  %v2445_v23 = vsel %vm8219_vm2, %v2440_v51, %v2444_v38  ;;  %v3440_v28 = vrot.slane %v3438_v61, 4  ;;  %v3446_v16 = vrot.slane %v3444_v5, 5  ;;  %8037 = vmatprep.subr.bf16.mxu1 %v8172_v14  ;;  %1745 = vst.msk [vmem:[#allocation2 + $0x60] sm:$0xff] %vm1738_vm10, %v1703_v21  ;;  %v3713_v41 = vpop.permute.xlu1 %3712  ;;  %v7641_v62 = vld [vmem:[%s12307_s0 + $0x12c] sm:$0xf]  ;;  %v10042_v15 = vld [vmem:[%s12308_s1 + $0x30] sm:$0xff]  }
 0x110   :  { %v7292_v1 = vcombine.low %v2435_v0, %v2445_v23  ;;  %v3431_v44 = vor.u32 %v3430_v27, %v3427_v19  ;;  %v5485_v58 = vrot.slane %v5483_v36, 4  ;;  %v5488_v11 = vrot.slane %v5486_v9, 5  ;;  %6392 = vmatpush1.bf16.msra.mxu0 %v8113_v2  ;;  %3760 = vst.msk [vmem:[#allocation2 + $0x100] sm:$0xff] %vm691_vm7, %v3713_v41  ;;  %v7642_v42 = vld [vmem:[%s12307_s0 + $0x130] sm:$0xf] }
 0x111   :  { %v3441_v34 = vor.u32 %v3440_v28, %v9976_v31  ;;  %v5492_v63 = vshll.u32 %v7831_v39, 16  ;;  %v5496_v20 = vshrl.u32 %v7831_v39, 16  ;;  %v5502_v45 = vshll.u32 %v7832_v55, 16  ;;  %8046 = vmatpush1.bf16.msra.mxu1 %v9962_v10  ;;  %6393 = vmatprep.subr.bf16.mxu0 %v8172_v14  ;;  %3221 = vst.msk [vmem:[#allocation2 + $0x150] sm:$0xff] %vm143_vm6, %v8136_v4  ;;  %v7643_v59 = vld [vmem:[%s12307_s0 + $0x134] sm:$0x1] }
 0x112   :  { %5083 = vrot.lane.b32.xlu0 %v7756_v56, %s8169_s25  ;;  %2744 = vrot.lane.b32.xlu1 %v7292_v1, %s8171_s16  ;;  %v3432_v49 = vrot.slane %v3431_v44, 4  ;;  %v5489_v50 = vor.u32 %v5488_v11, %v5485_v58  ;;  %vm2059_vm11 = vcmask 786048   ;;  %v7549_v32 = vrot.slane %v9981_v40, 9  ;;  %v1707_v37 = vpop.permute.xlu0 %1706  ;;  %v7705_v29 = vld [vmem:[%s12307_s0 + $0x12c] sm:$0xe]  ;;  %v8120_v28 = vld [vmem:[%s12308_s1 + $0x38] sm:$0xff]  }
 0x113   :  { %v3442_v54 = vrot.slane %v3441_v34, 4  ;;  %v5494_v57 = vrot.slane %v5492_v63, 5  ;;  %v5498_v60 = vrot.slane %v5496_v20, 4  ;;  %v5504_v43 = vrot.slane %v5502_v45, 5  ;;  %8038 = vmatprep.subr.bf16.mxu1 %v8172_v14  ;;  %1747 = vst.msk [vmem:[#allocation2 + $0x80] sm:$0xff] %vm1738_vm10, %v1707_v37  ;;  %v4210_v2 = vpop.permute.xlu1 %4209  ;;  %v8115_v5 = vld [vmem:[%s12307_s0 + $0x12c] sm:$0xff]  }
 0x114   :  { %v3437_v13 = vsel %vm8219_vm2, %v3432_v49, %v9976_v31  ;;  %v5490_v7 = vrot.slane %v5489_v50, 4  ;;  %v3916_v8 = vrot.slane %v7514_v22, 5  ;;  %v3919_v46 = vrot.slane %v9994_v6, 5  ;;  %6394 = vmatpush1.bf16.msra.mxu0 %v9962_v10  ;;  %v7706_v51 = vld [vmem:[%s12307_s0 + $0x130] sm:$0xf]  ;;  %v8122_v4 = vld [vmem:[%s12308_s1 + $0x40] sm:$0xff]  }
 0x115   :  { %v3447_v17 = vsel %vm8219_vm2, %v3442_v54, %v3446_v16  ;;  %v5499_v18 = vor.u32 %v5498_v60, %v5494_v57  ;;  %vm2237_vm12 = vcmask 917248   ;;  %8047 = vmatpush1.bf16.msra.mxu1 %v8116_v47  ;;  %v7165_v56 = vrot.slane %v10003_v12, 9  ;;  %6395 = vmatprep.subr.bf16.mxu0 %v8172_v14  ;;  %v7707_v9 = vld [vmem:[%s12307_s0 + $0x134] sm:$0x1]  ;;  %v7257_v16 = vld [vmem:[%s12307_s0 + $0x60] sm:$0xf] }
 0x116   :  { %5260 = vrot.lane.b32.xlu0 %v8112_v33, %s8170_s29  ;;  %v7485_v53 = vcombine.low %v3437_v13, %v3447_v17  ;;  %v5495_v35 = vsel %vm8219_vm2, %v5490_v7, %v5494_v57  ;;  %v10054_v48 = vsel %vm8437_vm5, %v7549_v32, %v3916_v8  ;;  %v3918_v10 = vrot.slane %v3916_v8, 4  ;;  %8039 = vmatprep.subr.bf16.mxu1 %v8172_v14  ;;  %v4033_v38 = vpop.permute.xlu0 %4032  ;;  %v7452_v8 = vld [vmem:[%s12307_s0 + $0x12c] sm:$0xf] }
 0x117   :  { %v5500_v19 = vrot.slane %v5499_v18, 4  ;;  %v1895_v24 = vrot.slane %v7130_v52, 5  ;;  %v1898_v25 = vrot.slane %v10021_v30, 5  ;;  %v4466_v39 = vshrl.u32 %v7641_v62, 16  ;;  %4080 = vst.msk [vmem:[#allocation2 + $0x100] sm:$0xff] %vm1015_vm8, %v4033_v38  ;;  %v2012_v61 = vpop.permute.xlu1 %2011 }
 0x118   :  { %3724 = vrot.lane.b32.xlu1 %v7485_v53, %s8165_s9  ;;  %v3920_v55 = vsel %vm8437_vm5, %v3918_v10, %v3919_v46  ;;  %v4469_v27 = vshll.u32 %v7641_v62, 16  ;;  %v4475_v31 = vshll.u32 %v7642_v42, 16  ;;  %v4479_v36 = vshrl.u32 %v7642_v42, 16  ;;  %6396 = vmatpush1.bf16.msra.mxu0 %v8116_v47  ;;  %4257 = vst.msk [vmem:[#allocation2 + $0x100] sm:$0xff] %vm1193_vm9, %v4210_v2  ;;  %v7258_v47 = vld [vmem:[%s12307_s0 + $0x64] sm:$0xf] }
 0x119   :  { %v5505_v40 = vsel %vm8219_vm2, %v5500_v19, %v5504_v43  ;;  %2060 = vst.msk [vmem:[#allocation2] sm:$0xff] %vm2059_vm11, %v2012_v61  ;;  %v7565_v21 = vcombine.low %v10054_v48, %v3920_v55  ;;  %v1896_v0 = vsel %vm8437_vm5, %v7165_v56, %v1895_v24  ;;  %v1897_v23 = vrot.slane %v1895_v24, 4  ;;  %8048 = vmatpush1.bf16.msra.mxu1 %v10042_v15  ;;  %v7259_v52 = vld [vmem:[%s12307_s0 + $0x68] sm:$0x1]  ;;  %v7453_v53 = vld [vmem:[%s12307_s0 + $0x130] sm:$0xf] }
 0x11a   :  { %6397 = vmatprep.subr.bf16.mxu0 %v8172_v14  ;;  %v7868_v22 = vcombine.low %v5495_v35, %v5505_v40  ;;  %v4468_v6 = vrot.slane %v4466_v39, 4  ;;  %v4471_v41 = vrot.slane %v4469_v27, 5  ;;  %v4477_v1 = vrot.slane %v4475_v31, 5  ;;  %8040 = vmatprep.subr.bf16.mxu1 %v8172_v14  ;;  %v4754_v33 = vpop.permute.xlu0 %4753  ;;  %v7454_v38 = vld [vmem:[%s12307_s0 + $0x134] sm:$0x1] }
 0x11b   :  { %v1899_v44 = vsel %vm8437_vm5, %v1897_v23, %v1898_v25  ;;  %v4481_v58 = vrot.slane %v4479_v36, 4  ;;  %v4485_v11 = vshll.u32 %v7643_v59, 16  ;;  %vm2782_vm13 = vcmask 1048448   ;;  %4801 = vst.msk [vmem:[#allocation2 + $0x100] sm:$0xff] %vm1738_vm10, %v4754_v33  ;;  %v2190_v12 = vpop.permute.xlu1 %2189  ;;  %v7833_v19 = vld [vmem:[%s12307_s0 + $0x138] sm:$0xf] }
 0x11c   :  { %5804 = vrot.lane.b32.xlu0 %v7868_v22, %s8171_s16  ;;  %4221 = vrot.lane.b32.xlu1 %v8115_v5, %s8167_s28  ;;  %v7181_v34 = vcombine.low %v1896_v0, %v1899_v44  ;;  %v4472_v63 = vor.u32 %v4471_v41, %v4468_v6  ;;  %v7741_v20 = vrot.slane %v7705_v29, 9  ;;  %v4957_v45 = vrot.slane %v7706_v51, 5  ;;  %2238 = vst.msk [vmem:[#allocation2] sm:$0xff] %vm2237_vm12, %v2190_v12  ;;  %v7834_v51 = vld [vmem:[%s12307_s0 + $0x13c] sm:$0xf] }
 0x11d   :  { %v4482_v49 = vor.u32 %v4481_v58, %v4477_v1  ;;  %v4487_v50 = vrot.slane %v4485_v11, 5  ;;  %v4960_v32 = vrot.slane %v7707_v9, 5  ;;  %8049 = vmatpush1.bf16.msra.mxu1 %v8120_v28  ;;  %v2447_v30 = vshrl.u32 %v7257_v16, 16  ;;  %6398 = vmatpush1.bf16.msra.mxu0 %v10042_v15  ;;  %v8118_v15 = vld [vmem:[%s12307_s0 + $0x60] sm:$0xff]   ;;  %v7879_v6 = vld [vmem:[%s12307_s0 + $0xf0] sm:$0xe] }
 0x11e   :  { %v4473_v37 = vrot.slane %v4472_v63, 4  ;;  %v10111_v54 = vsel %vm8437_vm5, %v7741_v20, %v4957_v45  ;;  %v4959_v57 = vrot.slane %v4957_v45, 4  ;;  %v2450_v60 = vshll.u32 %v7257_v16, 16  ;;  %8041 = vmatprep.subr.bf16.mxu1 %v8172_v14  ;;  %6399 = vmatprep.subr.bf16.mxu0 %v8172_v14  ;;  %v5074_v43 = vpop.permute.xlu0 %5073  ;;  %v7835_v0 = vld [vmem:[%s12307_s0 + $0x140] sm:$0x1] }
 0x11f   :  { %v4483_v62 = vrot.slane %v4482_v49, 4  ;;  %v2449_v2 = vrot.slane %v2447_v30, 4  ;;  %v2456_v13 = vshll.u32 %v7258_v47, 16  ;;  %v2460_v7 = vshrl.u32 %v7258_v47, 16  ;;  %5121 = vst.msk [vmem:[#allocation2 + $0x100] sm:$0xff] %vm2059_vm11, %v5074_v43  ;;  %v2735_v42 = vpop.permute.xlu1 %2734 }
 0x120   :  { %4044 = vrot.lane.b32.xlu0 %v7565_v21, %s8166_s20  ;;  %2023 = vrot.lane.b32.xlu1 %v7181_v34, %s8169_s25  ;;  %v4478_v46 = vsel %vm8219_vm2, %v4473_v37, %v4477_v1  ;;  %v4961_v17 = vsel %vm8437_vm5, %v4959_v57, %v4960_v32  ;;  %v2452_v18 = vrot.slane %v2450_v60, 5  ;;  %v2466_v56 = vshll.u32 %v7259_v52, 16  ;;  %2783 = vst.msk [vmem:[#allocation2] sm:$0xff] %vm2782_vm13, %v2735_v42  ;;  %v7880_v58 = vld [vmem:[%s12307_s0 + $0xf4] sm:$0xf] }
 0x121   :  { %v4488_v35 = vsel %vm8219_vm2, %v4483_v62, %v4487_v50  ;;  %v7757_v48 = vcombine.low %v10111_v54, %v4961_v17  ;;  %v2458_v10 = vrot.slane %v2456_v13, 5  ;;  %v2462_v59 = vrot.slane %v2460_v7, 4  ;;  %8050 = vmatpush1.bf16.msra.mxu1 %v8122_v4  ;;  %6400 = vmatpush1.bf16.msra.mxu0 %v8120_v28  ;;  %v7881_v45 = vld [vmem:[%s12307_s0 + $0xf8] sm:$0x1]  ;;  %v7516_v47 = vld [vmem:[%s12307_s0 + $0x12c] sm:$0xe] }
 0x122   :  { %v7677_v24 = vcombine.low %v4478_v46, %v4488_v35  ;;  %v2453_v25 = vor.u32 %v2452_v18, %v2449_v2  ;;  %v2468_v39 = vrot.slane %v2466_v56, 5  ;;  %v3449_v29 = vshrl.u32 %v7452_v8, 16  ;;  %6401 = vmatprep.subr.bf16.mxu0 %v8172_v14  ;;  %v5251_v61 = vpop.permute.xlu0 %5250  ;;  %v8121_v50 = vld [vmem:[%s12307_s0 + $0x138] sm:$0xff]   ;;  %v7517_v37 = vld [vmem:[%s12307_s0 + $0x130] sm:$0xf] }
 0x123   :  { %v2463_v5 = vor.u32 %v2462_v59, %v2458_v10  ;;  %v3452_v55 = vshll.u32 %v7452_v8, 16  ;;  %v3458_v27 = vshll.u32 %v7453_v53, 16  ;;  %v3462_v31 = vshrl.u32 %v7453_v53, 16  ;;  %5298 = vst.msk [vmem:[#allocation2 + $0x100] sm:$0xff] %vm2237_vm12, %v5251_v61  ;;  %v3715_v36 = vpop.permute.xlu1 %3714  ;;  %v7518_v62 = vld [vmem:[%s12307_s0 + $0x134] sm:$0x1] }
 0x124   :  { %4765 = vrot.lane.b32.xlu0 %v7677_v24, %s8168_s19  ;;  %2201 = vrot.lane.b32.xlu1 %v8118_v15, %s8170_s29  ;;  %v2454_v9 = vrot.slane %v2453_v25, 4  ;;  %v3451_v40 = vrot.slane %v3449_v29, 4  ;;  %v3468_v21 = vshll.u32 %v7454_v38, 16  ;;  %v5507_v14 = vshrl.u32 %v7833_v19, 16  ;;  %3761 = vst.msk [vmem:[#allocation2 + $0x110] sm:$0xff] %vm691_vm7, %v3715_v36  ;;  %v8123_v24 = vld [vmem:[%s12307_s0 + $0x138] sm:$0xff]  }
 0x125   :  { %v2464_v23 = vrot.slane %v2463_v5, 4  ;;  %v3454_v28 = vrot.slane %v3452_v55, 5  ;;  %v3460_v16 = vrot.slane %v3458_v27, 5  ;;  %v3464_v22 = vrot.slane %v3462_v31, 4  ;;  %6402 = vmatpush1.bf16.msra.mxu0 %v8122_v4  ;;  %v7132_v46 = vld [vmem:[%s12307_s0 + $0x60] sm:$0xe] }
 0x126   :  { %v2459_v41 = vsel %vm8219_vm2, %v2454_v9, %v2458_v10  ;;  %v3470_v1 = vrot.slane %v3468_v21, 5  ;;  %v5509_v33 = vrot.slane %v5507_v14, 4  ;;  %v5510_v44 = vshll.u32 %v7833_v19, 16  ;;  %v5795_v11 = vpop.permute.xlu0 %5794  ;;  %v7133_v53 = vld [vmem:[%s12307_s0 + $0x64] sm:$0xf] }
 0x127   :  { %v2469_v12 = vsel %vm8219_vm2, %v2464_v23, %v2468_v39  ;;  %v3455_v34 = vor.u32 %v3454_v28, %v3451_v40  ;;  %v3465_v63 = vor.u32 %v3464_v22, %v3460_v16  ;;  %v5516_v20 = vshll.u32 %v7834_v51, 16  ;;  %5842 = vst.msk [vmem:[#allocation2 + $0x100] sm:$0xff] %vm2782_vm13, %v5795_v11  ;;  %v4212_v32 = vpop.permute.xlu1 %4211  ;;  %v7134_v35 = vld [vmem:[%s12307_s0 + $0x68] sm:$0x1]  ;;  %v7644_v25 = vld [vmem:[%s12307_s0 + $0x138] sm:$0xf] }
 0x128   :  { %5085 = vrot.lane.b32.xlu0 %v7757_v48, %s8169_s25  ;;  %v7293_v49 = vcombine.low %v2459_v41, %v2469_v12  ;;  %v5512_v52 = vrot.slane %v5510_v44, 5  ;;  %v5520_v30 = vshrl.u32 %v7834_v51, 16  ;;  %v5526_v4 = vshll.u32 %v7835_v0, 16  ;;  %v7645_v5 = vld [vmem:[%s12307_s0 + $0x13c] sm:$0xf]  ;;  %v8140_v21 = vld [vmem:[%s12307_s0 + $0x120] sm:$0xff]  }
 0x129   :  { %v3456_v54 = vrot.slane %v3455_v34, 4  ;;  %v3466_v57 = vrot.slane %v3465_v63, 4  ;;  %v5518_v60 = vrot.slane %v5516_v20, 5  ;;  %v7927_v43 = vrot.slane %v7879_v6, 9  ;;  %v7646_v9 = vld [vmem:[%s12307_s0 + $0x140] sm:$0x1] }
 0x12a   :  { %2746 = vrot.lane.b32.xlu1 %v7293_v49, %s8171_s16  ;;  %v5513_v2 = vor.u32 %v5512_v52, %v5509_v33  ;;  %v5522_v13 = vrot.slane %v5520_v30, 4  ;;  %v5528_v7 = vrot.slane %v5526_v4, 5  ;;  %v5956_v8 = vrot.slane %v7880_v58, 5  ;;  %v4035_v42 = vpop.permute.xlu0 %4034  ;;  %v7303_v40 = vld [vmem:[%s12307_s0 + $0x18] sm:$0xe]  ;;  %3222 = vst.msk [vmem:[#allocation2 + $0x160] sm:$0xff] %vm143_vm6, %v8140_v21 }
 0x12b   :  { %v3461_v15 = vsel %vm8219_vm2, %v3456_v54, %v3460_v16  ;;  %v3471_v17 = vsel %vm8219_vm2, %v3466_v57, %v3470_v1  ;;  %v5959_v18 = vrot.slane %v7881_v45, 5  ;;  %v7550_v56 = vrot.slane %v7516_v47, 9  ;;  %4081 = vst.msk [vmem:[#allocation2 + $0x110] sm:$0xff] %vm1015_vm8, %v4035_v42  ;;  %v2014_v19 = vpop.permute.xlu1 %2013  ;;  %v7304_v22 = vld [vmem:[%s12307_s0 + $0x1c] sm:$0xf] }
 0x12c   :  { %5262 = vrot.lane.b32.xlu0 %v8121_v50, %s8170_s29  ;;  %v7486_v48 = vcombine.low %v3461_v15, %v3471_v17  ;;  %v5514_v10 = vrot.slane %v5513_v2, 4  ;;  %v5523_v59 = vor.u32 %v5522_v13, %v5518_v60  ;;  %v5957_v38 = vsel %vm8437_vm5, %v7927_v43, %v5956_v8  ;;  %4258 = vst.msk [vmem:[#allocation2 + $0x110] sm:$0xff] %vm1193_vm9, %v4212_v32  ;;  %v7305_v6 = vld [vmem:[%s12307_s0 + $0x20] sm:$0x1]  ;;  %v7708_v11 = vld [vmem:[%s12307_s0 + $0x138] sm:$0xe] }
 0x12d   :  { %v5958_v39 = vrot.slane %v5956_v8, 4  ;;  %2061 = vst.msk [vmem:[#allocation2 + $0x10] sm:$0xff] %vm2059_vm11, %v2014_v19  ;;  %v3923_v29 = vrot.slane %v7517_v37, 5  ;;  %v3926_v51 = vrot.slane %v7518_v62, 5  ;;  %v7166_v61 = vrot.slane %v7132_v46, 9 }
 0x12e   :  { %3726 = vrot.lane.b32.xlu1 %v7486_v48, %s8165_s9  ;;  %v5519_v55 = vsel %vm8219_vm2, %v5514_v10, %v5518_v60  ;;  %v5524_v27 = vrot.slane %v5523_v59, 4  ;;  %v1902_v31 = vrot.slane %v7133_v53, 5  ;;  %v1905_v36 = vrot.slane %v7134_v35, 5  ;;  %v4756_v14 = vpop.permute.xlu0 %4755  ;;  %v7709_v12 = vld [vmem:[%s12307_s0 + $0x13c] sm:$0xf]  ;;  %v8124_v35 = vld [vmem:[%s12307_s0 + $0x6c] sm:$0xff]  }
 0x12f   :  { %v5960_v0 = vsel %vm8437_vm5, %v5958_v39, %v5959_v18  ;;  %v3924_v23 = vsel %vm8437_vm5, %v7550_v56, %v3923_v29  ;;  %v3925_v28 = vrot.slane %v3923_v29, 4  ;;  %v4490_v16 = vshrl.u32 %v7644_v25, 16  ;;  %4802 = vst.msk [vmem:[#allocation2 + $0x110] sm:$0xff] %vm1738_vm10, %v4756_v14  ;;  %v2192_v33 = vpop.permute.xlu1 %2191  ;;  %v7710_v52 = vld [vmem:[%s12307_s0 + $0x140] sm:$0x1] }
 0x130   :  { %v5529_v41 = vsel %vm8219_vm2, %v5524_v27, %v5528_v7  ;;  %v7943_v1 = vcombine.low %v5957_v38, %v5960_v0  ;;  %v1903_v44 = vsel %vm8437_vm5, %v7166_v61, %v1902_v31  ;;  %v1904_v58 = vrot.slane %v1902_v31, 4  ;;  %2239 = vst.msk [vmem:[#allocation2 + $0x10] sm:$0xff] %vm2237_vm12, %v2192_v33  ;;  %v7260_v30 = vld [vmem:[%s12307_s0 + $0x6c] sm:$0xf]  ;;  %v10259_v43 = vld [vmem:[%s12307_s0 + $0x70] sm:$0xf] }
 0x131   :  { %v7869_v34 = vcombine.low %v5519_v55, %v5529_v41  ;;  %v3927_v63 = vsel %vm8437_vm5, %v3925_v28, %v3926_v51  ;;  %v4492_v20 = vrot.slane %v4490_v16, 4  ;;  %v4493_v45 = vshll.u32 %v7644_v25, 16  ;;  %v6178_v39 = vld [vmem:[#allocation2 + $0x100] sm:$0xff]  ;;  %v7837_v0 = vld [vmem:[%s12307_s0 + $0x148] sm:$0xf] }
 0x132   :  { %6130 = vst.msk [vmem:[#allocation2 + $0x108] sm:$0xff] %vm143_vm6, %v7943_v1  ;;  %4223 = vrot.lane.b32.xlu1 %v8123_v24, %s8167_s28  ;;  %v7566_v47 = vcombine.low %v3924_v23, %v3927_v63  ;;  %v1906_v49 = vsel %vm8437_vm5, %v1904_v58, %v1905_v36  ;;  %v4499_v50 = vshll.u32 %v7645_v5, 16  ;;  %v4503_v32 = vshrl.u32 %v7645_v5, 16  ;;  %v5076_v4 = vpop.permute.xlu0 %5075  ;;  %v7262_v24 = vld [vmem:[%s12307_s0 + $0x74] sm:$0x1] }
 0x133   :  { %5806 = vrot.lane.b32.xlu0 %v7869_v34, %s8171_s16  ;;  %v7182_v37 = vcombine.low %v1903_v44, %v1906_v49  ;;  %v4495_v54 = vrot.slane %v4493_v45, 5  ;;  %v4509_v57 = vshll.u32 %v7646_v9, 16  ;;  %v7351_v60 = vrot.slane %v7303_v40, 9  ;;  %5122 = vst.msk [vmem:[#allocation2 + $0x110] sm:$0xff] %vm2059_vm11, %v5076_v4  ;;  %v2737_v8 = vpop.permute.xlu1 %2736  ;;  %v7836_v27 = vld [vmem:[%s12307_s0 + $0x144] sm:$0xf] }
 0x134   :  { %v4501_v62 = vrot.slane %v4499_v50, 5  ;;  %v4505_v2 = vrot.slane %v4503_v32, 4  ;;  %v2897_v13 = vrot.slane %v7304_v22, 5  ;;  %v2900_v7 = vrot.slane %v7305_v6, 5  ;;  %2784 = vst.msk [vmem:[#allocation2 + $0x10] sm:$0xff] %vm2782_vm13, %v2737_v8 }
 0x135   :  { %v4496_v46 = vor.u32 %v4495_v54, %v4492_v20  ;;  %v4511_v42 = vrot.slane %v4509_v57, 5  ;;  %v7742_v15 = vrot.slane %v7708_v11, 9  ;;  %v4964_v17 = vrot.slane %v7709_v12, 5  ;;  %v7838_v22 = vld [vmem:[%s12307_s0 + $0x14c] sm:$0x1] }
 0x136   :  { %2025 = vrot.lane.b32.xlu1 %v7182_v37, %s8169_s25  ;;  %v4506_v18 = vor.u32 %v4505_v2, %v4501_v62  ;;  %v2898_v56 = vsel %vm8437_vm5, %v7351_v60, %v2897_v13  ;;  %v2899_v53 = vrot.slane %v2897_v13, 4  ;;  %v4967_v48 = vrot.slane %v7710_v52, 5  ;;  %v5253_v59 = vpop.permute.xlu0 %5252  ;;  %v7882_v6 = vld [vmem:[%s12307_s0 + $0xfc] sm:$0xe]  ;;  %v7883_v11 = vld [vmem:[%s12307_s0 + $0x100] sm:$0xf] }
 0x137   :  { %4046 = vrot.lane.b32.xlu0 %v7566_v47, %s8166_s20  ;;  %v4497_v10 = vrot.slane %v4496_v46, 4  ;;  %v10272_v38 = vsel %vm8437_vm5, %v7742_v15, %v4964_v17  ;;  %v4966_v19 = vrot.slane %v4964_v17, 4  ;;  %v2471_v25 = vshrl.u32 %v7260_v30, 16  ;;  %5299 = vst.msk [vmem:[#allocation2 + $0x110] sm:$0xff] %vm2237_vm12, %v5253_v59  ;;  %v3717_v61 = vpop.permute.xlu1 %3716  ;;  %v7884_v47 = vld [vmem:[%s12307_s0 + $0x104] sm:$0x1] }
 0x138   :  { %v4507_v29 = vrot.slane %v4506_v18, 4  ;;  %v2901_v51 = vsel %vm8437_vm5, %v2899_v53, %v2900_v7  ;;  %v2474_v5 = vshll.u32 %v7260_v30, 16  ;;  %v2480_v55 = vshll.u32 %v10259_v43, 16  ;;  %3762 = vst.msk [vmem:[#allocation2 + $0x120] sm:$0xff] %vm691_vm7, %v3717_v61  ;;  %v7455_v30 = vld [vmem:[%s12307_s0 + $0x138] sm:$0xf] }
 0x139   :  { %v6179_v31 = vld [vmem:[#allocation2 + $0x108] sm:$0xff]  ;;  %v4502_v36 = vsel %vm8219_vm2, %v4497_v10, %v4501_v62  ;;  %v7367_v9 = vcombine.low %v2898_v56, %v2901_v51  ;;  %v4968_v40 = vsel %vm8437_vm5, %v4966_v19, %v4967_v48  ;;  %v2473_v21 = vrot.slane %v2471_v25, 4  ;;  %v7456_v60 = vld [vmem:[%s12307_s0 + $0x13c] sm:$0xf]  ;;  %v6146_v56 = vld [vmem:[#allocation2] sm:$0xff] }
 0x13a   :  { %7985 = vmatprep.mubr.msk.bf16.mxu1 %vm143_vm6, %v6179_v31  ;;  %v4512_v14 = vsel %vm8219_vm2, %v4507_v29, %v4511_v42  ;;  %2203 = vrot.lane.b32.xlu1 %v8124_v35, %s8170_s29  ;;  %v7758_v23 = vcombine.low %v10272_v38, %v4968_v40  ;;  %v2476_v28 = vrot.slane %v2474_v5, 5  ;;  %v10297_v16 = vrot.slane %v2480_v55, 5  ;;  %v5797_v1 = vpop.permute.xlu0 %5796  ;;  %v8126_v46 = vld [vmem:[%s12307_s0 + $0x144] sm:$0xff]   ;;  %v7457_v10 = vld [vmem:[%s12307_s0 + $0x140] sm:$0x1] }
 0x13b   :  { %6546 = vmatmul.mubr.bf16.vlgmr.msra.gmra.mrb[0].mxu1 %v6178_v39  ;;  %v7678_v41 = vcombine.low %v4502_v36, %v4512_v14  ;;  %3071 = vst.msk [vmem:[#allocation2 + $0x8] sm:$0xff] %vm143_vm6, %v7367_v9  ;;  %v2484_v33 = vshrl.u32 %v10259_v43, 16  ;;  %v2490_v44 = vshll.u32 %v7262_v24, 16  ;;  %v5531_v58 = vshrl.u32 %v7836_v27, 16  ;;  %v4214_v34 = vpop.permute.xlu1 %4213  ;;  %v7519_v38 = vld [vmem:[%s12307_s0 + $0x138] sm:$0xe] }
 0x13c   :  { %5843 = vst.msk [vmem:[#allocation2 + $0x110] sm:$0xff] %vm2782_vm13, %v5797_v1  ;;  %v2477_v12 = vor.u32 %v2476_v28, %v2473_v21  ;;  %v5534_v63 = vshll.u32 %v7836_v27, 16  ;;  %v5540_v20 = vshll.u32 %v7837_v0, 16  ;;  %v5544_v45 = vshrl.u32 %v7837_v0, 16  ;;  %v7520_v31 = vld [vmem:[%s12307_s0 + $0x13c] sm:$0xf] }
 0x13d   :  { %4767 = vrot.lane.b32.xlu0 %v7678_v41, %s8168_s19  ;;  %v2486_v49 = vrot.slane %v2484_v33, 4  ;;  %v2492_v50 = vrot.slane %v2490_v44, 5  ;;  %v5533_v32 = vrot.slane %v5531_v58, 4  ;;  %v5550_v52 = vshll.u32 %v7838_v22, 16  ;;  %v7521_v36 = vld [vmem:[%s12307_s0 + $0x140] sm:$0x1] }
 0x13e   :  { %v2478_v4 = vrot.slane %v2477_v12, 4  ;;  %v5536_v37 = vrot.slane %v5534_v63, 5  ;;  %v5542_v54 = vrot.slane %v5540_v20, 5  ;;  %v5546_v57 = vrot.slane %v5544_v45, 4  ;;  %v4037_v62 = vpop.permute.xlu0 %4036  ;;  %v7648_v41 = vld [vmem:[%s12307_s0 + $0x148] sm:$0xf] }
 0x13f   :  { %v2487_v43 = vor.u32 %v2486_v49, %v10297_v16  ;;  %v5552_v2 = vrot.slane %v5550_v52, 5  ;;  %v7928_v13 = vrot.slane %v7882_v6, 9  ;;  %v5963_v7 = vrot.slane %v7883_v11, 5  ;;  %4082 = vst.msk [vmem:[#allocation2 + $0x120] sm:$0xff] %vm1015_vm8, %v4037_v62  ;;  %v2016_v17 = vpop.permute.xlu1 %2015  ;;  %v7649_v63 = vld [vmem:[%s12307_s0 + $0x14c] sm:$0x1] }
 0x140   :  { %v2483_v8 = vsel %vm8219_vm2, %v2478_v4, %v10297_v16  ;;  %v5537_v42 = vor.u32 %v5536_v37, %v5533_v32  ;;  %v5547_v15 = vor.u32 %v5546_v57, %v5542_v54  ;;  %v5966_v18 = vrot.slane %v7884_v47, 5  ;;  %4259 = vst.msk [vmem:[#allocation2 + $0x120] sm:$0xff] %vm1193_vm9, %v4214_v34  ;;  %v7306_v47 = vld [vmem:[%s12307_s0 + $0x24] sm:$0xe]  ;;  %v7307_v4 = vld [vmem:[%s12307_s0 + $0x28] sm:$0xf] }
 0x141   :  { %5087 = vrot.lane.b32.xlu0 %v7758_v23, %s8169_s25  ;;  %v2488_v53 = vrot.slane %v2487_v43, 4  ;;  %2062 = vst.msk [vmem:[#allocation2 + $0x20] sm:$0xff] %vm2059_vm11, %v2016_v17  ;;  %v5964_v35 = vsel %vm8437_vm5, %v7928_v13, %v5963_v7  ;;  %v5965_v48 = vrot.slane %v5963_v7, 4  ;;  %v3473_v59 = vshrl.u32 %v7455_v30, 16  ;;  %v7647_v23 = vld [vmem:[%s12307_s0 + $0x144] sm:$0xf] }
 0x142   :  { %v6147_v19 = vld [vmem:[#allocation2 + $0x8] sm:$0xff]  ;;  %v5538_v24 = vrot.slane %v5537_v42, 4  ;;  %v5548_v25 = vrot.slane %v5547_v15, 4  ;;  %v3476_v39 = vshll.u32 %v7455_v30, 16  ;;  %v3482_v29 = vshll.u32 %v7456_v60, 16  ;;  %v4758_v5 = vpop.permute.xlu0 %4757 }
 0x143   :  { %7969 = vmatprep.mubr.msk.bf16.mxu0 %vm143_vm6, %v6147_v19  ;;  %v2493_v51 = vsel %vm8219_vm2, %v2488_v53, %v2492_v50  ;;  %v5967_v61 = vsel %vm8437_vm5, %v5965_v48, %v5966_v18  ;;  %v3475_v55 = vrot.slane %v3473_v59, 4  ;;  %v3486_v27 = vshrl.u32 %v7456_v60, 16  ;;  %4803 = vst.msk [vmem:[#allocation2 + $0x120] sm:$0xff] %vm1738_vm10, %v4758_v5  ;;  %v2194_v14 = vpop.permute.xlu1 %2193  ;;  %v7308_v37 = vld [vmem:[%s12307_s0 + $0x2c] sm:$0x1] }
 0x144   :  { %6418 = vmatmul.mubr.bf16.vlgmr.msra.gmra.mrb[0].mxu0 %v6146_v56  ;;  %v7294_v9 = vcombine.low %v2483_v8, %v2493_v51  ;;  %v5543_v40 = vsel %vm8219_vm2, %v5538_v24, %v5542_v54  ;;  %v5553_v21 = vsel %vm8219_vm2, %v5548_v25, %v5552_v2  ;;  %v7944_v0 = vcombine.low %v5964_v35, %v5967_v61  ;;  %v7135_v54 = vld [vmem:[%s12307_s0 + $0x6c] sm:$0xe]  ;;  %v7136_v2 = vld [vmem:[%s12307_s0 + $0x70] sm:$0xf]  ;;  %v7137_v13 = vld [vmem:[%s12307_s0 + $0x74] sm:$0x1] }
 0x145   :  { %5264 = vrot.lane.b32.xlu0 %v8126_v46, %s8170_s29  ;;  %v7870_v28 = vcombine.low %v5543_v40, %v5553_v21  ;;  %v3478_v16 = vrot.slane %v3476_v39, 5  ;;  %v3484_v22 = vrot.slane %v3482_v29, 5  ;;  %v3488_v6 = vrot.slane %v3486_v27, 4  ;;  %2240 = vst.msk [vmem:[#allocation2 + $0x20] sm:$0xff] %vm2237_vm12, %v2194_v14  ;;  %v7711_v7 = vld [vmem:[%s12307_s0 + $0x144] sm:$0xe] }
 0x146   :  { %2748 = vrot.lane.b32.xlu1 %v7294_v9, %s8171_s16  ;;  %6131 = vst.msk [vmem:[#allocation2 + $0x118] sm:$0xff] %vm143_vm6, %v7944_v0  ;;  %v3492_v1 = vshll.u32 %v7457_v10, 16  ;;  %v7551_v33 = vrot.slane %v7519_v38, 9  ;;  %v3930_v44 = vrot.slane %v7520_v31, 5  ;;  %v3933_v58 = vrot.slane %v7521_v36, 5  ;;  %v5078_v34 = vpop.permute.xlu0 %5077  ;;  %v6180_v8 = vld [vmem:[#allocation2 + $0x110] sm:$0xff] }
 0x147   :  { %v3479_v11 = vor.u32 %v3478_v16, %v3475_v55  ;;  %v3489_v12 = vor.u32 %v3488_v6, %v3484_v22  ;;  %v4514_v20 = vshrl.u32 %v7647_v23, 16  ;;  %v4517_v45 = vshll.u32 %v7647_v23, 16  ;;  %5123 = vst.msk [vmem:[#allocation2 + $0x120] sm:$0xff] %vm2059_vm11, %v5078_v34  ;;  %v2739_v30 = vpop.permute.xlu1 %2738  ;;  %v7712_v18 = vld [vmem:[%s12307_s0 + $0x148] sm:$0xf]  ;;  %v8144_v29 = vld [vmem:[%s12307_s0 + $0x12c] sm:$0xff]  }
 0x148   :  { %v3494_v49 = vrot.slane %v3492_v1, 5  ;;  %v3931_v50 = vsel %vm8437_vm5, %v7551_v33, %v3930_v44  ;;  %v3932_v32 = vrot.slane %v3930_v44, 4  ;;  %v4523_v52 = vshll.u32 %v7648_v41, 16  ;;  %2785 = vst.msk [vmem:[#allocation2 + $0x20] sm:$0xff] %vm2782_vm13, %v2739_v30  ;;  %v7713_v59 = vld [vmem:[%s12307_s0 + $0x14c] sm:$0x1] }
 0x149   :  { %5808 = vrot.lane.b32.xlu0 %v7870_v28, %s8171_s16  ;;  %v3480_v57 = vrot.slane %v3479_v11, 4  ;;  %v3490_v60 = vrot.slane %v3489_v12, 4  ;;  %v4516_v43 = vrot.slane %v4514_v20, 4  ;;  %v4519_v62 = vrot.slane %v4517_v45, 5  ;;  %v8127_v31 = vld [vmem:[%s12307_s0 + $0x144] sm:$0xff]   ;;  %3223 = vst.msk [vmem:[#allocation2 + $0x170] sm:$0xff] %vm143_vm6, %v8144_v29 }
 0x14a   :  { %v3934_v46 = vsel %vm8437_vm5, %v3932_v32, %v3933_v58  ;;  %v4525_v42 = vrot.slane %v4523_v52, 5  ;;  %v4527_v15 = vshrl.u32 %v7648_v41, 16  ;;  %v4533_v17 = vshll.u32 %v7649_v63, 16  ;;  %v5255_v10 = vpop.permute.xlu0 %5254  ;;  %v7264_v34 = vld [vmem:[%s12307_s0 + $0x7c] sm:$0xf]  ;;  %v8130_v29 = vld [vmem:[%s12307_s0 + $0x150] sm:$0xff]  }
 0x14b   :  { %v3485_v56 = vsel %vm8219_vm2, %v3480_v57, %v3484_v22  ;;  %v3495_v53 = vsel %vm8219_vm2, %v3490_v60, %v3494_v49  ;;  %v7567_v35 = vcombine.low %v3931_v50, %v3934_v46  ;;  %v4520_v48 = vor.u32 %v4519_v62, %v4516_v43  ;;  %5300 = vst.msk [vmem:[#allocation2 + $0x120] sm:$0xff] %vm2237_vm12, %v5255_v10  ;;  %v3719_v39 = vpop.permute.xlu1 %3718  ;;  %v7263_v22 = vld [vmem:[%s12307_s0 + $0x78] sm:$0xf]  ;;  %v7265_v63 = vld [vmem:[%s12307_s0 + $0x80] sm:$0x1] }
 0x14c   :  { %v7487_v38 = vcombine.low %v3485_v56, %v3495_v53  ;;  %v4529_v19 = vrot.slane %v4527_v15, 4  ;;  %v4535_v24 = vrot.slane %v4533_v17, 5  ;;  %v7352_v25 = vrot.slane %v7306_v47, 9  ;;  %3763 = vst.msk [vmem:[#allocation2 + $0x130] sm:$0xff] %vm691_vm7, %v3719_v39  ;;  %v7839_v32 = vld [vmem:[%s12307_s0 + $0x150] sm:$0xf] }
 0x14d   :  { %v6181_v51 = vld [vmem:[#allocation2 + $0x118] sm:$0xff]  ;;  %4048 = vrot.lane.b32.xlu0 %v7567_v35, %s8166_s20  ;;  %v4521_v61 = vrot.slane %v4520_v48, 4  ;;  %v2904_v5 = vrot.slane %v7307_v4, 5  ;;  %v2907_v55 = vrot.slane %v7308_v37, 5  ;;  %v7167_v27 = vrot.slane %v7135_v54, 9 }
 0x14e   :  { %7986 = vmatprep.mubr.msk.bf16.mxu1 %vm143_vm6, %v6181_v51  ;;  %3728 = vrot.lane.b32.xlu1 %v7487_v38, %s8165_s9  ;;  %v4530_v36 = vor.u32 %v4529_v19, %v4525_v42  ;;  %v1909_v9 = vrot.slane %v7136_v2, 5  ;;  %v1912_v40 = vrot.slane %v7137_v13, 5  ;;  %v7743_v21 = vrot.slane %v7711_v7, 9  ;;  %v5799_v16 = vpop.permute.xlu0 %5798  ;;  %v7840_v52 = vld [vmem:[%s12307_s0 + $0x154] sm:$0xf]  ;;  %v8129_v56 = vld [vmem:[%s12307_s0 + $0x78] sm:$0xff]  }
 0x14f   :  { %6554 = vmatmul.mubr.bf16.gmra.mrb[4].mxu1 %v6180_v8  ;;  %v4526_v0 = vsel %vm8219_vm2, %v4521_v61, %v4525_v42  ;;  %v2905_v14 = vsel %vm8437_vm5, %v7352_v25, %v2904_v5  ;;  %v2906_v23 = vrot.slane %v2904_v5, 4  ;;  %v4971_v28 = vrot.slane %v7712_v18, 5  ;;  %5844 = vst.msk [vmem:[#allocation2 + $0x120] sm:$0xff] %vm2782_vm13, %v5799_v16  ;;  %v4216_v44 = vpop.permute.xlu1 %4215  ;;  %v7841_v60 = vld [vmem:[%s12307_s0 + $0x158] sm:$0x1] }
 0x150   :  { %v4531_v6 = vrot.slane %v4530_v36, 4  ;;  %v1910_v41 = vsel %vm8437_vm5, %v7167_v27, %v1909_v9  ;;  %v1911_v1 = vrot.slane %v1909_v9, 4  ;;  %v4974_v33 = vrot.slane %v7713_v59, 5  ;;  %v7885_v8 = vld [vmem:[%s12307_s0 + $0x108] sm:$0xe]  ;;  %v6148_v36 = vld [vmem:[#allocation2 + $0x10] sm:$0xff] }
 0x151   :  { %v2908_v58 = vsel %vm8437_vm5, %v2906_v23, %v2907_v55  ;;  %v4972_v11 = vsel %vm8437_vm5, %v7743_v21, %v4971_v28  ;;  %v4973_v12 = vrot.slane %v4971_v28, 4  ;;  %v2495_v20 = vshrl.u32 %v7263_v22, 16  ;;  %v7886_v18 = vld [vmem:[%s12307_s0 + $0x10c] sm:$0xf]  ;;  %v7887_v59 = vld [vmem:[%s12307_s0 + $0x110] sm:$0x1] }
 0x152   :  { %4225 = vrot.lane.b32.xlu1 %v8127_v31, %s8167_s28  ;;  %v4536_v45 = vsel %vm8219_vm2, %v4531_v6, %v4535_v24  ;;  %v7368_v47 = vcombine.low %v2905_v14, %v2908_v58  ;;  %v1913_v49 = vsel %vm8437_vm5, %v1911_v1, %v1912_v40  ;;  %v2498_v50 = vshll.u32 %v7263_v22, 16  ;;  %v4039_v54 = vpop.permute.xlu0 %4038  ;;  %v7458_v27 = vld [vmem:[%s12307_s0 + $0x144] sm:$0xf]  ;;  %v7459_v14 = vld [vmem:[%s12307_s0 + $0x148] sm:$0xf] }
 0x153   :  { %v7679_v30 = vcombine.low %v4526_v0, %v4536_v45  ;;  %v7183_v4 = vcombine.low %v1910_v41, %v1913_v49  ;;  %v4975_v37 = vsel %vm8437_vm5, %v4973_v12, %v4974_v33  ;;  %v2497_v57 = vrot.slane %v2495_v20, 4  ;;  %4083 = vst.msk [vmem:[#allocation2 + $0x130] sm:$0xff] %vm1015_vm8, %v4039_v54  ;;  %v2018_v7 = vpop.permute.xlu1 %2017  ;;  %v7460_v6 = vld [vmem:[%s12307_s0 + $0x14c] sm:$0x1]  ;;  %v7522_v41 = vld [vmem:[%s12307_s0 + $0x144] sm:$0xe] }
 0x154   :  { %3072 = vst.msk [vmem:[#allocation2 + $0x18] sm:$0xff] %vm143_vm6, %v7368_v47  ;;  %v7759_v43 = vcombine.low %v4972_v11, %v4975_v37  ;;  %v2500_v62 = vrot.slane %v2498_v50, 5  ;;  %v2504_v2 = vshll.u32 %v7264_v34, 16  ;;  %v2508_v13 = vshrl.u32 %v7264_v34, 16  ;;  %v7523_v47 = vld [vmem:[%s12307_s0 + $0x148] sm:$0xf] }
 0x155   :  { %4769 = vrot.lane.b32.xlu0 %v7679_v30, %s8168_s19  ;;  %4260 = vst.msk [vmem:[#allocation2 + $0x130] sm:$0xff] %vm1193_vm9, %v4216_v44  ;;  %v2514_v46 = vshll.u32 %v7265_v63, 16  ;;  %v5555_v42 = vshrl.u32 %v7839_v32, 16  ;;  %v5558_v15 = vshll.u32 %v7839_v32, 16  ;;  %v5564_v17 = vshll.u32 %v7840_v52, 16 }
 0x156   :  { %2063 = vst.msk [vmem:[#allocation2 + $0x30] sm:$0xff] %vm2059_vm11, %v2018_v7  ;;  %2027 = vrot.lane.b32.xlu1 %v7183_v4, %s8169_s25  ;;  %v2501_v53 = vor.u32 %v2500_v62, %v2497_v57  ;;  %v2506_v35 = vrot.slane %v2504_v2, 5  ;;  %v2510_v48 = vrot.slane %v2508_v13, 4  ;;  %v5568_v10 = vshrl.u32 %v7840_v52, 16  ;;  %v4760_v39 = vpop.permute.xlu0 %4759  ;;  %v7524_v4 = vld [vmem:[%s12307_s0 + $0x14c] sm:$0x1] }
 0x157   :  { %v2516_v38 = vrot.slane %v2514_v46, 5  ;;  %v5557_v19 = vrot.slane %v5555_v42, 4  ;;  %v5560_v24 = vrot.slane %v5558_v15, 5  ;;  %v5566_v25 = vrot.slane %v5564_v17, 5  ;;  %4804 = vst.msk [vmem:[#allocation2 + $0x130] sm:$0xff] %vm1738_vm10, %v4760_v39  ;;  %v2196_v31 = vpop.permute.xlu1 %2195 }
 0x158   :  { %v2502_v51 = vrot.slane %v2501_v53, 4  ;;  %v2511_v61 = vor.u32 %v2510_v48, %v2506_v35  ;;  %v5570_v5 = vrot.slane %v5568_v10, 4  ;;  %v5574_v55 = vshll.u32 %v7841_v60, 16  ;;  %2241 = vst.msk [vmem:[#allocation2 + $0x30] sm:$0xff] %vm2237_vm12, %v2196_v31  ;;  %v7074_v37 = vld [vmem:[%s12307_s0 + $0x78] sm:$0xf] }
 0x159   :  { %5089 = vrot.lane.b32.xlu0 %v7759_v43, %s8169_s25  ;;  %v5561_v9 = vor.u32 %v5560_v24, %v5557_v19  ;;  %v7929_v40 = vrot.slane %v7885_v8, 9  ;;  %v5970_v21 = vrot.slane %v7886_v18, 5  ;;  %v5973_v0 = vrot.slane %v7887_v59, 5  ;;  %v7075_v62 = vld [vmem:[%s12307_s0 + $0x7c] sm:$0xf] }
 0x15a   :  { %2205 = vrot.lane.b32.xlu1 %v8129_v56, %s8170_s29  ;;  %v2507_v23 = vsel %vm8219_vm2, %v2502_v51, %v2506_v35  ;;  %v2512_v28 = vrot.slane %v2511_v61, 4  ;;  %v5571_v16 = vor.u32 %v5570_v5, %v5566_v25  ;;  %v5576_v22 = vrot.slane %v5574_v55, 5  ;;  %v5080_v12 = vpop.permute.xlu0 %5079  ;;  %v7076_v46 = vld [vmem:[%s12307_s0 + $0x80] sm:$0x1]  ;;  %v7309_v53 = vld [vmem:[%s12307_s0 + $0x30] sm:$0xe] }
 0x15b   :  { %v6149_v1 = vld [vmem:[#allocation2 + $0x18] sm:$0xff]  ;;  %v5562_v33 = vrot.slane %v5561_v9, 4  ;;  %v5971_v44 = vsel %vm8437_vm5, %v7929_v40, %v5970_v21  ;;  %v5972_v58 = vrot.slane %v5970_v21, 4  ;;  %v3497_v11 = vshrl.u32 %v7458_v27, 16  ;;  %5124 = vst.msk [vmem:[#allocation2 + $0x130] sm:$0xff] %vm2059_vm11, %v5080_v12  ;;  %v2741_v49 = vpop.permute.xlu1 %2740  ;;  %v6182_v40 = vld [vmem:[#allocation2 + $0x120] sm:$0xff] }
 0x15c   :  { %7970 = vmatprep.mubr.msk.bf16.mxu0 %vm143_vm6, %v6149_v1  ;;  %v2517_v34 = vsel %vm8219_vm2, %v2512_v28, %v2516_v38  ;;  %v5572_v63 = vrot.slane %v5571_v16, 4  ;;  %v3500_v20 = vshll.u32 %v7458_v27, 16  ;;  %v3506_v45 = vshll.u32 %v7459_v14, 16  ;;  %2786 = vst.msk [vmem:[#allocation2 + $0x30] sm:$0xff] %vm2782_vm13, %v2741_v49  ;;  %v7310_v19 = vld [vmem:[%s12307_s0 + $0x34] sm:$0xf] }
 0x15d   :  { %6426 = vmatmul.mubr.bf16.gmra.mrb[4].mxu0 %v6148_v36  ;;  %5266 = vrot.lane.b32.xlu0 %v8130_v29, %s8170_s29  ;;  %v7295_v50 = vcombine.low %v2507_v23, %v2517_v34  ;;  %v5567_v32 = vsel %vm8219_vm2, %v5562_v33, %v5566_v25  ;;  %v5974_v52 = vsel %vm8437_vm5, %v5972_v58, %v5973_v0  ;;  %v3499_v30 = vrot.slane %v3497_v11, 4  ;;  %v7311_v51 = vld [vmem:[%s12307_s0 + $0x38] sm:$0x1]  ;;  %v7650_v31 = vld [vmem:[%s12307_s0 + $0x150] sm:$0xf] }
 0x15e   :  { %v5577_v54 = vsel %vm8219_vm2, %v5572_v63, %v5576_v22  ;;  %v7945_v57 = vcombine.low %v5971_v44, %v5974_v52  ;;  %v3502_v60 = vrot.slane %v3500_v20, 5  ;;  %v10517_v43 = vrot.slane %v3506_v45, 5  ;;  %v5257_v42 = vpop.permute.xlu0 %5256  ;;  %v7651_v23 = vld [vmem:[%s12307_s0 + $0x154] sm:$0xf]  ;;  %v7652_v1 = vld [vmem:[%s12307_s0 + $0x158] sm:$0x1] }
 0x15f   :  { %2750 = vrot.lane.b32.xlu1 %v7295_v50, %s8171_s16  ;;  %v7871_v2 = vcombine.low %v5567_v32, %v5577_v54  ;;  %v3510_v13 = vshrl.u32 %v7459_v14, 16  ;;  %v3516_v7 = vshll.u32 %v7460_v6, 16  ;;  %v7552_v8 = vrot.slane %v7522_v41, 9  ;;  %5301 = vst.msk [vmem:[#allocation2 + $0x130] sm:$0xff] %vm2237_vm12, %v5257_v42  ;;  %v3721_v35 = vpop.permute.xlu1 %3720  ;;  %v7138_v12 = vld [vmem:[%s12307_s0 + $0x78] sm:$0xe] }
 0x160   :  { %6132 = vst.msk [vmem:[#allocation2 + $0x128] sm:$0xff] %vm143_vm6, %v7945_v57  ;;  %v3503_v15 = vor.u32 %v3502_v60, %v3499_v30  ;;  %v3937_v17 = vrot.slane %v7523_v47, 5  ;;  %v3940_v18 = vrot.slane %v7524_v4, 5  ;;  %v1475_v56 = vshrl.u32 %v7074_v37, 16  ;;  %v7139_v49 = vld [vmem:[%s12307_s0 + $0x7c] sm:$0xf] }
 0x161   :  { %5810 = vrot.lane.b32.xlu0 %v7871_v2, %s8171_s16  ;;  %v3512_v48 = vrot.slane %v3510_v13, 4  ;;  %v3518_v10 = vrot.slane %v3516_v7, 5  ;;  %v1478_v59 = vshll.u32 %v7074_v37, 16  ;;  %v1484_v38 = vshll.u32 %v7075_v62, 16  ;;  %3764 = vst.msk [vmem:[#allocation2 + $0x140] sm:$0xff] %vm691_vm7, %v3721_v35  ;;  %v8148_v7 = vld [vmem:[%s12307_s0 + $0x138] sm:$0xff]  }
 0x162   :  { %v3504_v24 = vrot.slane %v3503_v15, 4  ;;  %v3938_v25 = vsel %vm8437_vm5, %v7552_v8, %v3937_v17  ;;  %v3939_v39 = vrot.slane %v3937_v17, 4  ;;  %v1477_v29 = vrot.slane %v1475_v56, 4  ;;  %v5801_v36 = vpop.permute.xlu0 %5800  ;;  %v7140_v37 = vld [vmem:[%s12307_s0 + $0x80] sm:$0x1]  ;;  %v8131_v8 = vld [vmem:[%s12307_s0 + $0x150] sm:$0xff]  }
 0x163   :  { %v3513_v61 = vor.u32 %v3512_v48, %v10517_v43  ;;  %v1480_v5 = vrot.slane %v1478_v59, 5  ;;  %v1486_v55 = vrot.slane %v1484_v38, 5  ;;  %v1488_v27 = vshrl.u32 %v7075_v62, 16  ;;  %5845 = vst.msk [vmem:[#allocation2 + $0x130] sm:$0xff] %vm2782_vm13, %v5801_v36  ;;  %v4218_v28 = vpop.permute.xlu1 %4217  ;;  %v7714_v54 = vld [vmem:[%s12307_s0 + $0x150] sm:$0xe] }
 0x164   :  { %v3509_v9 = vsel %vm8219_vm2, %v3504_v24, %v10517_v43  ;;  %v3941_v21 = vsel %vm8437_vm5, %v3939_v39, %v3940_v18  ;;  %v1494_v0 = vshll.u32 %v7076_v46, 16  ;;  %v7353_v14 = vrot.slane %v7309_v53, 9  ;;  %v7715_v57 = vld [vmem:[%s12307_s0 + $0x154] sm:$0xf]  ;;  %v7716_v48 = vld [vmem:[%s12307_s0 + $0x158] sm:$0x1] }
 0x165   :  { %v3514_v16 = vrot.slane %v3513_v61, 4  ;;  %v7568_v22 = vcombine.low %v3938_v25, %v3941_v21  ;;  %v1481_v6 = vor.u32 %v1480_v5, %v1477_v29  ;;  %v1490_v41 = vrot.slane %v1488_v27, 4  ;;  %3224 = vst.msk [vmem:[#allocation2 + $0x180] sm:$0xff] %vm143_vm6, %v8148_v7  ;;  %v7266_v25 = vld [vmem:[%s12307_s0 + $0x84] sm:$0xf] }
 0x166   :  { %v1496_v33 = vrot.slane %v1494_v0, 5  ;;  %v2911_v44 = vrot.slane %v7310_v19, 5  ;;  %v2914_v58 = vrot.slane %v7311_v51, 5  ;;  %v4538_v11 = vshrl.u32 %v7650_v31, 16  ;;  %v4041_v50 = vpop.permute.xlu0 %4040  ;;  %v7844_v7 = vld [vmem:[%s12307_s0 + $0x164] sm:$0x1] }
 0x167   :  { %v6183_v34 = vld [vmem:[#allocation2 + $0x128] sm:$0xff]  ;;  %v3519_v63 = vsel %vm8219_vm2, %v3514_v16, %v3518_v10  ;;  %4050 = vrot.lane.b32.xlu0 %v7568_v22, %s8166_s20  ;;  %v1482_v20 = vrot.slane %v1481_v6, 4  ;;  %v1491_v45 = vor.u32 %v1490_v41, %v1486_v55  ;;  %v4541_v47 = vshll.u32 %v7650_v31, 16  ;;  %4084 = vst.msk [vmem:[#allocation2 + $0x140] sm:$0xff] %vm1015_vm8, %v4041_v50  ;;  %v2020_v60 = vpop.permute.xlu1 %2019 }
 0x168   :  { %7987 = vmatprep.mubr.msk.bf16.mxu1 %vm143_vm6, %v6183_v34  ;;  %v7488_v32 = vcombine.low %v3509_v9, %v3519_v63  ;;  %v2912_v52 = vsel %vm8437_vm5, %v7353_v14, %v2911_v44  ;;  %v2913_v30 = vrot.slane %v2911_v44, 4  ;;  %v4540_v4 = vrot.slane %v4538_v11, 4  ;;  %4261 = vst.msk [vmem:[#allocation2 + $0x140] sm:$0xff] %vm1193_vm9, %v4218_v28  ;;  %v7268_v14 = vld [vmem:[%s12307_s0 + $0x8c] sm:$0x1] }
 0x169   :  { %6562 = vmatmul.mubr.bf16.gmra.mrb[8].mxu1 %v6182_v40  ;;  %v1487_v43 = vsel %vm8219_vm2, %v1482_v20, %v1486_v55  ;;  %v1492_v62 = vrot.slane %v1491_v45, 4  ;;  %v4543_v2 = vrot.slane %v4541_v47, 5  ;;  %v4547_v13 = vshll.u32 %v7651_v23, 16  ;;  %2064 = vst.msk [vmem:[#allocation2 + $0x40] sm:$0xff] %vm2059_vm11, %v2020_v60  ;;  %v7267_v55 = vld [vmem:[%s12307_s0 + $0x88] sm:$0xf] }
 0x16a   :  { %3730 = vrot.lane.b32.xlu1 %v7488_v32, %s8165_s9  ;;  %v2915_v46 = vsel %vm8437_vm5, %v2913_v30, %v2914_v58  ;;  %v4551_v42 = vshrl.u32 %v7651_v23, 16  ;;  %v4557_v15 = vshll.u32 %v7652_v1, 16  ;;  %v7168_v17 = vrot.slane %v7138_v12, 9  ;;  %v4762_v10 = vpop.permute.xlu0 %4761  ;;  %v7888_v28 = vld [vmem:[%s12307_s0 + $0x114] sm:$0xe]  ;;  %v6150_v30 = vld [vmem:[#allocation2 + $0x20] sm:$0xff] }
 0x16b   :  { %v1497_v18 = vsel %vm8219_vm2, %v1492_v62, %v1496_v33  ;;  %v7369_v56 = vcombine.low %v2912_v52, %v2915_v46  ;;  %v4544_v53 = vor.u32 %v4543_v2, %v4540_v4  ;;  %v4549_v35 = vrot.slane %v4547_v13, 5  ;;  %4805 = vst.msk [vmem:[#allocation2 + $0x140] sm:$0xff] %vm1738_vm10, %v4762_v10  ;;  %v2198_v39 = vpop.permute.xlu1 %2197  ;;  %v7889_v33 = vld [vmem:[%s12307_s0 + $0x118] sm:$0xf]  ;;  %v7890_v63 = vld [vmem:[%s12307_s0 + $0x11c] sm:$0x1] }
 0x16c   :  { %v7104_v59 = vcombine.low %v1487_v43, %v1497_v18  ;;  %v4553_v38 = vrot.slane %v4551_v42, 4  ;;  %v4559_v19 = vrot.slane %v4557_v15, 5  ;;  %v1916_v24 = vrot.slane %v7139_v49, 5  ;;  %2242 = vst.msk [vmem:[#allocation2 + $0x40] sm:$0xff] %vm2237_vm12, %v2198_v39  ;;  %v7842_v20 = vld [vmem:[%s12307_s0 + $0x15c] sm:$0xf] }
 0x16d   :  { %3073 = vst.msk [vmem:[#allocation2 + $0x28] sm:$0xff] %vm143_vm6, %v7369_v56  ;;  %v4545_v29 = vrot.slane %v4544_v53, 4  ;;  %v1919_v51 = vrot.slane %v7140_v37, 5  ;;  %v7744_v61 = vrot.slane %v7714_v54, 9  ;;  %v4978_v5 = vrot.slane %v7715_v57, 5  ;;  %v8133_v4 = vld [vmem:[%s12307_s0 + $0x84] sm:$0xff]  }
 0x16e   :  { %4227 = vrot.lane.b32.xlu1 %v8131_v8, %s8167_s28  ;;  %1708 = vrot.lane.b32.xlu0 %v7104_v59, %s8168_s19  ;;  %v4554_v27 = vor.u32 %v4553_v38, %v4549_v35  ;;  %v1917_v31 = vsel %vm8437_vm5, %v7168_v17, %v1916_v24  ;;  %v1918_v36 = vrot.slane %v1916_v24, 4  ;;  %v4981_v9 = vrot.slane %v7716_v48, 5  ;;  %v5082_v16 = vpop.permute.xlu0 %5081  ;;  %v7843_v32 = vld [vmem:[%s12307_s0 + $0x160] sm:$0xf]  ;;  %v7461_v56 = vld [vmem:[%s12307_s0 + $0x150] sm:$0xf] }
 0x16f   :  { %v4550_v40 = vsel %vm8219_vm2, %v4545_v29, %v4549_v35  ;;  %v10615_v21 = vsel %vm8437_vm5, %v7744_v61, %v4978_v5  ;;  %v4980_v0 = vrot.slane %v4978_v5, 4  ;;  %v2519_v23 = vshrl.u32 %v7266_v25, 16  ;;  %5125 = vst.msk [vmem:[#allocation2 + $0x140] sm:$0xff] %vm2059_vm11, %v5082_v16  ;;  %v2743_v44 = vpop.permute.xlu1 %2742  ;;  %v7463_v61 = vld [vmem:[%s12307_s0 + $0x158] sm:$0x1] }
 0x170   :  { %v4555_v22 = vrot.slane %v4554_v27, 4  ;;  %v1920_v6 = vsel %vm8437_vm5, %v1918_v36, %v1919_v51  ;;  %v2522_v41 = vshll.u32 %v7266_v25, 16  ;;  %v2528_v1 = vshll.u32 %v7267_v55, 16  ;;  %2787 = vst.msk [vmem:[#allocation2 + $0x40] sm:$0xff] %vm2782_vm13, %v2743_v44  ;;  %v7462_v51 = vld [vmem:[%s12307_s0 + $0x154] sm:$0xf] }
 0x171   :  { %v7184_v58 = vcombine.low %v1917_v31, %v1920_v6  ;;  %v4982_v11 = vsel %vm8437_vm5, %v4980_v0, %v4981_v9  ;;  %v2521_v12 = vrot.slane %v2519_v23, 4  ;;  %v2532_v34 = vshrl.u32 %v7267_v55, 16  ;;  %v8134_v31 = vld [vmem:[%s12307_s0 + $0x15c] sm:$0xff]   ;;  %v7525_v0 = vld [vmem:[%s12307_s0 + $0x150] sm:$0xe] }
 0x172   :  { %v4560_v45 = vsel %vm8219_vm2, %v4555_v22, %v4559_v19  ;;  %v7760_v47 = vcombine.low %v10615_v21, %v4982_v11  ;;  %v2524_v49 = vrot.slane %v2522_v41, 5  ;;  %v2530_v50 = vrot.slane %v2528_v1, 5  ;;  %v7527_v6 = vld [vmem:[%s12307_s0 + $0x158] sm:$0x1] }
 0x173   :  { %v7680_v52 = vcombine.low %v4550_v40, %v4560_v45  ;;  %2029 = vrot.lane.b32.xlu0 %v7184_v58, %s8169_s25  ;;  %v2534_v37 = vrot.slane %v2532_v34, 4  ;;  %v2538_v54 = vshll.u32 %v7268_v14, 16  ;;  %v7930_v57 = vrot.slane %v7888_v28, 9  ;;  %v5259_v60 = vpop.permute.xlu0 %5258  ;;  %v7526_v14 = vld [vmem:[%s12307_s0 + $0x154] sm:$0xf] }
 0x174   :  { %v6151_v43 = vld [vmem:[#allocation2 + $0x28] sm:$0xff]  ;;  %v2525_v62 = vor.u32 %v2524_v49, %v2521_v12  ;;  %v5977_v2 = vrot.slane %v7889_v33, 5  ;;  %v5980_v13 = vrot.slane %v7890_v63, 5  ;;  %v5579_v8 = vshrl.u32 %v7842_v20, 16  ;;  %5302 = vst.msk [vmem:[#allocation2 + $0x140] sm:$0xff] %vm2237_vm12, %v5259_v60  ;;  %v3723_v46 = vpop.permute.xlu1 %3722 }
 0x175   :  { %7971 = vmatprep.mubr.msk.bf16.mxu0 %vm143_vm6, %v6151_v43  ;;  %4771 = vrot.lane.b32.xlu1 %v7680_v52, %s8168_s19  ;;  %v2535_v42 = vor.u32 %v2534_v37, %v2530_v50  ;;  %v2540_v15 = vrot.slane %v2538_v54, 5  ;;  %v5582_v17 = vshll.u32 %v7842_v20, 16  ;;  %v5588_v18 = vshll.u32 %v7843_v32, 16  ;;  %3765 = vst.msk [vmem:[#allocation2 + $0x150] sm:$0xff] %vm691_vm7, %v3723_v46  ;;  %v7312_v58 = vld [vmem:[%s12307_s0 + $0x3c] sm:$0xe] }
 0x176   :  { %6434 = vmatmul.mubr.bf16.gmra.mrb[8].mxu0 %v6150_v30  ;;  %v2526_v53 = vrot.slane %v2525_v62, 4  ;;  %v5978_v35 = vsel %vm8437_vm5, %v7930_v57, %v5977_v2  ;;  %v5979_v48 = vrot.slane %v5977_v2, 4  ;;  %v5581_v10 = vrot.slane %v5579_v8, 4  ;;  %v7313_v20 = vld [vmem:[%s12307_s0 + $0x40] sm:$0xf] }
 0x177   :  { %2207 = vrot.lane.b32.xlu0 %v8133_v4, %s8170_s29  ;;  %v2536_v59 = vrot.slane %v2535_v42, 4  ;;  %v5584_v38 = vrot.slane %v5582_v17, 5  ;;  %v5590_v19 = vrot.slane %v5588_v18, 5  ;;  %v5592_v24 = vshrl.u32 %v7843_v32, 16  ;;  %v7314_v30 = vld [vmem:[%s12307_s0 + $0x44] sm:$0x1] }
 0x178   :  { %v2531_v25 = vsel %vm8219_vm2, %v2526_v53, %v2530_v50  ;;  %v5981_v39 = vsel %vm8437_vm5, %v5979_v48, %v5980_v13  ;;  %v5598_v29 = vshll.u32 %v7844_v7, 16  ;;  %v3521_v5 = vshrl.u32 %v7461_v56, 16  ;;  %v5803_v55 = vpop.permute.xlu0 %5802  ;;  %v4220_v27 = vpop.permute.xlu1 %4219  ;;  %v7077_v60 = vld [vmem:[%s12307_s0 + $0x84] sm:$0xf]  ;;  %v7078_v7 = vld [vmem:[%s12307_s0 + $0x88] sm:$0xf] }
 0x179   :  { %5091 = vrot.lane.b32.xlu1 %v7760_v47, %s8169_s25  ;;  %v2541_v36 = vsel %vm8219_vm2, %v2536_v59, %v2540_v15  ;;  %v7946_v9 = vcombine.low %v5978_v35, %v5981_v39  ;;  %v5585_v40 = vor.u32 %v5584_v38, %v5581_v10  ;;  %v5594_v21 = vrot.slane %v5592_v24, 4  ;;  %5846 = vst.msk [vmem:[#allocation2 + $0x140] sm:$0xff] %vm2782_vm13, %v5803_v55  ;;  %v7079_v17 = vld [vmem:[%s12307_s0 + $0x8c] sm:$0x1]  ;;  %v6184_v53 = vld [vmem:[#allocation2 + $0x130] sm:$0xff] }
 0x17a   :  { %v7296_v23 = vcombine.low %v2531_v25, %v2541_v36  ;;  %v5600_v28 = vrot.slane %v5598_v29, 5  ;;  %v3523_v16 = vrot.slane %v3521_v5, 4  ;;  %v3524_v22 = vshll.u32 %v7461_v56, 16  ;;  %v7653_v38 = vld [vmem:[%s12307_s0 + $0x15c] sm:$0xf] }
 0x17b   :  { %6133 = vst.msk [vmem:[#allocation2 + $0x138] sm:$0xff] %vm143_vm6, %v7946_v9  ;;  %v5586_v41 = vrot.slane %v5585_v40, 4  ;;  %v5595_v1 = vor.u32 %v5594_v21, %v5590_v19  ;;  %v3530_v33 = vshll.u32 %v7462_v51, 16  ;;  %v3534_v44 = vshrl.u32 %v7462_v51, 16  ;;  %v7654_v51 = vld [vmem:[%s12307_s0 + $0x160] sm:$0xf] }
 0x17c   :  { %2752 = vrot.lane.b32.xlu0 %v7296_v23, %s8171_s16  ;;  %v3526_v11 = vrot.slane %v3524_v22, 5  ;;  %v3540_v12 = vshll.u32 %v7463_v61, 16  ;;  %v7553_v34 = vrot.slane %v7525_v0, 9  ;;  %v3944_v63 = vrot.slane %v7526_v14, 5  ;;  %v4043_v45 = vpop.permute.xlu0 %4042  ;;  %v2022_v47 = vpop.permute.xlu1 %2021  ;;  %v7655_v61 = vld [vmem:[%s12307_s0 + $0x164] sm:$0x1] }
 0x17d   :  { %5268 = vrot.lane.b32.xlu1 %v8134_v31, %s8170_s29  ;;  %v5591_v49 = vsel %vm8219_vm2, %v5586_v41, %v5590_v19  ;;  %v5596_v50 = vrot.slane %v5595_v1, 4  ;;  %v3532_v32 = vrot.slane %v3530_v33, 5  ;;  %v3536_v52 = vrot.slane %v3534_v44, 4  ;;  %4085 = vst.msk [vmem:[#allocation2 + $0x150] sm:$0xff] %vm1015_vm8, %v4043_v45  ;;  %v7141_v36 = vld [vmem:[%s12307_s0 + $0x84] sm:$0xe] }
 0x17e   :  { %2065 = vst.msk [vmem:[#allocation2 + $0x50] sm:$0xff] %vm2059_vm11, %v2022_v47  ;;  %v3527_v4 = vor.u32 %v3526_v11, %v3523_v16  ;;  %v3542_v37 = vrot.slane %v3540_v12, 5  ;;  %v3945_v54 = vsel %vm8437_vm5, %v7553_v34, %v3944_v63  ;;  %v3946_v57 = vrot.slane %v3944_v63, 4  ;;  %v8152_v9 = vld [vmem:[%s12307_s0 + $0x144] sm:$0xff]   ;;  %v8135_v21 = vld [vmem:[%s12307_s0 + $0x15c] sm:$0xff]  }
 0x17f   :  { %4262 = vst.msk [vmem:[#allocation2 + $0x150] sm:$0xff] %vm1193_vm9, %v4220_v27  ;;  %v5601_v43 = vsel %vm8219_vm2, %v5596_v50, %v5600_v28  ;;  %v3537_v62 = vor.u32 %v3536_v52, %v3532_v32  ;;  %v3947_v2 = vrot.slane %v7527_v6, 5  ;;  %v7354_v13 = vrot.slane %v7312_v58, 9  ;;  %v7142_v28 = vld [vmem:[%s12307_s0 + $0x88] sm:$0xf] }
 0x180   :  { %v7872_v8 = vcombine.low %v5591_v49, %v5601_v43  ;;  %v3528_v46 = vrot.slane %v3527_v4, 4  ;;  %v2918_v42 = vrot.slane %v7313_v20, 5  ;;  %v2921_v15 = vrot.slane %v7314_v30, 5  ;;  %v4764_v18 = vpop.permute.xlu0 %4763  ;;  %v2200_v56 = vpop.permute.xlu1 %2199  ;;  %v7143_v44 = vld [vmem:[%s12307_s0 + $0x8c] sm:$0x1]  ;;  %3225 = vst.msk [vmem:[#allocation2 + $0x190] sm:$0xff] %vm143_vm6, %v8152_v9 }
 0x181   :  { %v3538_v35 = vrot.slane %v3537_v62, 4  ;;  %v3948_v48 = vsel %vm8437_vm5, %v3946_v57, %v3947_v2  ;;  %v1499_v10 = vshrl.u32 %v7077_v60, 16  ;;  %v1502_v59 = vshll.u32 %v7077_v60, 16  ;;  %4806 = vst.msk [vmem:[#allocation2 + $0x150] sm:$0xff] %vm1738_vm10, %v4764_v18  ;;  %v7717_v63 = vld [vmem:[%s12307_s0 + $0x15c] sm:$0xe] }
 0x182   :  { %2243 = vst.msk [vmem:[#allocation2 + $0x50] sm:$0xff] %vm2237_vm12, %v2200_v56  ;;  %v6185_v19 = vld [vmem:[#allocation2 + $0x138] sm:$0xff]  ;;  %5812 = vrot.lane.b32.xlu1 %v7872_v8, %s8171_s16  ;;  %v3533_v24 = vsel %vm8219_vm2, %v3528_v46, %v3532_v32  ;;  %v7569_v25 = vcombine.low %v3945_v54, %v3948_v48  ;;  %v2919_v39 = vsel %vm8437_vm5, %v7354_v13, %v2918_v42  ;;  %v2920_v29 = vrot.slane %v2918_v42, 4  ;;  %v7718_v50 = vld [vmem:[%s12307_s0 + $0x160] sm:$0xf] }
 0x183   :  { %7988 = vmatprep.mubr.msk.bf16.mxu1 %vm143_vm6, %v6185_v19  ;;  %v3543_v5 = vsel %vm8219_vm2, %v3538_v35, %v3542_v37  ;;  %v1501_v55 = vrot.slane %v1499_v10, 4  ;;  %v1504_v27 = vrot.slane %v1502_v59, 5  ;;  %v1508_v31 = vshll.u32 %v7078_v7, 16  ;;  %v7719_v37 = vld [vmem:[%s12307_s0 + $0x164] sm:$0x1] }
 0x184   :  { %6570 = vmatmul.mubr.bf16.gmra.mrb[12].mxu1 %v6184_v53  ;;  %v7489_v40 = vcombine.low %v3533_v24, %v3543_v5  ;;  %v2922_v0 = vsel %vm8437_vm5, %v2920_v29, %v2921_v15  ;;  %v1512_v14 = vshrl.u32 %v7078_v7, 16  ;;  %v1518_v23 = vshll.u32 %v7079_v17, 16  ;;  %v5084_v16 = vpop.permute.xlu0 %5083  ;;  %v2745_v22 = vpop.permute.xlu1 %2744  ;;  %v7891_v2 = vld [vmem:[%s12307_s0 + $0x120] sm:$0xe]  ;;  %v7892_v53 = vld [vmem:[%s12307_s0 + $0x124] sm:$0xf] }
 0x185   :  { %v7370_v6 = vcombine.low %v2919_v39, %v2922_v0  ;;  %v1505_v41 = vor.u32 %v1504_v27, %v1501_v55  ;;  %v1510_v1 = vrot.slane %v1508_v31, 5  ;;  %v4562_v33 = vshrl.u32 %v7653_v38, 16  ;;  %5126 = vst.msk [vmem:[#allocation2 + $0x150] sm:$0xff] %vm2059_vm11, %v5084_v16  ;;  %v7893_v35 = vld [vmem:[%s12307_s0 + $0x128] sm:$0x1] }
 0x186   :  { %2788 = vst.msk [vmem:[#allocation2 + $0x50] sm:$0xff] %vm2782_vm13, %v2745_v22  ;;  %3732 = vrot.lane.b32.xlu0 %v7489_v40, %s8165_s9  ;;  %4052 = vrot.lane.b32.xlu1 %v7569_v25, %s8166_s20  ;;  %v1514_v58 = vrot.slane %v1512_v14, 4  ;;  %v1520_v11 = vrot.slane %v1518_v23, 5  ;;  %v4565_v12 = vshll.u32 %v7653_v38, 16  ;;  %v4571_v34 = vshll.u32 %v7654_v51, 16  ;;  %v6152_v25 = vld [vmem:[#allocation2 + $0x30] sm:$0xff] }
 0x187   :  { %3074 = vst.msk [vmem:[#allocation2 + $0x38] sm:$0xff] %vm143_vm6, %v7370_v6  ;;  %v1506_v20 = vrot.slane %v1505_v41, 4  ;;  %v4564_v45 = vrot.slane %v4562_v33, 4  ;;  %v4575_v47 = vshrl.u32 %v7654_v51, 16  ;;  %v4581_v49 = vshll.u32 %v7655_v61, 16 }
 0x188   :  { %v1515_v32 = vor.u32 %v1514_v58, %v1510_v1  ;;  %v4567_v52 = vrot.slane %v4565_v12, 5  ;;  %v4573_v30 = vrot.slane %v4571_v34, 5  ;;  %v7169_v4 = vrot.slane %v7141_v36, 9  ;;  %v5261_v54 = vpop.permute.xlu0 %5260  ;;  %v7269_v19 = vld [vmem:[%s12307_s0 + $0x90] sm:$0xf] }
 0x189   :  { %v1511_v57 = vsel %vm8219_vm2, %v1506_v20, %v1510_v1  ;;  %v4577_v60 = vrot.slane %v4575_v47, 4  ;;  %v4583_v43 = vrot.slane %v4581_v49, 5  ;;  %v1923_v62 = vrot.slane %v7142_v28, 5  ;;  %5303 = vst.msk [vmem:[#allocation2 + $0x150] sm:$0xff] %vm2237_vm12, %v5261_v54  ;;  %v7270_v61 = vld [vmem:[%s12307_s0 + $0x94] sm:$0xf] }
 0x18a   :  { %4229 = vrot.lane.b32.xlu0 %v8135_v21, %s8167_s28  ;;  %v1516_v13 = vrot.slane %v1515_v32, 4  ;;  %v4568_v7 = vor.u32 %v4567_v52, %v4564_v45  ;;  %v1926_v8 = vrot.slane %v7143_v44, 5  ;;  %v7745_v46 = vrot.slane %v7717_v63, 9  ;;  %v3725_v42 = vpop.permute.xlu1 %3724  ;;  %v7271_v9 = vld [vmem:[%s12307_s0 + $0x98] sm:$0x1]  ;;  %v8137_v34 = vld [vmem:[%s12307_s0 + $0x90] sm:$0xff]  }
 0x18b   :  { %v4578_v15 = vor.u32 %v4577_v60, %v4573_v30  ;;  %v1924_v17 = vsel %vm8437_vm5, %v7169_v4, %v1923_v62  ;;  %v1925_v18 = vrot.slane %v1923_v62, 4  ;;  %v4985_v56 = vrot.slane %v7718_v50, 5  ;;  %3766 = vst.msk [vmem:[#allocation2 + $0x160] sm:$0xff] %vm691_vm7, %v3725_v42  ;;  %v7845_v16 = vld [vmem:[%s12307_s0 + $0x168] sm:$0xf] }
 0x18c   :  { %v1521_v48 = vsel %vm8219_vm2, %v1516_v13, %v1520_v11  ;;  %v4569_v10 = vrot.slane %v4568_v7, 4  ;;  %v4988_v59 = vrot.slane %v7719_v37, 5  ;;  %v7931_v38 = vrot.slane %v7891_v2, 9  ;;  %v7846_v12 = vld [vmem:[%s12307_s0 + $0x16c] sm:$0xf] }
 0x18d   :  { %v7105_v24 = vcombine.low %v1511_v57, %v1521_v48  ;;  %v4579_v39 = vrot.slane %v4578_v15, 4  ;;  %v1927_v29 = vsel %vm8437_vm5, %v1925_v18, %v1926_v8  ;;  %v4986_v51 = vsel %vm8437_vm5, %v7745_v46, %v4985_v56  ;;  %v7847_v47 = vld [vmem:[%s12307_s0 + $0x170] sm:$0x1]  ;;  %v7464_v54 = vld [vmem:[%s12307_s0 + $0x15c] sm:$0xf]  ;;  %v8138_v15 = vld [vmem:[%s12307_s0 + $0x168] sm:$0xff]  }
 0x18e   :  { %v6153_v5 = vld [vmem:[#allocation2 + $0x38] sm:$0xff]  ;;  %v4574_v55 = vsel %vm8219_vm2, %v4569_v10, %v4573_v30  ;;  %v7185_v27 = vcombine.low %v1924_v17, %v1927_v29  ;;  %v4987_v31 = vrot.slane %v4985_v56, 4  ;;  %v5984_v36 = vrot.slane %v7892_v53, 5  ;;  %v5805_v40 = vpop.permute.xlu0 %5804  ;;  %v4222_v21 = vpop.permute.xlu1 %4221  ;;  %v7465_v57 = vld [vmem:[%s12307_s0 + $0x160] sm:$0xf] }
 0x18f   :  { %7972 = vmatprep.mubr.msk.bf16.mxu0 %vm143_vm6, %v6153_v5  ;;  %1710 = vrot.lane.b32.xlu1 %v7105_v24, %s8168_s19  ;;  %v4584_v0 = vsel %vm8219_vm2, %v4579_v39, %v4583_v43  ;;  %v5987_v14 = vrot.slane %v7893_v35, 5  ;;  %v2543_v23 = vshrl.u32 %v7269_v19, 16  ;;  %v2546_v28 = vshll.u32 %v7269_v19, 16  ;;  %5847 = vst.msk [vmem:[#allocation2 + $0x150] sm:$0xff] %vm2782_vm13, %v5805_v40  ;;  %v7466_v13 = vld [vmem:[%s12307_s0 + $0x164] sm:$0x1] }
 0x190   :  { %6442 = vmatmul.mubr.bf16.gmra.mrb[12].mxu0 %v6152_v25  ;;  %v7681_v22 = vcombine.low %v4574_v55, %v4584_v0  ;;  %v4989_v6 = vsel %vm8437_vm5, %v4987_v31, %v4988_v59  ;;  %v5985_v41 = vsel %vm8437_vm5, %v7931_v38, %v5984_v36  ;;  %v5986_v1 = vrot.slane %v5984_v36, 4  ;;  %v7528_v35 = vld [vmem:[%s12307_s0 + $0x15c] sm:$0xe]  ;;  %v7529_v25 = vld [vmem:[%s12307_s0 + $0x160] sm:$0xf] }
 0x191   :  { %v7761_v33 = vcombine.low %v4986_v51, %v4989_v6  ;;  %v2545_v44 = vrot.slane %v2543_v23, 4  ;;  %v2548_v58 = vrot.slane %v2546_v28, 5  ;;  %v2552_v11 = vshll.u32 %v7270_v61, 16  ;;  %v7530_v39 = vld [vmem:[%s12307_s0 + $0x164] sm:$0x1] }
 0x192   :  { %4773 = vrot.lane.b32.xlu0 %v7681_v22, %s8168_s19  ;;  %v5988_v63 = vsel %vm8437_vm5, %v5986_v1, %v5987_v14  ;;  %v2556_v20 = vshrl.u32 %v7270_v61, 16  ;;  %v2562_v45 = vshll.u32 %v7271_v9, 16  ;;  %v5603_v49 = vshrl.u32 %v7845_v16, 16  ;;  %v4045_v50 = vpop.permute.xlu0 %4044  ;;  %v2024_v32 = vpop.permute.xlu1 %2023  ;;  %v7315_v14 = vld [vmem:[%s12307_s0 + $0x48] sm:$0xe]  ;;  %v6186_v22 = vld [vmem:[#allocation2 + $0x140] sm:$0xff] }
 0x193   :  { %2031 = vrot.lane.b32.xlu1 %v7185_v27, %s8169_s25  ;;  %v7947_v52 = vcombine.low %v5985_v41, %v5988_v63  ;;  %v2549_v30 = vor.u32 %v2548_v58, %v2545_v44  ;;  %v2554_v4 = vrot.slane %v2552_v11, 5  ;;  %v5606_v37 = vshll.u32 %v7845_v16, 16  ;;  %4086 = vst.msk [vmem:[#allocation2 + $0x160] sm:$0xff] %vm1015_vm8, %v4045_v50  ;;  %v7316_v23 = vld [vmem:[%s12307_s0 + $0x4c] sm:$0xf] }
 0x194   :  { %2066 = vst.msk [vmem:[#allocation2 + $0x60] sm:$0xff] %vm2059_vm11, %v2024_v32  ;;  %v2558_v60 = vrot.slane %v2556_v20, 4  ;;  %v2564_v43 = vrot.slane %v2562_v45, 5  ;;  %v5605_v62 = vrot.slane %v5603_v49, 4  ;;  %v5612_v2 = vshll.u32 %v7846_v12, 16 }
 0x195   :  { %4263 = vst.msk [vmem:[#allocation2 + $0x160] sm:$0xff] %vm1193_vm9, %v4222_v21  ;;  %v2550_v7 = vrot.slane %v2549_v30, 4  ;;  %v5608_v8 = vrot.slane %v5606_v37, 5  ;;  %v5616_v46 = vshrl.u32 %v7846_v12, 16  ;;  %v5622_v42 = vshll.u32 %v7847_v47, 16 }
 0x196   :  { %6134 = vst.msk [vmem:[#allocation2 + $0x148] sm:$0xff] %vm143_vm6, %v7947_v52  ;;  %5093 = vrot.lane.b32.xlu0 %v7761_v33, %s8169_s25  ;;  %v2559_v17 = vor.u32 %v2558_v60, %v2554_v4  ;;  %v5614_v18 = vrot.slane %v5612_v2, 5  ;;  %v3545_v56 = vshrl.u32 %v7464_v54, 16  ;;  %v3548_v53 = vshll.u32 %v7464_v54, 16  ;;  %v4766_v48 = vpop.permute.xlu0 %4765  ;;  %v2202_v10 = vpop.permute.xlu1 %2201  ;;  %v7317_v33 = vld [vmem:[%s12307_s0 + $0x50] sm:$0x1] }
 0x197   :  { %2209 = vrot.lane.b32.xlu1 %v8137_v34, %s8170_s29  ;;  %v2555_v59 = vsel %vm8219_vm2, %v2550_v7, %v2554_v4  ;;  %v5609_v38 = vor.u32 %v5608_v8, %v5605_v62  ;;  %v5618_v19 = vrot.slane %v5616_v46, 4  ;;  %v5624_v24 = vrot.slane %v5622_v42, 5  ;;  %4807 = vst.msk [vmem:[#allocation2 + $0x160] sm:$0xff] %vm1738_vm10, %v4766_v48  ;;  %v7080_v50 = vld [vmem:[%s12307_s0 + $0x90] sm:$0xf] }
 0x198   :  { %2244 = vst.msk [vmem:[#allocation2 + $0x60] sm:$0xff] %vm2237_vm12, %v2202_v10  ;;  %v2560_v29 = vrot.slane %v2559_v17, 4  ;;  %v3547_v51 = vrot.slane %v3545_v56, 4  ;;  %v3550_v61 = vrot.slane %v3548_v53, 5  ;;  %v3554_v5 = vshll.u32 %v7465_v57, 16 }
 0x199   :  { %v5610_v55 = vrot.slane %v5609_v38, 4  ;;  %v5619_v27 = vor.u32 %v5618_v19, %v5614_v18  ;;  %v3558_v31 = vshrl.u32 %v7465_v57, 16  ;;  %v3564_v36 = vshll.u32 %v7466_v13, 16  ;;  %v7081_v32 = vld [vmem:[%s12307_s0 + $0x94] sm:$0xf] }
 0x19a   :  { %5270 = vrot.lane.b32.xlu0 %v8138_v15, %s8170_s29  ;;  %v2565_v9 = vsel %vm8219_vm2, %v2560_v29, %v2564_v43  ;;  %v3551_v40 = vor.u32 %v3550_v61, %v3547_v51  ;;  %v3556_v21 = vrot.slane %v3554_v5, 5  ;;  %v7554_v0 = vrot.slane %v7528_v35, 9  ;;  %v5086_v28 = vpop.permute.xlu0 %5085  ;;  %v7082_v54 = vld [vmem:[%s12307_s0 + $0x98] sm:$0x1]  ;;  %v7656_v57 = vld [vmem:[%s12307_s0 + $0x168] sm:$0xf] }
 0x19b   :  { %v7297_v16 = vcombine.low %v2555_v59, %v2565_v9  ;;  %v5615_v6 = vsel %vm8219_vm2, %v5610_v55, %v5614_v18  ;;  %v5620_v41 = vrot.slane %v5619_v27, 4  ;;  %v3560_v1 = vrot.slane %v3558_v31, 4  ;;  %5127 = vst.msk [vmem:[#allocation2 + $0x160] sm:$0xff] %vm2059_vm11, %v5086_v28  ;;  %v8155_v43 = vld [vmem:[%s12307_s0 + $0x150] sm:$0xff]   ;;  %v7657_v8 = vld [vmem:[%s12307_s0 + $0x16c] sm:$0xf] }
 0x19c   :  { %v3552_v58 = vrot.slane %v3551_v40, 4  ;;  %v3566_v11 = vrot.slane %v3564_v36, 5  ;;  %v3951_v12 = vrot.slane %v7529_v25, 5  ;;  %v3954_v34 = vrot.slane %v7530_v39, 5  ;;  %v2747_v63 = vpop.permute.xlu1 %2746  ;;  %3226 = vst.msk [vmem:[#allocation2 + $0x1a0] sm:$0xff] %vm143_vm6, %v8155_v43  ;;  %v8139_v27 = vld [vmem:[%s12307_s0 + $0x168] sm:$0xff]  }
 0x19d   :  { %v6187_v44 = vld [vmem:[#allocation2 + $0x148] sm:$0xff]  ;;  %2754 = vrot.lane.b32.xlu1 %v7297_v16, %s8171_s16  ;;  %v5625_v20 = vsel %vm8219_vm2, %v5620_v41, %v5624_v24  ;;  %v3561_v45 = vor.u32 %v3560_v1, %v3556_v21  ;;  %v7355_v47 = vrot.slane %v7315_v14, 9  ;;  %v2925_v49 = vrot.slane %v7316_v23, 5  ;;  %2789 = vst.msk [vmem:[#allocation2 + $0x60] sm:$0xff] %vm2782_vm13, %v2747_v63  ;;  %v7658_v10 = vld [vmem:[%s12307_s0 + $0x170] sm:$0x1] }
 0x19e   :  { %7989 = vmatprep.mubr.msk.bf16.mxu1 %vm143_vm6, %v6187_v44  ;;  %v7873_v52 = vcombine.low %v5615_v6, %v5625_v20  ;;  %v3557_v30 = vsel %vm8219_vm2, %v3552_v58, %v3556_v21  ;;  %v3952_v4 = vsel %vm8437_vm5, %v7554_v0, %v3951_v12  ;;  %v3953_v37 = vrot.slane %v3951_v12, 4  ;;  %v5263_v60 = vpop.permute.xlu0 %5262  ;;  %v7144_v25 = vld [vmem:[%s12307_s0 + $0x90] sm:$0xe]  ;;  %v7145_v39 = vld [vmem:[%s12307_s0 + $0x94] sm:$0xf] }
 0x19f   :  { %6578 = vmatmul.mubr.bf16.gmra.mrb[16].mxu1 %v6186_v22  ;;  %v3562_v62 = vrot.slane %v3561_v45, 4  ;;  %v2926_v2 = vsel %vm8437_vm5, %v7355_v47, %v2925_v49  ;;  %v2927_v13 = vrot.slane %v2925_v49, 4  ;;  %v2928_v7 = vrot.slane %v7317_v33, 5  ;;  %5304 = vst.msk [vmem:[#allocation2 + $0x160] sm:$0xff] %vm2237_vm12, %v5263_v60  ;;  %v7146_v55 = vld [vmem:[%s12307_s0 + $0x98] sm:$0x1] }
 0x1a0   :  { %5814 = vrot.lane.b32.xlu0 %v7873_v52, %s8171_s16  ;;  %v3955_v46 = vsel %vm8437_vm5, %v3953_v37, %v3954_v34  ;;  %v1523_v42 = vshrl.u32 %v7080_v50, 16  ;;  %v1526_v15 = vshll.u32 %v7080_v50, 16  ;;  %v1532_v17 = vshll.u32 %v7081_v32, 16  ;;  %v3727_v18 = vpop.permute.xlu1 %3726  ;;  %v7720_v16 = vld [vmem:[%s12307_s0 + $0x168] sm:$0xe]  ;;  %v6154_v60 = vld [vmem:[#allocation2 + $0x40] sm:$0xff] }
 0x1a1   :  { %v3567_v56 = vsel %vm8219_vm2, %v3562_v62, %v3566_v11  ;;  %v7570_v53 = vcombine.low %v3952_v4, %v3955_v46  ;;  %v2929_v35 = vsel %vm8437_vm5, %v2927_v13, %v2928_v7  ;;  %v1536_v48 = vshrl.u32 %v7081_v32, 16  ;;  %3767 = vst.msk [vmem:[#allocation2 + $0x170] sm:$0xff] %vm691_vm7, %v3727_v18  ;;  %v7721_v44 = vld [vmem:[%s12307_s0 + $0x16c] sm:$0xf]  ;;  %v7722_v63 = vld [vmem:[%s12307_s0 + $0x170] sm:$0x1] }
 0x1a2   :  { %v7490_v59 = vcombine.low %v3557_v30, %v3567_v56  ;;  %v7371_v38 = vcombine.low %v2926_v2, %v2929_v35  ;;  %v1525_v19 = vrot.slane %v1523_v42, 4  ;;  %v1528_v24 = vrot.slane %v1526_v15, 5  ;;  %v7894_v50 = vld [vmem:[%s12307_s0 + $0x12c] sm:$0xe]  ;;  %v7895_v32 = vld [vmem:[%s12307_s0 + $0x130] sm:$0xf] }
 0x1a3   :  { %v1534_v29 = vrot.slane %v1532_v17, 5  ;;  %v1538_v51 = vrot.slane %v1536_v48, 4  ;;  %v1542_v61 = vshll.u32 %v7082_v54, 16  ;;  %v4586_v5 = vshrl.u32 %v7656_v57, 16  ;;  %v7896_v7 = vld [vmem:[%s12307_s0 + $0x134] sm:$0x1] }
 0x1a4   :  { %3734 = vrot.lane.b32.xlu1 %v7490_v59, %s8165_s9  ;;  %4054 = vrot.lane.b32.xlu0 %v7570_v53, %s8166_s20  ;;  %3075 = vst.msk [vmem:[#allocation2 + $0x48] sm:$0xff] %vm143_vm6, %v7371_v38  ;;  %v1529_v31 = vor.u32 %v1528_v24, %v1525_v19  ;;  %v4589_v36 = vshll.u32 %v7656_v57, 16  ;;  %v4595_v9 = vshll.u32 %v7657_v8, 16  ;;  %v4599_v40 = vshrl.u32 %v7657_v8, 16  ;;  %v4224_v21 = vpop.permute.xlu1 %4223  ;;  %v7272_v18 = vld [vmem:[%s12307_s0 + $0x9c] sm:$0xf] }
 0x1a5   :  { %v1539_v0 = vor.u32 %v1538_v51, %v1534_v29  ;;  %v1544_v14 = vrot.slane %v1542_v61, 5  ;;  %v4588_v23 = vrot.slane %v4586_v5, 4  ;;  %v4605_v28 = vshll.u32 %v7658_v10, 16  ;;  %v5807_v22 = vpop.permute.xlu0 %5806  ;;  %v7273_v10 = vld [vmem:[%s12307_s0 + $0xa0] sm:$0xf] }
 0x1a6   :  { %v1530_v6 = vrot.slane %v1529_v31, 4  ;;  %v4591_v41 = vrot.slane %v4589_v36, 5  ;;  %v4597_v1 = vrot.slane %v4595_v9, 5  ;;  %v4601_v33 = vrot.slane %v4599_v40, 4  ;;  %5848 = vst.msk [vmem:[#allocation2 + $0x160] sm:$0xff] %vm2782_vm13, %v5807_v22 }
 0x1a7   :  { %v1540_v58 = vrot.slane %v1539_v0, 4  ;;  %v4607_v11 = vrot.slane %v4605_v28, 5  ;;  %v7170_v12 = vrot.slane %v7144_v25, 9  ;;  %v1930_v34 = vrot.slane %v7145_v39, 5  ;;  %v7274_v59 = vld [vmem:[%s12307_s0 + $0xa4] sm:$0x1] }
 0x1a8   :  { %4231 = vrot.lane.b32.xlu1 %v8139_v27, %s8167_s28  ;;  %v1535_v20 = vsel %vm8219_vm2, %v1530_v6, %v1534_v29  ;;  %v4592_v45 = vor.u32 %v4591_v41, %v4588_v23  ;;  %v4602_v47 = vor.u32 %v4601_v33, %v4597_v1  ;;  %v1933_v49 = vrot.slane %v7146_v55, 5  ;;  %v2026_v52 = vpop.permute.xlu1 %2025  ;;  %v7848_v29 = vld [vmem:[%s12307_s0 + $0x174] sm:$0xf]  ;;  %v7849_v51 = vld [vmem:[%s12307_s0 + $0x178] sm:$0xf]  ;;  %v8141_v23 = vld [vmem:[%s12307_s0 + $0x9c] sm:$0xff]  }
 0x1a9   :  { %v1545_v30 = vsel %vm8219_vm2, %v1540_v58, %v1544_v14  ;;  %v1931_v4 = vsel %vm8437_vm5, %v7170_v12, %v1930_v34  ;;  %v1932_v37 = vrot.slane %v1930_v34, 4  ;;  %v7746_v54 = vrot.slane %v7720_v16, 9  ;;  %v4047_v57 = vpop.permute.xlu0 %4046  ;;  %2067 = vst.msk [vmem:[#allocation2 + $0x70] sm:$0xff] %vm2059_vm11, %v2026_v52  ;;  %v7850_v31 = vld [vmem:[%s12307_s0 + $0x17c] sm:$0x1] }
 0x1aa   :  { %v7106_v43 = vcombine.low %v1535_v20, %v1545_v30  ;;  %v4593_v62 = vrot.slane %v4592_v45, 4  ;;  %v4603_v2 = vrot.slane %v4602_v47, 4  ;;  %v4992_v13 = vrot.slane %v7721_v44, 5  ;;  %4087 = vst.msk [vmem:[#allocation2 + $0x170] sm:$0xff] %vm1015_vm8, %v4047_v57  ;;  %v7467_v0 = vld [vmem:[%s12307_s0 + $0x168] sm:$0xf] }
 0x1ab   :  { %v6155_v8 = vld [vmem:[#allocation2 + $0x48] sm:$0xff]  ;;  %v1934_v46 = vsel %vm8437_vm5, %v1932_v37, %v1933_v49  ;;  %v4995_v42 = vrot.slane %v7722_v63, 5  ;;  %v7932_v15 = vrot.slane %v7894_v50, 9  ;;  %v5991_v17 = vrot.slane %v7895_v32, 5  ;;  %4264 = vst.msk [vmem:[#allocation2 + $0x170] sm:$0xff] %vm1193_vm9, %v4224_v21  ;;  %v8157_v52 = vld [vmem:[%s12307_s0 + $0x15c] sm:$0xff]  }
 0x1ac   :  { %7973 = vmatprep.mubr.msk.bf16.mxu0 %vm143_vm6, %v6155_v8  ;;  %1712 = vrot.lane.b32.xlu0 %v7106_v43, %s8168_s19  ;;  %v4598_v56 = vsel %vm8219_vm2, %v4593_v62, %v4597_v1  ;;  %v4608_v53 = vsel %vm8219_vm2, %v4603_v2, %v4607_v11  ;;  %v7186_v35 = vcombine.low %v1931_v4, %v1934_v46  ;;  %v4994_v48 = vrot.slane %v4992_v13, 4  ;;  %v2204_v38 = vpop.permute.xlu1 %2203  ;;  %v7468_v58 = vld [vmem:[%s12307_s0 + $0x16c] sm:$0xf]  ;;  %v8142_v11 = vld [vmem:[%s12307_s0 + $0x174] sm:$0xff]  }
 0x1ad   :  { %6450 = vmatmul.mubr.bf16.gmra.mrb[16].mxu0 %v6154_v60  ;;  %v7682_v19 = vcombine.low %v4598_v56, %v4608_v53  ;;  %v4993_v24 = vsel %vm8437_vm5, %v7746_v54, %v4992_v13  ;;  %v5992_v25 = vsel %vm8437_vm5, %v7932_v15, %v5991_v17  ;;  %v5993_v39 = vrot.slane %v5991_v17, 4  ;;  %2245 = vst.msk [vmem:[#allocation2 + $0x70] sm:$0xff] %vm2237_vm12, %v2204_v38  ;;  %v7469_v54 = vld [vmem:[%s12307_s0 + $0x170] sm:$0x1]  ;;  %v7319_v53 = vld [vmem:[%s12307_s0 + $0x58] sm:$0xf] }
 0x1ae   :  { %v4996_v61 = vsel %vm8437_vm5, %v4994_v48, %v4995_v42  ;;  %v5994_v5 = vrot.slane %v7896_v7, 5  ;;  %v2567_v55 = vshrl.u32 %v7272_v18, 16  ;;  %v2570_v27 = vshll.u32 %v7272_v18, 16  ;;  %3227 = vst.msk [vmem:[#allocation2 + $0x1b0] sm:$0xff] %vm143_vm6, %v8157_v52  ;;  %v7318_v42 = vld [vmem:[%s12307_s0 + $0x54] sm:$0xe] }
 0x1af   :  { %4775 = vrot.lane.b32.xlu1 %v7682_v19, %s8168_s19  ;;  %v7762_v36 = vcombine.low %v4993_v24, %v4996_v61  ;;  %v2576_v9 = vshll.u32 %v7273_v10, 16  ;;  %v2580_v40 = vshrl.u32 %v7273_v10, 16  ;;  %v2586_v21 = vshll.u32 %v7274_v59, 16  ;;  %v4768_v14 = vpop.permute.xlu0 %4767  ;;  %v7531_v24 = vld [vmem:[%s12307_s0 + $0x168] sm:$0xe] }
 0x1b0   :  { %2033 = vrot.lane.b32.xlu0 %v7186_v35, %s8169_s25  ;;  %v5995_v28 = vsel %vm8437_vm5, %v5993_v39, %v5994_v5  ;;  %v2569_v16 = vrot.slane %v2567_v55, 4  ;;  %v2572_v22 = vrot.slane %v2570_v27, 5  ;;  %v5627_v6 = vshrl.u32 %v7848_v29, 16  ;;  %4808 = vst.msk [vmem:[#allocation2 + $0x170] sm:$0xff] %vm1738_vm10, %v4768_v14  ;;  %v7320_v35 = vld [vmem:[%s12307_s0 + $0x5c] sm:$0x1] }
 0x1b1   :  { %v7948_v41 = vcombine.low %v5992_v25, %v5995_v28  ;;  %v2578_v1 = vrot.slane %v2576_v9, 5  ;;  %v2582_v33 = vrot.slane %v2580_v40, 4  ;;  %v2588_v44 = vrot.slane %v2586_v21, 5  ;;  %v7532_v25 = vld [vmem:[%s12307_s0 + $0x16c] sm:$0xf] }
 0x1b2   :  { %v2573_v12 = vor.u32 %v2572_v22, %v2569_v16  ;;  %v5629_v34 = vrot.slane %v5627_v6, 4  ;;  %v5630_v63 = vshll.u32 %v7848_v29, 16  ;;  %v5636_v20 = vshll.u32 %v7849_v51, 16  ;;  %v6188_v29 = vld [vmem:[#allocation2 + $0x150] sm:$0xff]  ;;  %v7083_v16 = vld [vmem:[%s12307_s0 + $0x9c] sm:$0xf] }
 0x1b3   :  { %5095 = vrot.lane.b32.xlu1 %v7762_v36, %s8169_s25  ;;  %6135 = vst.msk [vmem:[#allocation2 + $0x158] sm:$0xff] %vm143_vm6, %v7948_v41  ;;  %v2583_v45 = vor.u32 %v2582_v33, %v2578_v1  ;;  %v5640_v47 = vshrl.u32 %v7849_v51, 16  ;;  %v5646_v49 = vshll.u32 %v7850_v31, 16  ;;  %v3569_v50 = vshrl.u32 %v7467_v0, 16  ;;  %v5088_v32 = vpop.permute.xlu0 %5087  ;;  %v7533_v21 = vld [vmem:[%s12307_s0 + $0x170] sm:$0x1] }
 0x1b4   :  { %2211 = vrot.lane.b32.xlu0 %v8141_v23, %s8170_s29  ;;  %v2574_v30 = vrot.slane %v2573_v12, 4  ;;  %v5632_v4 = vrot.slane %v5630_v63, 5  ;;  %v5638_v37 = vrot.slane %v5636_v20, 5  ;;  %v3572_v57 = vshll.u32 %v7467_v0, 16  ;;  %5128 = vst.msk [vmem:[#allocation2 + $0x170] sm:$0xff] %vm2059_vm11, %v5088_v32  ;;  %v8158_v12 = vld [vmem:[%s12307_s0 + $0x168] sm:$0xff]  }
 0x1b5   :  { %v2584_v60 = vrot.slane %v2583_v45, 4  ;;  %v5642_v43 = vrot.slane %v5640_v47, 4  ;;  %v5648_v62 = vrot.slane %v5646_v49, 5  ;;  %v3571_v2 = vrot.slane %v3569_v50, 4  ;;  %v7084_v22 = vld [vmem:[%s12307_s0 + $0xa0] sm:$0xf] }
 0x1b6   :  { %v2579_v13 = vsel %vm8219_vm2, %v2574_v30, %v2578_v1  ;;  %v5633_v7 = vor.u32 %v5632_v4, %v5629_v34  ;;  %v3574_v8 = vrot.slane %v3572_v57, 5  ;;  %v3578_v46 = vshll.u32 %v7468_v58, 16  ;;  %v7660_v47 = vld [vmem:[%s12307_s0 + $0x178] sm:$0xf]  ;;  %v7661_v30 = vld [vmem:[%s12307_s0 + $0x17c] sm:$0x1] }
 0x1b7   :  { %5272 = vrot.lane.b32.xlu1 %v8142_v11, %s8170_s29  ;;  %v2589_v15 = vsel %vm8219_vm2, %v2584_v60, %v2588_v44  ;;  %v5643_v17 = vor.u32 %v5642_v43, %v5638_v37  ;;  %v3582_v18 = vshrl.u32 %v7468_v58, 16  ;;  %v3588_v56 = vshll.u32 %v7469_v54, 16  ;;  %v5265_v48 = vpop.permute.xlu0 %5264  ;;  %v7085_v58 = vld [vmem:[%s12307_s0 + $0xa4] sm:$0x1]  ;;  %v7659_v11 = vld [vmem:[%s12307_s0 + $0x174] sm:$0xf] }
 0x1b8   :  { %v7298_v10 = vcombine.low %v2579_v13, %v2589_v15  ;;  %v5634_v59 = vrot.slane %v5633_v7, 4  ;;  %v3575_v38 = vor.u32 %v3574_v8, %v3571_v2  ;;  %v3580_v19 = vrot.slane %v3578_v46, 5  ;;  %v2749_v39 = vpop.permute.xlu1 %2748  ;;  %5305 = vst.msk [vmem:[#allocation2 + $0x170] sm:$0xff] %vm2237_vm12, %v5265_v48  ;;  %v7147_v7 = vld [vmem:[%s12307_s0 + $0x9c] sm:$0xe] }
 0x1b9   :  { %v5644_v51 = vrot.slane %v5643_v17, 4  ;;  %v3584_v61 = vrot.slane %v3582_v18, 4  ;;  %v3590_v5 = vrot.slane %v3588_v56, 5  ;;  %v7356_v55 = vrot.slane %v7318_v42, 9  ;;  %2790 = vst.msk [vmem:[#allocation2 + $0x70] sm:$0xff] %vm2782_vm13, %v2749_v39  ;;  %v8143_v56 = vld [vmem:[%s12307_s0 + $0x174] sm:$0xff]  }
 0x1ba   :  { %v6189_v27 = vld [vmem:[#allocation2 + $0x158] sm:$0xff]  ;;  %2756 = vrot.lane.b32.xlu0 %v7298_v10, %s8171_s16  ;;  %v5639_v31 = vsel %vm8219_vm2, %v5634_v59, %v5638_v37  ;;  %v3576_v36 = vrot.slane %v3575_v38, 4  ;;  %v2932_v9 = vrot.slane %v7319_v53, 5  ;;  %v2935_v40 = vrot.slane %v7320_v35, 5  ;;  %3228 = vst.msk [vmem:[#allocation2 + $0x1c0] sm:$0xff] %vm143_vm6, %v8158_v12 }
 0x1bb   :  { %7990 = vmatprep.mubr.msk.bf16.mxu1 %vm143_vm6, %v6189_v27  ;;  %v5649_v0 = vsel %vm8219_vm2, %v5644_v51, %v5648_v62  ;;  %v3585_v14 = vor.u32 %v3584_v61, %v3580_v19  ;;  %v7555_v23 = vrot.slane %v7531_v24, 9  ;;  %v3958_v28 = vrot.slane %v7532_v25, 5  ;;  %v5809_v6 = vpop.permute.xlu0 %5808  ;;  %v7148_v18 = vld [vmem:[%s12307_s0 + $0xa0] sm:$0xf]  ;;  %v7149_v59 = vld [vmem:[%s12307_s0 + $0xa4] sm:$0x1] }
 0x1bc   :  { %6586 = vmatmul.mubr.bf16.gmra.mrb[20].mxu1 %v6188_v29  ;;  %v7874_v41 = vcombine.low %v5639_v31, %v5649_v0  ;;  %v3581_v1 = vsel %vm8219_vm2, %v3576_v36, %v3580_v19  ;;  %v2933_v33 = vsel %vm8437_vm5, %v7356_v55, %v2932_v9  ;;  %v2934_v44 = vrot.slane %v2932_v9, 4  ;;  %5849 = vst.msk [vmem:[#allocation2 + $0x170] sm:$0xff] %vm2782_vm13, %v5809_v6  ;;  %v7723_v39 = vld [vmem:[%s12307_s0 + $0x174] sm:$0xe]  ;;  %v7724_v55 = vld [vmem:[%s12307_s0 + $0x178] sm:$0xf] }
 0x1bd   :  { %v3586_v34 = vrot.slane %v3585_v14, 4  ;;  %v3959_v63 = vsel %vm8437_vm5, %v7555_v23, %v3958_v28  ;;  %v3960_v20 = vrot.slane %v3958_v28, 4  ;;  %v3961_v45 = vrot.slane %v7533_v21, 5  ;;  %v7725_v21 = vld [vmem:[%s12307_s0 + $0x17c] sm:$0x1]  ;;  %v6156_v6 = vld [vmem:[#allocation2 + $0x50] sm:$0xff] }
 0x1be   :  { %5816 = vrot.lane.b32.xlu1 %v7874_v41, %s8171_s16  ;;  %v2936_v49 = vsel %vm8437_vm5, %v2934_v44, %v2935_v40  ;;  %v1547_v50 = vshrl.u32 %v7083_v16, 16  ;;  %v1550_v32 = vshll.u32 %v7083_v16, 16  ;;  %v1556_v52 = vshll.u32 %v7084_v22, 16  ;;  %v7897_v16 = vld [vmem:[%s12307_s0 + $0x138] sm:$0xe] }
 0x1bf   :  { %v3591_v4 = vsel %vm8219_vm2, %v3586_v34, %v3590_v5  ;;  %v7372_v37 = vcombine.low %v2933_v33, %v2936_v49  ;;  %v3962_v54 = vsel %vm8437_vm5, %v3960_v20, %v3961_v45  ;;  %v1560_v57 = vshrl.u32 %v7084_v22, 16  ;;  %v4049_v60 = vpop.permute.xlu0 %4048  ;;  %v7898_v22 = vld [vmem:[%s12307_s0 + $0x13c] sm:$0xf] }
 0x1c0   :  { %v7491_v43 = vcombine.low %v3581_v1, %v3591_v4  ;;  %v7571_v62 = vcombine.low %v3959_v63, %v3962_v54  ;;  %v1549_v2 = vrot.slane %v1547_v50, 4  ;;  %v1552_v13 = vrot.slane %v1550_v32, 5  ;;  %v3729_v8 = vpop.permute.xlu1 %3728  ;;  %v7276_v4 = vld [vmem:[%s12307_s0 + $0xac] sm:$0xf] }
 0x1c1   :  { %3076 = vst.msk [vmem:[#allocation2 + $0x58] sm:$0xff] %vm143_vm6, %v7372_v37  ;;  %v1558_v46 = vrot.slane %v1556_v52, 5  ;;  %v1562_v42 = vrot.slane %v1560_v57, 4  ;;  %v1566_v15 = vshll.u32 %v7085_v58, 16  ;;  %v4610_v17 = vshrl.u32 %v7659_v11, 16 }
 0x1c2   :  { %3768 = vst.msk [vmem:[#allocation2 + $0x180] sm:$0xff] %vm691_vm7, %v3729_v8  ;;  %3736 = vrot.lane.b32.xlu0 %v7491_v43, %s8165_s9  ;;  %4056 = vrot.lane.b32.xlu1 %v7571_v62, %s8166_s20  ;;  %v1553_v53 = vor.u32 %v1552_v13, %v1549_v2  ;;  %v4613_v35 = vshll.u32 %v7659_v11, 16  ;;  %v4619_v48 = vshll.u32 %v7660_v47, 16  ;;  %v4623_v10 = vshrl.u32 %v7660_v47, 16  ;;  %v7899_v58 = vld [vmem:[%s12307_s0 + $0x140] sm:$0x1] }
 0x1c3   :  { %4088 = vst.msk [vmem:[#allocation2 + $0x180] sm:$0xff] %vm1015_vm8, %v4049_v60  ;;  %v1563_v38 = vor.u32 %v1562_v42, %v1558_v46  ;;  %v1568_v19 = vrot.slane %v1566_v15, 5  ;;  %v4612_v24 = vrot.slane %v4610_v17, 4  ;;  %v4629_v25 = vshll.u32 %v7661_v30, 16  ;;  %v7275_v47 = vld [vmem:[%s12307_s0 + $0xa8] sm:$0xf] }
 0x1c4   :  { %v1554_v29 = vrot.slane %v1553_v53, 4  ;;  %v4615_v51 = vrot.slane %v4613_v35, 5  ;;  %v4621_v61 = vrot.slane %v4619_v48, 5  ;;  %v4625_v5 = vrot.slane %v4623_v10, 4  ;;  %v4226_v27 = vpop.permute.xlu1 %4225  ;;  %v7277_v43 = vld [vmem:[%s12307_s0 + $0xb0] sm:$0x1] }
 0x1c5   :  { %v1564_v31 = vrot.slane %v1563_v38, 4  ;;  %v4631_v36 = vrot.slane %v4629_v25, 5  ;;  %v7171_v9 = vrot.slane %v7147_v7, 9  ;;  %v1937_v40 = vrot.slane %v7148_v18, 5  ;;  %4265 = vst.msk [vmem:[#allocation2 + $0x180] sm:$0xff] %vm1193_vm9, %v4226_v27  ;;  %v8145_v25 = vld [vmem:[%s12307_s0 + $0xa8] sm:$0xff]  }
 0x1c6   :  { %4233 = vrot.lane.b32.xlu0 %v8143_v56, %s8167_s28  ;;  %v1559_v0 = vsel %vm8219_vm2, %v1554_v29, %v1558_v46  ;;  %v4616_v14 = vor.u32 %v4615_v51, %v4612_v24  ;;  %v4626_v23 = vor.u32 %v4625_v5, %v4621_v61  ;;  %v1940_v28 = vrot.slane %v7149_v59, 5  ;;  %v7851_v62 = vld [vmem:[%s12307_s0 + $0x180] sm:$0xf]  ;;  %v7852_v46 = vld [vmem:[%s12307_s0 + $0x184] sm:$0xf] }
 0x1c7   :  { %v1569_v41 = vsel %vm8219_vm2, %v1564_v31, %v1568_v19  ;;  %v1938_v1 = vsel %vm8437_vm5, %v7171_v9, %v1937_v40  ;;  %v1939_v33 = vrot.slane %v1937_v40, 4  ;;  %v7747_v44 = vrot.slane %v7723_v39, 9  ;;  %v4770_v11 = vpop.permute.xlu0 %4769  ;;  %v7853_v53 = vld [vmem:[%s12307_s0 + $0x188] sm:$0x1]  ;;  %v7321_v19 = vld [vmem:[%s12307_s0 + $0x60] sm:$0xe] }
 0x1c8   :  { %v6157_v12 = vld [vmem:[#allocation2 + $0x58] sm:$0xff]  ;;  %v7107_v34 = vcombine.low %v1559_v0, %v1569_v41  ;;  %v4617_v63 = vrot.slane %v4616_v14, 4  ;;  %v4627_v20 = vrot.slane %v4626_v23, 4  ;;  %v4999_v45 = vrot.slane %v7724_v55, 5  ;;  %4809 = vst.msk [vmem:[#allocation2 + $0x180] sm:$0xff] %vm1738_vm10, %v4770_v11  ;;  %v2028_v49 = vpop.permute.xlu1 %2027  ;;  %v8146_v23 = vld [vmem:[%s12307_s0 + $0x180] sm:$0xff]  }
 0x1c9   :  { %7974 = vmatprep.mubr.msk.bf16.mxu0 %vm143_vm6, %v6157_v12  ;;  %v1941_v50 = vsel %vm8437_vm5, %v1939_v33, %v1940_v28  ;;  %v5002_v32 = vrot.slane %v7725_v21, 5  ;;  %v7933_v52 = vrot.slane %v7897_v16, 9  ;;  %v5998_v30 = vrot.slane %v7898_v22, 5  ;;  %2068 = vst.msk [vmem:[#allocation2 + $0x80] sm:$0xff] %vm2059_vm11, %v2028_v49  ;;  %v7470_v11 = vld [vmem:[%s12307_s0 + $0x174] sm:$0xf] }
 0x1ca   :  { %6458 = vmatmul.mubr.bf16.gmra.mrb[20].mxu0 %v6156_v6  ;;  %1714 = vrot.lane.b32.xlu1 %v7107_v34, %s8168_s19  ;;  %v4622_v37 = vsel %vm8219_vm2, %v4617_v63, %v4621_v61  ;;  %v4632_v54 = vsel %vm8219_vm2, %v4627_v20, %v4631_v36  ;;  %v7187_v57 = vcombine.low %v1938_v1, %v1941_v50  ;;  %v5001_v60 = vrot.slane %v4999_v45, 4  ;;  %v7322_v61 = vld [vmem:[%s12307_s0 + $0x64] sm:$0xf]  ;;  %v7323_v36 = vld [vmem:[%s12307_s0 + $0x68] sm:$0x1] }
 0x1cb   :  { %v7683_v2 = vcombine.low %v4622_v37, %v4632_v54  ;;  %v5000_v13 = vsel %vm8437_vm5, %v7747_v44, %v4999_v45  ;;  %v5999_v7 = vsel %vm8437_vm5, %v7933_v52, %v5998_v30  ;;  %v6000_v8 = vrot.slane %v5998_v30, 4  ;;  %v5090_v42 = vpop.permute.xlu0 %5089  ;;  %v7471_v45 = vld [vmem:[%s12307_s0 + $0x178] sm:$0xf]  ;;  %v6190_v30 = vld [vmem:[#allocation2 + $0x160] sm:$0xff]  ;;  %v7472_v54 = vld [vmem:[%s12307_s0 + $0x17c] sm:$0x1] }
 0x1cc   :  { %v5003_v15 = vsel %vm8437_vm5, %v5001_v60, %v5002_v32  ;;  %v6001_v17 = vrot.slane %v7899_v58, 5  ;;  %v2591_v18 = vshrl.u32 %v7275_v47, 16  ;;  %v2594_v56 = vshll.u32 %v7275_v47, 16  ;;  %5129 = vst.msk [vmem:[#allocation2 + $0x180] sm:$0xff] %vm2059_vm11, %v5090_v42  ;;  %v2206_v35 = vpop.permute.xlu1 %2205 }
 0x1cd   :  { %4777 = vrot.lane.b32.xlu0 %v7683_v2, %s8168_s19  ;;  %v7763_v48 = vcombine.low %v5000_v13, %v5003_v15  ;;  %v2600_v10 = vshll.u32 %v7276_v4, 16  ;;  %v2604_v59 = vshrl.u32 %v7276_v4, 16  ;;  %v2610_v38 = vshll.u32 %v7277_v43, 16  ;;  %2246 = vst.msk [vmem:[#allocation2 + $0x80] sm:$0xff] %vm2237_vm12, %v2206_v35 }
 0x1ce   :  { %2035 = vrot.lane.b32.xlu1 %v7187_v57, %s8169_s25  ;;  %v6002_v24 = vsel %vm8437_vm5, %v6000_v8, %v6001_v17  ;;  %v2593_v39 = vrot.slane %v2591_v18, 4  ;;  %v2596_v29 = vrot.slane %v2594_v56, 5  ;;  %v5651_v51 = vshrl.u32 %v7851_v62, 16  ;;  %v7535_v8 = vld [vmem:[%s12307_s0 + $0x178] sm:$0xf] }
 0x1cf   :  { %v7949_v5 = vcombine.low %v5999_v7, %v6002_v24  ;;  %v2602_v55 = vrot.slane %v2600_v10, 5  ;;  %v2606_v27 = vrot.slane %v2604_v59, 4  ;;  %v2612_v31 = vrot.slane %v2610_v38, 5  ;;  %v5267_v9 = vpop.permute.xlu0 %5266  ;;  %v7534_v7 = vld [vmem:[%s12307_s0 + $0x174] sm:$0xe] }
 0x1d0   :  { %v2597_v40 = vor.u32 %v2596_v29, %v2593_v39  ;;  %v5653_v21 = vrot.slane %v5651_v51, 4  ;;  %v5654_v0 = vshll.u32 %v7851_v62, 16  ;;  %v5660_v14 = vshll.u32 %v7852_v46, 16  ;;  %5306 = vst.msk [vmem:[#allocation2 + $0x180] sm:$0xff] %vm2237_vm12, %v5267_v9  ;;  %v7536_v18 = vld [vmem:[%s12307_s0 + $0x17c] sm:$0x1] }
 0x1d1   :  { %5097 = vrot.lane.b32.xlu0 %v7763_v48, %s8169_s25  ;;  %6136 = vst.msk [vmem:[#allocation2 + $0x168] sm:$0xff] %vm143_vm6, %v7949_v5  ;;  %v2607_v28 = vor.u32 %v2606_v27, %v2602_v55  ;;  %v5664_v16 = vshrl.u32 %v7852_v46, 16  ;;  %v5670_v22 = vshll.u32 %v7853_v53, 16  ;;  %v7357_v6 = vrot.slane %v7321_v19, 9  ;;  %v2751_v41 = vpop.permute.xlu1 %2750  ;;  %v8160_v56 = vld [vmem:[%s12307_s0 + $0x174] sm:$0xff]  }
 0x1d2   :  { %2213 = vrot.lane.b32.xlu1 %v8145_v25, %s8170_s29  ;;  %v2598_v1 = vrot.slane %v2597_v40, 4  ;;  %v5656_v33 = vrot.slane %v5654_v0, 5  ;;  %v5662_v44 = vrot.slane %v5660_v14, 5  ;;  %v2939_v58 = vrot.slane %v7322_v61, 5  ;;  %2791 = vst.msk [vmem:[#allocation2 + $0x80] sm:$0xff] %vm2782_vm13, %v2751_v41 }
 0x1d3   :  { %v2608_v12 = vrot.slane %v2607_v28, 4  ;;  %v5666_v34 = vrot.slane %v5664_v16, 4  ;;  %v5672_v63 = vrot.slane %v5670_v22, 5  ;;  %v2942_v20 = vrot.slane %v7323_v36, 5  ;;  %v5811_v47 = vpop.permute.xlu0 %5810  ;;  %v7086_v38 = vld [vmem:[%s12307_s0 + $0xa8] sm:$0xf] }
 0x1d4   :  { %v2603_v49 = vsel %vm8219_vm2, %v2598_v1, %v2602_v55  ;;  %v5657_v50 = vor.u32 %v5656_v33, %v5653_v21  ;;  %v2940_v32 = vsel %vm8437_vm5, %v7357_v6, %v2939_v58  ;;  %v2941_v52 = vrot.slane %v2939_v58, 4  ;;  %5850 = vst.msk [vmem:[#allocation2 + $0x180] sm:$0xff] %vm2782_vm13, %v5811_v47  ;;  %v7087_v29 = vld [vmem:[%s12307_s0 + $0xac] sm:$0xf]  ;;  %v7088_v51 = vld [vmem:[%s12307_s0 + $0xb0] sm:$0x1] }
 0x1d5   :  { %5274 = vrot.lane.b32.xlu0 %v8146_v23, %s8170_s29  ;;  %v2613_v4 = vsel %vm8219_vm2, %v2608_v12, %v2612_v31  ;;  %v5667_v37 = vor.u32 %v5666_v34, %v5662_v44  ;;  %v3593_v57 = vshrl.u32 %v7470_v11, 16  ;;  %v3596_v60 = vshll.u32 %v7470_v11, 16  ;;  %3229 = vst.msk [vmem:[#allocation2 + $0x1d0] sm:$0xff] %vm143_vm6, %v8160_v56  ;;  %v7324_v31 = vld [vmem:[%s12307_s0 + $0x6c] sm:$0xe] }
 0x1d6   :  { %v7299_v43 = vcombine.low %v2603_v49, %v2613_v4  ;;  %v5658_v62 = vrot.slane %v5657_v50, 4  ;;  %v2943_v2 = vsel %vm8437_vm5, %v2941_v52, %v2942_v20  ;;  %v3602_v13 = vshll.u32 %v7471_v45, 16  ;;  %v7325_v36 = vld [vmem:[%s12307_s0 + $0x70] sm:$0xf]  ;;  %v7326_v23 = vld [vmem:[%s12307_s0 + $0x74] sm:$0x1] }
 0x1d7   :  { %v5668_v46 = vrot.slane %v5667_v37, 4  ;;  %v7373_v42 = vcombine.low %v2940_v32, %v2943_v2  ;;  %v3595_v15 = vrot.slane %v3593_v57, 4  ;;  %v3598_v17 = vrot.slane %v3596_v60, 5  ;;  %v7662_v41 = vld [vmem:[%s12307_s0 + $0x180] sm:$0xf] }
 0x1d8   :  { %v6191_v53 = vld [vmem:[#allocation2 + $0x168] sm:$0xff]  ;;  %2758 = vrot.lane.b32.xlu1 %v7299_v43, %s8171_s16  ;;  %v5663_v35 = vsel %vm8219_vm2, %v5658_v62, %v5662_v44  ;;  %v3604_v48 = vrot.slane %v3602_v13, 5  ;;  %v3606_v10 = vshrl.u32 %v7471_v45, 16  ;;  %v3612_v59 = vshll.u32 %v7472_v54, 16  ;;  %v7663_v12 = vld [vmem:[%s12307_s0 + $0x184] sm:$0xf] }
 0x1d9   :  { %7991 = vmatprep.mubr.msk.bf16.mxu1 %vm143_vm6, %v6191_v53  ;;  %v5673_v19 = vsel %vm8219_vm2, %v5668_v46, %v5672_v63  ;;  %3077 = vst.msk [vmem:[#allocation2 + $0x68] sm:$0xff] %vm143_vm6, %v7373_v42  ;;  %v3599_v24 = vor.u32 %v3598_v17, %v3595_v15  ;;  %v7556_v25 = vrot.slane %v7534_v7, 9  ;;  %v3965_v39 = vrot.slane %v7535_v8, 5  ;;  %v4051_v9 = vpop.permute.xlu0 %4050  ;;  %v6158_v63 = vld [vmem:[#allocation2 + $0x60] sm:$0xff]  ;;  %v7664_v57 = vld [vmem:[%s12307_s0 + $0x188] sm:$0x1] }
 0x1da   :  { %6594 = vmatmul.mubr.bf16.gmra.mrb[24].mxu1 %v6190_v30  ;;  %v7875_v61 = vcombine.low %v5663_v35, %v5673_v19  ;;  %v3608_v5 = vrot.slane %v3606_v10, 4  ;;  %v3614_v55 = vrot.slane %v3612_v59, 5  ;;  %v3968_v27 = vrot.slane %v7536_v18, 5  ;;  %v7150_v46 = vld [vmem:[%s12307_s0 + $0xa8] sm:$0xe]  ;;  %v8147_v35 = vld [vmem:[%s12307_s0 + $0x180] sm:$0xff]  }
 0x1db   :  { %v3600_v40 = vrot.slane %v3599_v24, 4  ;;  %v3966_v21 = vsel %vm8437_vm5, %v7556_v25, %v3965_v39  ;;  %v3967_v0 = vrot.slane %v3965_v39, 4  ;;  %v1571_v14 = vshrl.u32 %v7086_v38, 16  ;;  %v7151_v42 = vld [vmem:[%s12307_s0 + $0xac] sm:$0xf] }
 0x1dc   :  { %5818 = vrot.lane.b32.xlu0 %v7875_v61, %s8171_s16  ;;  %v3609_v28 = vor.u32 %v3608_v5, %v3604_v48  ;;  %v1574_v16 = vshll.u32 %v7086_v38, 16  ;;  %v1580_v22 = vshll.u32 %v7087_v29, 16  ;;  %v1584_v6 = vshrl.u32 %v7087_v29, 16  ;;  %v3731_v1 = vpop.permute.xlu1 %3730  ;;  %v7152_v53 = vld [vmem:[%s12307_s0 + $0xb0] sm:$0x1] }
 0x1dd   :  { %v3605_v33 = vsel %vm8219_vm2, %v3600_v40, %v3604_v48  ;;  %v3969_v44 = vsel %vm8437_vm5, %v3967_v0, %v3968_v27  ;;  %v1573_v58 = vrot.slane %v1571_v14, 4  ;;  %v1590_v11 = vshll.u32 %v7088_v51, 16  ;;  %3769 = vst.msk [vmem:[#allocation2 + $0x190] sm:$0xff] %vm691_vm7, %v3731_v1  ;;  %v7900_v19 = vld [vmem:[%s12307_s0 + $0x144] sm:$0xe] }
 0x1de   :  { %v3610_v34 = vrot.slane %v3609_v28, 4  ;;  %v7572_v20 = vcombine.low %v3966_v21, %v3969_v44  ;;  %v1576_v45 = vrot.slane %v1574_v16, 5  ;;  %v1582_v47 = vrot.slane %v1580_v22, 5  ;;  %4089 = vst.msk [vmem:[#allocation2 + $0x190] sm:$0xff] %vm1015_vm8, %v4051_v9  ;;  %v7901_v51 = vld [vmem:[%s12307_s0 + $0x148] sm:$0xf] }
 0x1df   :  { %v1586_v49 = vrot.slane %v1584_v6, 4  ;;  %v1592_v50 = vrot.slane %v1590_v11, 5  ;;  %v7358_v32 = vrot.slane %v7324_v31, 9  ;;  %v2946_v52 = vrot.slane %v7325_v36, 5  ;;  %v7902_v61 = vld [vmem:[%s12307_s0 + $0x14c] sm:$0x1] }
 0x1e0   :  { %v6159_v30 = vld [vmem:[#allocation2 + $0x68] sm:$0xff]  ;;  %v3615_v4 = vsel %vm8219_vm2, %v3610_v34, %v3614_v55  ;;  %4058 = vrot.lane.b32.xlu0 %v7572_v20, %s8166_s20  ;;  %v1577_v37 = vor.u32 %v1576_v45, %v1573_v58  ;;  %v2949_v54 = vrot.slane %v7326_v23, 5  ;;  %v4634_v60 = vshrl.u32 %v7662_v41, 16  ;;  %v4228_v43 = vpop.permute.xlu1 %4227  ;;  %v1709_v62 = vpop.permute.xlu0 %1708  ;;  %v7726_v36 = vld [vmem:[%s12307_s0 + $0x180] sm:$0xe] }
 0x1e1   :  { %7975 = vmatprep.mubr.msk.bf16.mxu0 %vm143_vm6, %v6159_v30  ;;  %v7492_v2 = vcombine.low %v3605_v33, %v3615_v4  ;;  %v1587_v13 = vor.u32 %v1586_v49, %v1582_v47  ;;  %v2947_v7 = vsel %vm8437_vm5, %v7358_v32, %v2946_v52  ;;  %v2948_v8 = vrot.slane %v2946_v52, 4  ;;  %4266 = vst.msk [vmem:[#allocation2 + $0x190] sm:$0xff] %vm1193_vm9, %v4228_v43  ;;  %v7727_v23 = vld [vmem:[%s12307_s0 + $0x184] sm:$0xf]  ;;  %v7728_v28 = vld [vmem:[%s12307_s0 + $0x188] sm:$0x1] }
 0x1e2   :  { %1748 = vst.msk [vmem:[#allocation2 + $0x90] sm:$0xff] %vm1738_vm10, %v1709_v62  ;;  %6466 = vmatmul.mubr.bf16.gmra.mrb[24].mxu0 %v6158_v63  ;;  %v1578_v15 = vrot.slane %v1577_v37, 4  ;;  %v4636_v17 = vrot.slane %v4634_v60, 4  ;;  %v4637_v18 = vshll.u32 %v7662_v41, 16  ;;  %v4643_v56 = vshll.u32 %v7663_v12, 16 }
 0x1e3   :  { %3738 = vrot.lane.b32.xlu1 %v7492_v2, %s8165_s9  ;;  %v1588_v48 = vrot.slane %v1587_v13, 4  ;;  %v2950_v10 = vsel %vm8437_vm5, %v2948_v8, %v2949_v54  ;;  %v4647_v59 = vshrl.u32 %v7663_v12, 16  ;;  %v4653_v38 = vshll.u32 %v7664_v57, 16  ;;  %v7278_v1 = vld [vmem:[%s12307_s0 + $0xb4] sm:$0xf] }
 0x1e4   :  { %v1583_v24 = vsel %vm8219_vm2, %v1578_v15, %v1582_v47  ;;  %v7374_v25 = vcombine.low %v2947_v7, %v2950_v10  ;;  %v4639_v39 = vrot.slane %v4637_v18, 5  ;;  %v4645_v29 = vrot.slane %v4643_v56, 5  ;;  %v7279_v34 = vld [vmem:[%s12307_s0 + $0xb8] sm:$0xf]  ;;  %v7280_v63 = vld [vmem:[%s12307_s0 + $0xbc] sm:$0x1] }
 0x1e5   :  { %v1593_v5 = vsel %vm8219_vm2, %v1588_v48, %v1592_v50  ;;  %v4649_v55 = vrot.slane %v4647_v59, 4  ;;  %v4655_v27 = vrot.slane %v4653_v38, 5  ;;  %v7172_v31 = vrot.slane %v7150_v46, 9  ;;  %v2030_v9 = vpop.permute.xlu0 %2029  ;;  %v7854_v43 = vld [vmem:[%s12307_s0 + $0x18c] sm:$0xf]  ;;  %v6160_v7 = vld [vmem:[#allocation2 + $0x70] sm:$0xff] }
 0x1e6   :  { %v7108_v40 = vcombine.low %v1583_v24, %v1593_v5  ;;  %3078 = vst.msk [vmem:[#allocation2 + $0x78] sm:$0xff] %vm143_vm6, %v7374_v25  ;;  %v4640_v21 = vor.u32 %v4639_v39, %v4636_v17  ;;  %v1944_v0 = vrot.slane %v7151_v42, 5  ;;  %v1947_v14 = vrot.slane %v7152_v53, 5  ;;  %v7855_v62 = vld [vmem:[%s12307_s0 + $0x190] sm:$0xf]  ;;  %v8149_v18 = vld [vmem:[%s12307_s0 + $0xb4] sm:$0xff]  }
 0x1e7   :  { %2069 = vst.msk [vmem:[#allocation2 + $0x90] sm:$0xff] %vm2059_vm11, %v2030_v9  ;;  %4235 = vrot.lane.b32.xlu1 %v8147_v35, %s8167_s28  ;;  %v4650_v16 = vor.u32 %v4649_v55, %v4645_v29  ;;  %v7934_v22 = vrot.slane %v7900_v19, 9  ;;  %v6005_v6 = vrot.slane %v7901_v51, 5  ;;  %v6008_v41 = vrot.slane %v7902_v61, 5  ;;  %v4772_v33 = vpop.permute.xlu1 %4771  ;;  %v7856_v15 = vld [vmem:[%s12307_s0 + $0x194] sm:$0x1] }
 0x1e8   :  { %1716 = vrot.lane.b32.xlu0 %v7108_v40, %s8168_s19  ;;  %v4641_v44 = vrot.slane %v4640_v21, 4  ;;  %v1945_v58 = vsel %vm8437_vm5, %v7172_v31, %v1944_v0  ;;  %v1946_v11 = vrot.slane %v1944_v0, 4  ;;  %v7748_v12 = vrot.slane %v7726_v36, 9  ;;  %4810 = vst.msk [vmem:[#allocation2 + $0x190] sm:$0xff] %vm1738_vm10, %v4772_v33  ;;  %v7473_v24 = vld [vmem:[%s12307_s0 + $0x180] sm:$0xf] }
 0x1e9   :  { %v4651_v20 = vrot.slane %v4650_v16, 4  ;;  %v6006_v45 = vsel %vm8437_vm5, %v7934_v22, %v6005_v6  ;;  %v6007_v47 = vrot.slane %v6005_v6, 4  ;;  %v5006_v49 = vrot.slane %v7727_v23, 5  ;;  %v2208_v50 = vpop.permute.xlu0 %2207  ;;  %v7474_v5 = vld [vmem:[%s12307_s0 + $0x184] sm:$0xf]  ;;  %v8150_v21 = vld [vmem:[%s12307_s0 + $0x18c] sm:$0xff]  }
 0x1ea   :  { %v4646_v32 = vsel %vm8219_vm2, %v4641_v44, %v4645_v29  ;;  %v1948_v52 = vsel %vm8437_vm5, %v1946_v11, %v1947_v14  ;;  %v5009_v30 = vrot.slane %v7728_v28, 5  ;;  %v2615_v4 = vshrl.u32 %v7278_v1, 16  ;;  %2247 = vst.msk [vmem:[#allocation2 + $0x90] sm:$0xff] %vm2237_vm12, %v2208_v50  ;;  %v6192_v16 = vld [vmem:[#allocation2 + $0x170] sm:$0xff]  ;;  %v7475_v6 = vld [vmem:[%s12307_s0 + $0x188] sm:$0x1] }
 0x1eb   :  { %v4656_v37 = vsel %vm8219_vm2, %v4651_v20, %v4655_v27  ;;  %v7188_v54 = vcombine.low %v1945_v58, %v1948_v52  ;;  %v6009_v57 = vsel %vm8437_vm5, %v6007_v47, %v6008_v41  ;;  %v5007_v60 = vsel %vm8437_vm5, %v7748_v12, %v5006_v49  ;;  %v5092_v2 = vpop.permute.xlu1 %5091  ;;  %v8162_v27 = vld [vmem:[%s12307_s0 + $0x180] sm:$0xff]  }
 0x1ec   :  { %v7684_v13 = vcombine.low %v4646_v32, %v4656_v37  ;;  %v7950_v8 = vcombine.low %v6006_v45, %v6009_v57  ;;  %v5008_v46 = vrot.slane %v5006_v49, 4  ;;  %v2617_v42 = vrot.slane %v2615_v4, 4  ;;  %5130 = vst.msk [vmem:[#allocation2 + $0x190] sm:$0xff] %vm2059_vm11, %v5092_v2  ;;  %v7538_v49 = vld [vmem:[%s12307_s0 + $0x184] sm:$0xf] }
 0x1ed   :  { %v6161_v17 = vld [vmem:[#allocation2 + $0x78] sm:$0xff]  ;;  %2037 = vrot.lane.b32.xlu0 %v7188_v54, %s8169_s25  ;;  %v2618_v56 = vshll.u32 %v7278_v1, 16  ;;  %v2624_v53 = vshll.u32 %v7279_v34, 16  ;;  %v2628_v35 = vshrl.u32 %v7279_v34, 16  ;;  %v2634_v48 = vshll.u32 %v7280_v63, 16  ;;  %3230 = vst.msk [vmem:[#allocation2 + $0x1e0] sm:$0xff] %vm143_vm6, %v8162_v27 }
 0x1ee   :  { %7976 = vmatprep.mubr.msk.bf16.mxu0 %vm143_vm6, %v6161_v17  ;;  %4779 = vrot.lane.b32.xlu1 %v7684_v13, %s8168_s19  ;;  %6137 = vst.msk [vmem:[#allocation2 + $0x178] sm:$0xff] %vm143_vm6, %v7950_v8  ;;  %v5010_v10 = vsel %vm8437_vm5, %v5008_v46, %v5009_v30  ;;  %v5675_v59 = vshrl.u32 %v7854_v43, 16  ;;  %v5678_v38 = vshll.u32 %v7854_v43, 16  ;;  %v5684_v19 = vshll.u32 %v7855_v62, 16  ;;  %v2753_v25 = vpop.permute.xlu0 %2752  ;;  %v7537_v34 = vld [vmem:[%s12307_s0 + $0x180] sm:$0xe] }
 0x1ef   :  { %6474 = vmatmul.mubr.bf16.gmra.mrb[28].mxu0 %v6160_v7  ;;  %v7764_v39 = vcombine.low %v5007_v60, %v5010_v10  ;;  %v2620_v29 = vrot.slane %v2618_v56, 5  ;;  %v2626_v51 = vrot.slane %v2624_v53, 5  ;;  %v2630_v61 = vrot.slane %v2628_v35, 4  ;;  %v5269_v55 = vpop.permute.xlu1 %5268  ;;  %2792 = vst.msk [vmem:[#allocation2 + $0x90] sm:$0xff] %vm2782_vm13, %v2753_v25  ;;  %v7539_v54 = vld [vmem:[%s12307_s0 + $0x188] sm:$0x1] }
 0x1f0   :  { %v2636_v31 = vrot.slane %v2634_v48, 5  ;;  %v5677_v36 = vrot.slane %v5675_v59, 4  ;;  %v5680_v9 = vrot.slane %v5678_v38, 5  ;;  %v5686_v40 = vrot.slane %v5684_v19, 5  ;;  %5307 = vst.msk [vmem:[#allocation2 + $0x190] sm:$0xff] %vm2237_vm12, %v5269_v55 }
 0x1f1   :  { %2215 = vrot.lane.b32.xlu0 %v8149_v18, %s8170_s29  ;;  %v2621_v0 = vor.u32 %v2620_v29, %v2617_v42  ;;  %v2631_v14 = vor.u32 %v2630_v61, %v2626_v51  ;;  %v5688_v23 = vshrl.u32 %v7855_v62, 16  ;;  %v5694_v28 = vshll.u32 %v7856_v15, 16  ;;  %v7089_v57 = vld [vmem:[%s12307_s0 + $0xb4] sm:$0xf]  ;;  %v7090_v13 = vld [vmem:[%s12307_s0 + $0xb8] sm:$0xf] }
 0x1f2   :  { %5099 = vrot.lane.b32.xlu1 %v7764_v39, %s8169_s25  ;;  %v5681_v22 = vor.u32 %v5680_v9, %v5677_v36  ;;  %v3617_v41 = vshrl.u32 %v7473_v24, 16  ;;  %v3620_v1 = vshll.u32 %v7473_v24, 16  ;;  %v3626_v33 = vshll.u32 %v7474_v5, 16  ;;  %v7091_v15 = vld [vmem:[%s12307_s0 + $0xbc] sm:$0x1] }
 0x1f3   :  { %v2622_v44 = vrot.slane %v2621_v0, 4  ;;  %v2632_v58 = vrot.slane %v2631_v14, 4  ;;  %v5690_v11 = vrot.slane %v5688_v23, 4  ;;  %v5696_v12 = vrot.slane %v5694_v28, 5  ;;  %v7665_v24 = vld [vmem:[%s12307_s0 + $0x18c] sm:$0xf] }
 0x1f4   :  { %v5682_v63 = vrot.slane %v5681_v22, 4  ;;  %v3619_v20 = vrot.slane %v3617_v41, 4  ;;  %v3622_v45 = vrot.slane %v3620_v1, 5  ;;  %v3628_v47 = vrot.slane %v3626_v33, 5  ;;  %v5813_v50 = vpop.permute.xlu1 %5812  ;;  %v7666_v61 = vld [vmem:[%s12307_s0 + $0x190] sm:$0xf] }
 0x1f5   :  { %v6193_v32 = vld [vmem:[#allocation2 + $0x178] sm:$0xff]  ;;  %v2627_v52 = vsel %vm8219_vm2, %v2622_v44, %v2626_v51  ;;  %v2637_v30 = vsel %vm8219_vm2, %v2632_v58, %v2636_v31  ;;  %v5691_v4 = vor.u32 %v5690_v11, %v5686_v40  ;;  %v3630_v37 = vshrl.u32 %v7474_v5, 16  ;;  %5851 = vst.msk [vmem:[#allocation2 + $0x190] sm:$0xff] %vm2782_vm13, %v5813_v50  ;;  %v7667_v36 = vld [vmem:[%s12307_s0 + $0x194] sm:$0x1] }
 0x1f6   :  { %7992 = vmatprep.mubr.msk.bf16.mxu1 %vm143_vm6, %v6193_v32  ;;  %5276 = vrot.lane.b32.xlu1 %v8150_v21, %s8170_s29  ;;  %v7300_v60 = vcombine.low %v2627_v52, %v2637_v30  ;;  %v5687_v43 = vsel %vm8219_vm2, %v5682_v63, %v5686_v40  ;;  %v3623_v62 = vor.u32 %v3622_v45, %v3619_v20  ;;  %v3636_v2 = vshll.u32 %v7475_v6, 16  ;;  %v7903_v14 = vld [vmem:[%s12307_s0 + $0x150] sm:$0xe]  ;;  %v7904_v41 = vld [vmem:[%s12307_s0 + $0x154] sm:$0xf] }
 0x1f7   :  { %6602 = vmatmul.mubr.bf16.gmra.mrb[28].mxu1 %v6192_v16  ;;  %v5692_v7 = vrot.slane %v5691_v4, 4  ;;  %v3632_v8 = vrot.slane %v3630_v37, 4  ;;  %v7557_v46 = vrot.slane %v7537_v34, 9  ;;  %v3972_v42 = vrot.slane %v7538_v49, 5  ;;  %v7905_v11 = vld [vmem:[%s12307_s0 + $0x158] sm:$0x1] }
 0x1f8   :  { %2760 = vrot.lane.b32.xlu0 %v7300_v60, %s8171_s16  ;;  %v3624_v17 = vrot.slane %v3623_v62, 4  ;;  %v3638_v18 = vrot.slane %v3636_v2, 5  ;;  %v3975_v56 = vrot.slane %v7539_v54, 5  ;;  %v1595_v53 = vshrl.u32 %v7089_v57, 16  ;;  %v3733_v35 = vpop.permute.xlu0 %3732  ;;  %v4053_v48 = vpop.permute.xlu1 %4052  ;;  %v7154_v49 = vld [vmem:[%s12307_s0 + $0xb8] sm:$0xf] }
 0x1f9   :  { %v5697_v10 = vsel %vm8219_vm2, %v5692_v7, %v5696_v12  ;;  %v3633_v59 = vor.u32 %v3632_v8, %v3628_v47  ;;  %v3973_v38 = vsel %vm8437_vm5, %v7557_v46, %v3972_v42  ;;  %v3974_v19 = vrot.slane %v3972_v42, 4  ;;  %3770 = vst.msk [vmem:[#allocation2 + $0x1a0] sm:$0xff] %vm691_vm7, %v3733_v35  ;;  %v8151_v12 = vld [vmem:[%s12307_s0 + $0x18c] sm:$0xff]   ;;  %v7155_v4 = vld [vmem:[%s12307_s0 + $0xbc] sm:$0x1] }
 0x1fa   :  { %v7876_v25 = vcombine.low %v5687_v43, %v5697_v10  ;;  %v3629_v39 = vsel %vm8219_vm2, %v3624_v17, %v3628_v47  ;;  %v1597_v29 = vrot.slane %v1595_v53, 4  ;;  %v1598_v51 = vshll.u32 %v7089_v57, 16  ;;  %4090 = vst.msk [vmem:[#allocation2 + $0x1a0] sm:$0xff] %vm1015_vm8, %v4053_v48  ;;  %v7153_v47 = vld [vmem:[%s12307_s0 + $0xb4] sm:$0xe] }
 0x1fb   :  { %v3634_v5 = vrot.slane %v3633_v59, 4  ;;  %v3976_v55 = vsel %vm8437_vm5, %v3974_v19, %v3975_v56  ;;  %v1604_v27 = vshll.u32 %v7090_v13, 16  ;;  %v1608_v31 = vshrl.u32 %v7090_v13, 16  ;;  %v7729_v43 = vld [vmem:[%s12307_s0 + $0x18c] sm:$0xe] }
 0x1fc   :  { %5820 = vrot.lane.b32.xlu1 %v7876_v25, %s8171_s16  ;;  %v7573_v9 = vcombine.low %v3973_v38, %v3976_v55  ;;  %v1600_v40 = vrot.slane %v1598_v51, 5  ;;  %v1614_v21 = vshll.u32 %v7091_v15, 16  ;;  %v4658_v0 = vshrl.u32 %v7665_v24, 16  ;;  %v4230_v23 = vpop.permute.xlu0 %4229  ;;  %v7730_v46 = vld [vmem:[%s12307_s0 + $0x190] sm:$0xf] }
 0x1fd   :  { %v3639_v28 = vsel %vm8219_vm2, %v3634_v5, %v3638_v18  ;;  %v1606_v16 = vrot.slane %v1604_v27, 5  ;;  %v1610_v22 = vrot.slane %v1608_v31, 4  ;;  %v4661_v6 = vshll.u32 %v7665_v24, 16  ;;  %4267 = vst.msk [vmem:[#allocation2 + $0x1a0] sm:$0xff] %vm1193_vm9, %v4230_v23  ;;  %v7731_v42 = vld [vmem:[%s12307_s0 + $0x194] sm:$0x1] }
 0x1fe   :  { %v7493_v1 = vcombine.low %v3629_v39, %v3639_v28  ;;  %v1601_v33 = vor.u32 %v1600_v40, %v1597_v29  ;;  %v1616_v44 = vrot.slane %v1614_v21, 5  ;;  %v4660_v58 = vrot.slane %v4658_v0, 4  ;;  %v7327_v53 = vld [vmem:[%s12307_s0 + $0x78] sm:$0xe]  ;;  %v7328_v35 = vld [vmem:[%s12307_s0 + $0x7c] sm:$0xf] }
 0x1ff   :  { %v1611_v34 = vor.u32 %v1610_v22, %v1606_v16  ;;  %v4663_v63 = vrot.slane %v4661_v6, 5  ;;  %v4667_v20 = vshll.u32 %v7666_v61, 16  ;;  %v4671_v45 = vshrl.u32 %v7666_v61, 16  ;;  %v7329_v31 = vld [vmem:[%s12307_s0 + $0x80] sm:$0x1] }
 0x200   :  { %3740 = vrot.lane.b32.xlu0 %v7493_v1, %s8165_s9  ;;  %4060 = vrot.lane.b32.xlu1 %v7573_v9, %s8166_s20  ;;  %v1602_v50 = vrot.slane %v1601_v33, 4  ;;  %v4677_v32 = vshll.u32 %v7667_v36, 16  ;;  %v7935_v52 = vrot.slane %v7903_v14, 9  ;;  %v6012_v30 = vrot.slane %v7904_v41, 5  ;;  %v7281_v36 = vld [vmem:[%s12307_s0 + $0xc0] sm:$0xf] }
 0x201   :  { %v1612_v37 = vrot.slane %v1611_v34, 4  ;;  %v4664_v54 = vor.u32 %v4663_v63, %v4660_v58  ;;  %v4669_v57 = vrot.slane %v4667_v20, 5  ;;  %v4673_v60 = vrot.slane %v4671_v45, 4  ;;  %v1711_v62 = vpop.permute.xlu1 %1710  ;;  %v7282_v14 = vld [vmem:[%s12307_s0 + $0xc4] sm:$0xf] }
 0x202   :  { %v1607_v2 = vsel %vm8219_vm2, %v1602_v50, %v1606_v16  ;;  %v4679_v13 = vrot.slane %v4677_v32, 5  ;;  %v6013_v7 = vsel %vm8437_vm5, %v7935_v52, %v6012_v30  ;;  %v6014_v8 = vrot.slane %v6012_v30, 4  ;;  %1749 = vst.msk [vmem:[#allocation2 + $0xa0] sm:$0xff] %vm1738_vm10, %v1711_v62  ;;  %v7283_v6 = vld [vmem:[%s12307_s0 + $0xc8] sm:$0x1]  ;;  %v8153_v20 = vld [vmem:[%s12307_s0 + $0xc0] sm:$0xff]  }
 0x203   :  { %v1617_v15 = vsel %vm8219_vm2, %v1612_v37, %v1616_v44  ;;  %v4665_v17 = vrot.slane %v4664_v54, 4  ;;  %v4674_v18 = vor.u32 %v4673_v60, %v4669_v57  ;;  %v6015_v56 = vrot.slane %v7905_v11, 5  ;;  %v7857_v11 = vld [vmem:[%s12307_s0 + $0x198] sm:$0xf]  ;;  %v7859_v50 = vld [vmem:[%s12307_s0 + $0x1a0] sm:$0x1] }
 0x204   :  { %4237 = vrot.lane.b32.xlu0 %v8151_v12, %s8167_s28  ;;  %v7109_v48 = vcombine.low %v1607_v2, %v1617_v15  ;;  %v7173_v10 = vrot.slane %v7153_v47, 9  ;;  %v1951_v59 = vrot.slane %v7154_v49, 5  ;;  %v1954_v38 = vrot.slane %v7155_v4, 5  ;;  %v4774_v19 = vpop.permute.xlu0 %4773  ;;  %v7858_v12 = vld [vmem:[%s12307_s0 + $0x19c] sm:$0xf]  ;;  %v8163_v2 = vld [vmem:[%s12307_s0 + $0x18c] sm:$0xff]  }
 0x205   :  { %v4670_v24 = vsel %vm8219_vm2, %v4665_v17, %v4669_v57  ;;  %v4675_v25 = vrot.slane %v4674_v18, 4  ;;  %v6016_v39 = vsel %vm8437_vm5, %v6014_v8, %v6015_v56  ;;  %v7749_v29 = vrot.slane %v7729_v43, 9  ;;  %4811 = vst.msk [vmem:[#allocation2 + $0x1a0] sm:$0xff] %vm1738_vm10, %v4774_v19  ;;  %v2032_v51 = vpop.permute.xlu1 %2031  ;;  %v7476_v43 = vld [vmem:[%s12307_s0 + $0x18c] sm:$0xf] }
 0x206   :  { %1718 = vrot.lane.b32.xlu1 %v7109_v48, %s8168_s19  ;;  %v7951_v61 = vcombine.low %v6013_v7, %v6016_v39  ;;  %v1952_v5 = vsel %vm8437_vm5, %v7173_v10, %v1951_v59  ;;  %v1953_v55 = vrot.slane %v1951_v59, 4  ;;  %v5013_v27 = vrot.slane %v7730_v46, 5  ;;  %2070 = vst.msk [vmem:[#allocation2 + $0xa0] sm:$0xff] %vm2059_vm11, %v2032_v51  ;;  %v8154_v7 = vld [vmem:[%s12307_s0 + $0x198] sm:$0xff]  }
 0x207   :  { %v4680_v9 = vsel %vm8219_vm2, %v4675_v25, %v4679_v13  ;;  %v5016_v40 = vrot.slane %v7731_v42, 5  ;;  %v7359_v21 = vrot.slane %v7327_v53, 9  ;;  %v2953_v0 = vrot.slane %v7328_v35, 5  ;;  %v6194_v13 = vld [vmem:[#allocation2 + $0x180] sm:$0xff]  ;;  %v7477_v35 = vld [vmem:[%s12307_s0 + $0x190] sm:$0xf] }
 0x208   :  { %v7685_v23 = vcombine.low %v4670_v24, %v4680_v9  ;;  %6138 = vst.msk [vmem:[#allocation2 + $0x188] sm:$0xff] %vm143_vm6, %v7951_v61  ;;  %v1955_v28 = vsel %vm8437_vm5, %v1953_v55, %v1954_v38  ;;  %v5014_v16 = vsel %vm8437_vm5, %v7749_v29, %v5013_v27  ;;  %v5015_v22 = vrot.slane %v5013_v27, 4  ;;  %v5094_v41 = vpop.permute.xlu0 %5093  ;;  %3231 = vst.msk [vmem:[#allocation2 + $0x1f0] sm:$0xff] %vm143_vm6, %v8163_v2  ;;  %v7478_v24 = vld [vmem:[%s12307_s0 + $0x194] sm:$0x1] }
 0x209   :  { %v7189_v1 = vcombine.low %v1952_v5, %v1955_v28  ;;  %v2954_v33 = vsel %vm8437_vm5, %v7359_v21, %v2953_v0  ;;  %v2955_v44 = vrot.slane %v2953_v0, 4  ;;  %v2956_v58 = vrot.slane %v7329_v31, 5  ;;  %5131 = vst.msk [vmem:[#allocation2 + $0x1a0] sm:$0xff] %vm2059_vm11, %v5094_v41  ;;  %v2210_v34 = vpop.permute.xlu1 %2209  ;;  %v7540_v55 = vld [vmem:[%s12307_s0 + $0x18c] sm:$0xe] }
 0x20a   :  { %4781 = vrot.lane.b32.xlu0 %v7685_v23, %s8168_s19  ;;  %v5017_v63 = vsel %vm8437_vm5, %v5015_v22, %v5016_v40  ;;  %v2639_v45 = vshrl.u32 %v7281_v36, 16  ;;  %v2642_v47 = vshll.u32 %v7281_v36, 16  ;;  %v2648_v49 = vshll.u32 %v7282_v14, 16  ;;  %2248 = vst.msk [vmem:[#allocation2 + $0xa0] sm:$0xff] %vm2237_vm12, %v2210_v34  ;;  %v7541_v40 = vld [vmem:[%s12307_s0 + $0x190] sm:$0xf] }
 0x20b   :  { %2039 = vrot.lane.b32.xlu1 %v7189_v1, %s8169_s25  ;;  %v7765_v32 = vcombine.low %v5014_v16, %v5017_v63  ;;  %v2957_v52 = vsel %vm8437_vm5, %v2955_v44, %v2956_v58  ;;  %v2652_v30 = vshrl.u32 %v7282_v14, 16  ;;  %v2658_v4 = vshll.u32 %v7283_v6, 16  ;;  %v6162_v14 = vld [vmem:[#allocation2 + $0x80] sm:$0xff]  ;;  %v7542_v44 = vld [vmem:[%s12307_s0 + $0x194] sm:$0x1] }
 0x20c   :  { %v7375_v37 = vcombine.low %v2954_v33, %v2957_v52  ;;  %v2641_v54 = vrot.slane %v2639_v45, 4  ;;  %v2644_v57 = vrot.slane %v2642_v47, 5  ;;  %v2650_v60 = vrot.slane %v2648_v49, 5  ;;  %v5271_v62 = vpop.permute.xlu0 %5270 }
 0x20d   :  { %v2654_v8 = vrot.slane %v2652_v30, 4  ;;  %v2660_v46 = vrot.slane %v2658_v4, 5  ;;  %v5699_v42 = vshrl.u32 %v7857_v11, 16  ;;  %v5702_v15 = vshll.u32 %v7857_v11, 16  ;;  %5308 = vst.msk [vmem:[#allocation2 + $0x1a0] sm:$0xff] %vm2237_vm12, %v5271_v62 }
 0x20e   :  { %5101 = vrot.lane.b32.xlu0 %v7765_v32, %s8169_s25  ;;  %3079 = vst.msk [vmem:[#allocation2 + $0x88] sm:$0xff] %vm143_vm6, %v7375_v37  ;;  %v2645_v17 = vor.u32 %v2644_v57, %v2641_v54  ;;  %v5708_v18 = vshll.u32 %v7858_v12, 16  ;;  %v5712_v56 = vshrl.u32 %v7858_v12, 16  ;;  %v5718_v53 = vshll.u32 %v7859_v50, 16  ;;  %v11541_v48 = vpop.f32.mrb[0].mxu1 }
 0x20f   :  { %v6195_v10 = vld [vmem:[#allocation2 + $0x188] sm:$0xff]  ;;  %2217 = vrot.lane.b32.xlu1 %v8153_v20, %s8170_s29  ;;  %v2655_v59 = vor.u32 %v2654_v8, %v2650_v60  ;;  %v5701_v38 = vrot.slane %v5699_v42, 4  ;;  %v5704_v19 = vrot.slane %v5702_v15, 5  ;;  %v3641_v25 = vshrl.u32 %v7476_v43, 16  ;;  %v2755_v39 = vpop.permute.xlu1 %2754  ;;  %v6549_v21 = vpop.f32.mrb[1].mxu1 }
 0x210   :  { %7993 = vmatprep.mubr.msk.bf16.mxu1 %vm143_vm6, %v6195_v10  ;;  %v2646_v29 = vrot.slane %v2645_v17, 4  ;;  %v5710_v51 = vrot.slane %v5708_v18, 5  ;;  %v5714_v61 = vrot.slane %v5712_v56, 4  ;;  %v5720_v5 = vrot.slane %v5718_v53, 5  ;;  %2793 = vst.msk [vmem:[#allocation2 + $0xa0] sm:$0xff] %vm2782_vm13, %v2755_v39  ;;  %v11565_v58 = vpop.f32.mrb[2].mxu1 }
 0x211   :  { %6610 = vmatmul.mubr.bf16.gmra.mrb[32].mxu1 %v6194_v13  ;;  %v2656_v27 = vrot.slane %v2655_v59, 4  ;;  %v5705_v31 = vor.u32 %v5704_v19, %v5701_v38  ;;  %v3643_v36 = vrot.slane %v3641_v25, 4  ;;  %v3644_v9 = vshll.u32 %v7476_v43, 16  ;;  %v7092_v20 = vld [vmem:[%s12307_s0 + $0xc0] sm:$0xf]  ;;  %v6552_v45 = vpop.f32.mrb[3].mxu1 }
 0x212   :  { %5278 = vrot.lane.b32.xlu0 %v8154_v7, %s8170_s29  ;;  %v2651_v0 = vsel %vm8219_vm2, %v2646_v29, %v2650_v60  ;;  %v5715_v23 = vor.u32 %v5714_v61, %v5710_v51  ;;  %v3650_v28 = vshll.u32 %v7477_v35, 16  ;;  %v3654_v16 = vshrl.u32 %v7477_v35, 16  ;;  %v5815_v22 = vpop.permute.xlu0 %5814  ;;  %v7093_v30 = vld [vmem:[%s12307_s0 + $0xc4] sm:$0xf]  ;;  %v7094_v60 = vld [vmem:[%s12307_s0 + $0xc8] sm:$0x1] }
 0x213   :  { %v2661_v6 = vsel %vm8219_vm2, %v2656_v27, %v2660_v46  ;;  %v5706_v41 = vrot.slane %v5705_v31, 4  ;;  %v3646_v1 = vrot.slane %v3644_v9, 5  ;;  %v3660_v33 = vshll.u32 %v7478_v24, 16  ;;  %5852 = vst.msk [vmem:[#allocation2 + $0x1a0] sm:$0xff] %vm2782_vm13, %v5815_v22  ;;  %v7330_v46 = vld [vmem:[%s12307_s0 + $0x84] sm:$0xe] }
 0x214   :  { %v7301_v11 = vcombine.low %v2651_v0, %v2661_v6  ;;  %v5716_v12 = vrot.slane %v5715_v23, 4  ;;  %v3652_v34 = vrot.slane %v3650_v28, 5  ;;  %v3656_v63 = vrot.slane %v3654_v16, 4  ;;  %v7331_v42 = vld [vmem:[%s12307_s0 + $0x88] sm:$0xf] }
 0x215   :  { %v6163_v47 = vld [vmem:[#allocation2 + $0x88] sm:$0xff]  ;;  %v5711_v49 = vsel %vm8219_vm2, %v5706_v41, %v5710_v51  ;;  %v3647_v50 = vor.u32 %v3646_v1, %v3643_v36  ;;  %v3662_v32 = vrot.slane %v3660_v33, 5  ;;  %v7558_v52 = vrot.slane %v7540_v55, 9  ;;  %v7156_v35 = vld [vmem:[%s12307_s0 + $0xc0] sm:$0xe] }
 0x216   :  { %7977 = vmatprep.mubr.msk.bf16.mxu0 %vm143_vm6, %v6163_v47  ;;  %2762 = vrot.lane.b32.xlu1 %v7301_v11, %s8171_s16  ;;  %v5721_v4 = vsel %vm8219_vm2, %v5716_v12, %v5720_v5  ;;  %v3657_v37 = vor.u32 %v3656_v63, %v3652_v34  ;;  %v3979_v54 = vrot.slane %v7541_v40, 5  ;;  %v3982_v57 = vrot.slane %v7542_v44, 5  ;;  %v3735_v43 = vpop.permute.xlu1 %3734  ;;  %v4055_v62 = vpop.permute.xlu0 %4054  ;;  %v7332_v15 = vld [vmem:[%s12307_s0 + $0x8c] sm:$0x1]  ;;  %v7157_v10 = vld [vmem:[%s12307_s0 + $0xc4] sm:$0xf] }
 0x217   :  { %6482 = vmatmul.mubr.bf16.gmra.mrb[32].mxu0 %v6162_v14  ;;  %v7877_v2 = vcombine.low %v5711_v49, %v5721_v4  ;;  %v3648_v13 = vrot.slane %v3647_v50, 4  ;;  %v1619_v7 = vshrl.u32 %v7092_v20, 16  ;;  %v1622_v8 = vshll.u32 %v7092_v20, 16  ;;  %3771 = vst.msk [vmem:[#allocation2 + $0x1b0] sm:$0xff] %vm691_vm7, %v3735_v43  ;;  %v11601_v59 = vpop.f32.mrb[0].mxu0  ;;  %v8159_v11 = vld [vmem:[%s12307_s0 + $0x198] sm:$0xff]  }
 0x218   :  { %v3658_v17 = vrot.slane %v3657_v37, 4  ;;  %v3980_v18 = vsel %vm8437_vm5, %v7558_v52, %v3979_v54  ;;  %v3981_v56 = vrot.slane %v3979_v54, 4  ;;  %v1628_v53 = vshll.u32 %v7093_v30, 16  ;;  %4091 = vst.msk [vmem:[#allocation2 + $0x1b0] sm:$0xff] %vm1015_vm8, %v4055_v62  ;;  %v6421_v39 = vpop.f32.mrb[1].mxu0 }
 0x219   :  { %5822 = vrot.lane.b32.xlu0 %v7877_v2, %s8171_s16  ;;  %v3653_v38 = vsel %vm8219_vm2, %v3648_v13, %v3652_v34  ;;  %v1621_v19 = vrot.slane %v1619_v7, 4  ;;  %v1624_v24 = vrot.slane %v1622_v8, 5  ;;  %v1632_v25 = vshrl.u32 %v7093_v30, 16  ;;  %v11610_v27 = vpop.f32.mrb[2].mxu0  ;;  %v7158_v21 = vld [vmem:[%s12307_s0 + $0xc8] sm:$0x1] }
 0x21a   :  { %v3663_v29 = vsel %vm8219_vm2, %v3658_v17, %v3662_v32  ;;  %v3983_v51 = vsel %vm8437_vm5, %v3981_v56, %v3982_v57  ;;  %v1630_v61 = vrot.slane %v1628_v53, 5  ;;  %v1638_v5 = vshll.u32 %v7094_v60, 16  ;;  %v4232_v55 = vpop.permute.xlu1 %4231  ;;  %v7284_v0 = vld [vmem:[%s12307_s0 + $0xcc] sm:$0xf]  ;;  %v6424_v14 = vpop.f32.mrb[3].mxu0 }
 0x21b   :  { %v7494_v31 = vcombine.low %v3653_v38, %v3663_v29  ;;  %v7574_v36 = vcombine.low %v3980_v18, %v3983_v51  ;;  %v1625_v9 = vor.u32 %v1624_v24, %v1621_v19  ;;  %v1634_v40 = vrot.slane %v1632_v25, 4  ;;  %4268 = vst.msk [vmem:[#allocation2 + $0x1b0] sm:$0xff] %vm1193_vm9, %v4232_v55  ;;  %v7285_v6 = vld [vmem:[%s12307_s0 + $0xd0] sm:$0xf]  ;;  %v7286_v20 = vld [vmem:[%s12307_s0 + $0xd4] sm:$0x1] }
 0x21c   :  { %v1640_v23 = vrot.slane %v1638_v5, 5  ;;  %v7360_v28 = vrot.slane %v7330_v46, 9  ;;  %v2960_v16 = vrot.slane %v7331_v42, 5  ;;  %v2963_v22 = vrot.slane %v7332_v15, 5  ;;  %v7906_v47 = vld [vmem:[%s12307_s0 + $0x15c] sm:$0xe] }
 0x21d   :  { %3742 = vrot.lane.b32.xlu1 %v7494_v31, %s8165_s9  ;;  %4062 = vrot.lane.b32.xlu0 %v7574_v36, %s8166_s20  ;;  %v1626_v41 = vrot.slane %v1625_v9, 4  ;;  %v1635_v1 = vor.u32 %v1634_v40, %v1630_v61  ;;  %v7174_v33 = vrot.slane %v7156_v35, 9  ;;  %v1958_v44 = vrot.slane %v7157_v10, 5  ;;  %v7907_v4 = vld [vmem:[%s12307_s0 + $0x160] sm:$0xf] }
 0x21e   :  { %v2961_v12 = vsel %vm8437_vm5, %v7360_v28, %v2960_v16  ;;  %v2962_v34 = vrot.slane %v2960_v16, 4  ;;  %v1961_v63 = vrot.slane %v7158_v21, 5  ;;  %v2663_v45 = vshrl.u32 %v7284_v0, 16  ;;  %v1713_v49 = vpop.permute.xlu0 %1712  ;;  %v7908_v37 = vld [vmem:[%s12307_s0 + $0x164] sm:$0x1] }
 0x21f   :  { %v1631_v50 = vsel %vm8219_vm2, %v1626_v41, %v1630_v61  ;;  %v1636_v32 = vrot.slane %v1635_v1, 4  ;;  %v1959_v52 = vsel %vm8437_vm5, %v7174_v33, %v1958_v44  ;;  %v1960_v30 = vrot.slane %v1958_v44, 4  ;;  %1750 = vst.msk [vmem:[#allocation2 + $0xb0] sm:$0xff] %vm1738_vm10, %v1713_v49  ;;  %v7909_v62 = vld [vmem:[%s12307_s0 + $0x168] sm:$0xe]  ;;  %v6164_v49 = vld [vmem:[#allocation2 + $0x90] sm:$0xff] }
 0x220   :  { %v2964_v54 = vsel %vm8437_vm5, %v2962_v34, %v2963_v22  ;;  %v2665_v57 = vrot.slane %v2663_v45, 4  ;;  %v2666_v60 = vshll.u32 %v7284_v0, 16  ;;  %v2672_v43 = vshll.u32 %v7285_v6, 16  ;;  %v7910_v46 = vld [vmem:[%s12307_s0 + $0x16c] sm:$0xf] }
 0x221   :  { %v1641_v2 = vsel %vm8219_vm2, %v1636_v32, %v1640_v23  ;;  %v7376_v13 = vcombine.low %v2961_v12, %v2964_v54  ;;  %v1962_v7 = vsel %vm8437_vm5, %v1960_v30, %v1961_v63  ;;  %v2676_v8 = vshrl.u32 %v7285_v6, 16  ;;  %v7911_v42 = vld [vmem:[%s12307_s0 + $0x170] sm:$0x1]  ;;  %v4776_v15 = vpop.permute.xlu1 %4775  ;;  %4239 = vrot.lane.b32.xlu1 %v8159_v11, %s8167_s28  ;;  %v7333_v10 = vld [vmem:[%s12307_s0 + $0x90] sm:$0xe] }
 0x222   :  { %v7110_v17 = vcombine.low %v1631_v50, %v1641_v2  ;;  %v7190_v18 = vcombine.low %v1959_v52, %v1962_v7  ;;  %v2668_v56 = vrot.slane %v2666_v60, 5  ;;  %v11662_v53 = vrot.slane %v2672_v43, 5  ;;  %4812 = vst.msk [vmem:[#allocation2 + $0x1b0] sm:$0xff] %vm1738_vm10, %v4776_v15  ;;  %v2034_v35 = vpop.permute.xlu0 %2033  ;;  %v11668_v38 = vpop.f32.mrb[4].mxu1  ;;  %v7334_v31 = vld [vmem:[%s12307_s0 + $0x94] sm:$0xf] }
 0x223   :  { %3080 = vst.msk [vmem:[#allocation2 + $0x98] sm:$0xff] %vm143_vm6, %v7376_v13  ;;  %v2678_v19 = vrot.slane %v2676_v8, 4  ;;  %v2682_v24 = vshll.u32 %v7286_v20, 16  ;;  %v7936_v25 = vrot.slane %v7906_v47, 9  ;;  %v6019_v39 = vrot.slane %v7907_v4, 5  ;;  %v6557_v29 = vpop.f32.mrb[5].mxu1 }
 0x224   :  { %2071 = vst.msk [vmem:[#allocation2 + $0xb0] sm:$0xff] %vm2059_vm11, %v2034_v35  ;;  %1720 = vrot.lane.b32.xlu0 %v7110_v17, %s8168_s19  ;;  %v2669_v51 = vor.u32 %v2668_v56, %v2665_v57  ;;  %v6022_v61 = vrot.slane %v7908_v37, 5  ;;  %v7937_v5 = vrot.slane %v7909_v62, 9  ;;  %v6026_v55 = vrot.slane %v7910_v46, 5  ;;  %v11676_v36 = vpop.f32.mrb[6].mxu1  ;;  %v8156_v63 = vld [vmem:[%s12307_s0 + $0xcc] sm:$0xff]  }
 0x225   :  { %v2679_v9 = vor.u32 %v2678_v19, %v11662_v53  ;;  %v2684_v40 = vrot.slane %v2682_v24, 5  ;;  %v6020_v21 = vsel %vm8437_vm5, %v7936_v25, %v6019_v39  ;;  %v6021_v0 = vrot.slane %v6019_v39, 4  ;;  %v5096_v14 = vpop.permute.xlu1 %5095  ;;  %v7335_v23 = vld [vmem:[%s12307_s0 + $0x98] sm:$0x1]  ;;  %v6560_v28 = vpop.f32.mrb[7].mxu1 }
 0x226   :  { %v2670_v16 = vrot.slane %v2669_v51, 4  ;;  %v6027_v22 = vsel %vm8437_vm5, %v7937_v5, %v6026_v55  ;;  %v6028_v6 = vrot.slane %v6026_v55, 4  ;;  %v6029_v41 = vrot.slane %v7911_v42, 5  ;;  %5132 = vst.msk [vmem:[#allocation2 + $0x1b0] sm:$0xff] %vm2059_vm11, %v5096_v14  ;;  %v2212_v1 = vpop.permute.xlu0 %2211  ;;  %v7336_v33 = vld [vmem:[%s12307_s0 + $0x9c] sm:$0xe] }
 0x227   :  { %v7337_v44 = vld [vmem:[%s12307_s0 + $0xa0] sm:$0xf]  ;;  %v2680_v11 = vrot.slane %v2679_v9, 4  ;;  %v6023_v12 = vsel %vm8437_vm5, %v6021_v0, %v6022_v61  ;;  %2249 = vst.msk [vmem:[#allocation2 + $0xb0] sm:$0xff] %vm2237_vm12, %v2212_v1  ;;  %v7361_v34 = vrot.slane %v7333_v10, 9  ;;  %v2967_v47 = vrot.slane %v7334_v31, 5 }
 0x228   :  { %2041 = vrot.lane.b32.xlu0 %v7190_v18, %s8169_s25  ;;  %v7952_v20 = vcombine.low %v6020_v21, %v6023_v12  ;;  %v6030_v45 = vsel %vm8437_vm5, %v6028_v6, %v6029_v41  ;;  %v2675_v50 = vsel %vm8219_vm2, %v2670_v16, %v11662_v53  ;;  %v2970_v30 = vrot.slane %v7335_v23, 5  ;;  %v7338_v37 = vld [vmem:[%s12307_s0 + $0xa4] sm:$0x1]  ;;  %v7912_v2 = vld [vmem:[%s12307_s0 + $0x174] sm:$0xe] }
 0x229   :  { %v2685_v32 = vsel %vm8219_vm2, %v2680_v11, %v2684_v40  ;;  %v7953_v52 = vcombine.low %v6027_v22, %v6030_v45  ;;  %v5273_v4 = vpop.permute.xlu1 %5272  ;;  %v2968_v57 = vsel %vm8437_vm5, %v7361_v34, %v2967_v47  ;;  %v2969_v60 = vrot.slane %v2967_v47, 4  ;;  %v7913_v13 = vld [vmem:[%s12307_s0 + $0x178] sm:$0xf]  ;;  %v7914_v15 = vld [vmem:[%s12307_s0 + $0x17c] sm:$0x1]  ;;  %v6196_v5 = vld [vmem:[#allocation2 + $0x190] sm:$0xff] }
 0x22a   :  { %v6165_v54 = vld [vmem:[#allocation2 + $0x98] sm:$0xff]  ;;  %6139 = vst.msk [vmem:[#allocation2 + $0x198] sm:$0xff] %vm143_vm6, %v7952_v20  ;;  %v7362_v43 = vrot.slane %v7336_v33, 9  ;;  %v2974_v62 = vrot.slane %v7337_v44, 5  ;;  %v7302_v7 = vcombine.low %v2675_v50, %v2685_v32  ;;  %v2977_v42 = vrot.slane %v7338_v37, 5  ;;  %v6166_v50 = vld [vmem:[#allocation2 + $0xa0] sm:$0xff] }
 0x22b   :  { %5309 = vst.msk [vmem:[#allocation2 + $0x1b0] sm:$0xff] %vm2237_vm12, %v5273_v4  ;;  %7978 = vmatprep.mubr.msk.bf16.mxu0 %vm143_vm6, %v6165_v54  ;;  %v2971_v8 = vsel %vm8437_vm5, %v2969_v60, %v2970_v30  ;;  %v7668_v17 = vld [vmem:[%s12307_s0 + $0x198] sm:$0xf]  ;;  %v7669_v56 = vld [vmem:[%s12307_s0 + $0x19c] sm:$0xf]  ;;  %v7938_v19 = vrot.slane %v7912_v2, 9 }
 0x22c   :  { %6140 = vst.msk [vmem:[#allocation2 + $0x1a8] sm:$0xff] %vm143_vm6, %v7953_v52  ;;  %6490 = vmatmul.mubr.bf16.gmra.mrb[36].mxu0 %v6164_v49  ;;  %2219 = vrot.lane.b32.xlu0 %v8156_v63, %s8170_s29  ;;  %v2757_v46 = vpop.permute.xlu0 %2756  ;;  %v7377_v18 = vcombine.low %v2968_v57, %v2971_v8  ;;  %v7670_v53 = vld [vmem:[%s12307_s0 + $0x1a0] sm:$0x1]  ;;  %v2975_v35 = vsel %vm8437_vm5, %v7362_v43, %v2974_v62  ;;  %v2976_v10 = vrot.slane %v2974_v62, 4  ;;  %v7732_v24 = vld [vmem:[%s12307_s0 + $0x198] sm:$0xe] }
 0x22d   :  { %2794 = vst.msk [vmem:[#allocation2 + $0xb0] sm:$0xff] %vm2782_vm13, %v2757_v46  ;;  %v6033_v25 = vrot.slane %v7913_v13, 5  ;;  %v6036_v39 = vrot.slane %v7914_v15, 5  ;;  %v4682_v29 = vshrl.u32 %v7668_v17, 16  ;;  %v4685_v51 = vshll.u32 %v7668_v17, 16  ;;  %v6198_v15 = vld [vmem:[#allocation2 + $0x1a0] sm:$0xff] }
 0x22e   :  { %3081 = vst.msk [vmem:[#allocation2 + $0xa8] sm:$0xff] %vm143_vm6, %v7377_v18  ;;  %v7733_v61 = vld [vmem:[%s12307_s0 + $0x19c] sm:$0xf]  ;;  %v2978_v31 = vsel %vm8437_vm5, %v2976_v10, %v2977_v42  ;;  %v4691_v9 = vshll.u32 %v7669_v56, 16  ;;  %v4695_v40 = vshrl.u32 %v7669_v56, 16  ;;  %v4701_v12 = vshll.u32 %v7670_v53, 16 }
 0x22f   :  { %v7734_v0 = vld [vmem:[%s12307_s0 + $0x1a0] sm:$0x1]  ;;  %v7378_v23 = vcombine.low %v2975_v35, %v2978_v31  ;;  %v6034_v28 = vsel %vm8437_vm5, %v7938_v19, %v6033_v25  ;;  %v6035_v16 = vrot.slane %v6033_v25, 4  ;;  %v4684_v22 = vrot.slane %v4682_v29, 4  ;;  %v7915_v41 = vld [vmem:[%s12307_s0 + $0x180] sm:$0xe] }
 0x230   :  { %2764 = vrot.lane.b32.xlu0 %v7302_v7, %s8171_s16  ;;  %v5817_v55 = vpop.permute.xlu1 %5816  ;;  %v11750_v21 = vpop.f32.mrb[4].mxu0  ;;  %v4687_v33 = vrot.slane %v4685_v51, 5  ;;  %v4693_v44 = vrot.slane %v4691_v9, 5  ;;  %v4697_v11 = vrot.slane %v4695_v40, 4  ;;  %v7750_v20 = vrot.slane %v7732_v24, 9 }
 0x231   :  { %v6197_v14 = vld [vmem:[#allocation2 + $0x198] sm:$0xff]  ;;  %5853 = vst.msk [vmem:[#allocation2 + $0x1b0] sm:$0xff] %vm2782_vm13, %v5817_v55  ;;  %v6429_v6 = vpop.f32.mrb[5].mxu0  ;;  %v6037_v63 = vsel %vm8437_vm5, %v6035_v16, %v6036_v39  ;;  %v5020_v45 = vrot.slane %v7733_v61, 5  ;;  %v7916_v49 = vld [vmem:[%s12307_s0 + $0x184] sm:$0xf] }
 0x232   :  { %7994 = vmatprep.mubr.msk.bf16.mxu1 %vm143_vm6, %v6197_v14  ;;  %v11762_v34 = vpop.f32.mrb[6].mxu0  ;;  %3082 = vst.msk [vmem:[#allocation2 + $0xb8] sm:$0xff] %vm143_vm6, %v7378_v23  ;;  %v7954_v30 = vcombine.low %v6034_v28, %v6037_v63  ;;  %v4688_v4 = vor.u32 %v4687_v33, %v4684_v22  ;;  %v4698_v37 = vor.u32 %v4697_v11, %v4693_v44  ;;  %v4703_v54 = vrot.slane %v4701_v12, 5  ;;  %v7917_v57 = vld [vmem:[%s12307_s0 + $0x188] sm:$0x1] }
 0x233   :  { %v6199_v1 = vld [vmem:[#allocation2 + $0x1a8] sm:$0xff]  ;;  %6618 = vmatmul.mubr.bf16.gmra.mrb[36].mxu1 %v6196_v5  ;;  %v6432_v47 = vpop.f32.mrb[7].mxu0  ;;  %v7860_v60 = vld [vmem:[%s12307_s0 + $0x1a4] sm:$0xf]  ;;  %v11780_v43 = vsel %vm8437_vm5, %v7750_v20, %v5020_v45  ;;  %v5022_v62 = vrot.slane %v5020_v45, 4  ;;  %v5023_v2 = vrot.slane %v7734_v0, 5 }
 0x234   :  { %7995 = vmatprep.mubr.msk.bf16.mxu1 %vm143_vm6, %v6199_v1  ;;  %v3737_v32 = vpop.permute.xlu0 %3736  ;;  %v4057_v52 = vpop.permute.xlu1 %4056  ;;  %v7861_v13 = vld [vmem:[%s12307_s0 + $0x1a8] sm:$0xf]  ;;  %6141 = vst.msk [vmem:[#allocation2 + $0x1b8] sm:$0xff] %vm143_vm6, %v7954_v30  ;;  %v4689_v8 = vrot.slane %v4688_v4, 4  ;;  %v4699_v46 = vrot.slane %v4698_v37, 4  ;;  %v7939_v42 = vrot.slane %v7915_v41, 9 }
 0x235   :  { %3772 = vst.msk [vmem:[#allocation2 + $0x1c0] sm:$0xff] %vm691_vm7, %v3737_v32  ;;  %v6167_v7 = vld [vmem:[#allocation2 + $0xa8] sm:$0xff]  ;;  %v11790_v17 = vsel %vm8437_vm5, %v5022_v62, %v5023_v2  ;;  %v6040_v18 = vrot.slane %v7916_v49, 5  ;;  %v6043_v56 = vrot.slane %v7917_v57, 5  ;;  %v5723_v35 = vshrl.u32 %v7860_v60, 16  ;;  %v6168_v22 = vld [vmem:[#allocation2 + $0xb0] sm:$0xff] }
 0x236   :  { %4092 = vst.msk [vmem:[#allocation2 + $0x1c0] sm:$0xff] %vm1015_vm8, %v4057_v52  ;;  %7979 = vmatprep.mubr.msk.bf16.mxu0 %vm143_vm6, %v6167_v7  ;;  %v7862_v53 = vld [vmem:[%s12307_s0 + $0x1ac] sm:$0x1]  ;;  %v4694_v19 = vsel %vm8219_vm2, %v4689_v8, %v4693_v44  ;;  %v4704_v24 = vsel %vm8219_vm2, %v4699_v46, %v4703_v54  ;;  %v7766_v25 = vcombine.low %v11780_v43, %v11790_v17  ;;  %v7339_v39 = vld [vmem:[%s12307_s0 + $0xa8] sm:$0xe]  ;;  %v5726_v14 = vshll.u32 %v7860_v60, 16 }
 0x237   :  { %6498 = vmatmul.mubr.bf16.gmra.mrb[40].mxu0 %v6166_v50  ;;  %v7340_v29 = vld [vmem:[%s12307_s0 + $0xac] sm:$0xf]  ;;  %v7341_v51 = vld [vmem:[%s12307_s0 + $0xb0] sm:$0x1]  ;;  %v7686_v61 = vcombine.low %v4694_v19, %v4704_v24  ;;  %v6041_v5 = vsel %vm8437_vm5, %v7939_v42, %v6040_v18  ;;  %v6042_v55 = vrot.slane %v6040_v18, 4  ;;  %v5725_v31 = vrot.slane %v5723_v35, 4 }
 0x238   :  { %v4234_v10 = vpop.permute.xlu0 %4233  ;;  %v7342_v9 = vld [vmem:[%s12307_s0 + $0xb4] sm:$0xe]  ;;  %v7343_v40 = vld [vmem:[%s12307_s0 + $0xb8] sm:$0xf]  ;;  %v5732_v23 = vshll.u32 %v7861_v13, 16  ;;  %v5736_v28 = vshrl.u32 %v7861_v13, 16 }
 0x239   :  { %4269 = vst.msk [vmem:[#allocation2 + $0x1c0] sm:$0xff] %vm1193_vm9, %v4234_v10  ;;  %v6169_v0 = vld [vmem:[#allocation2 + $0xb8] sm:$0xff]  ;;  %v5742_v16 = vshll.u32 %v7862_v53, 16  ;;  %v6044_v6 = vsel %vm8437_vm5, %v6042_v55, %v6043_v56  ;;  %v7363_v41 = vrot.slane %v7339_v39, 9  ;;  %v2981_v1 = vrot.slane %v7340_v29, 5  ;;  %4783 = vrot.lane.b32.xlu1 %v7686_v61, %s8168_s19  ;;  %v6200_v46 = vld [vmem:[#allocation2 + $0x1b0] sm:$0xff] }
 0x23a   :  { %7980 = vmatprep.mubr.msk.bf16.mxu0 %vm143_vm6, %v6169_v0  ;;  %v2984_v33 = vrot.slane %v7341_v51, 5  ;;  %v7344_v44 = vld [vmem:[%s12307_s0 + $0xbc] sm:$0x1]  ;;  %v7955_v12 = vcombine.low %v6041_v5, %v6044_v6  ;;  %v5728_v63 = vrot.slane %v5726_v14, 5  ;;  %v5734_v20 = vrot.slane %v5732_v23, 5  ;;  %v8161_v42 = vld [vmem:[%s12307_s0 + $0x1a4] sm:$0xff]  }
 0x23b   :  { %6626 = vmatmul.mubr.bf16.gmra.mrb[40].mxu1 %v6198_v15  ;;  %v5738_v45 = vrot.slane %v5736_v28, 4  ;;  %v7918_v49 = vld [vmem:[%s12307_s0 + $0x18c] sm:$0xe]  ;;  %v7919_v50 = vld [vmem:[%s12307_s0 + $0x190] sm:$0xf]  ;;  %v6201_v52 = vld [vmem:[#allocation2 + $0x1b8] sm:$0xff]  ;;  %v2982_v37 = vsel %vm8437_vm5, %v7363_v41, %v2981_v1 }
 0x23c   :  { %v1715_v11 = vpop.permute.xlu1 %1714  ;;  %v11826_v47 = vpop.f32.mrb[8].mxu1  ;;  %v11837_v32 = vld [vmem:[%s12309_s2] ss:$0 sm:$0xff]  ;;  %v5744_v30 = vrot.slane %v5742_v16, 5  ;;  %v2983_v54 = vrot.slane %v2981_v1, 4  ;;  %7996 = vmatprep.mubr.msk.bf16.mxu1 %vm143_vm6, %v6201_v52  ;;  %6142 = vst.msk [vmem:[#allocation2 + $0x1c8] sm:$0xff] %vm143_vm6, %v7955_v12  ;;  %v5729_v60 = vor.u32 %v5728_v63, %v5725_v31 }
 0x23d   :  { %1751 = vst.msk [vmem:[#allocation2 + $0xc0] sm:$0xff] %vm1738_vm10, %v1715_v11  ;;  %v6565_v4 = vpop.f32.mrb[9].mxu1  ;;  %v7920_v57 = vld [vmem:[%s12307_s0 + $0x194] sm:$0x1]  ;;  %v5739_v43 = vor.u32 %v5738_v45, %v5734_v20  ;;  %v7364_v2 = vrot.slane %v7342_v9, 9  ;;  %v2988_v13 = vrot.slane %v7343_v40, 5  ;;  %v11862_v53 = vadd.f32 %v11837_v32, %v11601_v59  ;;  %5103 = vrot.lane.b32.xlu1 %v7766_v25, %s8169_s25 }
 0x23e   :  { %v11847_v62 = vpop.f32.mrb[10].mxu1  ;;  %v7921_v7 = vld [vmem:[%s12307_s0 + $0x198] sm:$0xe]  ;;  %v2985_v17 = vsel %vm8437_vm5, %v2983_v54, %v2984_v33  ;;  %v2991_v18 = vrot.slane %v7344_v44, 5  ;;  %v7922_v56 = vld [vmem:[%s12307_s0 + $0x19c] sm:$0xf] }
 0x23f   :  { %v4778_v8 = vpop.permute.xlu0 %4777  ;;  %v6568_v15 = vpop.f32.mrb[11].mxu1  ;;  %6506 = vmatmul.mubr.bf16.gmra.mrb[44].mxu0 %v6168_v22  ;;  %v5730_v10 = vrot.slane %v5729_v60, 4  ;;  %v5740_v19 = vrot.slane %v5739_v43, 4  ;;  %v7379_v24 = vcombine.low %v2982_v37, %v2985_v17  ;;  %v7923_v39 = vld [vmem:[%s12307_s0 + $0x1a0] sm:$0x1]  ;;  %v2989_v59 = vsel %vm8437_vm5, %v7364_v2, %v2988_v13 }
 0x240   :  { %4813 = vst.msk [vmem:[#allocation2 + $0x1c0] sm:$0xff] %vm1738_vm10, %v4778_v8  ;;  %v2036_v35 = vpop.permute.xlu1 %2035  ;;  %v7345_v29 = vld [vmem:[%s12307_s0 + $0xc0] sm:$0xe]  ;;  %v2990_v51 = vrot.slane %v2988_v13, 4  ;;  %v7940_v61 = vrot.slane %v7918_v49, 9  ;;  %v6047_v5 = vrot.slane %v7919_v50, 5 }
 0x241   :  { %2072 = vst.msk [vmem:[#allocation2 + $0xc0] sm:$0xff] %vm2059_vm11, %v2036_v35  ;;  %v7346_v25 = vld [vmem:[%s12307_s0 + $0xc4] sm:$0xf]  ;;  %v5735_v55 = vsel %vm8219_vm2, %v5730_v10, %v5734_v20  ;;  %v5745_v31 = vsel %vm8219_vm2, %v5740_v19, %v5744_v30  ;;  %v6050_v9 = vrot.slane %v7920_v57, 5  ;;  %v7941_v40 = vrot.slane %v7921_v7, 9  ;;  %5280 = vrot.lane.b32.xlu1 %v8161_v42, %s8170_s29 }
 0x242   :  { %3083 = vst.msk [vmem:[#allocation2 + $0xc8] sm:$0xff] %vm143_vm6, %v7379_v24  ;;  %v7347_v0 = vld [vmem:[%s12307_s0 + $0xc8] sm:$0x1]  ;;  %v7348_v14 = vld [vmem:[%s12307_s0 + $0xcc] sm:$0xe]  ;;  %v7878_v28 = vcombine.low %v5735_v55, %v5745_v31  ;;  %v2992_v16 = vsel %vm8437_vm5, %v2990_v51, %v2991_v18  ;;  %v6048_v26 = vsel %vm8437_vm5, %v7940_v61, %v6047_v5  ;;  %v6049_v22 = vrot.slane %v6047_v5, 4 }
 0x243   :  { %v5098_v23 = vpop.permute.xlu0 %5097  ;;  %6634 = vmatmul.mubr.bf16.gmra.mrb[44].mxu1 %v6200_v46  ;;  %v7349_v6 = vld [vmem:[%s12307_s0 + $0xd0] sm:$0xf]  ;;  %v7380_v1 = vcombine.low %v2989_v59, %v2992_v16  ;;  %v6054_v33 = vrot.slane %v7922_v56, 5  ;;  %v6057_v44 = vrot.slane %v7923_v39, 5  ;;  %v7365_v11 = vrot.slane %v7345_v29, 9  ;;  %v6203_v63 = vld [vmem:[#allocation2 + $0x1c8] sm:$0xff] }
 0x244   :  { %5133 = vst.msk [vmem:[#allocation2 + $0x1c0] sm:$0xff] %vm2059_vm11, %v5098_v23  ;;  %v2214_v41 = vpop.permute.xlu1 %2213  ;;  %v7350_v12 = vld [vmem:[%s12307_s0 + $0xd4] sm:$0x1]  ;;  %v6051_v20 = vsel %vm8437_vm5, %v6049_v22, %v6050_v9  ;;  %v2995_v45 = vrot.slane %v7346_v25, 5  ;;  %v2998_v49 = vrot.slane %v7347_v0, 5  ;;  %v7366_v50 = vrot.slane %v7348_v14, 9  ;;  %7997 = vmatprep.mubr.msk.bf16.mxu1 %vm143_vm6, %v6203_v63 }
 0x245   :  { %2250 = vst.msk [vmem:[#allocation2 + $0xc0] sm:$0xff] %vm2237_vm12, %v2214_v41  ;;  %v7956_v52 = vcombine.low %v6048_v26, %v6051_v20  ;;  %v6055_v30 = vsel %vm8437_vm5, %v7941_v40, %v6054_v33  ;;  %v6056_v4 = vrot.slane %v6054_v33, 4  ;;  %v3002_v37 = vrot.slane %v7349_v6, 5  ;;  %5824 = vrot.lane.b32.xlu1 %v7878_v28, %s8171_s16  ;;  %v7925_v41 = vld [vmem:[%s12307_s0 + $0x1a8] sm:$0xf] }
 0x246   :  { %3084 = vst.msk [vmem:[#allocation2 + $0xd8] sm:$0xff] %vm143_vm6, %v7380_v1  ;;  %v2996_v57 = vsel %vm8437_vm5, %v7365_v11, %v2995_v45  ;;  %v2997_v60 = vrot.slane %v2995_v45, 4  ;;  %v3005_v43 = vrot.slane %v7350_v12, 5  ;;  %v6674_v17 = vmax.f32 %v11862_v53, 0.0  ;;  %v7926_v11 = vld [vmem:[%s12307_s0 + $0x1ac] sm:$0x1] }
 0x247   :  { %v5275_v54 = vpop.permute.xlu0 %5274  ;;  %6143 = vst.msk [vmem:[#allocation2 + $0x1d8] sm:$0xff] %vm143_vm6, %v7956_v52  ;;  %v6058_v2 = vsel %vm8437_vm5, %v6056_v4, %v6057_v44  ;;  %v3003_v13 = vsel %vm8437_vm5, %v7366_v50, %v3002_v37  ;;  %v3004_v7 = vrot.slane %v3002_v37, 4  ;;  %v6423_v18 = vadd.f32 %v11837_v32, %v11610_v27  ;;  %v7924_v44 = vld [vmem:[%s12307_s0 + $0x1a4] sm:$0xe] }
 0x248   :  { %5310 = vst.msk [vmem:[#allocation2 + $0x1c0] sm:$0xff] %vm2237_vm12, %v5275_v54  ;;  %v7957_v42 = vcombine.low %v6055_v30, %v6058_v2  ;;  %v2999_v15 = vsel %vm8437_vm5, %v2997_v60, %v2998_v49  ;;  %v6428_v59 = vadd.f32 %v11837_v32, %v11750_v21  ;;  %v6431_v5 = vadd.f32 %v11837_v32, %v11762_v34 }
 0x249   :  { %v6171_v8 = vld [vmem:[#allocation2 + $0xc8] sm:$0xff]  ;;  %v6435_v46 = vpop.f32.mrb[8].mxu0  ;;  %v7381_v10 = vcombine.low %v2996_v57, %v2999_v15  ;;  %v3006_v19 = vsel %vm8437_vm5, %v3004_v7, %v3005_v43  ;;  %v6675_v27 = vmax.f32 %v6423_v18, 0.0  ;;  %v6061_v1 = vrot.slane %v7925_v41, 5 }
 0x24a   :  { %v2759_v56 = vpop.permute.xlu1 %2758  ;;  %7981 = vmatprep.mubr.msk.bf16.mxu0 %vm143_vm6, %v6171_v8  ;;  %v6437_v35 = vpop.f32.mrb[9].mxu0  ;;  %6144 = vst.msk [vmem:[#allocation2 + $0x1e8] sm:$0xff] %vm143_vm6, %v7957_v42  ;;  %v7382_v39 = vcombine.low %v3003_v13, %v3006_v19  ;;  %v6676_v61 = vmax.f32 %v6428_v59, 0.0  ;;  %v6677_v40 = vmax.f32 %v6431_v5, 0.0  ;;  %v6436_v0 = vadd.f32 %v11837_v32, %v6435_v46 }
 0x24b   :  { %2795 = vst.msk [vmem:[#allocation2 + $0xc0] sm:$0xff] %vm2782_vm13, %v2759_v56  ;;  %v6438_v24 = vpop.f32.mrb[10].mxu0  ;;  %v7942_v63 = vrot.slane %v7924_v44, 9  ;;  %v6063_v20 = vrot.slane %v6061_v1, 4  ;;  %v6064_v45 = vrot.slane %v7926_v11, 5 }
 0x24c   :  { %v6440_v29 = vpop.f32.mrb[11].mxu0  ;;  %3085 = vst.msk [vmem:[#allocation2 + $0xe8] sm:$0xff] %vm143_vm6, %v7381_v10  ;;  %3086 = vst.msk [vmem:[#allocation2 + $0xf8] sm:$0xff] %vm143_vm6, %v7382_v39  ;;  %v6678_v26 = vmax.f32 %v6436_v0, 0.0  ;;  %v6439_v22 = vadd.f32 %v11837_v32, %v6438_v24 }
 0x24d   :  { %v6173_v51 = vld [vmem:[#allocation2 + $0xd8] sm:$0xff]  ;;  %v6062_v50 = vsel %vm8437_vm5, %v7942_v63, %v6061_v1  ;;  %v6065_v52 = vsel %vm8437_vm5, %v6063_v20, %v6064_v45 }
 0x24e   :  { %6738 = vxpose.xlu0.b32.start [1/16] %v6674_v17, 128  ;;  %v5819_v53 = vpop.permute.xlu0 %5818  ;;  %v6205_v9 = vld [vmem:[#allocation2 + $0x1d8] sm:$0xff]  ;;  %v6679_v33 = vmax.f32 %v6439_v22, 0.0  ;;  %v7958_v30 = vcombine.low %v6062_v50, %v6065_v52 }
 0x24f   :  { %5854 = vst.msk [vmem:[#allocation2 + $0x1c0] sm:$0xff] %vm2782_vm13, %v5819_v53 }
 0x250   :  { %6145 = vst.msk [vmem:[#allocation2 + $0x1f8] sm:$0xff] %vm143_vm6, %v7958_v30 }
 0x251   :  { %v6207_v24 = vld [vmem:[#allocation2 + $0x1e8] sm:$0xff] }
 0x252   :  { %6739 = vxpose.xlu0.b32.cont [2/16] %v6675_v27, 128  ;;  %v6170_v25 = vld [vmem:[#allocation2 + $0xc0] sm:$0xff]  ;;  %v4059_v55 = vpop.permute.xlu0 %4058 }
 0x253   :  { %6514 = vmatmul.mubr.bf16.gmra.mrb[48].mxu0 %v6170_v25  ;;  %v6175_v17 = vld [vmem:[#allocation2 + $0xe8] sm:$0xff]  ;;  %v6177_v41 = vld [vmem:[#allocation2 + $0xf8] sm:$0xff] }
 0x254   :  { %7982 = vmatprep.mubr.msk.bf16.mxu0 %vm143_vm6, %v6173_v51 }
 0x255   :  { %v3739_v31 = vpop.permute.xlu1 %3738 }
 0x256   :  { %3773 = vst.msk [vmem:[#allocation2 + $0x1d0] sm:$0xff] %vm691_vm7, %v3739_v31  ;;  %6740 = vxpose.xlu0.b32.cont [3/16] %v6676_v61, 128  ;;  %v6202_v21 = vld [vmem:[#allocation2 + $0x1c0] sm:$0xff] }
 0x257   :  { %4093 = vst.msk [vmem:[#allocation2 + $0x1d0] sm:$0xff] %vm1015_vm8, %v4059_v55  ;;  %6642 = vmatmul.mubr.bf16.gmra.mrb[48].mxu1 %v6202_v21  ;;  %v11938_v14 = vpop.f32.mrb[12].mxu1 }
 0x258   :  { %v6573_v34 = vpop.f32.mrb[13].mxu1  ;;  %7998 = vmatprep.mubr.msk.bf16.mxu1 %vm143_vm6, %v6205_v9 }
 0x259   :  { %v4236_v23 = vpop.permute.xlu1 %4235  ;;  %v11941_v28 = vpop.f32.mrb[14].mxu1 }
 0x25a   :  { %4270 = vst.msk [vmem:[#allocation2 + $0x1d0] sm:$0xff] %vm1193_vm9, %v4236_v23  ;;  %v1717_v16 = vpop.permute.xlu0 %1716  ;;  %6741 = vxpose.xlu0.b32.cont [4/16] %v6677_v40, 128  ;;  %v6576_v6 = vpop.f32.mrb[15].mxu1 }
 0x25b   :  { %1752 = vst.msk [vmem:[#allocation2 + $0xd0] sm:$0xff] %vm1738_vm10, %v1717_v16 }
 0x25e   :  { %6742 = vxpose.xlu0.b32.cont [5/16] %v6678_v26, 128 }
 0x25f   :  { %v2038_v12 = vpop.permute.xlu0 %2037 }
 0x260   :  { %v4780_v49 = vpop.permute.xlu1 %4779  ;;  %2073 = vst.msk [vmem:[#allocation2 + $0xd0] sm:$0xff] %vm2059_vm11, %v2038_v12  ;;  %v6209_v12 = vld [vmem:[#allocation2 + $0x1f8] sm:$0xff] }
 0x261   :  { %4814 = vst.msk [vmem:[#allocation2 + $0x1d0] sm:$0xff] %vm1738_vm10, %v4780_v49 }
 0x262   :  { %6743 = vxpose.xlu0.b32.cont [6/16] %v6679_v33, 128 }
 0x263   :  { %v2216_v4 = vpop.permute.xlu0 %2215  ;;  %v6443_v37 = vpop.f32.mrb[12].mxu0 }
 0x264   :  { %v5100_v54 = vpop.permute.xlu1 %5099  ;;  %2251 = vst.msk [vmem:[#allocation2 + $0xd0] sm:$0xff] %vm2237_vm12, %v2216_v4  ;;  %v6444_v57 = vadd.f32 %v11837_v32, %v6443_v37  ;;  %v6445_v60 = vpop.f32.mrb[13].mxu0 }
 0x265   :  { %5134 = vst.msk [vmem:[#allocation2 + $0x1d0] sm:$0xff] %vm2059_vm11, %v5100_v54  ;;  %v6446_v43 = vpop.f32.mrb[14].mxu0 }
 0x266   :  { %v6680_v2 = vmax.f32 %v6444_v57, 0.0  ;;  %v6447_v13 = vadd.f32 %v11837_v32, %v6446_v43  ;;  %v6448_v3 = vpop.f32.mrb[15].mxu0 }
 0x268   :  { %v5277_v7 = vpop.permute.xlu1 %5276  ;;  %v6681_v8 = vmax.f32 %v6447_v13, 0.0  ;;  %6744 = vxpose.xlu0.b32.cont [7/16] %v6680_v2, 128 }
 0x269   :  { %5311 = vst.msk [vmem:[#allocation2 + $0x1d0] sm:$0xff] %vm2237_vm12, %v5277_v7 }
 0x26a   :  { %v2761_v46 = vpop.permute.xlu0 %2760 }
 0x26b   :  { %2796 = vst.msk [vmem:[#allocation2 + $0xd0] sm:$0xff] %vm2782_vm13, %v2761_v46 }
 0x26c   :  { %6745 = vxpose.xlu0.b32.cont [8/16] %v6681_v8, 128 }
 0x26e   :  { %v5821_v42 = vpop.permute.xlu1 %5820 }
 0x26f   :  { %5855 = vst.msk [vmem:[#allocation2 + $0x1d0] sm:$0xff] %vm2782_vm13, %v5821_v42 }
 0x272   :  { %v11969_v15 = vpop.f32.mrb[16].mxu1  ;;  %v3741_v18 = vpop.permute.xlu0 %3740  ;;  %v6172_v35 = vld [vmem:[#allocation2 + $0xd0] sm:$0xff] }
 0x273   :  { %v4061_v56 = vpop.permute.xlu1 %4060  ;;  %3774 = vst.msk [vmem:[#allocation2 + $0x1e0] sm:$0xff] %vm691_vm7, %v3741_v18  ;;  %6522 = vmatmul.mubr.bf16.gmra.mrb[52].mxu0 %v6172_v35  ;;  %v6581_v10 = vpop.f32.mrb[17].mxu1 }
 0x274   :  { %4094 = vst.msk [vmem:[#allocation2 + $0x1e0] sm:$0xff] %vm1015_vm8, %v4061_v56  ;;  %v11973_v19 = vpop.f32.mrb[18].mxu1  ;;  %7983 = vmatprep.mubr.msk.bf16.mxu0 %vm143_vm6, %v6175_v17 }
 0x275   :  { %v6584_v39 = vpop.f32.mrb[19].mxu1 }
 0x276   :  { %v4238_v29 = vpop.permute.xlu0 %4237  ;;  %v6204_v27 = vld [vmem:[#allocation2 + $0x1d0] sm:$0xff] }
 0x277   :  { %4271 = vst.msk [vmem:[#allocation2 + $0x1e0] sm:$0xff] %vm1193_vm9, %v4238_v29  ;;  %6650 = vmatmul.mubr.bf16.gmra.mrb[52].mxu1 %v6204_v27 }
 0x278   :  { %v1719_v53 = vpop.permute.xlu1 %1718  ;;  %7999 = vmatprep.mubr.msk.bf16.mxu1 %vm143_vm6, %v6207_v24 }
 0x279   :  { %1753 = vst.msk [vmem:[#allocation2 + $0xe0] sm:$0xff] %vm1738_vm10, %v1719_v53 }
 0x27c   :  { %v4782_v59 = vpop.permute.xlu0 %4781 }
 0x27d   :  { %4815 = vst.msk [vmem:[#allocation2 + $0x1e0] sm:$0xff] %vm1738_vm10, %v4782_v59  ;;  %v2040_v51 = vpop.permute.xlu1 %2039 }
 0x27e   :  { %2074 = vst.msk [vmem:[#allocation2 + $0xe0] sm:$0xff] %vm2059_vm11, %v2040_v51 }
 0x280   :  { %v5102_v61 = vpop.permute.xlu0 %5101  ;;  %v6451_v5 = vpop.f32.mrb[16].mxu0 }
 0x281   :  { %5135 = vst.msk [vmem:[#allocation2 + $0x1e0] sm:$0xff] %vm2059_vm11, %v5102_v61  ;;  %v2218_v25 = vpop.permute.xlu1 %2217  ;;  %v6452_v55 = vadd.f32 %v11837_v32, %v6451_v5  ;;  %v6453_v31 = vpop.f32.mrb[17].mxu0 }
 0x282   :  { %2252 = vst.msk [vmem:[#allocation2 + $0xe0] sm:$0xff] %vm2237_vm12, %v2218_v25  ;;  %v6454_v9 = vpop.f32.mrb[18].mxu0 }
 0x283   :  { %v6682_v40 = vmax.f32 %v6452_v55, 0.0  ;;  %v6455_v21 = vadd.f32 %v11837_v32, %v6454_v9  ;;  %v6456_v0 = vpop.f32.mrb[19].mxu0 }
 0x284   :  { %v5279_v34 = vpop.permute.xlu0 %5278 }
 0x285   :  { %5312 = vst.msk [vmem:[#allocation2 + $0x1e0] sm:$0xff] %vm2237_vm12, %v5279_v34  ;;  %v6683_v23 = vmax.f32 %v6455_v21, 0.0  ;;  %6746 = vxpose.xlu0.b32.cont [9/16] %v6682_v40, 128  ;;  %v6548_v34 = vadd.f32 %v11837_v32, %v11541_v48  ;;  %v6559_v48 = vadd.f32 %v11837_v32, %v11676_v36  ;;  %v6575_v36 = vadd.f32 %v11837_v32, %v11941_v28 }
 0x288   :  { %v2763_v16 = vpop.permute.xlu1 %2762 }
 0x289   :  { %2797 = vst.msk [vmem:[#allocation2 + $0xe0] sm:$0xff] %vm2782_vm13, %v2763_v16  ;;  %6747 = vxpose.xlu0.b32.cont [10/16] %v6683_v23, 128 }
 0x28b   :  { %v5823_v26 = vpop.permute.xlu0 %5822 }
 0x28c   :  { %5856 = vst.msk [vmem:[#allocation2 + $0x1e0] sm:$0xff] %vm2782_vm13, %v5823_v26 }
 0x28f   :  { %v3743_v22 = vpop.permute.xlu1 %3742  ;;  %v4063_v6 = vpop.permute.xlu0 %4062 }
 0x290   :  { %3775 = vst.msk [vmem:[#allocation2 + $0x1f0] sm:$0xff] %vm691_vm7, %v3743_v22  ;;  %v6174_v1 = vld [vmem:[#allocation2 + $0xe0] sm:$0xff]  ;;  %v11989_v33 = vpop.f32.mrb[20].mxu1  ;;  %v6706_v22 = vmax.f32 %v6548_v34, 0.0 }
 0x291   :  { %4095 = vst.msk [vmem:[#allocation2 + $0x1f0] sm:$0xff] %vm1015_vm8, %v4063_v6  ;;  %6530 = vmatmul.mubr.bf16.gmra.mrb[56].mxu0 %v6174_v1  ;;  %v6589_v44 = vpop.f32.mrb[21].mxu1  ;;  %v6551_v6 = vadd.f32 %v11837_v32, %v11565_v58  ;;  %v6567_v58 = vadd.f32 %v11837_v32, %v11847_v62  ;;  %v6580_v62 = vadd.f32 %v11837_v32, %v11969_v15 }
 0x292   :  { %7984 = vmatprep.mubr.msk.bf16.mxu0 %vm143_vm6, %v6177_v41  ;;  %v11993_v11 = vpop.f32.mrb[22].mxu1  ;;  %v6556_v44 = vadd.f32 %v11837_v32, %v11668_v38  ;;  %v6572_v38 = vadd.f32 %v11837_v32, %v11938_v14  ;;  %v6588_v15 = vadd.f32 %v11837_v32, %v11989_v33 }
 0x293   :  { %v6206_v63 = vld [vmem:[#allocation2 + $0x1e0] sm:$0xff]  ;;  %v6592_v20 = vpop.f32.mrb[23].mxu1  ;;  %v4240_v45 = vpop.permute.xlu1 %4239  ;;  %v6707_v1 = vmax.f32 %v6551_v6, 0.0 }
 0x294   :  { %6658 = vmatmul.mubr.bf16.gmra.mrb[56].mxu1 %v6206_v63  ;;  %4272 = vst.msk [vmem:[#allocation2 + $0x1f0] sm:$0xff] %vm1193_vm9, %v4240_v45  ;;  %v6709_v63 = vmax.f32 %v6559_v48, 0.0  ;;  %v6564_v20 = vadd.f32 %v11837_v32, %v11826_v47 }
 0x295   :  { %8000 = vmatprep.mubr.msk.bf16.mxu1 %vm143_vm6, %v6209_v12  ;;  %v6708_v12 = vmax.f32 %v6556_v44, 0.0 }
 0x296   :  { %v1721_v49 = vpop.permute.xlu0 %1720  ;;  %v6710_v45 = vmax.f32 %v6564_v20, 0.0 }
 0x297   :  { %1754 = vst.msk [vmem:[#allocation2 + $0xf0] sm:$0xff] %vm1738_vm10, %v1721_v49  ;;  %v6711_v49 = vmax.f32 %v6567_v58, 0.0 }
 0x29a   :  { %v2042_v50 = vpop.permute.xlu0 %2041 }
 0x29b   :  { %2075 = vst.msk [vmem:[#allocation2 + $0xf0] sm:$0xff] %vm2059_vm11, %v2042_v50 }
 0x29d   :  { %v6459_v52 = vpop.f32.mrb[20].mxu0 }
 0x29e   :  { %v2220_v30 = vpop.permute.xlu0 %2219  ;;  %v6460_v4 = vadd.f32 %v11837_v32, %v6459_v52  ;;  %v6461_v37 = vpop.f32.mrb[21].mxu0  ;;  %v6712_v52 = vmax.f32 %v6572_v38, 0.0 }
 0x29f   :  { %2253 = vst.msk [vmem:[#allocation2 + $0xf0] sm:$0xff] %vm2237_vm12, %v2220_v30  ;;  %v6462_v54 = vpop.f32.mrb[22].mxu0  ;;  %v6713_v37 = vmax.f32 %v6575_v36, 0.0 }
 0x2a0   :  { %v6684_v57 = vmax.f32 %v6460_v4, 0.0  ;;  %v6463_v60 = vadd.f32 %v11837_v32, %v6462_v54  ;;  %v6464_v43 = vpop.f32.mrb[23].mxu0 }
 0x2a1   :  { %v6714_v43 = vmax.f32 %v6580_v62, 0.0 }
 0x2a2   :  { %v2765_v2 = vpop.permute.xlu0 %2764  ;;  %v6685_v13 = vmax.f32 %v6463_v60, 0.0  ;;  %6748 = vxpose.xlu0.b32.cont [11/16] %v6684_v57, 128 }
 0x2a3   :  { %2798 = vst.msk [vmem:[#allocation2 + $0xf0] sm:$0xff] %vm2782_vm13, %v2765_v2  ;;  %v6583_v2 = vadd.f32 %v11837_v32, %v11973_v19 }
 0x2a6   :  { %6749 = vxpose.xlu0.b32.cont [12/16] %v6685_v13, 128 }
 0x2aa   :  { %v6176_v3 = vld [vmem:[#allocation2 + $0xf0] sm:$0xff] }
 0x2ab   :  { %6538 = vmatmul.mubr.bf16.gmra.mrb[60].mxu0 %v6176_v3  ;;  %v4784_v46 = vpop.permute.xlu1 %4783 }
 0x2ac   :  { %4816 = vst.msk [vmem:[#allocation2 + $0x1f0] sm:$0xff] %vm1738_vm10, %v4784_v46  ;;  %v6715_v46 = vmax.f32 %v6583_v2, 0.0 }
 0x2ad   :  { %v12003_v7 = vpop.f32.mrb[24].mxu1 }
 0x2ae   :  { %v6597_v8 = vpop.f32.mrb[25].mxu1  ;;  %v6596_v19 = vadd.f32 %v11837_v32, %v12003_v7 }
 0x2af   :  { %v12005_v42 = vpop.f32.mrb[26].mxu1  ;;  %v5104_v18 = vpop.permute.xlu1 %5103 }
 0x2b0   :  { %v6600_v17 = vpop.f32.mrb[27].mxu1  ;;  %5136 = vst.msk [vmem:[#allocation2 + $0x1f0] sm:$0xff] %vm2059_vm11, %v5104_v18  ;;  %v6591_v18 = vadd.f32 %v11837_v32, %v11993_v11 }
 0x2b1   :  { %v6716_v17 = vmax.f32 %v6588_v15, 0.0 }
 0x2b3   :  { %v5281_v24 = vpop.permute.xlu1 %5280 }
 0x2b4   :  { %5313 = vst.msk [vmem:[#allocation2 + $0x1f0] sm:$0xff] %vm2237_vm12, %v5281_v24 }
 0x2b5   :  { %v6467_v56 = vpop.f32.mrb[24].mxu0 }
 0x2b6   :  { %v6468_v35 = vadd.f32 %v11837_v32, %v6467_v56  ;;  %v6469_v10 = vpop.f32.mrb[25].mxu0  ;;  %v6717_v56 = vmax.f32 %v6591_v18, 0.0 }
 0x2b7   :  { %v6470_v39 = vpop.f32.mrb[26].mxu0  ;;  %v5825_v51 = vpop.permute.xlu1 %5824  ;;  %v6599_v10 = vadd.f32 %v11837_v32, %v12005_v42 }
 0x2b8   :  { %v6686_v29 = vmax.f32 %v6468_v35, 0.0  ;;  %v6471_v27 = vadd.f32 %v11837_v32, %v6470_v39  ;;  %v6472_v53 = vpop.f32.mrb[27].mxu0  ;;  %5857 = vst.msk [vmem:[#allocation2 + $0x1f0] sm:$0xff] %vm2782_vm13, %v5825_v51  ;;  %v6718_v35 = vmax.f32 %v6596_v19, 0.0 }
 0x2ba   :  { %v6687_v59 = vmax.f32 %v6471_v27, 0.0  ;;  %6750 = vxpose.xlu0.b32.cont [13/16] %v6686_v29, 128  ;;  %v6719_v29 = vmax.f32 %v6599_v10, 0.0 }
 0x2be   :  { %6751 = vxpose.xlu0.b32.cont [14/16] %v6687_v59, 128 }
 0x2bf   :  { %v6208_v5 = vld [vmem:[#allocation2 + $0x1f0] sm:$0xff] }
 0x2c0   :  { %6666 = vmatmul.mubr.bf16.gmra.mrb[60].mxu1 %v6208_v5 }
 0x2c2   :  { %v6475_v61 = vpop.f32.mrb[28].mxu0 }
 0x2c3   :  { %v6476_v25 = vadd.f32 %v11837_v32, %v6475_v61  ;;  %v6477_v55 = vpop.f32.mrb[29].mxu0 }
 0x2c4   :  { %v6478_v31 = vpop.f32.mrb[30].mxu0 }
 0x2c5   :  { %v6688_v9 = vmax.f32 %v6476_v25, 0.0  ;;  %v6479_v40 = vadd.f32 %v11837_v32, %v6478_v31  ;;  %v6480_v21 = vpop.f32.mrb[31].mxu0 }
 0x2c7   :  { %v6689_v0 = vmax.f32 %v6479_v40, 0.0  ;;  %6752 = vxpose.xlu0.b32.cont [15/16] %v6688_v9, 128 }
 0x2ca   :  { %v6603_v23 = vpop.f32.mrb[28].mxu1 }
 0x2cb   :  { %v6605_v16 = vpop.f32.mrb[29].mxu1  ;;  %6753 = vxpose.xlu0.b32.end [16/16] %v6689_v0, 128  ;;  %v6604_v27 = vadd.f32 %v11837_v32, %v6603_v23 }
 0x2cc   :  { %v12017_v26 = vpop.f32.mrb[30].mxu1 }
 0x2cd   :  { %v6608_v41 = vpop.f32.mrb[31].mxu1  ;;  %v6720_v7 = vmax.f32 %v6604_v27, 0.0  ;;  %v6607_v61 = vadd.f32 %v11837_v32, %v12017_v26 }
 0x2cf   :  { %6834 = vxpose.xlu0.b32.start [1/16] %v6706_v22, 128  ;;  %v6721_v31 = vmax.f32 %v6607_v61, 0.0 }
 0x2d3   :  { %6835 = vxpose.xlu0.b32.cont [2/16] %v6707_v1, 128 }
 0x2d7   :  { %6836 = vxpose.xlu0.b32.cont [3/16] %v6708_v12, 128 }
 0x2db   :  { %6837 = vxpose.xlu0.b32.cont [4/16] %v6709_v63, 128 }
 0x2df   :  { %6838 = vxpose.xlu0.b32.cont [5/16] %v6710_v45, 128 }
 0x2e3   :  { %6839 = vxpose.xlu0.b32.cont [6/16] %v6711_v49, 128 }
 0x2e4   :  { %v12031_v50 = vpop.f32.mrb[32].mxu1 }
 0x2e5   :  { %v6613_v30 = vpop.f32.mrb[33].mxu1 }
 0x2e6   :  { %v12035_v4 = vpop.f32.mrb[34].mxu1 }
 0x2e7   :  { %v6616_v47 = vpop.f32.mrb[35].mxu1  ;;  %6840 = vxpose.xlu0.b32.cont [7/16] %v6712_v52, 128 }
 0x2ea   :  { %v6483_v54 = vpop.f32.mrb[32].mxu0 }
 0x2eb   :  { %v6484_v57 = vadd.f32 %v11837_v32, %v6483_v54  ;;  %v6485_v14 = vpop.f32.mrb[33].mxu0  ;;  %6841 = vxpose.xlu0.b32.cont [8/16] %v6713_v37, 128 }
 0x2ec   :  { %v6486_v60 = vpop.f32.mrb[34].mxu0 }
 0x2ed   :  { %v6690_v28 = vmax.f32 %v6484_v57, 0.0  ;;  %v6487_v13 = vadd.f32 %v11837_v32, %v6486_v60  ;;  %v6488_v3 = vpop.f32.mrb[35].mxu0 }
 0x2ef   :  { %v6691_v8 = vmax.f32 %v6487_v13, 0.0  ;;  %6770 = vxpose.xlu1.b32.start [1/16] %v6690_v28, 128  ;;  %6842 = vxpose.xlu0.b32.cont [9/16] %v6714_v43, 128 }
 0x2f3   :  { %6771 = vxpose.xlu1.b32.cont [2/16] %v6691_v8, 128  ;;  %6843 = vxpose.xlu0.b32.cont [10/16] %v6715_v46, 128 }
 0x2f7   :  { %6844 = vxpose.xlu0.b32.cont [11/16] %v6716_v17, 128 }
 0x2fb   :  { %6845 = vxpose.xlu0.b32.cont [12/16] %v6717_v56, 128 }
 0x2ff   :  { %v6491_v24 = vpop.f32.mrb[36].mxu0  ;;  %6846 = vxpose.xlu0.b32.cont [13/16] %v6718_v35, 128 }
 0x300   :  { %v6492_v33 = vadd.f32 %v11837_v32, %v6491_v24  ;;  %v6493_v39 = vpop.f32.mrb[37].mxu0 }
 0x301   :  { %v6494_v53 = vpop.f32.mrb[38].mxu0 }
 0x302   :  { %v6692_v11 = vmax.f32 %v6492_v33, 0.0  ;;  %v6495_v59 = vadd.f32 %v11837_v32, %v6494_v53  ;;  %v6496_v51 = vpop.f32.mrb[39].mxu0 }
 0x303   :  { %6847 = vxpose.xlu0.b32.cont [14/16] %v6719_v29, 128 }
 0x304   :  { %6772 = vxpose.xlu1.b32.cont [3/16] %v6692_v11, 128  ;;  %v6693_v42 = vmax.f32 %v6495_v59, 0.0 }
 0x306   :  { %v12056_v5 = vpop.f32.mrb[36].mxu1 }
 0x307   :  { %v6621_v25 = vpop.f32.mrb[37].mxu1  ;;  %6848 = vxpose.xlu0.b32.cont [15/16] %v6720_v7, 128 }
 0x308   :  { %6773 = vxpose.xlu1.b32.cont [4/16] %v6693_v42, 128  ;;  %v12058_v55 = vpop.f32.mrb[38].mxu1 }
 0x309   :  { %v6624_v9 = vpop.f32.mrb[39].mxu1 }
 0x30a   :  { %v6499_v40 = vpop.f32.mrb[40].mxu0 }
 0x30b   :  { %6849 = vxpose.xlu0.b32.end [16/16] %v6721_v31, 128  ;;  %v6500_v21 = vadd.f32 %v11837_v32, %v6499_v40  ;;  %v6501_v0 = vpop.f32.mrb[41].mxu0 }
 0x30c   :  { %v6502_v34 = vpop.f32.mrb[42].mxu0 }
 0x30d   :  { %v6694_v16 = vmax.f32 %v6500_v21, 0.0  ;;  %v6503_v26 = vadd.f32 %v11837_v32, %v6502_v34  ;;  %v6504_v22 = vpop.f32.mrb[43].mxu0 }
 0x30e   :  { %v12061_v23 = vpop.f32.mrb[40].mxu1 }
 0x30f   :  { %v6629_v6 = vpop.f32.mrb[41].mxu1  ;;  %v6695_v1 = vmax.f32 %v6503_v26, 0.0  ;;  %6774 = vxpose.xlu1.b32.cont [5/16] %v6694_v16, 128  ;;  %v6754_v39 = vpop.trf.xlu0 }
 0x310   :  { %v12064_v41 = vpop.f32.mrb[42].mxu1  ;;  %6802 = vst [vmem:[%s12310_s3] sm:$0xff] %v6754_v39 }
 0x311   :  { %v6632_v44 = vpop.f32.mrb[43].mxu1  ;;  %v6631_v39 = vadd.f32 %v11837_v32, %v12064_v41 }
 0x312   :  { %v6507_v12 = vpop.f32.mrb[44].mxu0 }
 0x313   :  { %6775 = vxpose.xlu1.b32.cont [6/16] %v6695_v1, 128  ;;  %v6508_v48 = vadd.f32 %v11837_v32, %v6507_v12  ;;  %v6509_v63 = vpop.f32.mrb[45].mxu0  ;;  %v6755_v53 = vpop.trf.xlu0 }
 0x314   :  { %v6510_v20 = vpop.f32.mrb[46].mxu0  ;;  %6804 = vst [vmem:[%s12310_s3 + $0x10] sm:$0xff] %v6755_v53  ;;  %v8164_v53 = vld [vmem:[%s12309_s2] ss:$0 sm:$0xff] }
 0x315   :  { %v6696_v45 = vmax.f32 %v6508_v48, 0.0  ;;  %v6511_v58 = vadd.f32 %v11837_v32, %v6510_v20  ;;  %v6512_v49 = vpop.f32.mrb[47].mxu0 }
 0x316   :  { %v12068_v38 = vpop.f32.mrb[44].mxu1 }
 0x317   :  { %v6637_v52 = vpop.f32.mrb[45].mxu1  ;;  %6776 = vxpose.xlu1.b32.cont [7/16] %v6696_v45, 128  ;;  %v6697_v47 = vmax.f32 %v6511_v58, 0.0  ;;  %v6756_v11 = vpop.trf.xlu0 }
 0x318   :  { %v12070_v36 = vpop.f32.mrb[46].mxu1  ;;  %6806 = vst [vmem:[%s12310_s3 + $0x20] sm:$0xff] %v6756_v11  ;;  %v6636_v11 = vadd.f32 %v8164_v53, %v12068_v38 }
 0x319   :  { %v6640_v30 = vpop.f32.mrb[47].mxu1 }
 0x31a   :  { %v6728_v41 = vmax.f32 %v6636_v11, 0.0 }
 0x31b   :  { %6777 = vxpose.xlu1.b32.cont [8/16] %v6697_v47, 128  ;;  %v6757_v59 = vpop.trf.xlu0 }
 0x31c   :  { %6808 = vst [vmem:[%s12310_s3 + $0x30] sm:$0xff] %v6757_v59  ;;  %v6639_v59 = vadd.f32 %v8164_v53, %v12070_v36 }
 0x31f   :  { %v6758_v51 = vpop.trf.xlu0 }
 0x320   :  { %6810 = vst [vmem:[%s12310_s3 + $0x40] sm:$0xff] %v6758_v51 }
 0x323   :  { %v6759_v7 = vpop.trf.xlu0 }
 0x324   :  { %6812 = vst [vmem:[%s12310_s3 + $0x50] sm:$0xff] %v6759_v7  ;;  %v6729_v7 = vmax.f32 %v6639_v59, 0.0 }
 0x326   :  { %v6515_v37 = vpop.f32.mrb[48].mxu0 }
 0x327   :  { %v6516_v62 = vadd.f32 %v11837_v32, %v6515_v37  ;;  %v6517_v54 = vpop.f32.mrb[49].mxu0  ;;  %v6760_v42 = vpop.trf.xlu0 }
 0x328   :  { %v6518_v57 = vpop.f32.mrb[50].mxu0  ;;  %6814 = vst [vmem:[%s12310_s3 + $0x60] sm:$0xff] %v6760_v42 }
 0x329   :  { %v6698_v14 = vmax.f32 %v6516_v62, 0.0  ;;  %v6519_v60 = vadd.f32 %v11837_v32, %v6518_v57  ;;  %v6520_v43 = vpop.f32.mrb[51].mxu0  ;;  %v6612_v57 = vadd.f32 %v11837_v32, %v12031_v50  ;;  %v6620_v50 = vadd.f32 %v11837_v32, %v12056_v5 }
 0x32a   :  { %v12074_v2 = vpop.f32.mrb[48].mxu1  ;;  %v6628_v5 = vadd.f32 %v11837_v32, %v12061_v23 }
 0x32b   :  { %v6645_v28 = vpop.f32.mrb[49].mxu1  ;;  %v6699_v13 = vmax.f32 %v6519_v60, 0.0  ;;  %6778 = vxpose.xlu1.b32.cont [9/16] %v6698_v14, 128  ;;  %v6761_v26 = vpop.trf.xlu0  ;;  %v6722_v43 = vmax.f32 %v6612_v57, 0.0 }
 0x32c   :  { %v12076_v3 = vpop.f32.mrb[50].mxu1  ;;  %6816 = vst [vmem:[%s12310_s3 + $0x70] sm:$0xff] %v6761_v26  ;;  %v6615_v28 = vadd.f32 %v11837_v32, %v12035_v4  ;;  %v6623_v4 = vadd.f32 %v11837_v32, %v12058_v55  ;;  %v6726_v55 = vmax.f32 %v6628_v5, 0.0 }
 0x32d   :  { %v6648_v8 = vpop.f32.mrb[51].mxu1 }
 0x32e   :  { %v6723_v8 = vmax.f32 %v6615_v28, 0.0 }
 0x32f   :  { %6779 = vxpose.xlu1.b32.cont [10/16] %v6699_v13, 128  ;;  %v6762_v44 = vpop.trf.xlu0 }
 0x330   :  { %6818 = vst [vmem:[%s12310_s3 + $0x80] sm:$0xff] %v6762_v44 }
 0x333   :  { %v6763_v12 = vpop.trf.xlu0 }
 0x334   :  { %6820 = vst [vmem:[%s12310_s3 + $0x90] sm:$0xff] %v6763_v12 }
 0x337   :  { %v6764_v48 = vpop.trf.xlu0 }
 0x338   :  { %6822 = vst [vmem:[%s12310_s3 + $0xa0] sm:$0xff] %v6764_v48 }
 0x33b   :  { %v6765_v63 = vpop.trf.xlu0 }
 0x33c   :  { %6824 = vst [vmem:[%s12310_s3 + $0xb0] sm:$0xff] %v6765_v63 }
 0x33f   :  { %v6766_v20 = vpop.trf.xlu0 }
 0x340   :  { %6826 = vst [vmem:[%s12310_s3 + $0xc0] sm:$0xff] %v6766_v20 }
 0x343   :  { %v6767_v30 = vpop.trf.xlu0 }
 0x344   :  { %6828 = vst [vmem:[%s12310_s3 + $0xd0] sm:$0xff] %v6767_v30 }
 0x346   :  { %v6523_v46 = vpop.f32.mrb[52].mxu0 }
 0x347   :  { %v6524_v15 = vadd.f32 %v11837_v32, %v6523_v46  ;;  %v6525_v17 = vpop.f32.mrb[53].mxu0  ;;  %v6768_v54 = vpop.trf.xlu0 }
 0x348   :  { %v6526_v18 = vpop.f32.mrb[54].mxu0  ;;  %6830 = vst [vmem:[%s12310_s3 + $0xe0] sm:$0xff] %v6768_v54 }
 0x349   :  { %v6700_v56 = vmax.f32 %v6524_v15, 0.0  ;;  %v6527_v19 = vadd.f32 %v11837_v32, %v6526_v18  ;;  %v6528_v35 = vpop.f32.mrb[55].mxu0  ;;  %v6724_v15 = vmax.f32 %v6620_v50, 0.0  ;;  %v6725_v18 = vmax.f32 %v6623_v4, 0.0 }
 0x34a   :  { %v12080_v10 = vpop.f32.mrb[52].mxu1 }
 0x34b   :  { %6780 = vxpose.xlu1.b32.cont [11/16] %v6700_v56, 128  ;;  %v6653_v24 = vpop.f32.mrb[53].mxu1  ;;  %v6701_v29 = vmax.f32 %v6527_v19, 0.0  ;;  %v6769_v60 = vpop.trf.xlu0 }
 0x34c   :  { %v12082_v33 = vpop.f32.mrb[54].mxu1  ;;  %6832 = vst [vmem:[%s12310_s3 + $0xf0] sm:$0xff] %v6769_v60 }
 0x34d   :  { %v6656_v27 = vpop.f32.mrb[55].mxu1 }
 0x34e   :  { %v6727_v27 = vmax.f32 %v6631_v39, 0.0 }
 0x34f   :  { %6781 = vxpose.xlu1.b32.cont [12/16] %v6701_v29, 128  ;;  %v6850_v13 = vpop.trf.xlu0 }
 0x350   :  { %8001 = vst [vmem:[%s12310_s3 + $0x100] sm:$0xff] %v6850_v13 }
 0x353   :  { %v6851_v46 = vpop.trf.xlu0 }
 0x354   :  { %8003 = vst [vmem:[%s12310_s3 + $0x110] sm:$0xff] %v6851_v46 }
 0x357   :  { %v6852_v17 = vpop.trf.xlu0 }
 0x358   :  { %8005 = vst [vmem:[%s12310_s3 + $0x120] sm:$0xff] %v6852_v17 }
 0x35b   :  { %v6853_v24 = vpop.trf.xlu0 }
 0x35c   :  { %8007 = vst [vmem:[%s12310_s3 + $0x130] sm:$0xff] %v6853_v24 }
 0x35f   :  { %v6854_v23 = vpop.trf.xlu0 }
 0x360   :  { %8009 = vst [vmem:[%s12310_s3 + $0x140] sm:$0xff] %v6854_v23 }
 0x364   :  { %v6531_v61 = vpop.f32.mrb[56].mxu0 }
 0x365   :  { %v6532_v25 = vadd.f32 %v11837_v32, %v6531_v61  ;;  %v6533_v31 = vpop.f32.mrb[57].mxu0  ;;  %v6644_v61 = vadd.f32 %v8164_v53, %v12074_v2 }
 0x366   :  { %v6534_v9 = vpop.f32.mrb[58].mxu0 }
 0x367   :  { %v12106_v40 = vpop.f32.mrb[56].mxu1  ;;  %v6702_v21 = vmax.f32 %v6532_v25, 0.0  ;;  %v6535_v0 = vadd.f32 %v11837_v32, %v6534_v9  ;;  %v6536_v34 = vpop.f32.mrb[59].mxu0  ;;  %v6730_v42 = vmax.f32 %v6644_v61, 0.0  ;;  %v6647_v25 = vadd.f32 %v8164_v53, %v12076_v3 }
 0x368   :  { %v6661_v16 = vpop.f32.mrb[57].mxu1  ;;  %v6652_v9 = vadd.f32 %v8164_v53, %v12080_v10 }
 0x369   :  { %v12109_v22 = vpop.f32.mrb[58].mxu1  ;;  %v6703_v6 = vmax.f32 %v6535_v0, 0.0  ;;  %6782 = vxpose.xlu1.b32.cont [13/16] %v6702_v21, 128  ;;  %v6731_v31 = vmax.f32 %v6647_v25, 0.0  ;;  %v6655_v0 = vadd.f32 %v8164_v53, %v12082_v33  ;;  %v6660_v16 = vadd.f32 %v8164_v53, %v12106_v40 }
 0x36a   :  { %v6664_v1 = vpop.f32.mrb[59].mxu1  ;;  %v6732_v21 = vmax.f32 %v6652_v9, 0.0 }
 0x36b   :  { %v6733_v34 = vmax.f32 %v6655_v0, 0.0  ;;  %v6734_v26 = vmax.f32 %v6660_v16, 0.0 }
 0x36d   :  { %6783 = vxpose.xlu1.b32.cont [14/16] %v6703_v6, 128  ;;  %v6663_v6 = vadd.f32 %v8164_v53, %v12109_v22 }
 0x36f   :  { %v6735_v44 = vmax.f32 %v6663_v6, 0.0 }
 0x37e   :  { %v6539_v45 = vpop.f32.mrb[60].mxu0 }
 0x37f   :  { %v6540_v58 = vadd.f32 %v11837_v32, %v6539_v45  ;;  %v6541_v49 = vpop.f32.mrb[61].mxu0 }
 0x380   :  { %v6542_v52 = vpop.f32.mrb[62].mxu0 }
 0x381   :  { %v6704_v47 = vmax.f32 %v6540_v58, 0.0  ;;  %v6543_v37 = vadd.f32 %v11837_v32, %v6542_v52  ;;  %v6544_v62 = vpop.f32.mrb[63].mxu0  ;;  %v6855_v32 = vpop.trf.xlu0 }
 0x382   :  { %8011 = vst [vmem:[%s12310_s3 + $0x150] sm:$0xff] %v6855_v32 }
 0x383   :  { %6784 = vxpose.xlu1.b32.cont [15/16] %v6704_v47, 128  ;;  %v6705_v14 = vmax.f32 %v6543_v37, 0.0 }
 0x385   :  { %v6856_v51 = vpop.trf.xlu0 }
 0x386   :  { %8013 = vst [vmem:[%s12310_s3 + $0x160] sm:$0xff] %v6856_v51 }
 0x387   :  { %6785 = vxpose.xlu1.b32.end [16/16] %v6705_v14, 128 }
 0x389   :  { %v6857_v38 = vpop.trf.xlu0 }
 0x38a   :  { %8015 = vst [vmem:[%s12310_s3 + $0x170] sm:$0xff] %v6857_v38 }
 0x38b   :  { %6866 = vxpose.xlu1.b32.start [1/16] %v6722_v43, 128 }
 0x38d   :  { %v6858_v36 = vpop.trf.xlu0 }
 0x38e   :  { %8017 = vst [vmem:[%s12310_s3 + $0x180] sm:$0xff] %v6858_v36 }
 0x38f   :  { %6867 = vxpose.xlu1.b32.cont [2/16] %v6723_v8, 128 }
 0x391   :  { %v6859_v2 = vpop.trf.xlu0 }
 0x392   :  { %8019 = vst [vmem:[%s12310_s3 + $0x190] sm:$0xff] %v6859_v2 }
 0x393   :  { %6868 = vxpose.xlu1.b32.cont [3/16] %v6724_v15, 128  ;;  %v6667_v56 = vpop.f32.mrb[60].mxu1 }
 0x394   :  { %v6669_v19 = vpop.f32.mrb[61].mxu1  ;;  %v6668_v33 = vadd.f32 %v8164_v53, %v6667_v56 }
 0x395   :  { %v6670_v35 = vpop.f32.mrb[62].mxu1  ;;  %v6860_v3 = vpop.trf.xlu0 }
 0x396   :  { %v6672_v29 = vpop.f32.mrb[63].mxu1  ;;  %8021 = vst [vmem:[%s12310_s3 + $0x1a0] sm:$0xff] %v6860_v3  ;;  %v6736_v40 = vmax.f32 %v6668_v33, 0.0  ;;  %v6671_v48 = vadd.f32 %v8164_v53, %v6670_v35 }
 0x397   :  { %6869 = vxpose.xlu1.b32.cont [4/16] %v6725_v18, 128 }
 0x398   :  { %v6737_v63 = vmax.f32 %v6671_v48, 0.0 }
 0x399   :  { %v6861_v10 = vpop.trf.xlu0 }
 0x39a   :  { %8023 = vst [vmem:[%s12310_s3 + $0x1b0] sm:$0xff] %v6861_v10 }
 0x39b   :  { %6870 = vxpose.xlu1.b32.cont [5/16] %v6726_v55, 128 }
 0x39d   :  { %v6862_v1 = vpop.trf.xlu0 }
 0x39e   :  { %8025 = vst [vmem:[%s12310_s3 + $0x1c0] sm:$0xff] %v6862_v1 }
 0x39f   :  { %6871 = vxpose.xlu1.b32.cont [6/16] %v6727_v27, 128 }
 0x3a1   :  { %v6863_v12 = vpop.trf.xlu0 }
 0x3a2   :  { %8027 = vst [vmem:[%s12310_s3 + $0x1d0] sm:$0xff] %v6863_v12 }
 0x3a3   :  { %6872 = vxpose.xlu1.b32.cont [7/16] %v6728_v41, 128 }
 0x3a5   :  { %v6864_v22 = vpop.trf.xlu0 }
 0x3a6   :  { %8029 = vst [vmem:[%s12310_s3 + $0x1e0] sm:$0xff] %v6864_v22 }
 0x3a7   :  { %6873 = vxpose.xlu1.b32.cont [8/16] %v6729_v7, 128 }
 0x3a9   :  { %v6865_v20 = vpop.trf.xlu0 }
 0x3aa   :  { %8031 = vst [vmem:[%s12310_s3 + $0x1f0] sm:$0xff] %v6865_v20 }
 0x3ab   :  { %6874 = vxpose.xlu1.b32.cont [9/16] %v6730_v42, 128 }
 0x3af   :  { %6875 = vxpose.xlu1.b32.cont [10/16] %v6731_v31, 128 }
 0x3b3   :  { %6876 = vxpose.xlu1.b32.cont [11/16] %v6732_v21, 128 }
 0x3b7   :  { %6877 = vxpose.xlu1.b32.cont [12/16] %v6733_v34, 128 }
 0x3bb   :  { %6878 = vxpose.xlu1.b32.cont [13/16] %v6734_v26, 128 }
 0x3bf   :  { %6879 = vxpose.xlu1.b32.cont [14/16] %v6735_v44, 128 }
 0x3c3   :  { %6880 = vxpose.xlu1.b32.cont [15/16] %v6736_v40, 128 }
 0x3c7   :  { %6881 = vxpose.xlu1.b32.end [16/16] %v6737_v63, 128 }
 0x3cb   :  { %v6786_v45 = vpop.trf.xlu1 }
 0x3cc   :  { %6803 = vst [vmem:[%s12310_s3 + $0x8] sm:$0xff] %v6786_v45 }
 0x3cf   :  { %v6787_v58 = vpop.trf.xlu1 }
 0x3d0   :  { %6805 = vst [vmem:[%s12310_s3 + $0x18] sm:$0xff] %v6787_v58 }
 0x3d3   :  { %v6788_v49 = vpop.trf.xlu1 }
 0x3d4   :  { %6807 = vst [vmem:[%s12310_s3 + $0x28] sm:$0xff] %v6788_v49 }
 0x3d7   :  { %v6789_v52 = vpop.trf.xlu1 }
 0x3d8   :  { %6809 = vst [vmem:[%s12310_s3 + $0x38] sm:$0xff] %v6789_v52 }
 0x3db   :  { %v6790_v30 = vpop.trf.xlu1 }
 0x3dc   :  { %6811 = vst [vmem:[%s12310_s3 + $0x48] sm:$0xff] %v6790_v30 }
 0x3df   :  { %v6791_v47 = vpop.trf.xlu1 }
 0x3e0   :  { %6813 = vst [vmem:[%s12310_s3 + $0x58] sm:$0xff] %v6791_v47 }
 0x3e3   :  { %v6792_v37 = vpop.trf.xlu1 }
 0x3e4   :  { %6815 = vst [vmem:[%s12310_s3 + $0x68] sm:$0xff] %v6792_v37 }
 0x3e7   :  { %v6793_v62 = vpop.trf.xlu1 }
 0x3e8   :  { %6817 = vst [vmem:[%s12310_s3 + $0x78] sm:$0xff] %v6793_v62 }
 0x3eb   :  { %v6794_v54 = vpop.trf.xlu1 }
 0x3ec   :  { %6819 = vst [vmem:[%s12310_s3 + $0x88] sm:$0xff] %v6794_v54 }
 0x3ef   :  { %v6795_v57 = vpop.trf.xlu1 }
 0x3f0   :  { %6821 = vst [vmem:[%s12310_s3 + $0x98] sm:$0xff] %v6795_v57 }
 0x3f3   :  { %v6796_v14 = vpop.trf.xlu1 }
 0x3f4   :  { %6823 = vst [vmem:[%s12310_s3 + $0xa8] sm:$0xff] %v6796_v14 }
 0x3f7   :  { %v6797_v60 = vpop.trf.xlu1 }
 0x3f8   :  { %6825 = vst [vmem:[%s12310_s3 + $0xb8] sm:$0xff] %v6797_v60 }
 0x3fb   :  { %v6798_v43 = vpop.trf.xlu1 }
 0x3fc   :  { %6827 = vst [vmem:[%s12310_s3 + $0xc8] sm:$0xff] %v6798_v43 }
 0x3ff   :  { %v6799_v28 = vpop.trf.xlu1 }
 0x400   :  { %6829 = vst [vmem:[%s12310_s3 + $0xd8] sm:$0xff] %v6799_v28 }
 0x403   :  { %v6800_v13 = vpop.trf.xlu1 }
 0x404   :  { %6831 = vst [vmem:[%s12310_s3 + $0xe8] sm:$0xff] %v6800_v13 }
 0x407   :  { %v6801_v8 = vpop.trf.xlu1 }
 0x408   :  { %6833 = vst [vmem:[%s12310_s3 + $0xf8] sm:$0xff] %v6801_v8 }
 0x40b   :  { %v6882_v50 = vpop.trf.xlu1 }
 0x40c   :  { %8002 = vst [vmem:[%s12310_s3 + $0x108] sm:$0xff] %v6882_v50 }
 0x40f   :  { %v6883_v46 = vpop.trf.xlu1 }
 0x410   :  { %8004 = vst [vmem:[%s12310_s3 + $0x118] sm:$0xff] %v6883_v46 }
 0x413   :  { %v6884_v15 = vpop.trf.xlu1 }
 0x414   :  { %8006 = vst [vmem:[%s12310_s3 + $0x128] sm:$0xff] %v6884_v15 }
 0x417   :  { %v6885_v4 = vpop.trf.xlu1 }
 0x418   :  { %8008 = vst [vmem:[%s12310_s3 + $0x138] sm:$0xff] %v6885_v4 }
 0x41b   :  { %v6886_v17 = vpop.trf.xlu1 }
 0x41c   :  { %8010 = vst [vmem:[%s12310_s3 + $0x148] sm:$0xff] %v6886_v17 }
 0x41f   :  { %v6887_v18 = vpop.trf.xlu1 }
 0x420   :  { %8012 = vst [vmem:[%s12310_s3 + $0x158] sm:$0xff] %v6887_v18 }
 0x423   :  { %v6888_v5 = vpop.trf.xlu1 }
 0x424   :  { %8014 = vst [vmem:[%s12310_s3 + $0x168] sm:$0xff] %v6888_v5 }
 0x427   :  { %v6889_v56 = vpop.trf.xlu1 }
 0x428   :  { %8016 = vst [vmem:[%s12310_s3 + $0x178] sm:$0xff] %v6889_v56 }
 0x42b   :  { %v6890_v19 = vpop.trf.xlu1 }
 0x42c   :  { %8018 = vst [vmem:[%s12310_s3 + $0x188] sm:$0xff] %v6890_v19 }
 0x42f   :  { %v6891_v35 = vpop.trf.xlu1 }
 0x430   :  { %8020 = vst [vmem:[%s12310_s3 + $0x198] sm:$0xff] %v6891_v35 }
 0x433   :  { %v6892_v24 = vpop.trf.xlu1 }
 0x434   :  { %8022 = vst [vmem:[%s12310_s3 + $0x1a8] sm:$0xff] %v6892_v24 }
 0x437   :  { %v6893_v55 = vpop.trf.xlu1 }
 0x438   :  { %8024 = vst [vmem:[%s12310_s3 + $0x1b8] sm:$0xff] %v6893_v55 }
 0x43b   :  { %v6894_v39 = vpop.trf.xlu1 }
 0x43c   :  { %8026 = vst [vmem:[%s12310_s3 + $0x1c8] sm:$0xff] %v6894_v39 }
 0x43f   :  { %v6895_v29 = vpop.trf.xlu1 }
 0x440   :  { %8028 = vst [vmem:[%s12310_s3 + $0x1d8] sm:$0xff] %v6895_v29 }
 0x443   :  { %v6896_v23 = vpop.trf.xlu1 }
 0x444   :  { %8030 = vst [vmem:[%s12310_s3 + $0x1e8] sm:$0xff] %v6896_v23 }
 0x447   :  { %v6897_v27 = vpop.trf.xlu1 }
 0x448   :  { %8032 = vst [vmem:[%s12310_s3 + $0x1f8] sm:$0xff] %v6897_v27 }

</bundles_post_ra>
